<compile_context>
chip_gen: v5e
topology: v5e:2x2
jax: 0.10.0
libtpu: 0.0.40
codegen_flags: <defaults>
</compile_context>

<pallas_src>
import functools

import jax
import jax.numpy as jnp
from jax import lax
from jax.experimental import pallas as pl
from jax.experimental.pallas import tpu as pltpu


def gru_recurrence_kernel(gi_ref, h0_ref, whh_ref, bhh_ref, out_ref, *,
                          hidden_size, seq_len, unroll):
    """Fused sequential GRU recurrence (single invocation, no grid).

    gi_ref  : (T, B, 3H) precomputed input projections  x_t @ W_ih^T + b_ih
    h0_ref  : (B, H)     initial hidden state
    whh_ref : (H, 3H)    transposed hidden-to-hidden weights, gate order [r|z|n]
    bhh_ref : (1, 3H)    hidden-to-hidden bias
    out_ref : (T, B, H)  per-step hidden states (the GRU outputs)
    """
    H = hidden_size

    def step(t, h):
        gi = gi_ref[t]                                        # (B, 3H)
        gh = jnp.dot(h, whh_ref[...],
                     precision=jax.lax.Precision.HIGHEST,
                     preferred_element_type=jnp.float32) + bhh_ref[...]
        # Lane-aligned gate slices (H is a multiple of 128).
        r = jax.nn.sigmoid(gi[:, 0:H] + gh[:, 0:H])
        z = jax.nn.sigmoid(gi[:, H:2 * H] + gh[:, H:2 * H])
        n = jnp.tanh(gi[:, 2 * H:3 * H] + r * gh[:, 2 * H:3 * H])
        h_new = (1.0 - z) * n + z * h
        out_ref[t] = h_new.astype(out_ref.dtype)
        return h_new

    lax.fori_loop(0, seq_len, step, h0_ref[...].astype(jnp.float32),
                  unroll=unroll)


def _run_gru_recurrence(gi, h0, w_hh, b_hh):
    """gi: (T, B, 3H), h0: (B, H), w_hh: (H, 3H), b_hh: (1, 3H) -> (T, B, H)."""
    T, B, G = gi.shape
    H = h0.shape[-1]
    assert G == 3 * H

    kernel = functools.partial(gru_recurrence_kernel, hidden_size=H,
                               seq_len=T, unroll=bool(T <= 32))
    vmem = pl.BlockSpec(memory_space=pltpu.MemorySpace.VMEM)
    return pl.pallas_call(
        kernel,
        out_shape=jax.ShapeDtypeStruct((T, B, H), jnp.float32),
        in_specs=[vmem, vmem, vmem, vmem],
        out_specs=vmem,
    )(gi.astype(jnp.float32), h0.astype(jnp.float32),
      w_hh.astype(jnp.float32), b_hh.astype(jnp.float32))


def gru_encoder_sequence(tokens, hidden0, params):
    """Run the GRU encoder over a token sequence (batch = 1, PyTorch semantics).

    tokens:  int32 (T,) token ids
    hidden0: float32 (1, 1, H) initial hidden state
    returns (outputs, hidden) with shapes (T, 1, H) and (1, 1, H); outputs[t]
    equals GRUEncoder.forward applied step-by-step as in the seq2seq loop.
    """
    emb = params["embedding"]                      # (V, H)
    V, H = emb.shape
    T = int(tokens.shape[0])
    hp = jax.lax.Precision.HIGHEST

    toks = tokens.reshape(T).astype(jnp.int32)
    # Hoisted input projection: one (T,H)@(H,3H) matmul outside the recurrence.
    x = jnp.take(emb, toks, axis=0)                              # (T, H)
    gi = jnp.dot(x, params["w_ih"], precision=hp) + params["b_ih"]   # (T, 3H)
    gi = gi.reshape(T, 1, 3 * H)

    h0 = hidden0.reshape(1, H)
    outputs = _run_gru_recurrence(gi, h0, params["w_hh"], params["b_hh"])
    hidden = outputs[T - 1].reshape(1, 1, H)
    return outputs, hidden


def gru_encoder_sequence_batched(tokens_tb, hidden0_b, params):
    """Batched variant (perf optimization): tokens (T, B), hidden0 (1, B, H)."""
    emb = params["embedding"]
    V, H = emb.shape
    T, B = tokens_tb.shape
    hp = jax.lax.Precision.HIGHEST

    toks = tokens_tb.reshape(T * B).astype(jnp.int32)
    x = jnp.take(emb, toks, axis=0)                              # (T*B, H)
    gi = jnp.dot(x, params["w_ih"], precision=hp) + params["b_ih"]   # (T*B, 3H)
    gi = gi.reshape(T, B, 3 * H)

    h0 = hidden0_b.reshape(B, H)
    outputs = _run_gru_recurrence(gi, h0, params["w_hh"], params["b_hh"])
    hidden = outputs[T - 1].reshape(1, B, H)
    return outputs, hidden


def gru_encoder_forward(token, hidden, params):
    """Exact equivalent of GRUEncoder.forward(input, hidden) for one token.

    token: int32 (1,), hidden: float32 (1, 1, H); returns ((1,1,H), (1,1,H)).
    """
    outputs, hid = gru_encoder_sequence(token.reshape(1), hidden, params)
    return outputs[0:1], hid


def _reference_sequence(tokens_tb, h0_bh, params):
    """Pure-JAX reference (nn.Embedding + nn.GRU), batched: tokens (T,B), h0 (B,H)."""
    H = params["embedding"].shape[1]
    hp = jax.lax.Precision.HIGHEST
    h = h0_bh
    outs = []
    for t in range(tokens_tb.shape[0]):
        x = params["embedding"][tokens_tb[t]]                    # (B, H)
        gi = jnp.dot(x, params["w_ih"], precision=hp) + params["b_ih"]
        gh = jnp.dot(h, params["w_hh"], precision=hp) + params["b_hh"]
        r = jax.nn.sigmoid(gi[:, :H] + gh[:, :H])
        z = jax.nn.sigmoid(gi[:, H:2 * H] + gh[:, H:2 * H])
        n = jnp.tanh(gi[:, 2 * H:] + r * gh[:, 2 * H:])
        h = (1.0 - z) * n + z * h
        outs.append(h)
    return jnp.stack(outs, axis=0), h                            # (T,B,H), (B,H)


def init_params(key, input_size, hidden_size):
    V, H = input_size, hidden_size
    k_emb, k_wih, k_whh, k_bih, k_bhh = jax.random.split(key, 5)
    bound = 1.0 / jnp.sqrt(jnp.float32(H))
    return {
        # nn.Embedding default init ~ N(0, 1)
        "embedding": jax.random.normal(k_emb, (V, H), jnp.float32),
        # nn.GRU params ~ U(-1/sqrt(H), 1/sqrt(H)); stored transposed (H, 3H)
        "w_ih": jax.random.uniform(k_wih, (H, 3 * H), jnp.float32, -bound, bound),
        "w_hh": jax.random.uniform(k_whh, (H, 3 * H), jnp.float32, -bound, bound),
        "b_ih": jax.random.uniform(k_bih, (1, 3 * H), jnp.float32, -bound, bound),
        "b_hh": jax.random.uniform(k_bhh, (1, 3 * H), jnp.float32, -bound, bound),
    }


if __name__ == "__main__":
    VOCAB = 16          # input_size
    HIDDEN = 128        # hidden_size — multiple of 128 for lane-dense layout
    SEQ = 8             # encoder steps fused into one kernel invocation
    BATCH = 8           # batched demo (fills vreg sublanes / MXU rows)

    key = jax.random.PRNGKey(0)
    params = init_params(key, VOCAB, HIDDEN)

    tokens = jax.random.randint(jax.random.PRNGKey(1), (SEQ,), 0, VOCAB, jnp.int32)
    hidden0 = jnp.zeros((1, 1, HIDDEN), jnp.float32)    # initHidden()

    # --- Fused sequence encoder (batch = 1, PyTorch loop semantics). ---
    outs, hid = gru_encoder_sequence(tokens, hidden0, params)
    outs = jax.block_until_ready(outs)
    hid = jax.block_until_ready(hid)
    ref_outs, ref_h = _reference_sequence(tokens.reshape(SEQ, 1),
                                          hidden0.reshape(1, HIDDEN), params)
    assert outs.shape == (SEQ, 1, HIDDEN) and hid.shape == (1, 1, HIDDEN)
    assert jnp.allclose(outs, ref_outs, atol=1e-3, rtol=1e-3), "sequence output mismatch"
    assert jnp.allclose(hid, ref_h.reshape(1, 1, HIDDEN), atol=1e-3, rtol=1e-3), \
        "final hidden mismatch"

    # --- Original single-step semantics: GRUEncoder.forward(input, hidden). ---
    out1, hid1 = gru_encoder_forward(tokens[:1], hidden0, params)
    out1 = jax.block_until_ready(out1)
    hid1 = jax.block_until_ready(hid1)
    ref_o1, ref_h1 = _reference_sequence(tokens[:1].reshape(1, 1),
                                         hidden0.reshape(1, HIDDEN), params)
    assert out1.shape == (1, 1, HIDDEN) and hid1.shape == (1, 1, HIDDEN)
    assert jnp.allclose(out1, ref_o1, atol=1e-3, rtol=1e-3), "single-step output mismatch"
    assert jnp.allclose(hid1, ref_h1.reshape(1, 1, HIDDEN), atol=1e-3, rtol=1e-3), \
        "single-step hidden mismatch"

    # --- Batched path (performance generalization; same kernel, B > 1). ---
    toks_b = jax.random.randint(jax.random.PRNGKey(2), (SEQ, BATCH), 0, VOCAB, jnp.int32)
    h0_b = jnp.zeros((1, BATCH, HIDDEN), jnp.float32)
    outs_b, hid_b = gru_encoder_sequence_batched(toks_b, h0_b, params)
    outs_b = jax.block_until_ready(outs_b)
    hid_b = jax.block_until_ready(hid_b)
    ref_ob, ref_hb = _reference_sequence(toks_b, h0_b.reshape(BATCH, HIDDEN), params)
    assert outs_b.shape == (SEQ, BATCH, HIDDEN) and hid_b.shape == (1, BATCH, HIDDEN)
    assert jnp.allclose(outs_b, ref_ob, atol=1e-3, rtol=1e-3), "batched output mismatch"
    assert jnp.allclose(hid_b.reshape(BATCH, HIDDEN), ref_hb, atol=1e-3, rtol=1e-3), \
        "batched hidden mismatch"

    print("KERNEL_OK")
</pallas_src>

<mosaic_0001>
module attributes {stable_mosaic.version = 11 : i64} {
  func.func @gru_recurrence_kernel(%arg0: memref<8x1x384xf32, #tpu.memory_space<vmem>>, %arg1: memref<1x128xf32, #tpu.memory_space<vmem>>, %arg2: memref<128x384xf32, #tpu.memory_space<vmem>>, %arg3: memref<1x384xf32, #tpu.memory_space<vmem>>, %arg4: memref<8x1x128xf32, #tpu.memory_space<vmem>>) attributes {dimension_semantics = [], scalar_prefetch = 0 : i64, scratch_operands = 0 : i64, tpu.core_type = #tpu.core_type<tc>} {
    %c0 = arith.constant 0 : index
    %c0_0 = arith.constant 0 : index
    %0 = vector.load %arg1[%c0, %c0_0] : memref<1x128xf32, #tpu.memory_space<vmem>>, vector<1x128xf32>
    %c0_i32 = arith.constant 0 : i32
    %1 = arith.index_cast %c0_i32 : i32 to index
    %c0_1 = arith.constant 0 : index
    %c0_2 = arith.constant 0 : index
    %2 = vector.load %arg0[%1, %c0_1, %c0_2] : memref<8x1x384xf32, #tpu.memory_space<vmem>>, vector<1x1x384xf32>
    %3 = vector.shape_cast %2 : vector<1x1x384xf32> to vector<1x384xf32>
    %c0_3 = arith.constant 0 : index
    %c0_4 = arith.constant 0 : index
    %4 = vector.load %arg2[%c0_3, %c0_4] : memref<128x384xf32, #tpu.memory_space<vmem>>, vector<128x384xf32>
    %cst = arith.constant dense<0.000000e+00> : vector<1x384xf32>
    %5 = tpu.matmul %0, %4, %cst {dimension_numbers = #tpu.dot_dimension_numbers<[1], [0], [0], [1], [0, 0, 1, 1], [], []>, precision = #tpu.contract_precision<fp32>} : vector<1x128xf32>, vector<128x384xf32>, vector<1x384xf32> -> vector<1x384xf32>
    %c0_5 = arith.constant 0 : index
    %c0_6 = arith.constant 0 : index
    %6 = vector.load %arg3[%c0_5, %c0_6] : memref<1x384xf32, #tpu.memory_space<vmem>>, vector<1x384xf32>
    %7 = arith.addf %5, %6 : vector<1x384xf32>
    %8 = vector.extract_strided_slice %3 {offsets = [0, 0], sizes = [1, 128], strides = [1, 1]} : vector<1x384xf32> to vector<1x128xf32>
    %9 = vector.extract_strided_slice %7 {offsets = [0, 0], sizes = [1, 128], strides = [1, 1]} : vector<1x384xf32> to vector<1x128xf32>
    %10 = arith.addf %8, %9 : vector<1x128xf32>
    %11 = arith.negf %10 : vector<1x128xf32>
    %12 = math.exp %11 : vector<1x128xf32>
    %cst_7 = arith.constant 1.000000e+00 : f32
    %13 = vector.broadcast %cst_7 : f32 to vector<1x128xf32>
    %14 = arith.addf %13, %12 : vector<1x128xf32>
    %15 = arith.divf %13, %14 : vector<1x128xf32>
    %16 = vector.extract_strided_slice %3 {offsets = [0, 128], sizes = [1, 128], strides = [1, 1]} : vector<1x384xf32> to vector<1x128xf32>
    %17 = vector.extract_strided_slice %7 {offsets = [0, 128], sizes = [1, 128], strides = [1, 1]} : vector<1x384xf32> to vector<1x128xf32>
    %18 = arith.addf %16, %17 : vector<1x128xf32>
    %19 = arith.negf %18 : vector<1x128xf32>
    %20 = math.exp %19 : vector<1x128xf32>
    %cst_8 = arith.constant 1.000000e+00 : f32
    %21 = vector.broadcast %cst_8 : f32 to vector<1x128xf32>
    %22 = arith.addf %21, %20 : vector<1x128xf32>
    %23 = arith.divf %21, %22 : vector<1x128xf32>
    %24 = vector.extract_strided_slice %3 {offsets = [0, 256], sizes = [1, 128], strides = [1, 1]} : vector<1x384xf32> to vector<1x128xf32>
    %25 = vector.extract_strided_slice %7 {offsets = [0, 256], sizes = [1, 128], strides = [1, 1]} : vector<1x384xf32> to vector<1x128xf32>
    %26 = arith.mulf %15, %25 : vector<1x128xf32>
    %27 = arith.addf %24, %26 : vector<1x128xf32>
    %28 = math.tanh %27 : vector<1x128xf32>
    %cst_9 = arith.constant 1.000000e+00 : f32
    %29 = vector.broadcast %cst_9 : f32 to vector<1x128xf32>
    %30 = arith.subf %29, %23 : vector<1x128xf32>
    %31 = arith.mulf %30, %28 : vector<1x128xf32>
    %32 = arith.mulf %23, %0 : vector<1x128xf32>
    %33 = arith.addf %31, %32 : vector<1x128xf32>
    %34 = arith.index_cast %c0_i32 : i32 to index
    %c0_10 = arith.constant 0 : index
    %c0_11 = arith.constant 0 : index
    %35 = vector.load %arg4[%34, %c0_10, %c0_11] : memref<8x1x128xf32, #tpu.memory_space<vmem>>, vector<1x1x128xf32>
    %36 = vector.shape_cast %35 : vector<1x1x128xf32> to vector<1x128xf32>
    %37 = vector.shape_cast %33 : vector<1x128xf32> to vector<1x1x128xf32>
    tpu.vector_store %arg4[%34, %c0_10, %c0_11], %37 {strides = array<i32>} : memref<8x1x128xf32, #tpu.memory_space<vmem>>, vector<1x1x128xf32>,
    %c1_i32 = arith.constant 1 : i32
    %38 = arith.index_cast %c1_i32 : i32 to index
    %c0_12 = arith.constant 0 : index
    %c0_13 = arith.constant 0 : index
    %39 = vector.load %arg0[%38, %c0_12, %c0_13] : memref<8x1x384xf32, #tpu.memory_space<vmem>>, vector<1x1x384xf32>
    %40 = vector.shape_cast %39 : vector<1x1x384xf32> to vector<1x384xf32>
    %c0_14 = arith.constant 0 : index
    %c0_15 = arith.constant 0 : index
    %41 = vector.load %arg2[%c0_14, %c0_15] : memref<128x384xf32, #tpu.memory_space<vmem>>, vector<128x384xf32>
    %cst_16 = arith.constant dense<0.000000e+00> : vector<1x384xf32>
    %42 = tpu.matmul %33, %41, %cst_16 {dimension_numbers = #tpu.dot_dimension_numbers<[1], [0], [0], [1], [0, 0, 1, 1], [], []>, precision = #tpu.contract_precision<fp32>} : vector<1x128xf32>, vector<128x384xf32>, vector<1x384xf32> -> vector<1x384xf32>
    %c0_17 = arith.constant 0 : index
    %c0_18 = arith.constant 0 : index
    %43 = vector.load %arg3[%c0_17, %c0_18] : memref<1x384xf32, #tpu.memory_space<vmem>>, vector<1x384xf32>
    %44 = arith.addf %42, %43 : vector<1x384xf32>
    %45 = vector.extract_strided_slice %40 {offsets = [0, 0], sizes = [1, 128], strides = [1, 1]} : vector<1x384xf32> to vector<1x128xf32>
    %46 = vector.extract_strided_slice %44 {offsets = [0, 0], sizes = [1, 128], strides = [1, 1]} : vector<1x384xf32> to vector<1x128xf32>
    %47 = arith.addf %45, %46 : vector<1x128xf32>
    %48 = arith.negf %47 : vector<1x128xf32>
    %49 = math.exp %48 : vector<1x128xf32>
    %cst_19 = arith.constant 1.000000e+00 : f32
    %50 = vector.broadcast %cst_19 : f32 to vector<1x128xf32>
    %51 = arith.addf %50, %49 : vector<1x128xf32>
    %52 = arith.divf %50, %51 : vector<1x128xf32>
    %53 = vector.extract_strided_slice %40 {offsets = [0, 128], sizes = [1, 128], strides = [1, 1]} : vector<1x384xf32> to vector<1x128xf32>
    %54 = vector.extract_strided_slice %44 {offsets = [0, 128], sizes = [1, 128], strides = [1, 1]} : vector<1x384xf32> to vector<1x128xf32>
    %55 = arith.addf %53, %54 : vector<1x128xf32>
    %56 = arith.negf %55 : vector<1x128xf32>
    %57 = math.exp %56 : vector<1x128xf32>
    %cst_20 = arith.constant 1.000000e+00 : f32
    %58 = vector.broadcast %cst_20 : f32 to vector<1x128xf32>
    %59 = arith.addf %58, %57 : vector<1x128xf32>
    %60 = arith.divf %58, %59 : vector<1x128xf32>
    %61 = vector.extract_strided_slice %40 {offsets = [0, 256], sizes = [1, 128], strides = [1, 1]} : vector<1x384xf32> to vector<1x128xf32>
    %62 = vector.extract_strided_slice %44 {offsets = [0, 256], sizes = [1, 128], strides = [1, 1]} : vector<1x384xf32> to vector<1x128xf32>
    %63 = arith.mulf %52, %62 : vector<1x128xf32>
    %64 = arith.addf %61, %63 : vector<1x128xf32>
    %65 = math.tanh %64 : vector<1x128xf32>
    %cst_21 = arith.constant 1.000000e+00 : f32
    %66 = vector.broadcast %cst_21 : f32 to vector<1x128xf32>
    %67 = arith.subf %66, %60 : vector<1x128xf32>
    %68 = arith.mulf %67, %65 : vector<1x128xf32>
    %69 = arith.mulf %60, %33 : vector<1x128xf32>
    %70 = arith.addf %68, %69 : vector<1x128xf32>
    %71 = arith.index_cast %c1_i32 : i32 to index
    %c0_22 = arith.constant 0 : index
    %c0_23 = arith.constant 0 : index
    %72 = vector.load %arg4[%71, %c0_22, %c0_23] : memref<8x1x128xf32, #tpu.memory_space<vmem>>, vector<1x1x128xf32>
    %73 = vector.shape_cast %72 : vector<1x1x128xf32> to vector<1x128xf32>
    %74 = vector.shape_cast %70 : vector<1x128xf32> to vector<1x1x128xf32>
    tpu.vector_store %arg4[%71, %c0_22, %c0_23], %74 {strides = array<i32>} : memref<8x1x128xf32, #tpu.memory_space<vmem>>, vector<1x1x128xf32>,
    %c2_i32 = arith.constant 2 : i32
    %75 = arith.index_cast %c2_i32 : i32 to index
    %c0_24 = arith.constant 0 : index
    %c0_25 = arith.constant 0 : index
    %76 = vector.load %arg0[%75, %c0_24, %c0_25] : memref<8x1x384xf32, #tpu.memory_space<vmem>>, vector<1x1x384xf32>
    %77 = vector.shape_cast %76 : vector<1x1x384xf32> to vector<1x384xf32>
    %c0_26 = arith.constant 0 : index
    %c0_27 = arith.constant 0 : index
    %78 = vector.load %arg2[%c0_26, %c0_27] : memref<128x384xf32, #tpu.memory_space<vmem>>, vector<128x384xf32>
    %cst_28 = arith.constant dense<0.000000e+00> : vector<1x384xf32>
    %79 = tpu.matmul %70, %78, %cst_28 {dimension_numbers = #tpu.dot_dimension_numbers<[1], [0], [0], [1], [0, 0, 1, 1], [], []>, precision = #tpu.contract_precision<fp32>} : vector<1x128xf32>, vector<128x384xf32>, vector<1x384xf32> -> vector<1x384xf32>
    %c0_29 = arith.constant 0 : index
    %c0_30 = arith.constant 0 : index
    %80 = vector.load %arg3[%c0_29, %c0_30] : memref<1x384xf32, #tpu.memory_space<vmem>>, vector<1x384xf32>
    %81 = arith.addf %79, %80 : vector<1x384xf32>
    %82 = vector.extract_strided_slice %77 {offsets = [0, 0], sizes = [1, 128], strides = [1, 1]} : vector<1x384xf32> to vector<1x128xf32>
    %83 = vector.extract_strided_slice %81 {offsets = [0, 0], sizes = [1, 128], strides = [1, 1]} : vector<1x384xf32> to vector<1x128xf32>
    %84 = arith.addf %82, %83 : vector<1x128xf32>
    %85 = arith.negf %84 : vector<1x128xf32>
    %86 = math.exp %85 : vector<1x128xf32>
    %cst_31 = arith.constant 1.000000e+00 : f32
    %87 = vector.broadcast %cst_31 : f32 to vector<1x128xf32>
    %88 = arith.addf %87, %86 : vector<1x128xf32>
    %89 = arith.divf %87, %88 : vector<1x128xf32>
    %90 = vector.extract_strided_slice %77 {offsets = [0, 128], sizes = [1, 128], strides = [1, 1]} : vector<1x384xf32> to vector<1x128xf32>
    %91 = vector.extract_strided_slice %81 {offsets = [0, 128], sizes = [1, 128], strides = [1, 1]} : vector<1x384xf32> to vector<1x128xf32>
    %92 = arith.addf %90, %91 : vector<1x128xf32>
    %93 = arith.negf %92 : vector<1x128xf32>
    %94 = math.exp %93 : vector<1x128xf32>
    %cst_32 = arith.constant 1.000000e+00 : f32
    %95 = vector.broadcast %cst_32 : f32 to vector<1x128xf32>
    %96 = arith.addf %95, %94 : vector<1x128xf32>
    %97 = arith.divf %95, %96 : vector<1x128xf32>
    %98 = vector.extract_strided_slice %77 {offsets = [0, 256], sizes = [1, 128], strides = [1, 1]} : vector<1x384xf32> to vector<1x128xf32>
    %99 = vector.extract_strided_slice %81 {offsets = [0, 256], sizes = [1, 128], strides = [1, 1]} : vector<1x384xf32> to vector<1x128xf32>
    %100 = arith.mulf %89, %99 : vector<1x128xf32>
    %101 = arith.addf %98, %100 : vector<1x128xf32>
    %102 = math.tanh %101 : vector<1x128xf32>
    %cst_33 = arith.constant 1.000000e+00 : f32
    %103 = vector.broadcast %cst_33 : f32 to vector<1x128xf32>
    %104 = arith.subf %103, %97 : vector<1x128xf32>
    %105 = arith.mulf %104, %102 : vector<1x128xf32>
    %106 = arith.mulf %97, %70 : vector<1x128xf32>
    %107 = arith.addf %105, %106 : vector<1x128xf32>
    %108 = arith.index_cast %c2_i32 : i32 to index
    %c0_34 = arith.constant 0 : index
    %c0_35 = arith.constant 0 : index
    %109 = vector.load %arg4[%108, %c0_34, %c0_35] : memref<8x1x128xf32, #tpu.memory_space<vmem>>, vector<1x1x128xf32>
    %110 = vector.shape_cast %109 : vector<1x1x128xf32> to vector<1x128xf32>
    %111 = vector.shape_cast %107 : vector<1x128xf32> to vector<1x1x128xf32>
    tpu.vector_store %arg4[%108, %c0_34, %c0_35], %111 {strides = array<i32>} : memref<8x1x128xf32, #tpu.memory_space<vmem>>, vector<1x1x128xf32>,
    %c3_i32 = arith.constant 3 : i32
    %112 = arith.index_cast %c3_i32 : i32 to index
    %c0_36 = arith.constant 0 : index
    %c0_37 = arith.constant 0 : index
    %113 = vector.load %arg0[%112, %c0_36, %c0_37] : memref<8x1x384xf32, #tpu.memory_space<vmem>>, vector<1x1x384xf32>
    %114 = vector.shape_cast %113 : vector<1x1x384xf32> to vector<1x384xf32>
    %c0_38 = arith.constant 0 : index
    %c0_39 = arith.constant 0 : index
    %115 = vector.load %arg2[%c0_38, %c0_39] : memref<128x384xf32, #tpu.memory_space<vmem>>, vector<128x384xf32>
    %cst_40 = arith.constant dense<0.000000e+00> : vector<1x384xf32>
    %116 = tpu.matmul %107, %115, %cst_40 {dimension_numbers = #tpu.dot_dimension_numbers<[1], [0], [0], [1], [0, 0, 1, 1], [], []>, precision = #tpu.contract_precision<fp32>} : vector<1x128xf32>, vector<128x384xf32>, vector<1x384xf32> -> vector<1x384xf32>
    %c0_41 = arith.constant 0 : index
    %c0_42 = arith.constant 0 : index
    %117 = vector.load %arg3[%c0_41, %c0_42] : memref<1x384xf32, #tpu.memory_space<vmem>>, vector<1x384xf32>
    %118 = arith.addf %116, %117 : vector<1x384xf32>
    %119 = vector.extract_strided_slice %114 {offsets = [0, 0], sizes = [1, 128], strides = [1, 1]} : vector<1x384xf32> to vector<1x128xf32>
    %120 = vector.extract_strided_slice %118 {offsets = [0, 0], sizes = [1, 128], strides = [1, 1]} : vector<1x384xf32> to vector<1x128xf32>
    %121 = arith.addf %119, %120 : vector<1x128xf32>
    %122 = arith.negf %121 : vector<1x128xf32>
    %123 = math.exp %122 : vector<1x128xf32>
    %cst_43 = arith.constant 1.000000e+00 : f32
    %124 = vector.broadcast %cst_43 : f32 to vector<1x128xf32>
    %125 = arith.addf %124, %123 : vector<1x128xf32>
    %126 = arith.divf %124, %125 : vector<1x128xf32>
    %127 = vector.extract_strided_slice %114 {offsets = [0, 128], sizes = [1, 128], strides = [1, 1]} : vector<1x384xf32> to vector<1x128xf32>
    %128 = vector.extract_strided_slice %118 {offsets = [0, 128], sizes = [1, 128], strides = [1, 1]} : vector<1x384xf32> to vector<1x128xf32>
    %129 = arith.addf %127, %128 : vector<1x128xf32>
    %130 = arith.negf %129 : vector<1x128xf32>
    %131 = math.exp %130 : vector<1x128xf32>
    %cst_44 = arith.constant 1.000000e+00 : f32
    %132 = vector.broadcast %cst_44 : f32 to vector<1x128xf32>
    %133 = arith.addf %132, %131 : vector<1x128xf32>
    %134 = arith.divf %132, %133 : vector<1x128xf32>
    %135 = vector.extract_strided_slice %114 {offsets = [0, 256], sizes = [1, 128], strides = [1, 1]} : vector<1x384xf32> to vector<1x128xf32>
    %136 = vector.extract_strided_slice %118 {offsets = [0, 256], sizes = [1, 128], strides = [1, 1]} : vector<1x384xf32> to vector<1x128xf32>
    %137 = arith.mulf %126, %136 : vector<1x128xf32>
    %138 = arith.addf %135, %137 : vector<1x128xf32>
    %139 = math.tanh %138 : vector<1x128xf32>
    %cst_45 = arith.constant 1.000000e+00 : f32
    %140 = vector.broadcast %cst_45 : f32 to vector<1x128xf32>
    %141 = arith.subf %140, %134 : vector<1x128xf32>
    %142 = arith.mulf %141, %139 : vector<1x128xf32>
    %143 = arith.mulf %134, %107 : vector<1x128xf32>
    %144 = arith.addf %142, %143 : vector<1x128xf32>
    %145 = arith.index_cast %c3_i32 : i32 to index
    %c0_46 = arith.constant 0 : index
    %c0_47 = arith.constant 0 : index
    %146 = vector.load %arg4[%145, %c0_46, %c0_47] : memref<8x1x128xf32, #tpu.memory_space<vmem>>, vector<1x1x128xf32>
    %147 = vector.shape_cast %146 : vector<1x1x128xf32> to vector<1x128xf32>
    %148 = vector.shape_cast %144 : vector<1x128xf32> to vector<1x1x128xf32>
    tpu.vector_store %arg4[%145, %c0_46, %c0_47], %148 {strides = array<i32>} : memref<8x1x128xf32, #tpu.memory_space<vmem>>, vector<1x1x128xf32>,
    %c4_i32 = arith.constant 4 : i32
    %149 = arith.index_cast %c4_i32 : i32 to index
    %c0_48 = arith.constant 0 : index
    %c0_49 = arith.constant 0 : index
    %150 = vector.load %arg0[%149, %c0_48, %c0_49] : memref<8x1x384xf32, #tpu.memory_space<vmem>>, vector<1x1x384xf32>
    %151 = vector.shape_cast %150 : vector<1x1x384xf32> to vector<1x384xf32>
    %c0_50 = arith.constant 0 : index
    %c0_51 = arith.constant 0 : index
    %152 = vector.load %arg2[%c0_50, %c0_51] : memref<128x384xf32, #tpu.memory_space<vmem>>, vector<128x384xf32>
    %cst_52 = arith.constant dense<0.000000e+00> : vector<1x384xf32>
    %153 = tpu.matmul %144, %152, %cst_52 {dimension_numbers = #tpu.dot_dimension_numbers<[1], [0], [0], [1], [0, 0, 1, 1], [], []>, precision = #tpu.contract_precision<fp32>} : vector<1x128xf32>, vector<128x384xf32>, vector<1x384xf32> -> vector<1x384xf32>
    %c0_53 = arith.constant 0 : index
    %c0_54 = arith.constant 0 : index
    %154 = vector.load %arg3[%c0_53, %c0_54] : memref<1x384xf32, #tpu.memory_space<vmem>>, vector<1x384xf32>
    %155 = arith.addf %153, %154 : vector<1x384xf32>
    %156 = vector.extract_strided_slice %151 {offsets = [0, 0], sizes = [1, 128], strides = [1, 1]} : vector<1x384xf32> to vector<1x128xf32>
    %157 = vector.extract_strided_slice %155 {offsets = [0, 0], sizes = [1, 128], strides = [1, 1]} : vector<1x384xf32> to vector<1x128xf32>
    %158 = arith.addf %156, %157 : vector<1x128xf32>
    %159 = arith.negf %158 : vector<1x128xf32>
    %160 = math.exp %159 : vector<1x128xf32>
    %cst_55 = arith.constant 1.000000e+00 : f32
    %161 = vector.broadcast %cst_55 : f32 to vector<1x128xf32>
    %162 = arith.addf %161, %160 : vector<1x128xf32>
    %163 = arith.divf %161, %162 : vector<1x128xf32>
    %164 = vector.extract_strided_slice %151 {offsets = [0, 128], sizes = [1, 128], strides = [1, 1]} : vector<1x384xf32> to vector<1x128xf32>
    %165 = vector.extract_strided_slice %155 {offsets = [0, 128], sizes = [1, 128], strides = [1, 1]} : vector<1x384xf32> to vector<1x128xf32>
    %166 = arith.addf %164, %165 : vector<1x128xf32>
    %167 = arith.negf %166 : vector<1x128xf32>
    %168 = math.exp %167 : vector<1x128xf32>
    %cst_56 = arith.constant 1.000000e+00 : f32
    %169 = vector.broadcast %cst_56 : f32 to vector<1x128xf32>
    %170 = arith.addf %169, %168 : vector<1x128xf32>
    %171 = arith.divf %169, %170 : vector<1x128xf32>
    %172 = vector.extract_strided_slice %151 {offsets = [0, 256], sizes = [1, 128], strides = [1, 1]} : vector<1x384xf32> to vector<1x128xf32>
    %173 = vector.extract_strided_slice %155 {offsets = [0, 256], sizes = [1, 128], strides = [1, 1]} : vector<1x384xf32> to vector<1x128xf32>
    %174 = arith.mulf %163, %173 : vector<1x128xf32>
    %175 = arith.addf %172, %174 : vector<1x128xf32>
    %176 = math.tanh %175 : vector<1x128xf32>
    %cst_57 = arith.constant 1.000000e+00 : f32
    %177 = vector.broadcast %cst_57 : f32 to vector<1x128xf32>
    %178 = arith.subf %177, %171 : vector<1x128xf32>
    %179 = arith.mulf %178, %176 : vector<1x128xf32>
    %180 = arith.mulf %171, %144 : vector<1x128xf32>
    %181 = arith.addf %179, %180 : vector<1x128xf32>
    %182 = arith.index_cast %c4_i32 : i32 to index
    %c0_58 = arith.constant 0 : index
    %c0_59 = arith.constant 0 : index
    %183 = vector.load %arg4[%182, %c0_58, %c0_59] : memref<8x1x128xf32, #tpu.memory_space<vmem>>, vector<1x1x128xf32>
    %184 = vector.shape_cast %183 : vector<1x1x128xf32> to vector<1x128xf32>
    %185 = vector.shape_cast %181 : vector<1x128xf32> to vector<1x1x128xf32>
    tpu.vector_store %arg4[%182, %c0_58, %c0_59], %185 {strides = array<i32>} : memref<8x1x128xf32, #tpu.memory_space<vmem>>, vector<1x1x128xf32>,
    %c5_i32 = arith.constant 5 : i32
    %186 = arith.index_cast %c5_i32 : i32 to index
    %c0_60 = arith.constant 0 : index
    %c0_61 = arith.constant 0 : index
    %187 = vector.load %arg0[%186, %c0_60, %c0_61] : memref<8x1x384xf32, #tpu.memory_space<vmem>>, vector<1x1x384xf32>
    %188 = vector.shape_cast %187 : vector<1x1x384xf32> to vector<1x384xf32>
    %c0_62 = arith.constant 0 : index
    %c0_63 = arith.constant 0 : index
    %189 = vector.load %arg2[%c0_62, %c0_63] : memref<128x384xf32, #tpu.memory_space<vmem>>, vector<128x384xf32>
    %cst_64 = arith.constant dense<0.000000e+00> : vector<1x384xf32>
    %190 = tpu.matmul %181, %189, %cst_64 {dimension_numbers = #tpu.dot_dimension_numbers<[1], [0], [0], [1], [0, 0, 1, 1], [], []>, precision = #tpu.contract_precision<fp32>} : vector<1x128xf32>, vector<128x384xf32>, vector<1x384xf32> -> vector<1x384xf32>
    %c0_65 = arith.constant 0 : index
    %c0_66 = arith.constant 0 : index
    %191 = vector.load %arg3[%c0_65, %c0_66] : memref<1x384xf32, #tpu.memory_space<vmem>>, vector<1x384xf32>
    %192 = arith.addf %190, %191 : vector<1x384xf32>
    %193 = vector.extract_strided_slice %188 {offsets = [0, 0], sizes = [1, 128], strides = [1, 1]} : vector<1x384xf32> to vector<1x128xf32>
    %194 = vector.extract_strided_slice %192 {offsets = [0, 0], sizes = [1, 128], strides = [1, 1]} : vector<1x384xf32> to vector<1x128xf32>
    %195 = arith.addf %193, %194 : vector<1x128xf32>
    %196 = arith.negf %195 : vector<1x128xf32>
    %197 = math.exp %196 : vector<1x128xf32>
    %cst_67 = arith.constant 1.000000e+00 : f32
    %198 = vector.broadcast %cst_67 : f32 to vector<1x128xf32>
    %199 = arith.addf %198, %197 : vector<1x128xf32>
    %200 = arith.divf %198, %199 : vector<1x128xf32>
    %201 = vector.extract_strided_slice %188 {offsets = [0, 128], sizes = [1, 128], strides = [1, 1]} : vector<1x384xf32> to vector<1x128xf32>
    %202 = vector.extract_strided_slice %192 {offsets = [0, 128], sizes = [1, 128], strides = [1, 1]} : vector<1x384xf32> to vector<1x128xf32>
    %203 = arith.addf %201, %202 : vector<1x128xf32>
    %204 = arith.negf %203 : vector<1x128xf32>
    %205 = math.exp %204 : vector<1x128xf32>
    %cst_68 = arith.constant 1.000000e+00 : f32
    %206 = vector.broadcast %cst_68 : f32 to vector<1x128xf32>
    %207 = arith.addf %206, %205 : vector<1x128xf32>
    %208 = arith.divf %206, %207 : vector<1x128xf32>
    %209 = vector.extract_strided_slice %188 {offsets = [0, 256], sizes = [1, 128], strides = [1, 1]} : vector<1x384xf32> to vector<1x128xf32>
    %210 = vector.extract_strided_slice %192 {offsets = [0, 256], sizes = [1, 128], strides = [1, 1]} : vector<1x384xf32> to vector<1x128xf32>
    %211 = arith.mulf %200, %210 : vector<1x128xf32>
    %212 = arith.addf %209, %211 : vector<1x128xf32>
    %213 = math.tanh %212 : vector<1x128xf32>
    %cst_69 = arith.constant 1.000000e+00 : f32
    %214 = vector.broadcast %cst_69 : f32 to vector<1x128xf32>
    %215 = arith.subf %214, %208 : vector<1x128xf32>
    %216 = arith.mulf %215, %213 : vector<1x128xf32>
    %217 = arith.mulf %208, %181 : vector<1x128xf32>
    %218 = arith.addf %216, %217 : vector<1x128xf32>
    %219 = arith.index_cast %c5_i32 : i32 to index
    %c0_70 = arith.constant 0 : index
    %c0_71 = arith.constant 0 : index
    %220 = vector.load %arg4[%219, %c0_70, %c0_71] : memref<8x1x128xf32, #tpu.memory_space<vmem>>, vector<1x1x128xf32>
    %221 = vector.shape_cast %220 : vector<1x1x128xf32> to vector<1x128xf32>
    %222 = vector.shape_cast %218 : vector<1x128xf32> to vector<1x1x128xf32>
    tpu.vector_store %arg4[%219, %c0_70, %c0_71], %222 {strides = array<i32>} : memref<8x1x128xf32, #tpu.memory_space<vmem>>, vector<1x1x128xf32>,
    %c6_i32 = arith.constant 6 : i32
    %223 = arith.index_cast %c6_i32 : i32 to index
    %c0_72 = arith.constant 0 : index
    %c0_73 = arith.constant 0 : index
    %224 = vector.load %arg0[%223, %c0_72, %c0_73] : memref<8x1x384xf32, #tpu.memory_space<vmem>>, vector<1x1x384xf32>
    %225 = vector.shape_cast %224 : vector<1x1x384xf32> to vector<1x384xf32>
    %c0_74 = arith.constant 0 : index
    %c0_75 = arith.constant 0 : index
    %226 = vector.load %arg2[%c0_74, %c0_75] : memref<128x384xf32, #tpu.memory_space<vmem>>, vector<128x384xf32>
    %cst_76 = arith.constant dense<0.000000e+00> : vector<1x384xf32>
    %227 = tpu.matmul %218, %226, %cst_76 {dimension_numbers = #tpu.dot_dimension_numbers<[1], [0], [0], [1], [0, 0, 1, 1], [], []>, precision = #tpu.contract_precision<fp32>} : vector<1x128xf32>, vector<128x384xf32>, vector<1x384xf32> -> vector<1x384xf32>
    %c0_77 = arith.constant 0 : index
    %c0_78 = arith.constant 0 : index
    %228 = vector.load %arg3[%c0_77, %c0_78] : memref<1x384xf32, #tpu.memory_space<vmem>>, vector<1x384xf32>
    %229 = arith.addf %227, %228 : vector<1x384xf32>
    %230 = vector.extract_strided_slice %225 {offsets = [0, 0], sizes = [1, 128], strides = [1, 1]} : vector<1x384xf32> to vector<1x128xf32>
    %231 = vector.extract_strided_slice %229 {offsets = [0, 0], sizes = [1, 128], strides = [1, 1]} : vector<1x384xf32> to vector<1x128xf32>
    %232 = arith.addf %230, %231 : vector<1x128xf32>
    %233 = arith.negf %232 : vector<1x128xf32>
    %234 = math.exp %233 : vector<1x128xf32>
    %cst_79 = arith.constant 1.000000e+00 : f32
    %235 = vector.broadcast %cst_79 : f32 to vector<1x128xf32>
    %236 = arith.addf %235, %234 : vector<1x128xf32>
    %237 = arith.divf %235, %236 : vector<1x128xf32>
    %238 = vector.extract_strided_slice %225 {offsets = [0, 128], sizes = [1, 128], strides = [1, 1]} : vector<1x384xf32> to vector<1x128xf32>
    %239 = vector.extract_strided_slice %229 {offsets = [0, 128], sizes = [1, 128], strides = [1, 1]} : vector<1x384xf32> to vector<1x128xf32>
    %240 = arith.addf %238, %239 : vector<1x128xf32>
    %241 = arith.negf %240 : vector<1x128xf32>
    %242 = math.exp %241 : vector<1x128xf32>
    %cst_80 = arith.constant 1.000000e+00 : f32
    %243 = vector.broadcast %cst_80 : f32 to vector<1x128xf32>
    %244 = arith.addf %243, %242 : vector<1x128xf32>
    %245 = arith.divf %243, %244 : vector<1x128xf32>
    %246 = vector.extract_strided_slice %225 {offsets = [0, 256], sizes = [1, 128], strides = [1, 1]} : vector<1x384xf32> to vector<1x128xf32>
    %247 = vector.extract_strided_slice %229 {offsets = [0, 256], sizes = [1, 128], strides = [1, 1]} : vector<1x384xf32> to vector<1x128xf32>
    %248 = arith.mulf %237, %247 : vector<1x128xf32>
    %249 = arith.addf %246, %248 : vector<1x128xf32>
    %250 = math.tanh %249 : vector<1x128xf32>
    %cst_81 = arith.constant 1.000000e+00 : f32
    %251 = vector.broadcast %cst_81 : f32 to vector<1x128xf32>
    %252 = arith.subf %251, %245 : vector<1x128xf32>
    %253 = arith.mulf %252, %250 : vector<1x128xf32>
    %254 = arith.mulf %245, %218 : vector<1x128xf32>
    %255 = arith.addf %253, %254 : vector<1x128xf32>
    %256 = arith.index_cast %c6_i32 : i32 to index
    %c0_82 = arith.constant 0 : index
    %c0_83 = arith.constant 0 : index
    %257 = vector.load %arg4[%256, %c0_82, %c0_83] : memref<8x1x128xf32, #tpu.memory_space<vmem>>, vector<1x1x128xf32>
    %258 = vector.shape_cast %257 : vector<1x1x128xf32> to vector<1x128xf32>
    %259 = vector.shape_cast %255 : vector<1x128xf32> to vector<1x1x128xf32>
    tpu.vector_store %arg4[%256, %c0_82, %c0_83], %259 {strides = array<i32>} : memref<8x1x128xf32, #tpu.memory_space<vmem>>, vector<1x1x128xf32>,
    %c7_i32 = arith.constant 7 : i32
    %260 = arith.index_cast %c7_i32 : i32 to index
    %c0_84 = arith.constant 0 : index
    %c0_85 = arith.constant 0 : index
    %261 = vector.load %arg0[%260, %c0_84, %c0_85] : memref<8x1x384xf32, #tpu.memory_space<vmem>>, vector<1x1x384xf32>
    %262 = vector.shape_cast %261 : vector<1x1x384xf32> to vector<1x384xf32>
    %c0_86 = arith.constant 0 : index
    %c0_87 = arith.constant 0 : index
    %263 = vector.load %arg2[%c0_86, %c0_87] : memref<128x384xf32, #tpu.memory_space<vmem>>, vector<128x384xf32>
    %cst_88 = arith.constant dense<0.000000e+00> : vector<1x384xf32>
    %264 = tpu.matmul %255, %263, %cst_88 {dimension_numbers = #tpu.dot_dimension_numbers<[1], [0], [0], [1], [0, 0, 1, 1], [], []>, precision = #tpu.contract_precision<fp32>} : vector<1x128xf32>, vector<128x384xf32>, vector<1x384xf32> -> vector<1x384xf32>
    %c0_89 = arith.constant 0 : index
    %c0_90 = arith.constant 0 : index
    %265 = vector.load %arg3[%c0_89, %c0_90] : memref<1x384xf32, #tpu.memory_space<vmem>>, vector<1x384xf32>
    %266 = arith.addf %264, %265 : vector<1x384xf32>
    %267 = vector.extract_strided_slice %262 {offsets = [0, 0], sizes = [1, 128], strides = [1, 1]} : vector<1x384xf32> to vector<1x128xf32>
    %268 = vector.extract_strided_slice %266 {offsets = [0, 0], sizes = [1, 128], strides = [1, 1]} : vector<1x384xf32> to vector<1x128xf32>
    %269 = arith.addf %267, %268 : vector<1x128xf32>
    %270 = arith.negf %269 : vector<1x128xf32>
    %271 = math.exp %270 : vector<1x128xf32>
    %cst_91 = arith.constant 1.000000e+00 : f32
    %272 = vector.broadcast %cst_91 : f32 to vector<1x128xf32>
    %273 = arith.addf %272, %271 : vector<1x128xf32>
    %274 = arith.divf %272, %273 : vector<1x128xf32>
    %275 = vector.extract_strided_slice %262 {offsets = [0, 128], sizes = [1, 128], strides = [1, 1]} : vector<1x384xf32> to vector<1x128xf32>
    %276 = vector.extract_strided_slice %266 {offsets = [0, 128], sizes = [1, 128], strides = [1, 1]} : vector<1x384xf32> to vector<1x128xf32>
    %277 = arith.addf %275, %276 : vector<1x128xf32>
    %278 = arith.negf %277 : vector<1x128xf32>
    %279 = math.exp %278 : vector<1x128xf32>
    %cst_92 = arith.constant 1.000000e+00 : f32
    %280 = vector.broadcast %cst_92 : f32 to vector<1x128xf32>
    %281 = arith.addf %280, %279 : vector<1x128xf32>
    %282 = arith.divf %280, %281 : vector<1x128xf32>
    %283 = vector.extract_strided_slice %262 {offsets = [0, 256], sizes = [1, 128], strides = [1, 1]} : vector<1x384xf32> to vector<1x128xf32>
    %284 = vector.extract_strided_slice %266 {offsets = [0, 256], sizes = [1, 128], strides = [1, 1]} : vector<1x384xf32> to vector<1x128xf32>
    %285 = arith.mulf %274, %284 : vector<1x128xf32>
    %286 = arith.addf %283, %285 : vector<1x128xf32>
    %287 = math.tanh %286 : vector<1x128xf32>
    %cst_93 = arith.constant 1.000000e+00 : f32
    %288 = vector.broadcast %cst_93 : f32 to vector<1x128xf32>
    %289 = arith.subf %288, %282 : vector<1x128xf32>
    %290 = arith.mulf %289, %287 : vector<1x128xf32>
    %291 = arith.mulf %282, %255 : vector<1x128xf32>
    %292 = arith.addf %290, %291 : vector<1x128xf32>
    %293 = arith.index_cast %c7_i32 : i32 to index
    %c0_94 = arith.constant 0 : index
    %c0_95 = arith.constant 0 : index
    %294 = vector.load %arg4[%293, %c0_94, %c0_95] : memref<8x1x128xf32, #tpu.memory_space<vmem>>, vector<1x1x128xf32>
    %295 = vector.shape_cast %294 : vector<1x1x128xf32> to vector<1x128xf32>
    %296 = vector.shape_cast %292 : vector<1x128xf32> to vector<1x1x128xf32>
    tpu.vector_store %arg4[%293, %c0_94, %c0_95], %296 {strides = array<i32>} : memref<8x1x128xf32, #tpu.memory_space<vmem>>, vector<1x1x128xf32>,
    %c8_i32 = arith.constant 8 : i32
    return
  }
}

</mosaic_0001>

<bundles_post_ra>
// kernel: tpu_custom_call.1
= control target key start
LH: loop header
LB: loop body
LE: loop exit
PB: predicated region body
PF: predicated region fallthrough
CT: control target
= control target key end

     0   :  { %9 = vsyncpa [#allocation3], 0  ;;  %s15786_s0 = inlined_call_operand.hbm [shape: f32[8,1,384], index: 0, kind: input, shape index: {}]   ;;  %s15787_s1 = inlined_call_operand.hbm [shape: f32[1,128], index: 1, kind: input, shape index: {}]   ;;  %s15788_s2 = inlined_call_operand.hbm [shape: f32[128,384], index: 2, kind: input, shape index: {}]   ;;  %s15789_s3 = inlined_call_operand.hbm [shape: f32[1,384], index: 3, kind: input, shape index: {}]   ;;  %s15790_s4 = inlined_call_operand.hbm [shape: f32[8,1,128], index: 4, kind: output, shape index: {}]  }
   0x1   :  { %10 = vsyncpa [#allocation6], 0 }
   0x2   :  { %11 = vsyncpa [#allocation9], 0  ;;  %s31_s17 = sshll.u32 %s15787_s1, 4  ;;  %s32_s17 = int_to_ptr.hbm [resolvable:$true] %s31_s17 }
   0x3   :  { %12 = vsyncpa [#allocation4], 0  ;;  %s9413_s18 = smov [#allocation5]   ;;  %s17_s22 = sshll.u32 %s15786_s0, 4  ;;  %s18_s22 = int_to_ptr.hbm [resolvable:$true] %s17_s22 }
   0x4   :  { %s33_s19 = sshll.u32 %s9413_s18, 4  ;;  %s9414_s23 = smov [#allocation2]   ;;  %s34_s19 = int_to_ptr.vmem [resolvable:$true] %s33_s19 }
   0x5   :  { %36 = dma.hbm_to_vmem [thread:$0]  %s32_s17, 16, %s34_s19, [#allocation6]  }
   0x6   :  { %s19_s24 = sshll.u32 %s9414_s23, 4  ;;  %s9415_s25 = smov 48   ;;  %s20_s24 = int_to_ptr.vmem [resolvable:$true] %s19_s24 }
   0x7   :  { %s9416_s26 = smov 3   ;;  %s41_s1 = sshll.u32 %s15788_s2, 4  ;;  %s42_s1 = int_to_ptr.hbm [resolvable:$true] %s41_s1 }
   0x8   :  { %25 = dma.hbm_to_vmem [thread:$0]  %s18_s22, 384, %s20_s24, [#allocation3], %s9415_s25, %s9415_s25, %s9416_s26  }
   0x9   :  { %s9417_s29 = smov [#allocation7]   ;;  %s55_s0 = sshll.u32 %s15789_s3, 4  ;;  %s56_s0 = int_to_ptr.hbm [resolvable:$true] %s55_s0 }
   0xa   :  { %s43_s30 = sshll.u32 %s9417_s29, 4  ;;  %s9418_s7 = smov 384   ;;  %s44_s30 = int_to_ptr.vmem [resolvable:$true] %s43_s30 }
   0xb   :  { %s9419_s8 = smov 24   ;;  %s9420_s9 = smov [#allocation8]  }
   0xc   :  { %49 = dma.hbm_to_vmem [thread:$0]  %s42_s1, 6144, %s44_s30, [#allocation6], %s9418_s7, %s9418_s7, %s9419_s8  }
   0xd   :  { %s57_s10 = sshll.u32 %s9420_s9, 4  ;;  %s58_s10 = int_to_ptr.vmem [resolvable:$true] %s57_s10 }
   0xe   :  { %60 = dma.hbm_to_vmem [thread:$0]  %s56_s0, 48, %s58_s10, [#allocation9]  }
   0xf   :  { %9405 = dma.done.wait [#allocation3], 384  }
  0x10   :  { %9406 = vsyncadd [#allocation3], 4294966912 }
  0x11   :  { %9407 = dma.done.wait [#allocation6], 6160  }
  0x12   :  { %9408 = vsyncadd [#allocation6], 4294961136 }
  0x13   :  { %9409 = dma.done.wait [#allocation9], 48  }
  0x14   :  { %9410 = vsyncadd [#allocation9], 4294967248  ;;  %v124_v0 = vld [vmem:[#allocation7 + $0x168] sm:$0xff]  ;;  %v121_v1 = vld [vmem:[#allocation7 + $0x150] sm:$0xff]  ;;  %s9421_s2 = smov [#allocation10]   ;;  %s9162_s13 = sshll.u32 %s15790_s4, 4  ;;  %s9163_s13 = int_to_ptr.hbm [resolvable:$true] %s9162_s13 }
  0x15   :  { %v118_v2 = vld [vmem:[#allocation7 + $0x138] sm:$0xff]  ;;  %v9461_v3 = vand.u32 4294901760, %v124_v0  ;;  %v9463_v4 = vand.u32 4294901760, %v121_v1  ;;  %v115_v6 = vld [vmem:[#allocation7 + $0x120] sm:$0xff]  ;;  %v112_v7 = vld [vmem:[#allocation7 + $0x108] sm:$0xff]  ;;  %s9160_s3 = sshll.u32 %s9421_s2, 4  ;;  %s9161_s3 = int_to_ptr.vmem [resolvable:$true] %s9160_s3 }
  0x16   :  { %v9465_v5 = vand.u32 4294901760, %v118_v2  ;;  %v109_v8 = vld [vmem:[#allocation7 + $0xf0] sm:$0xff]  ;;  %v9467_v9 = vand.u32 4294901760, %v115_v6  ;;  %v9469_v10 = vand.u32 4294901760, %v112_v7  ;;  %v106_v12 = vld [vmem:[#allocation7 + $0xd8] sm:$0xff]  ;;  %v103_v13 = vld [vmem:[#allocation7 + $0xc0] sm:$0xff] }
  0x17   :  { %v9471_v11 = vand.u32 4294901760, %v109_v8  ;;  %136 = vmatpush.msra.mxu0 %v9461_v3  ;;  %v9475_v14 = vsub.f32 %v124_v0, %v9461_v3  ;;  %v9478_v15 = vsub.f32 %v121_v1, %v9463_v4  ;;  %v9483_v17 = vand.u32 4294901760, %v106_v12  ;;  %332 = vmatpush.msra.mxu3 %v9461_v3  ;;  %v100_v21 = vld [vmem:[#allocation7 + $0xa8] sm:$0xff]  ;;  %v97_v34 = vld [vmem:[#allocation7 + $0x90] sm:$0xff]  ;;  %v94_v35 = vld [vmem:[#allocation7 + $0x78] sm:$0xff]  ;;  %s9422_s14 = smov 16  }
  0x18   :  { %v9481_v16 = vsub.f32 %v118_v2, %v9465_v5  ;;  %v9487_v18 = vsub.f32 %v115_v6, %v9467_v9  ;;  %v9490_v19 = vsub.f32 %v112_v7, %v9469_v10  ;;  %v9492_v20 = vand.u32 4294901760, %v103_v13  ;;  %v91_v42 = vld [vmem:[#allocation7 + $0x60] sm:$0xff]  ;;  %v88_v47 = vld [vmem:[#allocation7 + $0x48] sm:$0xff]  ;;  %v85_v53 = vld [vmem:[#allocation7 + $0x30] sm:$0xff]  ;;  %s9423_s15 = smov 1  }
  0x19   :  { %138 = vmatpush.msra.mxu0 %v9463_v4  ;;  %v178_v22 = vand.u32 4294901760, %v9475_v14  ;;  %v184_v23 = vand.u32 4294901760, %v9478_v15  ;;  %v9499_v25 = vsub.f32 %v109_v8, %v9471_v11  ;;  %279 = vmatpush.msra.mxu2 %v9475_v14  ;;  %v9505_v28 = vsub.f32 %v106_v12, %v9483_v17  ;;  %v82_v61 = vld [vmem:[#allocation7 + $0x18] sm:$0xff]  ;;  %v125_v62 = vld [vmem:[#allocation7 + $0x170] sm:$0xff]  ;;  %v79_v7 = vld [vmem:[#allocation7] sm:$0xff] }
  0x1a   :  { %v15806_v24 = vand.u32 4294901760, %v9481_v16  ;;  %v15805_v26 = vand.u32 4294901760, %v9487_v18  ;;  %v15802_v27 = vand.u32 4294901760, %v9490_v19  ;;  %334 = vmatpush.msra.mxu3 %v9463_v4  ;;  %v9518_v32 = vand.u32 4294901760, %v100_v21  ;;  %v122_v8 = vld [vmem:[#allocation7 + $0x158] sm:$0xff] }
  0x1b   :  { %v179_v29 = vsub.f32 %v9475_v14, %v178_v22  ;;  %140 = vmatpush.msra.mxu0 %v9465_v5  ;;  %v185_v30 = vsub.f32 %v9478_v15, %v184_v23  ;;  %282 = vmatpush.msra.mxu2 %v9478_v15  ;;  %v9522_v33 = vsub.f32 %v103_v13, %v9492_v20  ;;  %v15801_v39 = vand.u32 4294901760, %v9499_v25 }
  0x1c   :  { %v191_v31 = vsub.f32 %v9481_v16, %v15806_v24  ;;  %336 = vmatpush.msra.mxu3 %v9465_v5  ;;  %v197_v38 = vsub.f32 %v9487_v18, %v15805_v26  ;;  %v203_v40 = vsub.f32 %v9490_v19, %v15802_v27  ;;  %v15799_v41 = vand.u32 4294901760, %v9505_v28  ;;  %v101_v24 = vld [vmem:[#allocation7 + $0xb0] sm:$0xff] }
  0x1d   :  { %v180_v36 = vand.u32 4294901760, %v179_v29  ;;  %v186_v37 = vand.u32 4294901760, %v185_v30  ;;  %142 = vmatpush.msra.mxu0 %v9467_v9  ;;  %285 = vmatpush.msra.mxu2 %v9481_v16  ;;  %v9537_v44 = vand.u32 4294901760, %v97_v34  ;;  %v9540_v45 = vsub.f32 %v100_v21, %v9518_v32 }
  0x1e   :  { %338 = vmatpush.msra.mxu3 %v9467_v9  ;;  %v192_v43 = vand.u32 4294901760, %v191_v31  ;;  %v9542_v46 = vand.u32 4294901760, %v94_v35  ;;  %v15797_v48 = vand.u32 4294901760, %v9522_v33  ;;  %v198_v49 = vand.u32 4294901760, %v197_v38 }
  0x1f   :  { %181 = vmatpush.msra.mxu1 %v180_v36  ;;  %144 = vmatpush.msra.mxu0 %v9469_v10  ;;  %v209_v50 = vsub.f32 %v9499_v25, %v15801_v39  ;;  %v9552_v51 = vsub.f32 %v97_v34, %v9537_v44  ;;  %v9554_v52 = vand.u32 4294901760, %v91_v42  ;;  %v215_v54 = vsub.f32 %v9505_v28, %v15799_v41  ;;  %v119_v34 = vld [vmem:[#allocation7 + $0x140] sm:$0xff] }
  0x20   :  { %288 = vmatpush.msra.mxu2 %v9487_v18  ;;  %340 = vmatpush.msra.mxu3 %v9469_v10  ;;  %v9559_v55 = vand.u32 4294901760, %v88_v47  ;;  %v204_v56 = vand.u32 4294901760, %v203_v40  ;;  %v15795_v57 = vand.u32 4294901760, %v9540_v45  ;;  %v9566_v58 = vsub.f32 %v94_v35, %v9542_v46 }
  0x21   :  { %187 = vmatpush.msra.mxu1 %v186_v37  ;;  %146 = vmatpush.msra.mxu0 %v9471_v11  ;;  %v221_v59 = vsub.f32 %v9522_v33, %v15797_v48  ;;  %v9571_v60 = vand.u32 4294901760, %v85_v53  ;;  %v210_v63 = vand.u32 4294901760, %v209_v50  ;;  %v15794_v0 = vand.u32 4294901760, %v9552_v51 }
  0x22   :  { %291 = vmatpush.msra.mxu2 %v9490_v19  ;;  %342 = vmatpush.msra.mxu3 %v9471_v11  ;;  %v9578_v1 = vsub.f32 %v91_v42, %v9554_v52  ;;  %v216_v2 = vand.u32 4294901760, %v215_v54  ;;  %v9581_v6 = vsub.f32 %v88_v47, %v9559_v55  ;;  %v227_v12 = vsub.f32 %v9540_v45, %v15795_v57 }
  0x23   :  { %193 = vmatpush.msra.mxu1 %v192_v43  ;;  %148 = vmatpush.msra.mxu0 %v9483_v17  ;;  %v15792_v13 = vand.u32 4294901760, %v9566_v58  ;;  %v9590_v21 = vand.u32 4294901760, %v82_v61  ;;  %v9592_v29 = vand.u32 4294901760, %v125_v62  ;;  %v222_v30 = vand.u32 4294901760, %v221_v59  ;;  %v77_v43 = vld [vmem:[#allocation5] sm:$0x1] }
  0x24   :  { %294 = vmatpush.msra.mxu2 %v9499_v25  ;;  %344 = vmatpush.msra.mxu3 %v9483_v17  ;;  %v9595_v31 = vsub.f32 %v85_v53, %v9571_v60  ;;  %v233_v35 = vsub.f32 %v9552_v51, %v15794_v0  ;;  %v15791_v36 = vand.u32 4294901760, %v9578_v1  ;;  %v9604_v37 = vand.u32 4294901760, %v79_v7 }
  0x25   :  { %199 = vmatpush.msra.mxu1 %v198_v49  ;;  %150 = vmatpush.msra.mxu0 %v9492_v20  ;;  %v9606_v38 = vand.u32 4294901760, %v122_v8  ;;  %v15793_v40 = vand.u32 4294901760, %v9581_v6  ;;  %v9612_v42 = vsub.f32 %v125_v62, %v9592_v29  ;;  %v228_v47 = vand.u32 4294901760, %v227_v12 }
  0x26   :  { %297 = vmatpush.msra.mxu2 %v9505_v28  ;;  %346 = vmatpush.msra.mxu3 %v9492_v20  ;;  %v239_v49 = vsub.f32 %v9566_v58, %v15792_v13  ;;  %v9619_v50 = vsub.f32 %v82_v61, %v9590_v21  ;;  %v9621_v53 = vand.u32 4294901760, %v119_v34  ;;  %v15796_v54 = vand.u32 4294901760, %v9595_v31 }
  0x27   :  { %205 = vmatpush.msra.mxu1 %v204_v56  ;;  %152 = vmatpush.msra.mxu0 %v9518_v32  ;;  %v9627_v56 = vsub.f32 %v122_v8, %v9606_v38  ;;  %v234_v59 = vand.u32 4294901760, %v233_v35  ;;  %v245_v61 = vsub.f32 %v9578_v1, %v15791_v36  ;;  %v9634_v62 = vsub.f32 %v79_v7, %v9604_v37 }
  0x28   :  { %300 = vmatpush.msra.mxu2 %v9522_v33  ;;  %348 = vmatpush.msra.mxu3 %v9518_v32  ;;  %v15798_v8 = vand.u32 4294901760, %v9612_v42  ;;  %v240_v12 = vand.u32 4294901760, %v239_v49  ;;  %v15800_v7 = vand.u32 4294901760, %v9619_v50  ;;  %v9647_v35 = vsub.f32 %v119_v34, %v9621_v53 }
  0x29   :  { %211 = vmatpush.msra.mxu1 %v210_v63  ;;  %154 = vmatpush.msra.mxu0 %v9537_v44  ;;  %v9636_v63 = vand.u32 4294901760, %v77_v43  ;;  %v15803_v36 = vand.u32 4294901760, %v9627_v56  ;;  %v246_v49 = vand.u32 4294901760, %v245_v61  ;;  %v15804_v34 = vand.u32 4294901760, %v9634_v62  ;;  %v110_v61 = vld [vmem:[#allocation7 + $0xf8] sm:$0xff] }
  0x2a   :  { %303 = vmatpush.msra.mxu2 %v9540_v45  ;;  %350 = vmatpush.msra.mxu3 %v9537_v44  ;;  %v9689_v27 = vand.u32 4294901760, %v110_v61  ;;  %v15883_v15 = vand.u32 4294901760, %v9481_v16 }
  0x2b   :  { %217 = vmatpush.msra.mxu1 %v216_v2  ;;  %156 = vmatpush.msra.mxu0 %v9542_v46  ;;  %v116_v2 = vld [vmem:[#allocation7 + $0x128] sm:$0xff]  ;;  %v9660_v0 = vsub.f32 %v77_v43, %v9636_v63  ;;  %v15807_v43 = vand.u32 4294901760, %v9647_v35 }
  0x2c   :  { %306 = vmatpush.msra.mxu2 %v9552_v51  ;;  %352 = vmatpush.msra.mxu3 %v9542_v46  ;;  %v9652_v13 = vand.u32 4294901760, %v116_v2 }
  0x2d   :  { %223 = vmatpush.msra.mxu1 %v222_v30  ;;  %158 = vmatpush.msra.mxu0 %v9554_v52  ;;  %v251_v30 = vsub.f32 %v9581_v6, %v15793_v40  ;;  %v257_v40 = vsub.f32 %v9595_v31, %v15796_v54  ;;  %v263_v54 = vsub.f32 %v9619_v50, %v15800_v7  ;;  %v9687_v39 = vand.u32 4294901760, %v9660_v0 }
  0x2e   :  { %309 = vmatpush.msra.mxu2 %v9566_v58  ;;  %354 = vmatpush.msra.mxu3 %v9554_v52  ;;  %v269_v7 = vsub.f32 %v9634_v62, %v15804_v34 }
  0x2f   :  { %229 = vmatpush.msra.mxu1 %v228_v47  ;;  %160 = vmatpush.msra.mxu0 %v9559_v55  ;;  %v113_v47 = vld [vmem:[#allocation7 + $0x110] sm:$0xff]  ;;  %v252_v57 = vand.u32 4294901760, %v251_v30  ;;  %v107_v30 = vld [vmem:[#allocation7 + $0xe0] sm:$0xff]  ;;  %v258_v41 = vand.u32 4294901760, %v257_v40  ;;  %v264_v40 = vand.u32 4294901760, %v263_v54  ;;  %v170_v54 = vsub.f32 %v9660_v0, %v9687_v39 }
  0x30   :  { %312 = vmatpush.msra.mxu2 %v9578_v1  ;;  %356 = vmatpush.msra.mxu3 %v9559_v55  ;;  %v9672_v48 = vand.u32 4294901760, %v113_v47  ;;  %v9701_v26 = vand.u32 4294901760, %v107_v30 }
  0x31   :  { %235 = vmatpush.msra.mxu1 %v234_v59  ;;  %162 = vmatpush.msra.mxu0 %v9571_v60  ;;  %v520_v59 = vsub.f32 %v9612_v42, %v15798_v8  ;;  %v526_v8 = vsub.f32 %v9627_v56, %v15803_v36  ;;  %v104_v36 = vld [vmem:[#allocation7 + $0xc8] sm:$0xff] }
  0x32   :  { %315 = vmatpush.msra.mxu2 %v9581_v6  ;;  %358 = vmatpush.msra.mxu3 %v9571_v60  ;;  %v9699_v34 = vsub.f32 %v113_v47, %v9672_v48  ;;  %v9711_v47 = vsub.f32 %v110_v61, %v9689_v27  ;;  %v15884_v61 = vand.u32 4294901760, %v9487_v18  ;;  %v15885_v18 = vand.u32 4294901760, %v9490_v19  ;;  %v92_v19 = vld [vmem:[#allocation7 + $0x68] sm:$0xff] }
  0x33   :  { %241 = vmatpush.msra.mxu1 %v240_v12  ;;  %164 = vmatpush.msra.mxu0 %v9590_v21  ;;  %v9680_v12 = vsub.f32 %v116_v2, %v9652_v13  ;;  %v521_v2 = vand.u32 4294901760, %v520_v59  ;;  %v527_v14 = vand.u32 4294901760, %v526_v8  ;;  %v9713_v59 = vand.u32 4294901760, %v104_v36  ;;  %v98_v8 = vld [vmem:[#allocation7 + $0x98] sm:$0xff] }
  0x34   :  { %318 = vmatpush.msra.mxu2 %v9595_v31  ;;  %360 = vmatpush.msra.mxu3 %v9590_v21 }
  0x35   :  { %247 = vmatpush.msra.mxu1 %v246_v49  ;;  %166 = vmatpush.msra.mxu0 %v9604_v37  ;;  %v532_v49 = vsub.f32 %v9647_v35, %v15807_v43  ;;  %v9722_v43 = vsub.f32 %v107_v30, %v9701_v26  ;;  %v9736_v30 = vand.u32 4294901760, %v98_v8 }
  0x36   :  { %321 = vmatpush.msra.mxu2 %v9619_v50  ;;  %362 = vmatpush.msra.mxu3 %v9604_v37 }
  0x37   :  { %373 = vmatpush.msrb.mxu0 %v178_v22  ;;  %253 = vmatpush.msra.mxu1 %v252_v57  ;;  %v15811_v22 = vand.u32 4294901760, %v9680_v12  ;;  %v270_v57 = vand.u32 4294901760, %v269_v7  ;;  %v15809_v7 = vand.u32 4294901760, %v9699_v34 }
  0x38   :  { %324 = vmatpush.msra.mxu2 %v9634_v62  ;;  %522 = vmatpush.msrb.mxu3 %v521_v2  ;;  %v95_v2 = vld [vmem:[#allocation7 + $0x80] sm:$0xff] }
  0x39   :  { %377 = vmatpush.msrb.mxu0 %v184_v23  ;;  %259 = vmatpush.msra.mxu1 %v258_v41  ;;  %v9717_v23 = vand.u32 4294901760, %v101_v24  ;;  %v533_v41 = vand.u32 4294901760, %v532_v49  ;;  %v538_v16 = vsub.f32 %v9680_v12, %v15811_v22  ;;  %v15808_v49 = vand.u32 4294901760, %v9711_v47 }
  0x3a   :  { %477 = vmatpush.msrb.mxu2 %v9592_v29  ;;  %528 = vmatpush.msrb.mxu3 %v527_v14 }
  0x3b   :  { %381 = vmatpush.msrb.mxu0 %v15883_v15  ;;  %265 = vmatpush.msra.mxu1 %v264_v40  ;;  %v9730_v40 = vand.u32 4294901760, %v170_v54  ;;  %v9734_v15 = vsub.f32 %v104_v36, %v9713_v59  ;;  %v9742_v14 = vsub.f32 %v101_v24, %v9717_v23  ;;  %v15810_v36 = vand.u32 4294901760, %v9722_v43 }
  0x3c   :  { %479 = vmatpush.msrb.mxu2 %v9606_v38  ;;  %534 = vmatpush.msrb.mxu3 %v533_v41  ;;  %v9749_v54 = vand.u32 4294901760, %v95_v2  ;;  %v539_v24 = vand.u32 4294901760, %v538_v16  ;;  %v550_v41 = vsub.f32 %v9711_v47, %v15808_v49 }
  0x3d   :  { %385 = vmatpush.msrb.mxu0 %v15884_v61  ;;  %271 = vmatpush.msra.mxu1 %v270_v57  ;;  %v544_v57 = vsub.f32 %v9699_v34, %v15809_v7  ;;  %v15812_v61 = vand.u32 4294901760, %v9734_v15  ;;  %v556_v49 = vsub.f32 %v9722_v43, %v15810_v36  ;;  %v9772_v7 = vand.u32 4294901760, %v92_v19 }
  0x3e   :  { %481 = vmatpush.msrb.mxu2 %v9621_v53  ;;  %172 = vmatmul.f32.vlgmr.msra.gmra.mxu0 %v9730_v40 }
  0x3f   :  { %440 = vmatpush.msrb.mxu1 %v9461_v3  ;;  %389 = vmatpush.msrb.mxu0 %v15885_v18  ;;  %v15886_v3 = vand.u32 4294901760, %v9499_v25  ;;  %v9761_v18 = vsub.f32 %v98_v8, %v9736_v30  ;;  %v567_v25 = vand.u32 4294901760, %v9742_v14  ;;  %v545_v16 = vand.u32 4294901760, %v544_v57 }
  0x40   :  { %327 = vmatmul.f32.vlgmr.msra.gmra.mxu2 %v9660_v0  ;;  %366 = vmatmul.f32.vlgmr.msra.gmra.mxu3 %v9687_v39  ;;  %v9775_v8 = vsub.f32 %v95_v2, %v9749_v54  ;;  %v562_v57 = vsub.f32 %v9734_v15, %v15812_v61  ;;  %v83_v2 = vld [vmem:[#allocation7 + $0x20] sm:$0xff] }
  0x41   :  { %442 = vmatpush.msrb.mxu1 %v9463_v4  ;;  %393 = vmatpush.msrb.mxu0 %v15886_v3  ;;  %v15887_v4 = vand.u32 4294901760, %v9505_v28  ;;  %v89_v3 = vld [vmem:[#allocation7 + $0x50] sm:$0xff]  ;;  %v86_v28 = vld [vmem:[#allocation7 + $0x38] sm:$0xff]  ;;  %v573_v36 = vand.u32 4294901760, %v9761_v18 }
  0x42   :  { %483 = vmatpush.msrb.mxu2 %v9652_v13  ;;  %540 = vmatpush.msrb.mxu3 %v539_v24  ;;  %v9785_v22 = vand.u32 4294901760, %v89_v3  ;;  %v557_v24 = vand.u32 4294901760, %v556_v49  ;;  %v9798_v61 = vand.u32 4294901760, %v86_v28 }
  0x43   :  { %444 = vmatpush.msrb.mxu1 %v9465_v5  ;;  %397 = vmatpush.msrb.mxu0 %v15887_v4  ;;  %v15888_v5 = vand.u32 4294901760, %v9522_v33  ;;  %v551_v4 = vand.u32 4294901760, %v550_v41  ;;  %v568_v33 = vsub.f32 %v9742_v14, %v567_v25  ;;  %v579_v41 = vand.u32 4294901760, %v9775_v8 }
  0x44   :  { %485 = vmatpush.msrb.mxu2 %v9672_v48  ;;  %273 = vmatmul.f32.vlgmr.msra.gmra.mxu1 %v9636_v63  ;;  %v574_v49 = vsub.f32 %v9761_v18, %v573_v36 }
  0x45   :  { %446 = vmatpush.msrb.mxu1 %v9467_v9  ;;  %401 = vmatpush.msrb.mxu0 %v15888_v5  ;;  %v15889_v9 = vand.u32 4294901760, %v9540_v45  ;;  %v9796_v5 = vsub.f32 %v92_v19, %v9772_v7  ;;  %v80_v45 = vld [vmem:[#allocation7 + $0x8] sm:$0xff]  ;;  %v9810_v19 = vand.u32 4294901760, %v83_v2 }
  0x46   :  { %487 = vmatpush.msrb.mxu2 %v9689_v27  ;;  %546 = vmatpush.msrb.mxu3 %v545_v16  ;;  %v9808_v16 = vsub.f32 %v89_v3, %v9785_v22  ;;  %v9821_v3 = vsub.f32 %v86_v28, %v9798_v61  ;;  %v15893_v28 = vand.u32 4294901760, %v9581_v6 }
  0x47   :  { %448 = vmatpush.msrb.mxu1 %v9469_v10  ;;  %405 = vmatpush.msrb.mxu0 %v15889_v9  ;;  %v15890_v10 = vand.u32 4294901760, %v9552_v51  ;;  %v563_v9 = vand.u32 4294901760, %v562_v57  ;;  %v569_v51 = vand.u32 4294901760, %v568_v33  ;;  %v585_v57 = vand.u32 4294901760, %v9796_v5 }
  0x48   :  { %489 = vmatpush.msrb.mxu2 %v9701_v26  ;;  %552 = vmatpush.msrb.mxu3 %v551_v4  ;;  %v580_v4 = vsub.f32 %v9775_v8, %v579_v41  ;;  %v591_v33 = vand.u32 4294901760, %v9808_v16 }
  0x49   :  { %450 = vmatpush.msrb.mxu1 %v9471_v11  ;;  %409 = vmatpush.msrb.mxu0 %v15890_v10  ;;  %v15891_v11 = vand.u32 4294901760, %v9566_v58  ;;  %v9823_v10 = vand.u32 4294901760, %v80_v45  ;;  %v575_v58 = vand.u32 4294901760, %v574_v49 }
  0x4a   :  { %491 = vmatpush.msrb.mxu2 %v9713_v59  ;;  %558 = vmatpush.msrb.mxu3 %v557_v24  ;;  %v9831_v24 = vsub.f32 %v83_v2, %v9810_v19  ;;  %v592_v6 = vsub.f32 %v9808_v16, %v591_v33 }
  0x4b   :  { %452 = vmatpush.msrb.mxu1 %v9483_v17  ;;  %413 = vmatpush.msrb.mxu0 %v15891_v11  ;;  %v15892_v17 = vand.u32 4294901760, %v9578_v1  ;;  %v586_v1 = vsub.f32 %v9796_v5, %v585_v57  ;;  %v9842_v49 = vsub.f32 %v80_v45, %v9823_v10  ;;  %v15895_v11 = vand.u32 4294901760, %v9619_v50 }
  0x4c   :  { %493 = vmatpush.msrb.mxu2 %v9717_v23  ;;  %564 = vmatpush.msrb.mxu3 %v563_v9  ;;  %v597_v9 = vand.u32 4294901760, %v9821_v3  ;;  %v603_v2 = vand.u32 4294901760, %v9831_v24 }
  0x4d   :  { %454 = vmatpush.msrb.mxu1 %v9492_v20  ;;  %417 = vmatpush.msrb.mxu0 %v15892_v17  ;;  %v581_v20 = vand.u32 4294901760, %v580_v4  ;;  %v609_v45 = vand.u32 4294901760, %v9842_v49 }
  0x4e   :  { %495 = vmatpush.msrb.mxu2 %v9736_v30  ;;  %570 = vmatpush.msrb.mxu3 %v569_v51  ;;  %v15896_v51 = vand.u32 4294901760, %v9634_v62  ;;  %v604_v50 = vsub.f32 %v9831_v24, %v603_v2 }
  0x4f   :  { %456 = vmatpush.msrb.mxu1 %v9518_v32  ;;  %421 = vmatpush.msrb.mxu0 %v15893_v28  ;;  %v15894_v32 = vand.u32 4294901760, %v9595_v31  ;;  %v598_v31 = vsub.f32 %v9821_v3, %v597_v9  ;;  %v610_v62 = vsub.f32 %v9842_v49, %v609_v45 }
  0x50   :  { %497 = vmatpush.msrb.mxu2 %v9749_v54  ;;  %576 = vmatpush.msrb.mxu3 %v575_v58  ;;  %v605_v4 = vand.u32 4294901760, %v604_v50 }
  0x51   :  { %458 = vmatpush.msrb.mxu1 %v9537_v44  ;;  %425 = vmatpush.msrb.mxu0 %v15894_v32  ;;  %v587_v44 = vand.u32 4294901760, %v586_v1 }
  0x52   :  { %499 = vmatpush.msrb.mxu2 %v9772_v7  ;;  %582 = vmatpush.msrb.mxu3 %v581_v20 }
  0x53   :  { %460 = vmatpush.msrb.mxu1 %v9542_v46  ;;  %429 = vmatpush.msrb.mxu0 %v15895_v11  ;;  %v593_v46 = vand.u32 4294901760, %v592_v6  ;;  %v102_v6 = vld [vmem:[#allocation7 + $0xb8] sm:$0xff] }
  0x54   :  { %501 = vmatpush.msrb.mxu2 %v9785_v22  ;;  %588 = vmatpush.msrb.mxu3 %v587_v44  ;;  %v99_v44 = vld [vmem:[#allocation7 + $0xa0] sm:$0xff]  ;;  %v10002_v50 = vand.u32 4294901760, %v102_v6 }
  0x55   :  { %462 = vmatpush.msrb.mxu1 %v9554_v52  ;;  %433 = vmatpush.msrb.mxu0 %v15896_v51  ;;  %v599_v52 = vand.u32 4294901760, %v598_v31 }
  0x56   :  { %435 = vmatmul.f32.vlgmr.msrb.gmra.mxu0 %v9636_v63  ;;  %503 = vmatpush.msrb.mxu2 %v9798_v61 }
  0x57   :  { %464 = vmatpush.msrb.mxu1 %v9559_v55  ;;  %620 = vmatpush.msra.mxu0 %v9612_v42  ;;  %v611_v55 = vand.u32 4294901760, %v610_v62 }
  0x58   :  { %594 = vmatpush.msrb.mxu3 %v593_v46  ;;  %505 = vmatpush.msrb.mxu2 %v9810_v19 }
  0x59   :  { %466 = vmatpush.msrb.mxu1 %v9571_v60  ;;  %623 = vmatpush.msra.mxu0 %v9627_v56  ;;  %v15897_v60 = vand.u32 4294901760, %v9612_v42  ;;  %v15900_v42 = vand.u32 4294901760, %v9680_v12 }
  0x5a   :  { %600 = vmatpush.msrb.mxu3 %v599_v52  ;;  %507 = vmatpush.msrb.mxu2 %v9823_v10 }
  0x5b   :  { %468 = vmatpush.msrb.mxu1 %v9590_v21  ;;  %626 = vmatpush.msra.mxu0 %v9647_v35  ;;  %v15898_v21 = vand.u32 4294901760, %v9627_v56  ;;  %v15901_v56 = vand.u32 4294901760, %v9699_v34 }
  0x5c   :  { %606 = vmatpush.msrb.mxu3 %v605_v4  ;;  %714 = vmatpush.msra.mxu2 %v15897_v60  ;;  %v10016_v4 = vand.u32 4294901760, %v99_v44  ;;  %v93_v60 = vld [vmem:[#allocation7 + $0x70] sm:$0xff] }
  0x5d   :  { %470 = vmatpush.msrb.mxu1 %v9604_v37  ;;  %629 = vmatpush.msra.mxu0 %v9680_v12  ;;  %v15899_v37 = vand.u32 4294901760, %v9647_v35  ;;  %v15902_v35 = vand.u32 4294901760, %v9711_v47  ;;  %v15903_v12 = vand.u32 4294901760, %v9722_v43 }
  0x5e   :  { %472 = vmatmul.f32.vlgmr.msrb.gmra.mxu1 %v9636_v63  ;;  %612 = vmatpush.msrb.mxu3 %v611_v55 }
  0x5f   :  { %673 = vmatpush.msra.mxu1 %v9592_v29  ;;  %632 = vmatpush.msra.mxu0 %v9699_v34  ;;  %v120_v34 = vld [vmem:[#allocation7 + $0x148] sm:$0xff] }
  0x60   :  { %718 = vmatpush.msra.mxu2 %v15898_v21  ;;  %781 = vmatpush.msra.mxu3 %v9592_v29  ;;  %v126_v29 = vld [vmem:[#allocation7 + $0x178] sm:$0xff]  ;;  %v9929_v58 = vand.u32 4294901760, %v120_v34 }
  0x61   :  { %675 = vmatpush.msra.mxu1 %v9606_v38  ;;  %635 = vmatpush.msra.mxu0 %v9711_v47  ;;  %v117_v47 = vld [vmem:[#allocation7 + $0x130] sm:$0xff] }
  0x62   :  { %722 = vmatpush.msra.mxu2 %v15899_v37  ;;  %783 = vmatpush.msra.mxu3 %v9606_v38  ;;  %v123_v38 = vld [vmem:[#allocation7 + $0x160] sm:$0xff] }
  0x63   :  { %677 = vmatpush.msra.mxu1 %v9621_v53  ;;  %638 = vmatpush.msra.mxu0 %v9722_v43 }
  0x64   :  { %726 = vmatpush.msra.mxu2 %v15900_v42  ;;  %785 = vmatpush.msra.mxu3 %v9621_v53  ;;  %v9912_v53 = vand.u32 4294901760, %v126_v29  ;;  %v90_v42 = vld [vmem:[#allocation7 + $0x58] sm:$0xff] }
  0x65   :  { %679 = vmatpush.msra.mxu1 %v9652_v13  ;;  %641 = vmatpush.msra.mxu0 %v9734_v15 }
  0x66   :  { %730 = vmatpush.msra.mxu2 %v15901_v56  ;;  %787 = vmatpush.msra.mxu3 %v9652_v13  ;;  %v9919_v13 = vand.u32 4294901760, %v123_v38  ;;  %v9927_v17 = vsub.f32 %v126_v29, %v9912_v53 }
  0x67   :  { %681 = vmatpush.msra.mxu1 %v9672_v48  ;;  %644 = vmatpush.msra.mxu0 %v9742_v14  ;;  %v9948_v14 = vsub.f32 %v120_v34, %v9929_v58 }
  0x68   :  { %734 = vmatpush.msra.mxu2 %v15902_v35  ;;  %789 = vmatpush.msra.mxu3 %v9672_v48  ;;  %v15904_v48 = vand.u32 4294901760, %v9734_v15  ;;  %v9937_v43 = vsub.f32 %v123_v38, %v9919_v13  ;;  %v9939_v15 = vand.u32 4294901760, %v117_v47  ;;  %v860_v28 = vand.u32 4294901760, %v9927_v17 }
  0x69   :  { %683 = vmatpush.msra.mxu1 %v9689_v27  ;;  %647 = vmatpush.msra.mxu0 %v9761_v18  ;;  %v105_v18 = vld [vmem:[#allocation7 + $0xd0] sm:$0xff]  ;;  %v10039_v38 = vsub.f32 %v99_v44, %v10016_v4  ;;  %v10041_v35 = vand.u32 4294901760, %v93_v60 }
  0x6a   :  { %738 = vmatpush.msra.mxu2 %v15903_v12  ;;  %791 = vmatpush.msra.mxu3 %v9689_v27  ;;  %v114_v27 = vld [vmem:[#allocation7 + $0x118] sm:$0xff]  ;;  %v866_v20 = vand.u32 4294901760, %v9937_v43  ;;  %v9979_v32 = vand.u32 4294901760, %v105_v18 }
  0x6b   :  { %685 = vmatpush.msra.mxu1 %v9701_v26  ;;  %650 = vmatpush.msra.mxu0 %v9775_v8  ;;  %v861_v8 = vsub.f32 %v9927_v17, %v860_v28 }
  0x6c   :  { %742 = vmatpush.msra.mxu2 %v15904_v48  ;;  %793 = vmatpush.msra.mxu3 %v9701_v26  ;;  %v111_v26 = vld [vmem:[#allocation7 + $0x100] sm:$0xff]  ;;  %v867_v11 = vsub.f32 %v9937_v43, %v866_v20  ;;  %v914_v48 = vand.u32 4294901760, %v10039_v38 }
  0x6d   :  { %687 = vmatpush.msra.mxu1 %v9713_v59  ;;  %653 = vmatpush.msra.mxu0 %v9796_v5  ;;  %v862_v31 = vand.u32 4294901760, %v861_v8 }
  0x6e   :  { %746 = vmatpush.msra.mxu2 %v567_v25  ;;  %795 = vmatpush.msra.mxu3 %v9713_v59  ;;  %v9950_v59 = vand.u32 4294901760, %v114_v27  ;;  %v108_v25 = vld [vmem:[#allocation7 + $0xe8] sm:$0xff]  ;;  %v868_v52 = vand.u32 4294901760, %v867_v11 }
  0x6f   :  { %689 = vmatpush.msra.mxu1 %v9717_v23  ;;  %656 = vmatpush.msra.mxu0 %v9808_v16  ;;  %v9965_v1 = vand.u32 4294901760, %v108_v25  ;;  %v10007_v16 = vsub.f32 %v105_v18, %v9979_v32  ;;  %v81_v18 = vld [vmem:[#allocation7 + $0x10] sm:$0xff] }
  0x70   :  { %750 = vmatpush.msra.mxu2 %v573_v36  ;;  %797 = vmatpush.msra.mxu3 %v9717_v23  ;;  %v9959_v36 = vsub.f32 %v117_v47, %v9939_v15  ;;  %v9961_v23 = vand.u32 4294901760, %v111_v26  ;;  %v10054_v47 = vand.u32 4294901760, %v90_v42 }
  0x71   :  { %691 = vmatpush.msra.mxu1 %v9736_v30  ;;  %659 = vmatpush.msra.mxu0 %v9821_v3 }
  0x72   :  { %754 = vmatpush.msra.mxu2 %v579_v41  ;;  %799 = vmatpush.msra.mxu3 %v9736_v30  ;;  %v872_v30 = vand.u32 4294901760, %v9948_v14  ;;  %v9975_v41 = vsub.f32 %v114_v27, %v9950_v59  ;;  %v878_v5 = vand.u32 4294901760, %v9959_v36  ;;  %v10064_v27 = vsub.f32 %v93_v60, %v10041_v35 }
  0x73   :  { %693 = vmatpush.msra.mxu1 %v9749_v54  ;;  %662 = vmatpush.msra.mxu0 %v9831_v24  ;;  %v87_v24 = vld [vmem:[#allocation7 + $0x40] sm:$0xff] }
  0x74   :  { %758 = vmatpush.msra.mxu2 %v585_v57  ;;  %801 = vmatpush.msra.mxu3 %v9749_v54  ;;  %v9988_v57 = vsub.f32 %v111_v26, %v9961_v23  ;;  %v9994_v54 = vsub.f32 %v108_v25, %v9965_v1  ;;  %v873_v51 = vsub.f32 %v9948_v14, %v872_v30  ;;  %v884_v46 = vand.u32 4294901760, %v9975_v41 }
  0x75   :  { %695 = vmatpush.msra.mxu1 %v9772_v7  ;;  %665 = vmatpush.msra.mxu0 %v9842_v49  ;;  %v879_v62 = vsub.f32 %v9959_v36, %v878_v5  ;;  %v10066_v26 = vand.u32 4294901760, %v87_v24 }
  0x76   :  { %513 = vmatmul.f32.vlgmr.msrb.gmra.mxu2 %v9730_v40  ;;  %803 = vmatpush.msra.mxu3 %v9772_v7  ;;  %v890_v7 = vand.u32 4294901760, %v9988_v57  ;;  %v896_v55 = vand.u32 4294901760, %v9994_v54  ;;  %v874_v21 = vand.u32 4294901760, %v873_v51  ;;  %v885_v3 = vsub.f32 %v9975_v41, %v884_v46 }
  0x77   :  { %818 = vmatpush.msrb.mxu0 %v9912_v53  ;;  %697 = vmatpush.msra.mxu1 %v9785_v22  ;;  %v880_v29 = vand.u32 4294901760, %v879_v62  ;;  %v926_v51 = vand.u32 4294901760, %v10064_v27 }
  0x78   :  { %762 = vmatpush.msra.mxu2 %v591_v33  ;;  %614 = vmatmul.f32.vlgmr.msrb.gmra.mxu3 %v9636_v63  ;;  %v96_v33 = vld [vmem:[#allocation7 + $0x88] sm:$0xff]  ;;  %v891_v56 = vsub.f32 %v9988_v57, %v890_v7 }
  0x79   :  { %820 = vmatpush.msrb.mxu0 %v9919_v13  ;;  %699 = vmatpush.msra.mxu1 %v9798_v61  ;;  %v10028_v37 = vand.u32 4294901760, %v96_v33 }
  0x7a   :  { %766 = vmatpush.msra.mxu2 %v597_v9  ;;  %805 = vmatpush.msra.mxu3 %v9785_v22  ;;  %v10026_v9 = vsub.f32 %v102_v6, %v10002_v50  ;;  %v902_v22 = vand.u32 4294901760, %v10007_v16  ;;  %v10076_v6 = vsub.f32 %v90_v42, %v10054_v47 }
  0x7b   :  { %822 = vmatpush.msrb.mxu0 %v9929_v58  ;;  %701 = vmatpush.msra.mxu1 %v9810_v19  ;;  %v10052_v12 = vsub.f32 %v96_v33, %v10028_v37  ;;  %v10088_v33 = vsub.f32 %v87_v24, %v10066_v26 }
  0x7c   :  { %770 = vmatpush.msra.mxu2 %v603_v2  ;;  %807 = vmatpush.msra.mxu3 %v9798_v61  ;;  %v897_v61 = vsub.f32 %v9994_v54, %v896_v55  ;;  %v886_v2 = vand.u32 4294901760, %v885_v3  ;;  %v908_v34 = vand.u32 4294901760, %v10026_v9  ;;  %v903_v49 = vsub.f32 %v10007_v16, %v902_v22 }
  0x7d   :  { %824 = vmatpush.msrb.mxu0 %v9939_v15  ;;  %703 = vmatpush.msra.mxu1 %v9823_v10  ;;  %v920_v8 = vand.u32 4294901760, %v10052_v12 }
  0x7e   :  { %774 = vmatpush.msra.mxu2 %v609_v45  ;;  %809 = vmatpush.msra.mxu3 %v9810_v19  ;;  %v84_v19 = vld [vmem:[#allocation7 + $0x28] sm:$0xff]  ;;  %v892_v45 = vand.u32 4294901760, %v891_v56  ;;  %v898_v25 = vand.u32 4294901760, %v897_v61  ;;  %v904_v44 = vand.u32 4294901760, %v903_v49  ;;  %v938_v56 = vand.u32 4294901760, %v10088_v33 }
  0x7f   :  { %863 = vmatpush.msrb.mxu1 %v862_v31  ;;  %826 = vmatpush.msrb.mxu0 %v9950_v59  ;;  %v10078_v11 = vand.u32 4294901760, %v84_v19  ;;  %v915_v31 = vsub.f32 %v10039_v38, %v914_v48  ;;  %v921_v60 = vsub.f32 %v10052_v12, %v920_v8 }
  0x80   :  { %776 = vmatmul.f32.vlgmr.msra.gmra.mxu2 %v9636_v63  ;;  %811 = vmatpush.msra.mxu3 %v9823_v10  ;;  %v909_v10 = vsub.f32 %v10026_v9, %v908_v34 }
  0x81   :  { %869 = vmatpush.msrb.mxu1 %v868_v52  ;;  %828 = vmatpush.msrb.mxu0 %v9961_v23  ;;  %v10090_v52 = vand.u32 4294901760, %v81_v18  ;;  %v10100_v3 = vsub.f32 %v84_v19, %v10078_v11  ;;  %v916_v42 = vand.u32 4294901760, %v915_v31  ;;  %v922_v24 = vand.u32 4294901760, %v921_v60 }
  0x82   :  { %668 = vmatmul.f32.vlgmr.msra.gmra.mxu0 %v9660_v0  ;;  %813 = vmatmul.f32.vlgmr.msra.gmra.mxu3 %v9636_v63  ;;  %v910_v62 = vand.u32 4294901760, %v909_v10 }
  0x83   :  { %875 = vmatpush.msrb.mxu1 %v874_v21  ;;  %830 = vmatpush.msrb.mxu0 %v9965_v1  ;;  %v932_v21 = vand.u32 4294901760, %v10076_v6  ;;  %v10110_v61 = vsub.f32 %v81_v18, %v10090_v52  ;;  %v944_v49 = vand.u32 4294901760, %v10100_v3 }
  0x84   :  { %707 = vmatmul.f32.vlgmr.msra.gmra.mxu1 %v9687_v39  ;;  %961 = vmatpush.msrb.mxu2 %v9927_v17  ;;  %v1252_v17 = vld [vmem:[#allocation7 + $0x138] sm:$0xff] }
  0x85   :  { %881 = vmatpush.msrb.mxu1 %v880_v29  ;;  %832 = vmatpush.msrb.mxu0 %v9979_v32  ;;  %v927_v29 = vsub.f32 %v10064_v27, %v926_v51  ;;  %v945_v10 = vsub.f32 %v10100_v3, %v944_v49 }
  0x86   :  { %964 = vmatpush.msrb.mxu2 %v9937_v43  ;;  %1014 = vmatpush.msrb.mxu3 %v9912_v53 }
  0x87   :  { %887 = vmatpush.msrb.mxu1 %v886_v2  ;;  %834 = vmatpush.msrb.mxu0 %v10002_v50  ;;  %v933_v2 = vsub.f32 %v10076_v6, %v932_v21  ;;  %v928_v19 = vand.u32 4294901760, %v927_v29 }
  0x88   :  { %967 = vmatpush.msrb.mxu2 %v9948_v14  ;;  %1016 = vmatpush.msrb.mxu3 %v9919_v13 }
  0x89   :  { %893 = vmatpush.msrb.mxu1 %v892_v45  ;;  %836 = vmatpush.msrb.mxu0 %v10016_v4  ;;  %v939_v45 = vsub.f32 %v10088_v33, %v938_v56  ;;  %v934_v18 = vand.u32 4294901760, %v933_v2 }
  0x8a   :  { %970 = vmatpush.msrb.mxu2 %v9959_v36  ;;  %1018 = vmatpush.msrb.mxu3 %v9929_v58 }
  0x8b   :  { %899 = vmatpush.msrb.mxu1 %v898_v25  ;;  %838 = vmatpush.msrb.mxu0 %v10028_v37  ;;  %v950_v25 = vand.u32 4294901760, %v10110_v61 }
  0x8c   :  { %973 = vmatpush.msrb.mxu2 %v9975_v41  ;;  %1020 = vmatpush.msrb.mxu3 %v9939_v15 }
  0x8d   :  { %905 = vmatpush.msrb.mxu1 %v904_v44  ;;  %840 = vmatpush.msrb.mxu0 %v10041_v35  ;;  %v940_v44 = vand.u32 4294901760, %v939_v45  ;;  %v951_v31 = vsub.f32 %v10110_v61, %v950_v25 }
  0x8e   :  { %976 = vmatpush.msrb.mxu2 %v9988_v57  ;;  %1022 = vmatpush.msrb.mxu3 %v9950_v59 }
  0x8f   :  { %911 = vmatpush.msrb.mxu1 %v910_v62  ;;  %842 = vmatpush.msrb.mxu0 %v10054_v47  ;;  %v946_v62 = vand.u32 4294901760, %v945_v10  ;;  %v952_v60 = vand.u32 4294901760, %v951_v31 }
  0x90   :  { %979 = vmatpush.msrb.mxu2 %v9994_v54  ;;  %1024 = vmatpush.msrb.mxu3 %v9961_v23 }
  0x91   :  { %917 = vmatpush.msrb.mxu1 %v916_v42  ;;  %844 = vmatpush.msrb.mxu0 %v10066_v26 }
  0x92   :  { %982 = vmatpush.msrb.mxu2 %v10007_v16  ;;  %1026 = vmatpush.msrb.mxu3 %v9965_v1 }
  0x93   :  { %923 = vmatpush.msrb.mxu1 %v922_v24  ;;  %846 = vmatpush.msrb.mxu0 %v10078_v11  ;;  %v1231_v24 = vld [vmem:[#allocation7 + $0x90] sm:$0xff] }
  0x94   :  { %985 = vmatpush.msrb.mxu2 %v10026_v9  ;;  %1028 = vmatpush.msrb.mxu3 %v9979_v32  ;;  %v10308_v45 = vand.u32 4294901760, %v1231_v24 }
  0x95   :  { %929 = vmatpush.msrb.mxu1 %v928_v19  ;;  %848 = vmatpush.msrb.mxu0 %v10090_v52 }
  0x96   :  { %988 = vmatpush.msrb.mxu2 %v10039_v38  ;;  %1030 = vmatpush.msrb.mxu3 %v10002_v50 }
  0x97   :  { %1055 = vmatpush.msra.mxu0 %v860_v28  ;;  %935 = vmatpush.msrb.mxu1 %v934_v18  ;;  %v1249_v28 = vld [vmem:[#allocation7 + $0x120] sm:$0xff] }
  0x98   :  { %991 = vmatpush.msrb.mxu2 %v10052_v12  ;;  %1032 = vmatpush.msrb.mxu3 %v10016_v4 }
  0x99   :  { %1059 = vmatpush.msra.mxu0 %v866_v20  ;;  %941 = vmatpush.msrb.mxu1 %v940_v44  ;;  %v10236_v20 = vand.u32 4294901760, %v1249_v28  ;;  %v1228_v44 = vld [vmem:[#allocation7 + $0x78] sm:$0xff] }
  0x9a   :  { %994 = vmatpush.msrb.mxu2 %v10064_v27  ;;  %1034 = vmatpush.msrb.mxu3 %v10028_v37 }
  0x9b   :  { %1063 = vmatpush.msra.mxu0 %v872_v30  ;;  %947 = vmatpush.msrb.mxu1 %v946_v62 }
  0x9c   :  { %997 = vmatpush.msrb.mxu2 %v10076_v6  ;;  %1036 = vmatpush.msrb.mxu3 %v10041_v35 }
  0x9d   :  { %1067 = vmatpush.msra.mxu0 %v878_v5  ;;  %953 = vmatpush.msrb.mxu1 %v952_v60  ;;  %v10248_v5 = vsub.f32 %v1249_v28, %v10236_v20  ;;  %v10317_v60 = vsub.f32 %v1231_v24, %v10308_v45  ;;  %v1225_v28 = vld [vmem:[#allocation7 + $0x60] sm:$0xff]  ;;  %v1216_v24 = vld [vmem:[#allocation7 + $0x18] sm:$0xff] }
  0x9e   :  { %1000 = vmatpush.msrb.mxu2 %v10088_v33  ;;  %1038 = vmatpush.msrb.mxu3 %v10054_v47 }
  0x9f   :  { %1122 = vmatpush.msra.mxu1 %v9912_v53  ;;  %1071 = vmatpush.msra.mxu0 %v884_v46  ;;  %v1243_v46 = vld [vmem:[#allocation7 + $0xf0] sm:$0xff]  ;;  %v1330_v16 = vand.u32 4294901760, %v10248_v5 }
  0xa0   :  { %1003 = vmatpush.msrb.mxu2 %v10100_v3  ;;  %1040 = vmatpush.msrb.mxu3 %v10066_v26 }
  0xa1   :  { %1124 = vmatpush.msra.mxu1 %v9919_v13  ;;  %1075 = vmatpush.msra.mxu0 %v890_v7  ;;  %v1331_v38 = vsub.f32 %v10248_v5, %v1330_v16 }
  0xa2   :  { %1006 = vmatpush.msrb.mxu2 %v10110_v61  ;;  %1042 = vmatpush.msrb.mxu3 %v10078_v11 }
  0xa3   :  { %1126 = vmatpush.msra.mxu1 %v9929_v58  ;;  %1079 = vmatpush.msra.mxu0 %v896_v55  ;;  %v10220_v58 = vld [vmem:[#allocation8] sm:$0x7] }
  0xa4   :  { %1009 = vmatmul.f32.vlgmr.msrb.gmra.mxu2 %v9660_v0  ;;  %1044 = vmatpush.msrb.mxu3 %v10090_v52  ;;  %v129_v36 = vperm.slane %v10220_v58, 0  ;;  %v130_v18 = vperm.slane %v10220_v58, 1 }
  0xa5   :  { %1128 = vmatpush.msra.mxu1 %v9939_v15  ;;  %1083 = vmatpush.msra.mxu0 %v902_v22  ;;  %v10228_v15 = vand.u32 4294901760, %v1252_v17 }
  0xa6   :  { %854 = vmatmul.f32.vlgmr.msrb.gmra.mxu0 %v9730_v40  ;;  %1048 = vmatmul.f32.vlgmr.msrb.gmra.mxu3 %v9687_v39  ;;  %v1258_v39 = vld [vmem:[#allocation7 + $0x168] sm:$0xff]  ;;  %v1255_v40 = vld [vmem:[#allocation7 + $0x150] sm:$0xff] }
  0xa7   :  { %1130 = vmatpush.msra.mxu1 %v9950_v59  ;;  %1087 = vmatpush.msra.mxu0 %v908_v34  ;;  %v10211_v0 = vand.u32 4294901760, %v1258_v39  ;;  %v10216_v13 = vand.u32 4294901760, %v1255_v40 }
  0xa8   :  { %955 = vmatmul.f32.vlgmr.msrb.gmra.mxu1 %v9636_v63 }
  0xa9   :  { %1132 = vmatpush.msra.mxu1 %v9961_v23  ;;  %1091 = vmatpush.msra.mxu0 %v914_v48  ;;  %v10214_v53 = vsub.f32 %v1258_v39, %v10211_v0  ;;  %v10240_v23 = vsub.f32 %v1252_v17, %v10228_v15  ;;  %v1237_v48 = vld [vmem:[#allocation7 + $0xc0] sm:$0xff]  ;;  %v10319_v39 = vand.u32 4294901760, %v1228_v44 }
  0xaa   :  { %1270 = vmatpush.msra.mxu2 %v10211_v0  ;;  %v10288_v33 = vand.u32 4294901760, %v1237_v48 }
  0xab   :  { %1134 = vmatpush.msra.mxu1 %v9965_v1  ;;  %1095 = vmatpush.msra.mxu0 %v920_v8  ;;  %v1312_v43 = vand.u32 4294901760, %v10214_v53  ;;  %v1246_v1 = vld [vmem:[#allocation7 + $0x108] sm:$0xff]  ;;  %v1324_v54 = vand.u32 4294901760, %v10240_v23 }
  0xac   :  { %1272 = vmatpush.msra.mxu2 %v10216_v13  ;;  %v10250_v57 = vand.u32 4294901760, %v1246_v1  ;;  %v10299_v61 = vsub.f32 %v1237_v48, %v10288_v33 }
  0xad   :  { %1136 = vmatpush.msra.mxu1 %v9979_v32  ;;  %1099 = vmatpush.msra.mxu0 %v926_v51  ;;  %v1313_v14 = vsub.f32 %v10214_v53, %v1312_v43  ;;  %v1325_v9 = vsub.f32 %v10240_v23, %v1324_v54 }
  0xae   :  { %1274 = vmatpush.msra.mxu2 %v10228_v15  ;;  %v10257_v7 = vsub.f32 %v1246_v1, %v10250_v57  ;;  %v1354_v10 = vand.u32 4294901760, %v10299_v61  ;;  %v1366_v1 = vand.u32 4294901760, %v10317_v60 }
  0xaf   :  { %1138 = vmatpush.msra.mxu1 %v10002_v50  ;;  %1103 = vmatpush.msra.mxu0 %v932_v21  ;;  %v1314_v41 = vand.u32 4294901760, %v1313_v14 }
  0xb0   :  { %1276 = vmatpush.msra.mxu2 %v10236_v20  ;;  %v1355_v17 = vsub.f32 %v10299_v61, %v1354_v10 }
  0xb1   :  { %1140 = vmatpush.msra.mxu1 %v10016_v4  ;;  %1107 = vmatpush.msra.mxu0 %v938_v56  ;;  %v10259_v4 = vand.u32 4294901760, %v1243_v46 }
  0xb2   :  { %1315 = vmatpush.msra.mxu3 %v1314_v41  ;;  %1278 = vmatpush.msra.mxu2 %v10250_v57  ;;  %v10334_v41 = vand.u32 4294901760, %v1225_v28 }
  0xb3   :  { %1142 = vmatpush.msra.mxu1 %v10028_v37  ;;  %1111 = vmatpush.msra.mxu0 %v944_v49  ;;  %v1240_v37 = vld [vmem:[#allocation7 + $0xd8] sm:$0xff]  ;;  %v10272_v34 = vsub.f32 %v1243_v46, %v10259_v4 }
  0xb4   :  { %v10274_v12 = vand.u32 4294901760, %v1240_v37  ;;  %1280 = vmatpush.msra.mxu2 %v10259_v4 }
  0xb5   :  { %1144 = vmatpush.msra.mxu1 %v10041_v35  ;;  %1115 = vmatpush.msra.mxu0 %v950_v25  ;;  %v1336_v35 = vand.u32 4294901760, %v10257_v7  ;;  %v1342_v6 = vand.u32 4294901760, %v10272_v34 }
  0xb6   :  { %1117 = vmatmul.f32.vlgmr.msra.gmra.mxu0 %v9636_v63  ;;  %1282 = vmatpush.msra.mxu2 %v10274_v12 }
  0xb7   :  { %1146 = vmatpush.msra.mxu1 %v10054_v47  ;;  %1413 = vmatpush.msrb.mxu0 %v10214_v53  ;;  %v1326_v47 = vand.u32 4294901760, %v1325_v9  ;;  %v1337_v8 = vsub.f32 %v10257_v7, %v1336_v35  ;;  %v1343_v3 = vsub.f32 %v10272_v34, %v1342_v6  ;;  %v1222_v9 = vld [vmem:[#allocation7 + $0x48] sm:$0xff] }
  0xb8   :  { %1284 = vmatpush.msra.mxu2 %v10288_v33 }
  0xb9   :  { %1148 = vmatpush.msra.mxu1 %v10066_v26  ;;  %v1332_v26 = vand.u32 4294901760, %v1331_v38  ;;  %v1338_v21 = vand.u32 4294901760, %v1337_v8  ;;  %v1344_v2 = vand.u32 4294901760, %v1343_v3 }
  0xbb   :  { %1150 = vmatpush.msra.mxu1 %v10078_v11  ;;  %v173_v30 = vpop.f32.mrf.mxu0  ;;  %v10284_v11 = vsub.f32 %v1240_v37, %v10274_v12 }
  0xbc   :  { %v174_v55 = vadd.f32 %v173_v30, %v129_v36  ;;  %v10332_v30 = vsub.f32 %v1228_v44, %v10319_v39 }
  0xbd   :  { %1152 = vmatpush.msra.mxu1 %v10090_v52  ;;  %v1234_v52 = vld [vmem:[#allocation7 + $0xa8] sm:$0xff]  ;;  %v1348_v42 = vand.u32 4294901760, %v10284_v11 }
  0xbe   :  { %1154 = vmatmul.f32.vlgmr.msra.gmra.mxu1 %v9636_v63  ;;  %v10224_v63 = vsub.f32 %v1255_v40, %v10216_v13  ;;  %v10294_v29 = vand.u32 4294901760, %v1234_v52  ;;  %v1372_v38 = vand.u32 4294901760, %v10332_v30 }
  0xbf   :  { %1466 = vmatpush.msrb.mxu1 %v10211_v0  ;;  %v1349_v49 = vsub.f32 %v10284_v11, %v1348_v42 }
  0xc0   :  { %v1318_v59 = vand.u32 4294901760, %v10224_v63  ;;  %1416 = vmatpush.msrb.mxu0 %v10224_v63  ;;  %v10306_v19 = vsub.f32 %v1234_v52, %v10294_v29  ;;  %1286 = vmatpush.msra.mxu2 %v10294_v29  ;;  %v1373_v52 = vsub.f32 %v10332_v30, %v1372_v38 }
  0xc1   :  { %1468 = vmatpush.msrb.mxu1 %v10216_v13  ;;  %v274_v22 = vpop.f32.mrf.mxu1  ;;  %v1350_v31 = vand.u32 4294901760, %v1349_v49 }
  0xc2   :  { %v1319_v32 = vsub.f32 %v10224_v63, %v1318_v59  ;;  %1419 = vmatpush.msrb.mxu0 %v10240_v23  ;;  %v275_v51 = vadd.f32 %v274_v22, %v174_v55  ;;  %v1360_v62 = vand.u32 4294901760, %v10306_v19  ;;  %1288 = vmatpush.msra.mxu2 %v10308_v45  ;;  %v1356_v55 = vand.u32 4294901760, %v1355_v17 }
  0xc3   :  { %1470 = vmatpush.msrb.mxu1 %v10228_v15  ;;  %v328_v27 = vpop.f32.mrf.mxu2  ;;  %v367_v56 = vpop.f32.mrf.mxu3  ;;  %v1367_v22 = vsub.f32 %v10317_v60, %v1366_v1  ;;  %v1374_v49 = vand.u32 4294901760, %v1373_v52 }
  0xc4   :  { %v1320_v50 = vand.u32 4294901760, %v1319_v32  ;;  %1422 = vmatpush.msrb.mxu0 %v10248_v5  ;;  %v329_v25 = vadd.f32 %v328_v27, %v275_v51  ;;  %v1361_v36 = vsub.f32 %v10306_v19, %v1360_v62  ;;  %1290 = vmatpush.msra.mxu2 %v10319_v39  ;;  %v10349_v27 = vand.u32 4294901760, %v1222_v9 }
  0xc5   :  { %1472 = vmatpush.msrb.mxu1 %v10236_v20  ;;  %v1368_v51 = vand.u32 4294901760, %v1367_v22 }
  0xc6   :  { %1321 = vmatpush.msra.mxu3 %v1320_v50  ;;  %1425 = vmatpush.msrb.mxu0 %v10257_v7  ;;  %v368_v32 = vadd.f32 %v367_v56, %v329_v25  ;;  %v1362_v37 = vand.u32 4294901760, %v1361_v36  ;;  %v10358_v3 = vsub.f32 %v1222_v9, %v10349_v27  ;;  %v1241_v7 = vld [vmem:[#allocation7 + $0xe0] sm:$0xff] }
  0xc7   :  { %1474 = vmatpush.msrb.mxu1 %v10250_v57  ;;  %1292 = vmatpush.msra.mxu2 %v10334_v41 }
  0xc8   :  { %1327 = vmatpush.msra.mxu3 %v1326_v47  ;;  %1428 = vmatpush.msrb.mxu0 %v10272_v34  ;;  %v10344_v47 = vsub.f32 %v1225_v28, %v10334_v41 }
  0xc9   :  { %1476 = vmatpush.msrb.mxu1 %v10259_v4  ;;  %1294 = vmatpush.msra.mxu2 %v10349_v27 }
  0xca   :  { %1333 = vmatpush.msra.mxu3 %v1332_v26  ;;  %1431 = vmatpush.msrb.mxu0 %v10284_v11  ;;  %v1219_v26 = vld [vmem:[#allocation7 + $0x30] sm:$0xff] }
  0xcb   :  { %1478 = vmatpush.msrb.mxu1 %v10274_v12  ;;  %v10361_v56 = vand.u32 4294901760, %v1219_v26  ;;  %v1235_v11 = vld [vmem:[#allocation7 + $0xb0] sm:$0xff] }
  0xcc   :  { %1339 = vmatpush.msra.mxu3 %v1338_v21  ;;  %1434 = vmatpush.msrb.mxu0 %v10299_v61  ;;  %v1378_v21 = vand.u32 4294901760, %v10344_v47 }
  0xcd   :  { %1480 = vmatpush.msrb.mxu1 %v10288_v33  ;;  %v10372_v17 = vsub.f32 %v1219_v26, %v10361_v56  ;;  %1296 = vmatpush.msra.mxu2 %v10361_v56 }
  0xce   :  { %1345 = vmatpush.msra.mxu3 %v1344_v2  ;;  %1437 = vmatpush.msrb.mxu0 %v10306_v19  ;;  %v1379_v25 = vsub.f32 %v10344_v47, %v1378_v21 }
  0xcf   :  { %1482 = vmatpush.msrb.mxu1 %v10294_v29  ;;  %v1390_v9 = vand.u32 4294901760, %v10372_v17 }
  0xd0   :  { %1351 = vmatpush.msra.mxu3 %v1350_v31  ;;  %1440 = vmatpush.msrb.mxu0 %v10317_v60  ;;  %v1384_v31 = vand.u32 4294901760, %v10358_v3 }
  0xd1   :  { %1484 = vmatpush.msrb.mxu1 %v10308_v45 }
  0xd2   :  { %1357 = vmatpush.msra.mxu3 %v1356_v55  ;;  %1443 = vmatpush.msrb.mxu0 %v10332_v30  ;;  %v1385_v55 = vsub.f32 %v10358_v3, %v1384_v31 }
  0xd3   :  { %v436_v40 = vpop.f32.mrf.mxu0  ;;  %1486 = vmatpush.msrb.mxu1 %v10319_v39 }
  0xd4   :  { %1363 = vmatpush.msra.mxu3 %v1362_v37  ;;  %1446 = vmatpush.msrb.mxu0 %v10344_v47  ;;  %v437_v2 = vadd.f32 %v436_v40, %v368_v32  ;;  %v1213_v40 = vld [vmem:[#allocation7] sm:$0xff]  ;;  %v1386_v52 = vand.u32 4294901760, %v1385_v55 }
  0xd5   :  { %1488 = vmatpush.msrb.mxu1 %v10334_v41  ;;  %v10378_v32 = vand.u32 4294901760, %v1213_v40 }
  0xd6   :  { %1369 = vmatpush.msra.mxu3 %v1368_v51  ;;  %1449 = vmatpush.msrb.mxu0 %v10358_v3 }
  0xd7   :  { %1490 = vmatpush.msrb.mxu1 %v10349_v27  ;;  %v10389_v26 = vsub.f32 %v1213_v40, %v10378_v32 }
  0xd8   :  { %1375 = vmatpush.msra.mxu3 %v1374_v49  ;;  %1452 = vmatpush.msrb.mxu0 %v10372_v17 }
  0xd9   :  { %1492 = vmatpush.msrb.mxu1 %v10361_v56  ;;  %v15814_v49 = vand.u32 4294901760, %v10389_v26 }
  0xdb   :  { %v473_v46 = vpop.f32.mrf.mxu1  ;;  %v1403_v55 = vsub.f32 %v10389_v26, %v15814_v49  ;;  %v1250_v49 = vld [vmem:[#allocation7 + $0x128] sm:$0xff] }
  0xdc   :  { %v474_v37 = vadd.f32 %v473_v46, %v437_v2 }
  0xf9   :  { %v514_v14 = vpop.f32.mrf.mxu2 }
  0xfa   :  { %v515_v50 = vadd.f32 %v514_v14, %v130_v18  ;;  %v10366_v18 = vand.u32 4294901760, %v1216_v24  ;;  %v1380_v14 = vand.u32 4294901760, %v1379_v25  ;;  %v1259_v25 = vld [vmem:[#allocation7 + $0x170] sm:$0xff] }
  0xfb   :  { %v615_v48 = vpop.f32.mrf.mxu3 }
  0xfc   :  { %v616_v8 = vadd.f32 %v615_v48, %v515_v50  ;;  %v10376_v36 = vsub.f32 %v1216_v24, %v10366_v18  ;;  %1494 = vmatpush.msrb.mxu1 %v10366_v18  ;;  %1298 = vmatpush.msra.mxu2 %v10366_v18  ;;  %v1391_v24 = vsub.f32 %v10372_v17, %v1390_v9 }
  0xfd   :  { %1381 = vmatpush.msra.mxu3 %v1380_v14 }
  0xfe   :  { %v15813_v48 = vand.u32 4294901760, %v10376_v36  ;;  %1455 = vmatpush.msrb.mxu0 %v10376_v36  ;;  %1496 = vmatpush.msrb.mxu1 %v10378_v32  ;;  %v1392_v40 = vand.u32 4294901760, %v1391_v24 }
  0xff   :  { %v669_v44 = vpop.f32.mrf.mxu0  ;;  %1300 = vmatpush.msra.mxu2 %v10378_v32  ;;  %1387 = vmatpush.msra.mxu3 %v1386_v52 }
 0x100   :  { %v670_v28 = vadd.f32 %v669_v44, %v616_v8  ;;  %v10393_v8 = vld [vmem:[#allocation2] sm:$0x7]  ;;  %v1397_v2 = vsub.f32 %v10376_v36, %v15813_v48  ;;  %1458 = vmatpush.msrb.mxu0 %v10389_v26 }
 0x101   :  { %v708_v50 = vpop.f32.mrf.mxu1  ;;  %v1158_v14 = vadd.f32 %v474_v37, %v10393_v8  ;;  %1507 = vmatpush.msrb.mxu2 %v1312_v43  ;;  %1393 = vmatpush.msra.mxu3 %v1392_v40  ;;  %v1179_v37 = vrot.slane %v10393_v8, 1  ;;  %v1253_v48 = vld [vmem:[#allocation7 + $0x140] sm:$0xff] }
 0x102   :  { %v709_v22 = vadd.f32 %v708_v50, %v670_v28  ;;  %v10406_v28 = vand.u32 4294901760, %v1259_v25  ;;  %v1398_v50 = vand.u32 4294901760, %v1397_v2  ;;  %v1404_v2 = vand.u32 4294901760, %v1403_v55 }
 0x103   :  { %v777_v51 = vpop.f32.mrf.mxu2  ;;  %1511 = vmatpush.msrb.mxu2 %v1318_v59  ;;  %v10425_v43 = vand.u32 4294901760, %v1253_v48  ;;  %v9177_v40 = vmul.f32 -1.442695, %v1158_v14  ;;  %v1247_v14 = vld [vmem:[#allocation7 + $0x110] sm:$0xff] }
 0x104   :  { %v778_v46 = vadd.f32 %v777_v51, %v709_v22  ;;  %v1256_v22 = vld [vmem:[#allocation7 + $0x158] sm:$0xff]  ;;  %1611 = vmatpush.msra.mxu0 %v10406_v28  ;;  %v10416_v51 = vsub.f32 %v1259_v25, %v10406_v28  ;;  %1399 = vmatpush.msra.mxu3 %v1398_v50 }
 0x105   :  { %v814_v44 = vpop.f32.mrf.mxu3  ;;  %v10418_v52 = vand.u32 4294901760, %v1256_v22  ;;  %1515 = vmatpush.msrb.mxu2 %v1324_v54  ;;  %9204 = vpow2.f32 %v9177_v40  ;;  %v10473_v40 = vand.u32 4294901760, %v1241_v7 }
 0x106   :  { %v815_v24 = vadd.f32 %v814_v44, %v778_v46  ;;  %v1653_v53 = vand.u32 4294901760, %v10416_v51  ;;  %1405 = vmatpush.msra.mxu3 %v1404_v2  ;;  %v10437_v46 = vand.u32 4294901760, %v1250_v49  ;;  %v10440_v44 = vsub.f32 %v1253_v48, %v10425_v43  ;;  %v1244_v48 = vld [vmem:[#allocation7 + $0xf8] sm:$0xff] }
 0x107   :  { %1613 = vmatpush.msra.mxu0 %v10418_v52  ;;  %v10428_v25 = vsub.f32 %v1256_v22, %v10418_v52  ;;  %1519 = vmatpush.msrb.mxu2 %v1330_v16  ;;  %v10450_v22 = vand.u32 4294901760, %v1247_v14 }
 0x108   :  { %v1654_v63 = vsub.f32 %v10416_v51, %v1653_v53  ;;  %v1181_v50 = vadd.f32 %v1179_v37, %v815_v24  ;;  %1574 = vmatpush.msrb.mxu3 %v10211_v0  ;;  %v1665_v55 = vand.u32 4294901760, %v10440_v44  ;;  %v10454_v0 = vsub.f32 %v1250_v49, %v10437_v46 }
 0x109   :  { %1615 = vmatpush.msra.mxu0 %v10425_v43  ;;  %v1659_v59 = vand.u32 4294901760, %v10428_v25  ;;  %1523 = vmatpush.msrb.mxu2 %v1336_v35  ;;  %v10462_v24 = vand.u32 4294901760, %v1244_v48  ;;  %v10465_v37 = vsub.f32 %v1247_v14, %v10450_v22 }
 0x10a   :  { %v1655_v23 = vand.u32 4294901760, %v1654_v63  ;;  %1576 = vmatpush.msrb.mxu3 %v10216_v13  ;;  %v1666_v16 = vsub.f32 %v10440_v44, %v1665_v55  ;;  %v9178_v13 = vmul.f32 -1.442695, %v1181_v50  ;;  %v1671_v49 = vand.u32 4294901760, %v10454_v0  ;;  %v1238_v50 = vld [vmem:[#allocation7 + $0xc8] sm:$0xff] }
 0x10b   :  { %v1660_v54 = vsub.f32 %v10428_v25, %v1659_v59  ;;  %1617 = vmatpush.msra.mxu0 %v10437_v46  ;;  %1527 = vmatpush.msrb.mxu2 %v1342_v6  ;;  %v1677_v2 = vand.u32 4294901760, %v10465_v37  ;;  %v10476_v63 = vsub.f32 %v1244_v48, %v10462_v24  ;;  %v10489_v14 = vand.u32 4294901760, %v1238_v50 }
 0x10c   :  { %1656 = vmatpush.msra.mxu1 %v1655_v23  ;;  %1578 = vmatpush.msrb.mxu3 %v10228_v15  ;;  %v1667_v35 = vand.u32 4294901760, %v1666_v16  ;;  %v1672_v15 = vsub.f32 %v10454_v0, %v1671_v49  ;;  %9206 = vpow2.f32 %v9178_v13  ;;  %v1232_v16 = vld [vmem:[#allocation7 + $0x98] sm:$0xff] }
 0x10d   :  { %v1661_v5 = vand.u32 4294901760, %v1660_v54  ;;  %1619 = vmatpush.msra.mxu0 %v10450_v22  ;;  %1531 = vmatpush.msrb.mxu2 %v1348_v42  ;;  %v1678_v34 = vsub.f32 %v10465_v37, %v1677_v2  ;;  %v1683_v6 = vand.u32 4294901760, %v10476_v63  ;;  %v10493_v54 = vsub.f32 %v1241_v7, %v10473_v40 }
 0x10e   :  { %1580 = vmatpush.msrb.mxu3 %v10236_v20  ;;  %v9205_v20 = vpop.eup %9204  ;;  %v1673_v23 = vand.u32 4294901760, %v1672_v15  ;;  %v10506_v7 = vsub.f32 %v1238_v50, %v10489_v14  ;;  %v10508_v61 = vand.u32 4294901760, %v1232_v16  ;;  %v1229_v15 = vld [vmem:[#allocation7 + $0x80] sm:$0xff] }
 0x10f   :  { %1662 = vmatpush.msra.mxu1 %v1661_v5  ;;  %1621 = vmatpush.msra.mxu0 %v10462_v24  ;;  %v1679_v42 = vand.u32 4294901760, %v1678_v34  ;;  %v1684_v48 = vsub.f32 %v10476_v63, %v1683_v6  ;;  %v10503_v5 = vand.u32 4294901760, %v1235_v11  ;;  %v10523_v19 = vand.u32 4294901760, %v1229_v15 }
 0x110   :  { %1582 = vmatpush.msrb.mxu3 %v10250_v57  ;;  %1535 = vmatpush.msrb.mxu2 %v1354_v10  ;;  %v1689_v57 = vand.u32 4294901760, %v10493_v54  ;;  %v1695_v50 = vand.u32 4294901760, %v10506_v7 }
 0x111   :  { %1668 = vmatpush.msra.mxu1 %v1667_v35  ;;  %1623 = vmatpush.msra.mxu0 %v10473_v40  ;;  %v1685_v10 = vand.u32 4294901760, %v1684_v48  ;;  %v10519_v35 = vsub.f32 %v1235_v11, %v10503_v5  ;;  %v10540_v60 = vsub.f32 %v1229_v15, %v10523_v19 }
 0x112   :  { %1584 = vmatpush.msrb.mxu3 %v10259_v4  ;;  %1539 = vmatpush.msrb.mxu2 %v1360_v62  ;;  %v10512_v4 = vadd.f32 1.0, %v9205_v20  ;;  %v1690_v13 = vsub.f32 %v10493_v54, %v1689_v57  ;;  %v10526_v62 = vsub.f32 %v1232_v16, %v10508_v61  ;;  %v1226_v20 = vld [vmem:[#allocation7 + $0x68] sm:$0xff]  ;;  %v1696_v11 = vsub.f32 %v10506_v7, %v1695_v50 }
 0x113   :  { %1625 = vmatpush.msra.mxu0 %v10489_v14  ;;  %1674 = vmatpush.msra.mxu1 %v1673_v23  ;;  %v15816_v34 = vand.u32 4294901760, %v10519_v35  ;;  %v9207_v23 = vpop.eup %9206  ;;  %v10537_v48 = vand.u32 4294901760, %v1226_v20  ;;  %v15822_v30 = vand.u32 4294901760, %v10540_v60 }
 0x114   :  { %1586 = vmatpush.msrb.mxu3 %v10274_v12  ;;  %1543 = vmatpush.msrb.mxu2 %v1366_v1  ;;  %v1691_v12 = vand.u32 4294901760, %v1690_v13  ;;  %9208 = vrcp.f32 %v10512_v4  ;;  %v1223_v1 = vld [vmem:[#allocation7 + $0x50] sm:$0xff]  ;;  %v1697_v16 = vand.u32 4294901760, %v1696_v11  ;;  %vm1168_vm0 = vweird.f32 %v10512_v4 }
 0x115   :  { %1680 = vmatpush.msra.mxu1 %v1679_v42  ;;  %1627 = vmatpush.msra.mxu0 %v10503_v5  ;;  %v15815_v42 = vand.u32 4294901760, %v10526_v62  ;;  %v10562_v15 = vsub.f32 %v1226_v20, %v10537_v48  ;;  %v1217_v20 = vld [vmem:[#allocation7 + $0x20] sm:$0xff] }
 0x116   :  { %1588 = vmatpush.msrb.mxu3 %v10288_v33  ;;  %1547 = vmatpush.msrb.mxu2 %v1372_v38  ;;  %v1702_v33 = vsub.f32 %v10519_v35, %v15816_v34  ;;  %v10554_v38 = vand.u32 4294901760, %v1223_v1 }
 0x117   :  { %1686 = vmatpush.msra.mxu1 %v1685_v10  ;;  %1629 = vmatpush.msra.mxu0 %v10508_v61  ;;  %v1708_v10 = vsub.f32 %v10526_v62, %v15815_v42  ;;  %v1714_v42 = vsub.f32 %v10540_v60, %v15822_v30  ;;  %v9284_v30 = vld [vmem:[#allocation5] sm:$0x1] }
 0x118   :  { %1590 = vmatpush.msrb.mxu3 %v10294_v29  ;;  %1551 = vmatpush.msrb.mxu2 %v1378_v21  ;;  %v10558_v29 = vadd.f32 1.0, %v9207_v23  ;;  %v1703_v13 = vand.u32 4294901760, %v1702_v33  ;;  %v10571_v47 = vsub.f32 %v1223_v1, %v10554_v38  ;;  %v15821_v21 = vand.u32 4294901760, %v10562_v15 }
 0x119   :  { %1692 = vmatpush.msra.mxu1 %v1691_v12  ;;  %1631 = vmatpush.msra.mxu0 %v10523_v19  ;;  %v1220_v12 = vld [vmem:[#allocation7 + $0x38] sm:$0xff]  ;;  %v1709_v11 = vand.u32 4294901760, %v1708_v10  ;;  %v1715_v23 = vand.u32 4294901760, %v1714_v42  ;;  %v1214_v42 = vld [vmem:[#allocation7 + $0x8] sm:$0xff] }
 0x11a   :  { %1592 = vmatpush.msrb.mxu3 %v10308_v45  ;;  %v10568_v34 = vand.u32 4294901760, %v1220_v12  ;;  %v131_v45 = vperm.slane %v10220_v58, 2  ;;  %1555 = vmatpush.msrb.mxu2 %v1384_v31  ;;  %v15817_v33 = vand.u32 4294901760, %v10571_v47  ;;  %v10585_v58 = vpop.eup %9208  ;;  %9210 = vrcp.f32 %v10558_v29 }
 0x11b   :  { %1698 = vmatpush.msra.mxu1 %v1697_v16  ;;  %1633 = vmatpush.msra.mxu0 %v10537_v48  ;;  %v10580_v16 = vand.u32 4294901760, %v1217_v20  ;;  %vm1169_vm1 = vweird.f32 %v10585_v58  ;;  %vm1191_vm3 = vweird.f32 %v10558_v29 }
 0x11c   :  { %1594 = vmatpush.msrb.mxu3 %v10319_v39  ;;  %v10583_v1 = vsub.f32 %v1220_v12, %v10568_v34  ;;  %v1720_v39 = vsub.f32 %v10562_v15, %v15821_v21  ;;  %1559 = vmatpush.msrb.mxu2 %v1390_v9  ;;  %v1726_v3 = vsub.f32 %v10571_v47, %v15817_v33  ;;  %v15905_v9 = vand.u32 4294901760, %v10376_v36  ;;  %vm1170_vm2 = vmor %vm1168_vm0, %vm1169_vm1 }
 0x11d   :  { %1704 = vmatpush.msra.mxu1 %v1703_v13  ;;  %1635 = vmatpush.msra.mxu0 %v10554_v38  ;;  %v10600_v13 = vand.u32 4294901760, %v1214_v42  ;;  %v10603_v17 = vsub.f32 %v1217_v20, %v10580_v16 }
 0x11e   :  { %1596 = vmatpush.msrb.mxu3 %v10334_v41  ;;  %v15818_v31 = vand.u32 4294901760, %v10583_v1  ;;  %v1721_v10 = vand.u32 4294901760, %v1720_v39  ;;  %1563 = vmatpush.msrb.mxu2 %v15905_v9  ;;  %v1727_v33 = vand.u32 4294901760, %v1726_v3 }
 0x11f   :  { %1710 = vmatpush.msra.mxu1 %v1709_v11  ;;  %1637 = vmatpush.msra.mxu0 %v10568_v34  ;;  %v1164_v11 = vmul.f32 %v10585_v58, %v10512_v4  ;;  %v15819_v20 = vand.u32 4294901760, %v10603_v17  ;;  %v10616_v36 = vsub.f32 %v1214_v42, %v10600_v13 }
 0x120   :  { %1598 = vmatpush.msrb.mxu3 %v10349_v27  ;;  %v1732_v27 = vsub.f32 %v10583_v1, %v15818_v31  ;;  %v9211_v31 = vpop.eup %9210 }
 0x121   :  { %1716 = vmatpush.msra.mxu1 %v1715_v23  ;;  %1639 = vmatpush.msra.mxu0 %v10580_v16  ;;  %v15820_v9 = vand.u32 4294901760, %v10616_v36  ;;  %v1165_v42 = vsub.f32 1.0, %v1164_v11  ;;  %vm1192_vm4 = vweird.f32 %v9211_v31 }
 0x122   :  { %1600 = vmatpush.msrb.mxu3 %v10361_v56  ;;  %v1733_v23 = vand.u32 4294901760, %v1732_v27  ;;  %v1738_v56 = vsub.f32 %v10603_v17, %v15819_v20  ;;  %vm1193_vm6 = vmor %vm1191_vm3, %vm1192_vm4 }
 0x123   :  { %v855_v41 = vpop.f32.mrf.mxu0  ;;  %1722 = vmatpush.msra.mxu1 %v1721_v10  ;;  %1641 = vmatpush.msra.mxu0 %v10600_v13  ;;  %v1744_v10 = vsub.f32 %v10616_v36, %v15820_v9 }
 0x124   :  { %v856_v12 = vadd.f32 %v855_v41, %v131_v45  ;;  %v15906_v45 = vand.u32 4294901760, %v10389_v26  ;;  %1602 = vmatpush.msrb.mxu3 %v10366_v18  ;;  %v1739_v26 = vand.u32 4294901760, %v1738_v56  ;;  %v1187_v18 = vmul.f32 %v9211_v31, %v10558_v29 }
 0x125   :  { %v956_v39 = vpop.f32.mrf.mxu1  ;;  %1728 = vmatpush.msra.mxu1 %v1727_v33 }
 0x126   :  { %1567 = vmatpush.msrb.mxu2 %v15906_v45  ;;  %v957_v41 = vadd.f32 %v956_v39, %v856_v12  ;;  %1604 = vmatpush.msrb.mxu3 %v10378_v32  ;;  %v1745_v39 = vand.u32 4294901760, %v1744_v10  ;;  %v1166_v45 = vmul.f32 %v10585_v58, %v1165_v42  ;;  %v1188_v11 = vsub.f32 1.0, %v1187_v18 }
 0x127   :  { %v1010_v3 = vpop.f32.mrf.mxu2  ;;  %1734 = vmatpush.msra.mxu1 %v1733_v23 }
 0x128   :  { %v1011_v12 = vadd.f32 %v1010_v3, %v957_v41  ;;  %v1167_v32 = vadd.f32 %v10585_v58, %v1166_v45  ;;  %v1174_v41 = vand.u32 2147483648, %v10512_v4  ;;  %v1172_v3 = vand.u32 2147483647, %v10512_v4 }
 0x129   :  { %v1049_v27 = vpop.f32.mrf.mxu3  ;;  %1740 = vmatpush.msra.mxu1 %v1739_v26  ;;  %v1189_v56 = vmul.f32 %v9211_v31, %v1188_v11 }
 0x12a   :  { %v1050_v20 = vadd.f32 %v1049_v27, %v1011_v12  ;;  %v1171_v42 = vsel %vm1170_vm2, %v10585_v58, %v1167_v32  ;;  %v1175_v10 = vor.u32 1.1754944e-38, %v1174_v41  ;;  %v1197_v12 = vand.u32 2147483648, %v10558_v29 }
 0x12b   :  { %1746 = vmatpush.msra.mxu1 %v1745_v39  ;;  %vm1173_vm5 = vcmp.eq.f32.partialorder %v1172_v3, 8.507059e+37  ;;  %v1202_v27 = vrot.slane %v10393_v8, 2  ;;  %v1190_v45 = vadd.f32 %v9211_v31, %v1189_v56  ;;  %v15911_v56 = vand.u32 4294901760, %v10571_v47 }
 0x12c   :  { %v1176_v39 = vsel %vm1173_vm5, %v1175_v10, %v1171_v42  ;;  %v1198_v11 = vor.u32 1.1754944e-38, %v1197_v12  ;;  %v1236_v10 = vld [vmem:[#allocation7 + $0xb8] sm:$0xff]  ;;  %v15912_v12 = vand.u32 4294901760, %v10583_v1 }
 0x12d   :  { %v1194_v58 = vsel %vm1193_vm6, %v9211_v31, %v1190_v45  ;;  %v10787_v45 = vand.u32 4294901760, %v1236_v10 }
 0x133   :  { %v1118_v33 = vpop.f32.mrf.mxu0 }
 0x134   :  { %v1119_v23 = vadd.f32 %v1118_v33, %v1050_v20  ;;  %v1195_v20 = vand.u32 2147483647, %v10558_v29 }
 0x136   :  { %vm1196_vm7 = vcmp.eq.f32.partialorder %v1195_v20, 8.507059e+37  ;;  %v15913_v20 = vand.u32 4294901760, %v10603_v17 }
 0x137   :  { %v1199_v32 = vsel %vm1196_vm7, %v1198_v11, %v1194_v58 }
 0x138   :  { %v1206_v9 = vsub.f32 1.0, %v1199_v32 }
 0x13b   :  { %v1155_v26 = vpop.f32.mrf.mxu1 }
 0x13c   :  { %v1156_v18 = vadd.f32 %v1155_v26, %v1119_v23  ;;  %v1208_v23 = vmul.f32 %v9284_v30, %v1199_v32 }
 0x13e   :  { %v1201_v4 = vmul.f32 %v1176_v39, %v1156_v18 }
 0x140   :  { %v1204_v33 = vadd.f32 %v1202_v27, %v1201_v4 }
 0x142   :  { %9212 = vtanh.f32 %v1204_v33  ;;  %v1230_v33 = vld [vmem:[#allocation7 + $0x88] sm:$0xff] }
 0x148   :  { %v9213_v41 = vpop.eup %9212 }
 0x149   :  { %v1207_v21 = vmul.f32 %v9213_v41, %v1206_v9 }
 0x14b   :  { %v10642_v3 = vadd.f32 %v1208_v23, %v1207_v21 }
 0x14d   :  { %1210 = vst [vmem:[#allocation10] sm:$0x1] %v10642_v3  ;;  %v10646_v8 = vand.u32 4294901760, %v10642_v3 }
 0x14f   :  { %1407 = vmatmul.f32.vlgmr.msra.gmra.mxu3 %v10646_v8  ;;  %v10651_v29 = vsub.f32 %v10642_v3, %v10646_v8 }
 0x150   :  { %1807 = vmatpush.msra.mxu3 %v10406_v28 }
 0x151   :  { %1461 = vmatmul.f32.vlgmr.msrb.gmra.mxu0 %v10651_v29  ;;  %v10656_v31 = vand.u32 4294901760, %v10651_v29 }
 0x152   :  { %1809 = vmatpush.msra.mxu3 %v10418_v52  ;;  %1848 = vmatpush.msrb.mxu0 %v1653_v53  ;;  %v1254_v53 = vld [vmem:[#allocation7 + $0x148] sm:$0xff] }
 0x153   :  { %1500 = vmatmul.f32.vlgmr.msrb.gmra.mxu1 %v10656_v31  ;;  %v1304_v30 = vsub.f32 %v10651_v29, %v10656_v31 }
 0x154   :  { %1811 = vmatpush.msra.mxu3 %v10425_v43  ;;  %1852 = vmatpush.msrb.mxu0 %v1659_v59 }
 0x155   :  { %1915 = vmatpush.msrb.mxu1 %v10406_v28  ;;  %v10668_v21 = vand.u32 4294901760, %v1304_v30  ;;  %v1260_v28 = vld [vmem:[#allocation7 + $0x178] sm:$0xff]  ;;  %v1227_v30 = vld [vmem:[#allocation7 + $0x70] sm:$0xff] }
 0x156   :  { %1813 = vmatpush.msra.mxu3 %v10437_v46  ;;  %1856 = vmatpush.msrb.mxu0 %v1665_v55  ;;  %v15907_v55 = vand.u32 4294901760, %v10519_v35 }
 0x157   :  { %1917 = vmatpush.msrb.mxu1 %v10418_v52  ;;  %1306 = vmatmul.f32.vlgmr.msra.gmra.mxu2 %v10668_v21  ;;  %v10694_v52 = vand.u32 4294901760, %v1260_v28 }
 0x158   :  { %1606 = vmatmul.f32.vlgmr.msrb.gmra.mxu3 %v10646_v8  ;;  %1754 = vmatpush.msra.mxu2 %v10416_v51  ;;  %v1257_v51 = vld [vmem:[#allocation7 + $0x160] sm:$0xff] }
 0x159   :  { %1815 = vmatpush.msra.mxu3 %v10450_v22  ;;  %1860 = vmatpush.msrb.mxu0 %v1671_v49  ;;  %v10709_v59 = vsub.f32 %v1260_v28, %v10694_v52  ;;  %v10814_v28 = vand.u32 4294901760, %v1230_v33 }
 0x15a   :  { %1919 = vmatpush.msrb.mxu1 %v10425_v43  ;;  %1647 = vmatmul.f32.vlgmr.msra.gmra.mxu0 %v10668_v21  ;;  %v10701_v43 = vand.u32 4294901760, %v1257_v51 }
 0x15b   :  { %1757 = vmatpush.msra.mxu2 %v10428_v25  ;;  %1817 = vmatpush.msra.mxu3 %v10462_v24  ;;  %v1251_v25 = vld [vmem:[#allocation7 + $0x130] sm:$0xff] }
 0x15c   :  { %1864 = vmatpush.msrb.mxu0 %v1677_v2  ;;  %1921 = vmatpush.msrb.mxu1 %v10437_v46  ;;  %v10711_v46 = vand.u32 4294901760, %v1254_v53 }
 0x15d   :  { %1748 = vmatmul.f32.vlgmr.msra.gmra.mxu1 %v10646_v8  ;;  %1760 = vmatpush.msra.mxu2 %v10440_v44  ;;  %v1248_v44 = vld [vmem:[#allocation7 + $0x118] sm:$0xff] }
 0x15e   :  { %1819 = vmatpush.msra.mxu3 %v10473_v40  ;;  %1868 = vmatpush.msrb.mxu0 %v1683_v6  ;;  %v10730_v49 = vsub.f32 %v1254_v53, %v10711_v46  ;;  %v10732_v2 = vand.u32 4294901760, %v1248_v44  ;;  %v15909_v6 = vand.u32 4294901760, %v10540_v60 }
 0x15f   :  { %1923 = vmatpush.msrb.mxu1 %v10450_v22  ;;  %1763 = vmatpush.msra.mxu2 %v10454_v0  ;;  %v10719_v22 = vsub.f32 %v1257_v51, %v10701_v43  ;;  %v10721_v0 = vand.u32 4294901760, %v1251_v25 }
 0x160   :  { %1821 = vmatpush.msra.mxu3 %v10489_v14  ;;  %1872 = vmatpush.msrb.mxu0 %v1689_v57  ;;  %v10755_v9 = vsub.f32 %v1248_v44, %v10732_v2 }
 0x161   :  { %1925 = vmatpush.msrb.mxu1 %v10462_v24  ;;  %1569 = vmatmul.f32.vlgmr.msrb.gmra.mxu2 %v10646_v8  ;;  %v15908_v24 = vand.u32 4294901760, %v10526_v62 }
 0x162   :  { %1766 = vmatpush.msra.mxu2 %v10465_v37  ;;  %1823 = vmatpush.msra.mxu3 %v10503_v5  ;;  %v1994_v37 = vand.u32 4294901760, %v10709_v59  ;;  %v2018_v27 = vand.u32 4294901760, %v10755_v9 }
 0x163   :  { %1876 = vmatpush.msrb.mxu0 %v1695_v50  ;;  %1927 = vmatpush.msrb.mxu1 %v10473_v40  ;;  %v1245_v40 = vld [vmem:[#allocation7 + $0x100] sm:$0xff]  ;;  %v2006_v50 = vand.u32 4294901760, %v10730_v49 }
 0x164   :  { %1769 = vmatpush.msra.mxu2 %v10476_v63  ;;  %1825 = vmatpush.msra.mxu3 %v10508_v61  ;;  %v1242_v63 = vld [vmem:[#allocation7 + $0xe8] sm:$0xff]  ;;  %v10745_v57 = vand.u32 4294901760, %v1245_v40  ;;  %v2019_v41 = vsub.f32 %v10755_v9, %v2018_v27 }
 0x165   :  { %1880 = vmatpush.msrb.mxu0 %v15907_v55  ;;  %1929 = vmatpush.msrb.mxu1 %v10489_v14  ;;  %v2000_v14 = vand.u32 4294901760, %v10719_v22  ;;  %v2007_v18 = vsub.f32 %v10730_v49, %v2006_v50  ;;  %v10826_v55 = vand.u32 4294901760, %v1227_v30 }
 0x166   :  { %1772 = vmatpush.msra.mxu2 %v10493_v54  ;;  %1827 = vmatpush.msra.mxu3 %v10523_v19  ;;  %v10741_v54 = vsub.f32 %v1251_v25, %v10721_v0  ;;  %v1224_v25 = vld [vmem:[#allocation7 + $0x58] sm:$0xff] }
 0x167   :  { %1884 = vmatpush.msrb.mxu0 %v15908_v24  ;;  %1931 = vmatpush.msrb.mxu1 %v10503_v5  ;;  %v1239_v5 = vld [vmem:[#allocation7 + $0xd0] sm:$0xff]  ;;  %v2008_v32 = vand.u32 4294901760, %v2007_v18  ;;  %v2020_v24 = vand.u32 4294901760, %v2019_v41 }
 0x168   :  { %1775 = vmatpush.msra.mxu2 %v10506_v7  ;;  %1829 = vmatpush.msra.mxu3 %v10537_v48  ;;  %v15910_v7 = vand.u32 4294901760, %v10562_v15  ;;  %v2012_v42 = vand.u32 4294901760, %v10741_v54  ;;  %v10768_v26 = vand.u32 4294901760, %v1239_v5 }
 0x169   :  { %1888 = vmatpush.msrb.mxu0 %v15909_v6  ;;  %1933 = vmatpush.msrb.mxu1 %v10508_v61  ;;  %v1995_v61 = vsub.f32 %v10709_v59, %v1994_v37  ;;  %v10838_v6 = vand.u32 4294901760, %v1224_v25 }
 0x16a   :  { %1778 = vmatpush.msra.mxu2 %v10519_v35  ;;  %1831 = vmatpush.msra.mxu3 %v10554_v38  ;;  %v10757_v35 = vand.u32 4294901760, %v1242_v63  ;;  %v2013_v4 = vsub.f32 %v10741_v54, %v2012_v42  ;;  %v10796_v11 = vsub.f32 %v1239_v5, %v10768_v26 }
 0x16b   :  { %1892 = vmatpush.msrb.mxu0 %v15910_v7  ;;  %1935 = vmatpush.msrb.mxu1 %v10523_v19  ;;  %v2001_v19 = vsub.f32 %v10719_v22, %v2000_v14  ;;  %v1218_v7 = vld [vmem:[#allocation7 + $0x28] sm:$0xff] }
 0x16c   :  { %1781 = vmatpush.msra.mxu2 %v10526_v62  ;;  %1833 = vmatpush.msra.mxu3 %v10568_v34  ;;  %v10773_v62 = vsub.f32 %v1245_v40, %v10745_v57  ;;  %v10783_v39 = vsub.f32 %v1242_v63, %v10757_v35  ;;  %v2014_v51 = vand.u32 4294901760, %v2013_v4  ;;  %v2036_v53 = vand.u32 4294901760, %v10796_v11 }
 0x16d   :  { %1896 = vmatpush.msrb.mxu0 %v15911_v56  ;;  %1937 = vmatpush.msrb.mxu1 %v10537_v48  ;;  %v1996_v48 = vand.u32 4294901760, %v1995_v61  ;;  %v10836_v63 = vsub.f32 %v1230_v33, %v10814_v28 }
 0x16e   :  { %1784 = vmatpush.msra.mxu2 %v10540_v60  ;;  %1835 = vmatpush.msra.mxu3 %v10580_v16  ;;  %v1233_v60 = vld [vmem:[#allocation7 + $0xa0] sm:$0xff]  ;;  %v2030_v23 = vand.u32 4294901760, %v10783_v39  ;;  %v2037_v5 = vsub.f32 %v10796_v11, %v2036_v53 }
 0x16f   :  { %1900 = vmatpush.msrb.mxu0 %v15912_v12  ;;  %1939 = vmatpush.msrb.mxu1 %v10554_v38  ;;  %v2002_v38 = vand.u32 4294901760, %v2001_v19  ;;  %v10801_v58 = vand.u32 4294901760, %v1233_v60  ;;  %v10848_v19 = vsub.f32 %v1227_v30, %v10826_v55  ;;  %v1215_v12 = vld [vmem:[#allocation7 + $0x10] sm:$0xff]  ;;  %v2054_v18 = vand.u32 4294901760, %v10836_v63 }
 0x170   :  { %1787 = vmatpush.msra.mxu2 %v10562_v15  ;;  %1837 = vmatpush.msra.mxu3 %v10600_v13  ;;  %v2024_v15 = vand.u32 4294901760, %v10773_v62  ;;  %v2031_v40 = vsub.f32 %v10783_v39, %v2030_v23 }
 0x171   :  { %1904 = vmatpush.msrb.mxu0 %v15913_v20  ;;  %1941 = vmatpush.msrb.mxu1 %v10568_v34  ;;  %v15914_v34 = vand.u32 4294901760, %v10616_v36  ;;  %v10824_v44 = vsub.f32 %v1233_v60, %v10801_v58  ;;  %v10860_v60 = vsub.f32 %v1224_v25, %v10838_v6  ;;  %v10862_v20 = vand.u32 4294901760, %v1218_v7 }
 0x172   :  { %1841 = vmatmul.f32.vlgmr.msra.gmra.mxu3 %v10656_v31  ;;  %1790 = vmatpush.msra.mxu2 %v10571_v47  ;;  %v10812_v47 = vsub.f32 %v1236_v10, %v10787_v45  ;;  %v2060_v4 = vand.u32 4294901760, %v10848_v19  ;;  %v2055_v41 = vsub.f32 %v10836_v63, %v2054_v18 }
 0x173   :  { %1997 = vmatpush.msrb.mxu3 %v1996_v48  ;;  %1908 = vmatpush.msrb.mxu0 %v15914_v34  ;;  %v2048_v56 = vand.u32 4294901760, %v10824_v44  ;;  %v10874_v34 = vand.u32 4294901760, %v1215_v12  ;;  %v2066_v30 = vand.u32 4294901760, %v10860_v60 }
 0x174   :  { %1943 = vmatpush.msrb.mxu1 %v10580_v16  ;;  %1910 = vmatmul.f32.vlgmr.msrb.gmra.mxu0 %v10646_v8  ;;  %v2025_v16 = vsub.f32 %v10773_v62, %v2024_v15 }
 0x175   :  { %2003 = vmatpush.msrb.mxu3 %v2002_v38  ;;  %2095 = vmatpush.msra.mxu0 %v10709_v59  ;;  %v2049_v38 = vsub.f32 %v10824_v44, %v2048_v56  ;;  %v2387_v59 = vld [vmem:[#allocation7 + $0x138] sm:$0xff] }
 0x176   :  { %1793 = vmatpush.msra.mxu2 %v10583_v1  ;;  %1945 = vmatpush.msrb.mxu1 %v10600_v13  ;;  %v1221_v1 = vld [vmem:[#allocation7 + $0x40] sm:$0xff]  ;;  %v2042_v13 = vand.u32 4294901760, %v10812_v47  ;;  %v2026_v61 = vand.u32 4294901760, %v2025_v16  ;;  %v2061_v16 = vsub.f32 %v10848_v19, %v2060_v4 }
 0x177   :  { %1947 = vmatmul.f32.vlgmr.msrb.gmra.mxu1 %v10646_v8  ;;  %2009 = vmatpush.msrb.mxu3 %v2008_v32  ;;  %v10850_v10 = vand.u32 4294901760, %v1221_v1  ;;  %v2050_v25 = vand.u32 4294901760, %v2049_v38 }
 0x178   :  { %2098 = vmatpush.msra.mxu0 %v10719_v22  ;;  %2148 = vmatpush.msra.mxu1 %v10694_v52  ;;  %v2043_v48 = vsub.f32 %v10812_v47, %v2042_v13 }
 0x179   :  { %1796 = vmatpush.msra.mxu2 %v10603_v17  ;;  %2015 = vmatpush.msrb.mxu3 %v2014_v51  ;;  %v2032_v17 = vand.u32 4294901760, %v2031_v40  ;;  %v10872_v33 = vsub.f32 %v1221_v1, %v10850_v10  ;;  %v10884_v51 = vsub.f32 %v1218_v7, %v10862_v20  ;;  %v10894_v40 = vsub.f32 %v1215_v12, %v10874_v34 }
 0x17a   :  { %2101 = vmatpush.msra.mxu0 %v10730_v49  ;;  %2150 = vmatpush.msra.mxu1 %v10701_v43  ;;  %v2044_v32 = vand.u32 4294901760, %v2043_v48  ;;  %v2056_v1 = vand.u32 4294901760, %v2055_v41  ;;  %v2384_v49 = vld [vmem:[#allocation7 + $0x120] sm:$0xff] }
 0x17b   :  { %1799 = vmatpush.msra.mxu2 %v10616_v36  ;;  %2021 = vmatpush.msrb.mxu3 %v2020_v24  ;;  %v2038_v36 = vand.u32 4294901760, %v2037_v5  ;;  %v2072_v24 = vand.u32 4294901760, %v10872_v33  ;;  %v2067_v5 = vsub.f32 %v10860_v60, %v2066_v30  ;;  %v2078_v7 = vand.u32 4294901760, %v10884_v51 }
 0x17c   :  { %1802 = vmatmul.f32.vlgmr.msra.gmra.mxu2 %v10651_v29  ;;  %2104 = vmatpush.msra.mxu0 %v10741_v54  ;;  %v2084_v12 = vand.u32 4294901760, %v10894_v40 }
 0x17d   :  { %1952 = vmatpush.msrb.mxu2 %v10694_v52  ;;  %2152 = vmatpush.msra.mxu1 %v10711_v46  ;;  %v2068_v48 = vand.u32 4294901760, %v2067_v5 }
 0x17e   :  { %2027 = vmatpush.msrb.mxu3 %v2026_v61  ;;  %2107 = vmatpush.msra.mxu0 %v10755_v9  ;;  %v2062_v61 = vand.u32 4294901760, %v2061_v16  ;;  %v2381_v9 = vld [vmem:[#allocation7 + $0x108] sm:$0xff] }
 0x17f   :  { %1954 = vmatpush.msrb.mxu2 %v10701_v43  ;;  %2154 = vmatpush.msra.mxu1 %v10721_v0  ;;  %v2369_v16 = vld [vmem:[#allocation7 + $0xa8] sm:$0xff] }
 0x180   :  { %2033 = vmatpush.msrb.mxu3 %v2032_v17  ;;  %2110 = vmatpush.msra.mxu0 %v10773_v62  ;;  %v2073_v17 = vsub.f32 %v10872_v33, %v2072_v24 }
 0x181   :  { %1956 = vmatpush.msrb.mxu2 %v10711_v46  ;;  %2156 = vmatpush.msra.mxu1 %v10732_v2 }
 0x182   :  { %2039 = vmatpush.msrb.mxu3 %v2038_v36  ;;  %2113 = vmatpush.msra.mxu0 %v10783_v39  ;;  %v2079_v36 = vsub.f32 %v10884_v51, %v2078_v7  ;;  %v2074_v38 = vand.u32 4294901760, %v2073_v17  ;;  %v2366_v17 = vld [vmem:[#allocation7 + $0x90] sm:$0xff] }
 0x183   :  { %1958 = vmatpush.msrb.mxu2 %v10721_v0  ;;  %2158 = vmatpush.msra.mxu1 %v10745_v57 }
 0x184   :  { %2045 = vmatpush.msrb.mxu3 %v2044_v32  ;;  %2116 = vmatpush.msra.mxu0 %v10796_v11  ;;  %v2085_v32 = vsub.f32 %v10894_v40, %v2084_v12  ;;  %v2080_v41 = vand.u32 4294901760, %v2079_v36  ;;  %v2378_v11 = vld [vmem:[#allocation7 + $0xf0] sm:$0xff] }
 0x185   :  { %1960 = vmatpush.msrb.mxu2 %v10732_v2  ;;  %2160 = vmatpush.msra.mxu1 %v10757_v35 }
 0x186   :  { %2051 = vmatpush.msrb.mxu3 %v2050_v25  ;;  %2119 = vmatpush.msra.mxu0 %v10812_v47  ;;  %v2086_v25 = vand.u32 4294901760, %v2085_v32 }
 0x187   :  { %1962 = vmatpush.msrb.mxu2 %v10745_v57  ;;  %2162 = vmatpush.msra.mxu1 %v10768_v26 }
 0x188   :  { %2057 = vmatpush.msrb.mxu3 %v2056_v1  ;;  %2122 = vmatpush.msra.mxu0 %v10824_v44  ;;  %v2375_v44 = vld [vmem:[#allocation7 + $0xd8] sm:$0xff] }
 0x189   :  { %1964 = vmatpush.msrb.mxu2 %v10757_v35  ;;  %2164 = vmatpush.msra.mxu1 %v10787_v45 }
 0x18a   :  { %2063 = vmatpush.msrb.mxu3 %v2062_v61  ;;  %2125 = vmatpush.msra.mxu0 %v10836_v63  ;;  %v11093_v61 = vand.u32 4294901760, %v2369_v16 }
 0x18b   :  { %1966 = vmatpush.msrb.mxu2 %v10768_v26  ;;  %2166 = vmatpush.msra.mxu1 %v10801_v58 }
 0x18c   :  { %2069 = vmatpush.msrb.mxu3 %v2068_v48  ;;  %2128 = vmatpush.msra.mxu0 %v10848_v19 }
 0x18d   :  { %1968 = vmatpush.msrb.mxu2 %v10787_v45  ;;  %2168 = vmatpush.msra.mxu1 %v10814_v28 }
 0x18e   :  { %2075 = vmatpush.msrb.mxu3 %v2074_v38  ;;  %2131 = vmatpush.msra.mxu0 %v10860_v60 }
 0x18f   :  { %1970 = vmatpush.msrb.mxu2 %v10801_v58  ;;  %2170 = vmatpush.msra.mxu1 %v10826_v55 }
 0x190   :  { %2081 = vmatpush.msrb.mxu3 %v2080_v41  ;;  %2134 = vmatpush.msra.mxu0 %v10872_v33  ;;  %v11102_v41 = vsub.f32 %v2369_v16, %v11093_v61 }
 0x191   :  { %1972 = vmatpush.msrb.mxu2 %v10814_v28  ;;  %2172 = vmatpush.msra.mxu1 %v10838_v6 }
 0x192   :  { %2087 = vmatpush.msrb.mxu3 %v2086_v25  ;;  %2137 = vmatpush.msra.mxu0 %v10884_v51  ;;  %v11105_v25 = vand.u32 4294901760, %v2366_v17 }
 0x193   :  { %1974 = vmatpush.msrb.mxu2 %v10826_v55  ;;  %2174 = vmatpush.msra.mxu1 %v10850_v10 }
 0x194   :  { %2089 = vmatmul.f32.vlgmr.msrb.gmra.mxu3 %v10646_v8  ;;  %2140 = vmatpush.msra.mxu0 %v10894_v40 }
 0x195   :  { %2256 = vmatpush.msra.mxu3 %v10694_v52  ;;  %1976 = vmatpush.msrb.mxu2 %v10838_v6 }
 0x196   :  { %2176 = vmatpush.msra.mxu1 %v10862_v20  ;;  %2143 = vmatmul.f32.vlgmr.msra.gmra.mxu0 %v10651_v29  ;;  %v2393_v29 = vld [vmem:[#allocation7 + $0x168] sm:$0xff] }
 0x197   :  { %2258 = vmatpush.msra.mxu3 %v10701_v43  ;;  %1978 = vmatpush.msrb.mxu2 %v10850_v10 }
 0x198   :  { %2178 = vmatpush.msra.mxu1 %v10874_v34 }
 0x199   :  { %2182 = vmatmul.f32.vlgmr.msra.gmra.mxu1 %v10656_v31  ;;  %2260 = vmatpush.msra.mxu3 %v10711_v46  ;;  %v10997_v31 = vand.u32 4294901760, %v2393_v29 }
 0x19a   :  { %1980 = vmatpush.msrb.mxu2 %v10862_v20 }
 0x19b   :  { %2262 = vmatpush.msra.mxu3 %v10721_v0  ;;  %v11000_v52 = vsub.f32 %v2393_v29, %v10997_v31  ;;  %2405 = vmatpush.msrb.mxu0 %v10997_v31  ;;  %v2363_v29 = vld [vmem:[#allocation7 + $0x78] sm:$0xff] }
 0x19c   :  { %1982 = vmatpush.msrb.mxu2 %v10874_v34 }
 0x19d   :  { %1988 = vmatmul.f32.vlgmr.msrb.gmra.mxu2 %v10668_v21  ;;  %2264 = vmatpush.msra.mxu3 %v10732_v2  ;;  %v2390_v21 = vld [vmem:[#allocation7 + $0x150] sm:$0xff]  ;;  %v2447_v46 = vand.u32 4294901760, %v11000_v52 }
 0x19e   :  { %2189 = vmatpush.msra.mxu2 %v1994_v37  ;;  %v11002_v43 = vand.u32 4294901760, %v2390_v21 }
 0x19f   :  { %2266 = vmatpush.msra.mxu3 %v10745_v57  ;;  %v2448_v2 = vsub.f32 %v11000_v52, %v2447_v46  ;;  %v11026_v57 = vld [vmem:[#allocation8] sm:$0x7] }
 0x1a0   :  { %2193 = vmatpush.msra.mxu2 %v2000_v14  ;;  %v11008_v22 = vsub.f32 %v2390_v21, %v11002_v43  ;;  %2407 = vmatpush.msrb.mxu0 %v11002_v43 }
 0x1a1   :  { %2268 = vmatpush.msra.mxu3 %v10757_v35  ;;  %v1263_v35 = vperm.slane %v11026_v57, 0 }
 0x1a2   :  { %2197 = vmatpush.msra.mxu2 %v2006_v50  ;;  %v2453_v14 = vand.u32 4294901760, %v11008_v22  ;;  %v11028_v50 = vand.u32 4294901760, %v2384_v49 }
 0x1a3   :  { %2270 = vmatpush.msra.mxu3 %v10768_v26 }
 0x1a4   :  { %2201 = vmatpush.msra.mxu2 %v2012_v42  ;;  %v2449_v42 = vand.u32 4294901760, %v2448_v2  ;;  %v2454_v26 = vsub.f32 %v11008_v22, %v2453_v14  ;;  %v11040_v39 = vsub.f32 %v2384_v49, %v11028_v50  ;;  %v11111_v49 = vand.u32 4294901760, %v2363_v29 }
 0x1a5   :  { %2272 = vmatpush.msra.mxu3 %v10787_v45  ;;  %v11042_v45 = vand.u32 4294901760, %v2381_v9 }
 0x1a6   :  { %2205 = vmatpush.msra.mxu2 %v2018_v27  ;;  %2450 = vmatpush.msrb.mxu1 %v2449_v42  ;;  %v2357_v42 = vld [vmem:[#allocation7 + $0x48] sm:$0xff] }
 0x1a7   :  { %2274 = vmatpush.msra.mxu3 %v10801_v58 }
 0x1a8   :  { %2209 = vmatpush.msra.mxu2 %v2024_v15  ;;  %v2455_v15 = vand.u32 4294901760, %v2454_v26  ;;  %v2354_v26 = vld [vmem:[#allocation7 + $0x30] sm:$0xff] }
 0x1a9   :  { %2276 = vmatpush.msra.mxu3 %v10814_v28  ;;  %v2465_v28 = vand.u32 4294901760, %v11040_v39 }
 0x1aa   :  { %2213 = vmatpush.msra.mxu2 %v2030_v23  ;;  %v11049_v23 = vand.u32 4294901760, %v2378_v11  ;;  %2456 = vmatpush.msrb.mxu1 %v2455_v15 }
 0x1ab   :  { %2278 = vmatpush.msra.mxu3 %v10826_v55 }
 0x1ac   :  { %2217 = vmatpush.msra.mxu2 %v2036_v53  ;;  %v11053_v53 = vsub.f32 %v2381_v9, %v11042_v45  ;;  %v11058_v63 = vsub.f32 %v2378_v11, %v11049_v23  ;;  %v2495_v9 = vand.u32 4294901760, %v11102_v41 }
 0x1ad   :  { %2280 = vmatpush.msra.mxu3 %v10838_v6  ;;  %v11060_v6 = vand.u32 4294901760, %v2375_v44 }
 0x1ae   :  { %2221 = vmatpush.msra.mxu2 %v2042_v13  ;;  %v2471_v19 = vand.u32 4294901760, %v11053_v53  ;;  %v2477_v60 = vand.u32 4294901760, %v11058_v63 }
 0x1af   :  { %2282 = vmatpush.msra.mxu3 %v10850_v10  ;;  %v2372_v10 = vld [vmem:[#allocation7 + $0xc0] sm:$0xff] }
 0x1b0   :  { %2225 = vmatpush.msra.mxu2 %v2048_v56  ;;  %v2466_v56 = vsub.f32 %v11040_v39, %v2465_v28  ;;  %v2472_v51 = vsub.f32 %v11053_v53, %v2471_v19  ;;  %v2478_v40 = vsub.f32 %v11058_v63, %v2477_v60 }
 0x1b1   :  { %2284 = vmatpush.msra.mxu3 %v10862_v20  ;;  %v11072_v20 = vsub.f32 %v2375_v44, %v11060_v6  ;;  %v2351_v44 = vld [vmem:[#allocation7 + $0x18] sm:$0xff] }
 0x1b2   :  { %2229 = vmatpush.msra.mxu2 %v2054_v18  ;;  %v1264_v18 = vperm.slane %v11026_v57, 1  ;;  %v2479_v48 = vand.u32 4294901760, %v2478_v40  ;;  %v11145_v16 = vand.u32 4294901760, %v2351_v44 }
 0x1b3   :  { %2286 = vmatpush.msra.mxu3 %v10874_v34  ;;  %v2483_v1 = vand.u32 4294901760, %v11072_v20 }
 0x1b4   :  { %2233 = vmatpush.msra.mxu2 %v2060_v4  ;;  %2288 = vmatmul.f32.vlgmr.msra.gmra.mxu3 %v10646_v8  ;;  %v11074_v4 = vand.u32 4294901760, %v2372_v10 }
 0x1b5   :  { %2601 = vmatpush.msrb.mxu3 %v10997_v31  ;;  %v2484_v36 = vsub.f32 %v11072_v20, %v2483_v1 }
 0x1b6   :  { %2237 = vmatpush.msra.mxu2 %v2066_v30  ;;  %v2467_v30 = vand.u32 4294901760, %v2466_v56  ;;  %v11089_v5 = vsub.f32 %v2372_v10, %v11074_v4  ;;  %v11134_v10 = vand.u32 4294901760, %v2357_v42 }
 0x1b7   :  { %2603 = vmatpush.msrb.mxu3 %v11002_v43 }
 0x1b8   :  { %2241 = vmatpush.msra.mxu2 %v2072_v24  ;;  %v2489_v38 = vand.u32 4294901760, %v11089_v5 }
 0x1ba   :  { %2245 = vmatpush.msra.mxu2 %v2078_v7  ;;  %v2473_v7 = vand.u32 4294901760, %v2472_v51 }
 0x1bc   :  { %2249 = vmatpush.msra.mxu2 %v2084_v12 }
 0x1bd   :  { %2251 = vmatmul.f32.vlgmr.msra.gmra.mxu2 %v10646_v8  ;;  %v11011_v8 = vand.u32 4294901760, %v2387_v59 }
 0x1be   :  { %2548 = vmatpush.msrb.mxu2 %v11000_v52 }
 0x1bf   :  { %v11022_v54 = vsub.f32 %v2387_v59, %v11011_v8  ;;  %2605 = vmatpush.msrb.mxu3 %v11011_v8  ;;  %2409 = vmatpush.msrb.mxu0 %v11011_v8  ;;  %v2485_v59 = vand.u32 4294901760, %v2484_v36 }
 0x1c0   :  { %2551 = vmatpush.msrb.mxu2 %v11008_v22 }
 0x1c1   :  { %v2459_v62 = vand.u32 4294901760, %v11022_v54  ;;  %2607 = vmatpush.msrb.mxu3 %v11028_v50  ;;  %2411 = vmatpush.msrb.mxu0 %v11028_v50 }
 0x1c2   :  { %2554 = vmatpush.msrb.mxu2 %v11022_v54 }
 0x1c3   :  { %v2460_v58 = vsub.f32 %v11022_v54, %v2459_v62  ;;  %2609 = vmatpush.msrb.mxu3 %v11042_v45  ;;  %2413 = vmatpush.msrb.mxu0 %v11042_v45 }
 0x1c4   :  { %2557 = vmatpush.msrb.mxu2 %v11040_v39 }
 0x1c5   :  { %v2461_v13 = vand.u32 4294901760, %v2460_v58  ;;  %2611 = vmatpush.msrb.mxu3 %v11049_v23  ;;  %2415 = vmatpush.msrb.mxu0 %v11049_v23  ;;  %v11123_v58 = vsub.f32 %v2363_v29, %v11111_v49 }
 0x1c6   :  { %2560 = vmatpush.msrb.mxu2 %v11053_v53  ;;  %v2376_v53 = vld [vmem:[#allocation7 + $0xe0] sm:$0xff] }
 0x1c7   :  { %2462 = vmatpush.msrb.mxu1 %v2461_v13  ;;  %2613 = vmatpush.msrb.mxu3 %v11060_v6  ;;  %v2496_v13 = vsub.f32 %v11102_v41, %v2495_v9 }
 0x1c8   :  { %2563 = vmatpush.msrb.mxu2 %v11058_v63  ;;  %2417 = vmatpush.msrb.mxu0 %v11060_v6 }
 0x1c9   :  { %2468 = vmatpush.msrb.mxu1 %v2467_v30  ;;  %2615 = vmatpush.msrb.mxu3 %v11074_v4  ;;  %v2507_v30 = vand.u32 4294901760, %v11123_v58  ;;  %v2497_v40 = vand.u32 4294901760, %v2496_v13 }
 0x1ca   :  { %2566 = vmatpush.msrb.mxu2 %v11072_v20  ;;  %2419 = vmatpush.msrb.mxu0 %v11074_v4  ;;  %v2370_v20 = vld [vmem:[#allocation7 + $0xb0] sm:$0xff] }
 0x1cb   :  { %2474 = vmatpush.msrb.mxu1 %v2473_v7  ;;  %2617 = vmatpush.msrb.mxu3 %v11093_v61 }
 0x1cc   :  { %2569 = vmatpush.msrb.mxu2 %v11089_v5  ;;  %2421 = vmatpush.msrb.mxu0 %v11093_v61 }
 0x1cd   :  { %2480 = vmatpush.msrb.mxu1 %v2479_v48  ;;  %2619 = vmatpush.msrb.mxu3 %v11105_v25  ;;  %v2508_v48 = vsub.f32 %v11123_v58, %v2507_v30 }
 0x1ce   :  { %v11014_v0 = vpop.f32.mrf.mxu0  ;;  %2572 = vmatpush.msrb.mxu2 %v11102_v41  ;;  %2423 = vmatpush.msrb.mxu0 %v11105_v25 }
 0x1cf   :  { %2486 = vmatpush.msrb.mxu1 %v2485_v59  ;;  %2621 = vmatpush.msrb.mxu3 %v11111_v49 }
 0x1d0   :  { %v11037_v27 = vpop.f32.mrf.mxu1  ;;  %2425 = vmatpush.msrb.mxu0 %v11111_v49 }
 0x1d2   :  { %v1408_v47 = vpop.f32.mrf.mxu3 }
 0x1d7   :  { %v1648_v33 = vpop.f32.mrf.mxu0 }
 0x1d8   :  { %v1649_v12 = vadd.f32 %v1648_v33, %v1264_v18  ;;  %v11136_v18 = vand.u32 4294901760, %v2354_v26 }
 0x1da   :  { %v1307_v37 = vpop.f32.mrf.mxu2  ;;  %v1749_v32 = vpop.f32.mrf.mxu1 }
 0x1db   :  { %v1308_v55 = vadd.f32 %v1307_v37, %v1263_v35  ;;  %v2490_v37 = vsub.f32 %v11089_v5, %v2489_v38  ;;  %v11115_v2 = vpop.f32.mrf.mxu3  ;;  %v11119_v35 = vsub.f32 %v2366_v17, %v11105_v25  ;;  %v1750_v11 = vadd.f32 %v1749_v32, %v1649_v12  ;;  %v2367_v5 = vld [vmem:[#allocation7 + $0x98] sm:$0xff] }
 0x1dc   :  { %v11155_v17 = vsub.f32 %v2354_v26, %v11136_v18  ;;  %v11163_v32 = vsub.f32 %v2351_v44, %v11145_v16 }
 0x1dd   :  { %v1409_v24 = vadd.f32 %v1408_v47, %v1308_v55  ;;  %v2491_v15 = vand.u32 4294901760, %v2490_v37  ;;  %v2501_v56 = vand.u32 4294901760, %v11119_v35  ;;  %2575 = vmatpush.msrb.mxu2 %v11119_v35 }
 0x1de   :  { %v15825_v59 = vand.u32 4294901760, %v11155_v17 }
 0x1df   :  { %v1463_v21 = vadd.f32 %v11014_v0, %v1409_v24  ;;  %v2360_v0 = vld [vmem:[#allocation7 + $0x60] sm:$0xff]  ;;  %2492 = vmatpush.msrb.mxu1 %v2491_v15  ;;  %v2502_v7 = vsub.f32 %v11119_v35, %v2501_v56  ;;  %2578 = vmatpush.msrb.mxu2 %v11123_v58 }
 0x1e0   :  { %v11125_v47 = vand.u32 4294901760, %v2360_v0  ;;  %v2348_v24 = vld [vmem:[#allocation7] sm:$0xff] }
 0x1e1   :  { %v1502_v33 = vadd.f32 %v11037_v27, %v1463_v21  ;;  %v11152_v27 = vsub.f32 %v2357_v42, %v11134_v10  ;;  %2498 = vmatpush.msrb.mxu1 %v2497_v40  ;;  %v2503_v29 = vand.u32 4294901760, %v2502_v7  ;;  %v11169_v37 = vand.u32 4294901760, %v2348_v24 }
 0x1e2   :  { %v11141_v51 = vsub.f32 %v2360_v0, %v11125_v47  ;;  %2623 = vmatpush.msrb.mxu3 %v11125_v47  ;;  %2427 = vmatpush.msrb.mxu0 %v11125_v47  ;;  %v2509_v42 = vand.u32 4294901760, %v2508_v48 }
 0x1e3   :  { %v2519_v21 = vand.u32 4294901760, %v11152_v27  ;;  %2504 = vmatpush.msrb.mxu1 %v2503_v29 }
 0x1e4   :  { %v11077_v34 = vpop.f32.mrf.mxu2  ;;  %v2513_v36 = vand.u32 4294901760, %v11141_v51  ;;  %2581 = vmatpush.msrb.mxu2 %v11141_v51  ;;  %2625 = vmatpush.msrb.mxu3 %v11134_v10 }
 0x1e5   :  { %v1571_v0 = vadd.f32 %v11077_v34, %v1502_v33  ;;  %2429 = vmatpush.msrb.mxu0 %v11134_v10  ;;  %v2520_v44 = vsub.f32 %v11152_v27, %v2519_v21  ;;  %v2526_v34 = vsub.f32 %v11155_v17, %v15825_v59  ;;  %2510 = vmatpush.msrb.mxu1 %v2509_v42  ;;  %v2388_v59 = vld [vmem:[#allocation7 + $0x140] sm:$0xff] }
 0x1e6   :  { %v2514_v26 = vsub.f32 %v11141_v51, %v2513_v36  ;;  %2584 = vmatpush.msrb.mxu2 %v11152_v27  ;;  %2627 = vmatpush.msrb.mxu3 %v11136_v18  ;;  %v2352_v51 = vld [vmem:[#allocation7 + $0x20] sm:$0xff] }
 0x1e7   :  { %2431 = vmatpush.msrb.mxu0 %v11136_v18  ;;  %v2521_v40 = vand.u32 4294901760, %v2520_v44  ;;  %v1608_v29 = vadd.f32 %v11115_v2, %v1571_v0  ;;  %v2527_v42 = vand.u32 4294901760, %v2526_v34  ;;  %v2394_v44 = vld [vmem:[#allocation7 + $0x170] sm:$0xff]  ;;  %v11379_v27 = vand.u32 4294901760, %v2352_v51 }
 0x1e8   :  { %v2515_v33 = vand.u32 4294901760, %v2514_v26  ;;  %2587 = vmatpush.msrb.mxu2 %v11155_v17  ;;  %2629 = vmatpush.msrb.mxu3 %v11145_v16  ;;  %v11207_v0 = vand.u32 4294901760, %v2394_v44 }
 0x1e9   :  { %2433 = vmatpush.msrb.mxu0 %v11145_v16 }
 0x1ea   :  { %2516 = vmatpush.msrb.mxu1 %v2515_v33  ;;  %2590 = vmatpush.msrb.mxu2 %v11163_v32  ;;  %v2391_v33 = vld [vmem:[#allocation7 + $0x158] sm:$0xff] }
 0x1eb   :  { %2631 = vmatpush.msrb.mxu3 %v11169_v37  ;;  %2435 = vmatpush.msrb.mxu0 %v11169_v37 }
 0x1ec   :  { %2522 = vmatpush.msrb.mxu1 %v2521_v40  ;;  %v11216_v40 = vand.u32 4294901760, %v2391_v33 }
 0x1ed   :  { %2642 = vmatpush.msra.mxu0 %v2447_v46  ;;  %v11223_v46 = vand.u32 4294901760, %v2388_v59 }
 0x1ee   :  { %2528 = vmatpush.msrb.mxu1 %v2527_v42 }
 0x1ef   :  { %2646 = vmatpush.msra.mxu0 %v2453_v14 }
 0x1f1   :  { %2650 = vmatpush.msra.mxu0 %v2459_v62 }
 0x1f3   :  { %2654 = vmatpush.msra.mxu0 %v2465_v28 }
 0x1f5   :  { %v1842_v15 = vpop.f32.mrf.mxu3  ;;  %2658 = vmatpush.msra.mxu0 %v2471_v19 }
 0x1f7   :  { %2662 = vmatpush.msra.mxu0 %v2477_v60 }
 0x1f9   :  { %2666 = vmatpush.msra.mxu0 %v2483_v1 }
 0x1fb   :  { %2670 = vmatpush.msra.mxu0 %v2489_v38 }
 0x1fd   :  { %2674 = vmatpush.msra.mxu0 %v2495_v9  ;;  %v2361_v9 = vld [vmem:[#allocation7 + $0x68] sm:$0xff] }
 0x1fe   :  { %v11334_v35 = vand.u32 4294901760, %v2361_v9 }
 0x1ff   :  { %v1803_v55 = vpop.f32.mrf.mxu2  ;;  %2678 = vmatpush.msra.mxu0 %v2501_v56 }
 0x200   :  { %v1804_v12 = vadd.f32 %v1803_v55, %v1750_v11  ;;  %v15824_v11 = vand.u32 4294901760, %v11163_v32  ;;  %v11186_v55 = vsub.f32 %v2348_v24, %v11169_v37  ;;  %v11198_v24 = vld [vmem:[#allocation2 + $0x3] sm:$0x7] }
 0x201   :  { %v2292_v34 = vadd.f32 %v1608_v29, %v11198_v24  ;;  %v11226_v29 = vsub.f32 %v2391_v33, %v11216_v40  ;;  %2682 = vmatpush.msra.mxu0 %v2507_v30  ;;  %v11351_v30 = vsub.f32 %v2361_v9, %v11334_v35 }
 0x202   :  { %v1843_v13 = vadd.f32 %v1842_v15, %v1804_v12  ;;  %v2532_v7 = vsub.f32 %v11163_v32, %v15824_v11  ;;  %v15823_v48 = vand.u32 4294901760, %v11186_v55  ;;  %v1911_v12 = vpop.f32.mrf.mxu0  ;;  %2593 = vmatpush.msrb.mxu2 %v11186_v55 }
 0x203   :  { %v9179_v42 = vmul.f32 -1.442695, %v2292_v34  ;;  %v2794_v14 = vand.u32 4294901760, %v11226_v29  ;;  %2686 = vmatpush.msra.mxu0 %v2513_v36 }
 0x204   :  { %v2538_v26 = vsub.f32 %v11186_v55, %v15823_v48  ;;  %v1912_v15 = vadd.f32 %v1911_v12, %v1843_v13  ;;  %v2533_v2 = vand.u32 4294901760, %v2532_v7  ;;  %v1948_v48 = vpop.f32.mrf.mxu1  ;;  %2746 = vmatpush.msra.mxu2 %v11207_v0  ;;  %v11214_v12 = vsub.f32 %v2394_v44, %v11207_v0 }
 0x205   :  { %v2313_v7 = vrot.slane %v11198_v24, 1  ;;  %v2795_v62 = vsub.f32 %v11226_v29, %v2794_v14  ;;  %9214 = vpow2.f32 %v9179_v42  ;;  %2690 = vmatpush.msra.mxu0 %v2519_v21 }
 0x206   :  { %v2539_v13 = vand.u32 4294901760, %v2538_v26  ;;  %v1949_v11 = vadd.f32 %v1948_v48, %v1912_v15  ;;  %2534 = vmatpush.msrb.mxu1 %v2533_v2  ;;  %2748 = vmatpush.msra.mxu2 %v11216_v40  ;;  %v2788_v52 = vand.u32 4294901760, %v11214_v12  ;;  %v2385_v26 = vld [vmem:[#allocation7 + $0x128] sm:$0xff]  ;;  %v11238_v15 = vsub.f32 %v2388_v59, %v11223_v46  ;;  %v2382_v2 = vld [vmem:[#allocation7 + $0x110] sm:$0xff]  ;;  %v2379_v59 = vld [vmem:[#allocation7 + $0xf8] sm:$0xff] }
 0x207   :  { %v11235_v48 = vand.u32 4294901760, %v2385_v26  ;;  %v11248_v33 = vand.u32 4294901760, %v2382_v2  ;;  %v2796_v39 = vand.u32 4294901760, %v2795_v62 }
 0x208   :  { %2540 = vmatpush.msrb.mxu1 %v2539_v13  ;;  %v2789_v22 = vsub.f32 %v11214_v12, %v2788_v52  ;;  %2750 = vmatpush.msra.mxu2 %v11223_v46  ;;  %v2315_v44 = vadd.f32 %v2313_v7, %v1949_v11  ;;  %v2800_v34 = vand.u32 4294901760, %v11238_v15  ;;  %v11260_v11 = vand.u32 4294901760, %v2379_v59 }
 0x209   :  { %v11263_v13 = vsub.f32 %v2382_v2, %v11248_v33 }
 0x20a   :  { %2709 = vmatpush.msra.mxu1 %v10997_v31  ;;  %v2790_v54 = vand.u32 4294901760, %v2789_v22  ;;  %2752 = vmatpush.msra.mxu2 %v11235_v48  ;;  %v11252_v31 = vsub.f32 %v2385_v26, %v11235_v48  ;;  %v2801_v28 = vsub.f32 %v11238_v15, %v2800_v34  ;;  %v11271_v26 = vand.u32 4294901760, %v2376_v53 }
 0x20b   :  { %v2812_v42 = vand.u32 4294901760, %v11263_v13  ;;  %v11274_v22 = vsub.f32 %v2379_v59, %v11260_v11 }
 0x20c   :  { %2711 = vmatpush.msra.mxu1 %v11002_v43  ;;  %2791 = vmatpush.msra.mxu3 %v2790_v54  ;;  %v9180_v43 = vmul.f32 -1.442695, %v2315_v44  ;;  %v2806_v7 = vand.u32 4294901760, %v11252_v31  ;;  %v2802_v19 = vand.u32 4294901760, %v2801_v28  ;;  %v2373_v44 = vld [vmem:[#allocation7 + $0xc8] sm:$0xff]  ;;  %v9215_v54 = vpop.eup %9214  ;;  %v11301_v28 = vand.u32 4294901760, %v2370_v20 }
 0x20d   :  { %2754 = vmatpush.msra.mxu2 %v11248_v33  ;;  %v2813_v63 = vsub.f32 %v11263_v13, %v2812_v42  ;;  %v2818_v60 = vand.u32 4294901760, %v11274_v22  ;;  %v11287_v2 = vand.u32 4294901760, %v2373_v44 }
 0x20e   :  { %2713 = vmatpush.msra.mxu1 %v11011_v8  ;;  %2797 = vmatpush.msra.mxu3 %v2796_v39  ;;  %v2807_v8 = vsub.f32 %v11252_v31, %v2806_v7  ;;  %9216 = vpow2.f32 %v9180_v43 }
 0x20f   :  { %2756 = vmatpush.msra.mxu2 %v11260_v11  ;;  %v2814_v1 = vand.u32 4294901760, %v2813_v63  ;;  %v2819_v59 = vsub.f32 %v11274_v22, %v2818_v60 }
 0x210   :  { %2715 = vmatpush.msra.mxu1 %v11028_v50  ;;  %2803 = vmatpush.msra.mxu3 %v2802_v19  ;;  %v11290_v50 = vsub.f32 %v2376_v53, %v11271_v26  ;;  %v2808_v62 = vand.u32 4294901760, %v2807_v8  ;;  %v11309_v53 = vand.u32 4294901760, %v2367_v5  ;;  %v11313_v19 = vadd.f32 1.0, %v9215_v54 }
 0x211   :  { %2758 = vmatpush.msra.mxu2 %v11271_v26  ;;  %v2820_v38 = vand.u32 4294901760, %v2819_v59  ;;  %v11318_v8 = vsub.f32 %v2370_v20, %v11301_v28 }
 0x212   :  { %2717 = vmatpush.msra.mxu1 %v11042_v45  ;;  %v2824_v39 = vand.u32 4294901760, %v11290_v50  ;;  %2809 = vmatpush.msra.mxu3 %v2808_v62  ;;  %v11304_v45 = vsub.f32 %v2373_v44, %v11287_v2  ;;  %v2364_v44 = vld [vmem:[#allocation7 + $0x80] sm:$0xff]  ;;  %v11332_v20 = vsub.f32 %v2367_v5, %v11309_v53  ;;  %9218 = vrcp.f32 %v11313_v19 }
 0x213   :  { %2760 = vmatpush.msra.mxu2 %v11287_v2  ;;  %v2836_v41 = vand.u32 4294901760, %v11318_v8  ;;  %v11329_v62 = vand.u32 4294901760, %v2364_v44  ;;  %vm2302_vm9 = vweird.f32 %v11313_v19 }
 0x214   :  { %2719 = vmatpush.msra.mxu1 %v11049_v23  ;;  %v2825_v43 = vsub.f32 %v11290_v50, %v2824_v39  ;;  %2815 = vmatpush.msra.mxu3 %v2814_v1  ;;  %v2830_v23 = vand.u32 4294901760, %v11304_v45  ;;  %v9217_v54 = vpop.eup %9216  ;;  %v2358_v1 = vld [vmem:[#allocation7 + $0x50] sm:$0xff]  ;;  %v15828_v59 = vand.u32 4294901760, %v11332_v20 }
 0x215   :  { %2762 = vmatpush.msra.mxu2 %v11301_v28  ;;  %v2837_v56 = vsub.f32 %v11318_v8, %v2836_v41  ;;  %v11346_v5 = vsub.f32 %v2364_v44, %v11329_v62  ;;  %v11348_v58 = vand.u32 4294901760, %v2358_v1 }
 0x216   :  { %2721 = vmatpush.msra.mxu1 %v11060_v6  ;;  %v2826_v63 = vand.u32 4294901760, %v2825_v43  ;;  %2821 = vmatpush.msra.mxu3 %v2820_v38  ;;  %v2831_v6 = vsub.f32 %v11304_v45, %v2830_v23  ;;  %v2355_v43 = vld [vmem:[#allocation7 + $0x38] sm:$0xff]  ;;  %v2843_v44 = vsub.f32 %v11332_v20, %v15828_v59  ;;  %v11401_v59 = vsub.f32 %v2352_v51, %v11379_v27 }
 0x217   :  { %2764 = vmatpush.msra.mxu2 %v11309_v53  ;;  %v2838_v38 = vand.u32 4294901760, %v2837_v56  ;;  %v11364_v9 = vand.u32 4294901760, %v2355_v43 }
 0x218   :  { %2723 = vmatpush.msra.mxu1 %v11074_v4  ;;  %2827 = vmatpush.msra.mxu3 %v2826_v63  ;;  %v2832_v4 = vand.u32 4294901760, %v2831_v6  ;;  %v15827_v63 = vand.u32 4294901760, %v11346_v5  ;;  %v15826_v6 = vand.u32 4294901760, %v11351_v30  ;;  %v2844_v36 = vand.u32 4294901760, %v2843_v44  ;;  %v11383_v21 = vpop.eup %9218 }
 0x219   :  { %2766 = vmatpush.msra.mxu2 %v11329_v62  ;;  %vm2303_vm8 = vweird.f32 %v11383_v21 }
 0x21a   :  { %2725 = vmatpush.msra.mxu1 %v11093_v61  ;;  %v11355_v61 = vadd.f32 1.0, %v9217_v54  ;;  %2833 = vmatpush.msra.mxu3 %v2832_v4  ;;  %v2849_v54 = vsub.f32 %v11346_v5, %v15827_v63  ;;  %v2855_v4 = vsub.f32 %v11351_v30, %v15826_v6  ;;  %vm2304_vm10 = vmor %vm2302_vm9, %vm2303_vm8 }
 0x21b   :  { %2768 = vmatpush.msra.mxu2 %v11334_v35 }
 0x21c   :  { %2727 = vmatpush.msra.mxu1 %v11105_v25  ;;  %2839 = vmatpush.msra.mxu3 %v2838_v38  ;;  %v11370_v25 = vsub.f32 %v2358_v1, %v11348_v58  ;;  %v11388_v1 = vsub.f32 %v2355_v43, %v11364_v9  ;;  %9220 = vrcp.f32 %v11355_v61  ;;  %v1265_v38 = vperm.slane %v11026_v57, 2 }
 0x21d   :  { %2770 = vmatpush.msra.mxu2 %v11348_v58  ;;  %v2850_v44 = vand.u32 4294901760, %v2849_v54  ;;  %v2856_v6 = vand.u32 4294901760, %v2855_v4  ;;  %v15916_v57 = vand.u32 4294901760, %v11163_v32  ;;  %v15831_v4 = vand.u32 4294901760, %v11401_v59 }
 0x21e   :  { %2729 = vmatpush.msra.mxu1 %v11111_v49  ;;  %v15915_v49 = vand.u32 4294901760, %v11155_v17  ;;  %v15830_v56 = vand.u32 4294901760, %v11370_v25  ;;  %2845 = vmatpush.msra.mxu3 %v2844_v36  ;;  %v2349_v17 = vld [vmem:[#allocation7 + $0x8] sm:$0xff]  ;;  %v15829_v43 = vand.u32 4294901760, %v11388_v1  ;;  %v2298_v36 = vmul.f32 %v11383_v21, %v11313_v19 }
 0x21f   :  { %2772 = vmatpush.msra.mxu2 %v11364_v9  ;;  %v11398_v63 = vand.u32 4294901760, %v2349_v17  ;;  %v15917_v32 = vand.u32 4294901760, %v11186_v55  ;;  %vm2325_vm13 = vweird.f32 %v11355_v61 }
 0x220   :  { %2694 = vmatpush.msra.mxu0 %v15915_v49  ;;  %2731 = vmatpush.msra.mxu1 %v11125_v47  ;;  %v1989_v49 = vpop.f32.mrf.mxu2  ;;  %v2861_v47 = vsub.f32 %v11370_v25, %v15830_v56  ;;  %v2867_v54 = vsub.f32 %v11388_v1, %v15829_v43  ;;  %v2299_v56 = vsub.f32 1.0, %v2298_v36 }
 0x221   :  { %2851 = vmatpush.msra.mxu3 %v2850_v44  ;;  %2774 = vmatpush.msra.mxu2 %v11379_v27  ;;  %v11414_v51 = vsub.f32 %v2349_v17, %v11398_v63  ;;  %v2873_v44 = vsub.f32 %v11401_v59, %v15831_v4  ;;  %v2090_v17 = vpop.f32.mrf.mxu3 }
 0x222   :  { %2733 = vmatpush.msra.mxu1 %v11134_v10  ;;  %2698 = vmatpush.msra.mxu0 %v15916_v57  ;;  %v2862_v10 = vand.u32 4294901760, %v2861_v47  ;;  %v1990_v57 = vadd.f32 %v1989_v49, %v1265_v38  ;;  %v9221_v43 = vpop.eup %9220 }
 0x223   :  { %2857 = vmatpush.msra.mxu3 %v2856_v6  ;;  %2776 = vmatpush.msra.mxu2 %v11398_v63  ;;  %v15832_v47 = vand.u32 4294901760, %v11414_v51  ;;  %v2874_v55 = vand.u32 4294901760, %v2873_v44  ;;  %v2308_v44 = vand.u32 2147483648, %v11313_v19  ;;  %vm2326_vm12 = vweird.f32 %v9221_v43 }
 0x224   :  { %2735 = vmatpush.msra.mxu1 %v11136_v18  ;;  %2702 = vmatpush.msra.mxu0 %v15917_v32  ;;  %v2868_v18 = vand.u32 4294901760, %v2867_v54  ;;  %v2091_v38 = vadd.f32 %v2090_v17, %v1990_v57  ;;  %v2300_v54 = vmul.f32 %v11383_v21, %v2299_v56  ;;  %v2144_v32 = vpop.f32.mrf.mxu0  ;;  %v2306_v57 = vand.u32 2147483647, %v11313_v19  ;;  %vm2327_vm14 = vmor %vm2325_vm13, %vm2326_vm12 }
 0x225   :  { %2863 = vmatpush.msra.mxu3 %v2862_v10  ;;  %v2879_v6 = vsub.f32 %v11414_v51, %v15832_v47  ;;  %v2329_v19 = vand.u32 2147483647, %v11355_v61 }
 0x226   :  { %2737 = vmatpush.msra.mxu1 %v11145_v16  ;;  %v2321_v16 = vmul.f32 %v9221_v43, %v11355_v61  ;;  %v2145_v4 = vadd.f32 %v2144_v32, %v2091_v38  ;;  %v2301_v10 = vadd.f32 %v11383_v21, %v2300_v54  ;;  %v2309_v38 = vor.u32 1.1754944e-38, %v2308_v44 }
 0x227   :  { %2869 = vmatpush.msra.mxu3 %v2868_v18  ;;  %v2880_v49 = vand.u32 4294901760, %v2879_v6  ;;  %vm2307_vm11 = vcmp.eq.f32.partialorder %v2306_v57, 8.507059e+37  ;;  %vm2330_vm15 = vcmp.eq.f32.partialorder %v2329_v19, 8.507059e+37  ;;  %v15923_v19 = vand.u32 4294901760, %v11401_v59 }
 0x228   :  { %2739 = vmatpush.msra.mxu1 %v11169_v37  ;;  %v2322_v36 = vsub.f32 1.0, %v2321_v16  ;;  %v2183_v37 = vpop.f32.mrf.mxu1 }
 0x229   :  { %2875 = vmatpush.msra.mxu3 %v2874_v55  ;;  %v2184_v47 = vadd.f32 %v2183_v37, %v2145_v4  ;;  %v2305_v55 = vsel %vm2304_vm10, %v11383_v21, %v2301_v10  ;;  %v2331_v4 = vand.u32 2147483648, %v11355_v61 }
 0x22a   :  { %v2323_v56 = vmul.f32 %v9221_v43, %v2322_v36  ;;  %v2310_v54 = vsel %vm2307_vm11, %v2309_v38, %v2305_v55 }
 0x22b   :  { %2881 = vmatpush.msra.mxu3 %v2880_v49  ;;  %v2336_v49 = vrot.slane %v11198_v24, 2  ;;  %v2332_v21 = vor.u32 1.1754944e-38, %v2331_v4 }
 0x22c   :  { %v2324_v32 = vadd.f32 %v9221_v43, %v2323_v56 }
 0x22e   :  { %v2328_v36 = vsel %vm2327_vm14, %v9221_v43, %v2324_v32 }
 0x22f   :  { %v2333_v10 = vsel %vm2330_vm15, %v2332_v21, %v2328_v36  ;;  %v2365_v21 = vld [vmem:[#allocation7 + $0x88] sm:$0xff] }
 0x230   :  { %v2340_v44 = vsub.f32 1.0, %v2333_v10 }
 0x237   :  { %v2289_v6 = vpop.f32.mrf.mxu3 }
 0x240   :  { %v2252_v18 = vpop.f32.mrf.mxu2 }
 0x241   :  { %v2253_v17 = vadd.f32 %v2252_v18, %v2184_v47  ;;  %v2342_v18 = vmul.f32 %v2333_v10, %v10642_v3 }
 0x243   :  { %v2290_v16 = vadd.f32 %v2289_v6, %v2253_v17 }
 0x245   :  { %v2335_v37 = vmul.f32 %v2310_v54, %v2290_v16  ;;  %v2371_v16 = vld [vmem:[#allocation7 + $0xb8] sm:$0xff] }
 0x247   :  { %v2338_v47 = vadd.f32 %v2336_v49, %v2335_v37  ;;  %v15922_v49 = vand.u32 4294901760, %v11388_v1  ;;  %v11586_v37 = vand.u32 4294901760, %v2371_v16 }
 0x249   :  { %9222 = vtanh.f32 %v2338_v47 }
 0x24f   :  { %v9223_v57 = vpop.eup %9222 }
 0x250   :  { %v2341_v24 = vmul.f32 %v9223_v57, %v2340_v44 }
 0x252   :  { %v11441_v56 = vadd.f32 %v2342_v18, %v2341_v24  ;;  %v2362_v18 = vld [vmem:[#allocation7 + $0x70] sm:$0xff] }
 0x254   :  { %2345 = vst [vmem:[#allocation10 + $0x1] sm:$0x1] %v11441_v56  ;;  %v11445_v17 = vand.u32 4294901760, %v11441_v56 }
 0x256   :  { %2542 = vmatmul.f32.vlgmr.msrb.gmra.mxu1 %v11445_v17  ;;  %v11450_v61 = vsub.f32 %v11441_v56, %v11445_v17 }
 0x257   :  { %2942 = vmatpush.msrb.mxu1 %v11207_v0 }
 0x258   :  { %2596 = vmatmul.f32.vlgmr.msrb.gmra.mxu2 %v11450_v61  ;;  %v11455_v43 = vand.u32 4294901760, %v11450_v61 }
 0x259   :  { %2944 = vmatpush.msrb.mxu1 %v11216_v40  ;;  %2983 = vmatpush.msrb.mxu2 %v2788_v52  ;;  %v2389_v52 = vld [vmem:[#allocation7 + $0x148] sm:$0xff] }
 0x25a   :  { %2635 = vmatmul.f32.vlgmr.msrb.gmra.mxu3 %v11455_v43  ;;  %v2439_v3 = vsub.f32 %v11450_v61, %v11455_v43 }
 0x25b   :  { %2946 = vmatpush.msrb.mxu1 %v11223_v46  ;;  %2987 = vmatpush.msrb.mxu2 %v2794_v14 }
 0x25c   :  { %3050 = vmatpush.msrb.mxu3 %v11207_v0  ;;  %v11467_v55 = vand.u32 4294901760, %v2439_v3  ;;  %v2395_v0 = vld [vmem:[#allocation7 + $0x178] sm:$0xff]  ;;  %v11613_v3 = vand.u32 4294901760, %v2365_v21 }
 0x25d   :  { %2948 = vmatpush.msrb.mxu1 %v11235_v48  ;;  %2991 = vmatpush.msrb.mxu2 %v2800_v34 }
 0x25e   :  { %3052 = vmatpush.msrb.mxu3 %v11216_v40  ;;  %2441 = vmatmul.f32.vlgmr.msrb.gmra.mxu0 %v11467_v55  ;;  %v11493_v40 = vand.u32 4294901760, %v2395_v0 }
 0x25f   :  { %2741 = vmatmul.f32.vlgmr.msra.gmra.mxu1 %v11445_v17  ;;  %2889 = vmatpush.msrb.mxu0 %v11214_v12  ;;  %v2392_v12 = vld [vmem:[#allocation7 + $0x160] sm:$0xff] }
 0x260   :  { %2950 = vmatpush.msrb.mxu1 %v11248_v33  ;;  %2995 = vmatpush.msrb.mxu2 %v2806_v7  ;;  %v11508_v14 = vsub.f32 %v2395_v0, %v11493_v40 }
 0x261   :  { %3054 = vmatpush.msrb.mxu3 %v11223_v46  ;;  %2782 = vmatmul.f32.vlgmr.msra.gmra.mxu2 %v11467_v55  ;;  %v11500_v46 = vand.u32 4294901760, %v2392_v12 }
 0x262   :  { %2892 = vmatpush.msrb.mxu0 %v11226_v29  ;;  %2952 = vmatpush.msrb.mxu1 %v11260_v11  ;;  %v2386_v29 = vld [vmem:[#allocation7 + $0x130] sm:$0xff] }
 0x263   :  { %2999 = vmatpush.msrb.mxu2 %v2812_v42  ;;  %3056 = vmatpush.msrb.mxu3 %v11235_v48  ;;  %v11510_v48 = vand.u32 4294901760, %v2389_v52  ;;  %v11518_v34 = vsub.f32 %v2392_v12, %v11500_v46  ;;  %v2380_v42 = vld [vmem:[#allocation7 + $0x100] sm:$0xff] }
 0x264   :  { %2883 = vmatmul.f32.vlgmr.msra.gmra.mxu3 %v11445_v17  ;;  %2895 = vmatpush.msrb.mxu0 %v11238_v15  ;;  %v2383_v15 = vld [vmem:[#allocation7 + $0x118] sm:$0xff] }
 0x265   :  { %2954 = vmatpush.msrb.mxu1 %v11271_v26  ;;  %3003 = vmatpush.msrb.mxu2 %v2818_v60  ;;  %v11531_v7 = vand.u32 4294901760, %v2383_v15  ;;  %v3135_v60 = vand.u32 4294901760, %v11518_v34 }
 0x266   :  { %3058 = vmatpush.msrb.mxu3 %v11248_v33  ;;  %2898 = vmatpush.msrb.mxu0 %v11252_v31  ;;  %v11520_v33 = vand.u32 4294901760, %v2386_v29  ;;  %v15918_v31 = vand.u32 4294901760, %v11332_v20 }
 0x267   :  { %2956 = vmatpush.msrb.mxu1 %v11287_v2  ;;  %3007 = vmatpush.msrb.mxu2 %v2824_v39  ;;  %v2374_v39 = vld [vmem:[#allocation7 + $0xd0] sm:$0xff] }
 0x268   :  { %3060 = vmatpush.msrb.mxu3 %v11260_v11  ;;  %2704 = vmatmul.f32.vlgmr.msra.gmra.mxu0 %v11445_v17  ;;  %v3129_v11 = vand.u32 4294901760, %v11508_v14  ;;  %v11567_v38 = vand.u32 4294901760, %v2374_v39 }
 0x269   :  { %2901 = vmatpush.msrb.mxu0 %v11263_v13  ;;  %2958 = vmatpush.msrb.mxu1 %v11301_v28  ;;  %v11529_v13 = vsub.f32 %v2389_v52, %v11510_v48  ;;  %v2359_v52 = vld [vmem:[#allocation7 + $0x58] sm:$0xff] }
 0x26a   :  { %3011 = vmatpush.msrb.mxu2 %v2830_v23  ;;  %3062 = vmatpush.msrb.mxu3 %v11271_v26  ;;  %v2377_v26 = vld [vmem:[#allocation7 + $0xe8] sm:$0xff]  ;;  %v11554_v23 = vsub.f32 %v2383_v15, %v11531_v7  ;;  %v11595_v36 = vsub.f32 %v2374_v39, %v11567_v38  ;;  %v11625_v15 = vand.u32 4294901760, %v2362_v18 }
 0x26b   :  { %2904 = vmatpush.msrb.mxu0 %v11274_v22  ;;  %2960 = vmatpush.msrb.mxu1 %v11309_v53  ;;  %v15919_v22 = vand.u32 4294901760, %v11346_v5 }
 0x26c   :  { %3015 = vmatpush.msrb.mxu2 %v2836_v41  ;;  %3064 = vmatpush.msrb.mxu3 %v11287_v2  ;;  %v11540_v2 = vsub.f32 %v2386_v29, %v11520_v33  ;;  %v15921_v41 = vand.u32 4294901760, %v11370_v25  ;;  %v3153_v32 = vand.u32 4294901760, %v11554_v23  ;;  %v3171_v12 = vand.u32 4294901760, %v11595_v36 }
 0x26d   :  { %2907 = vmatpush.msrb.mxu0 %v11290_v50  ;;  %2962 = vmatpush.msrb.mxu1 %v11329_v62  ;;  %v11544_v50 = vand.u32 4294901760, %v2380_v42 }
 0x26e   :  { %3019 = vmatpush.msrb.mxu2 %v15918_v31  ;;  %3066 = vmatpush.msrb.mxu3 %v11301_v28  ;;  %v15920_v28 = vand.u32 4294901760, %v11351_v30  ;;  %v3147_v6 = vand.u32 4294901760, %v11540_v2  ;;  %v3154_v57 = vsub.f32 %v11554_v23, %v3153_v32  ;;  %v3172_v39 = vsub.f32 %v11595_v36, %v3171_v12 }
 0x26f   :  { %2910 = vmatpush.msrb.mxu0 %v11304_v45  ;;  %2964 = vmatpush.msrb.mxu1 %v11334_v35  ;;  %v3130_v45 = vsub.f32 %v11508_v14, %v3129_v11 }
 0x270   :  { %3023 = vmatpush.msrb.mxu2 %v15919_v22  ;;  %3068 = vmatpush.msrb.mxu3 %v11309_v53  ;;  %v3141_v53 = vand.u32 4294901760, %v11529_v13  ;;  %v3148_v47 = vsub.f32 %v11540_v2, %v3147_v6  ;;  %v3155_v31 = vand.u32 4294901760, %v3154_v57  ;;  %v11637_v22 = vand.u32 4294901760, %v2359_v52 }
 0x271   :  { %2913 = vmatpush.msrb.mxu0 %v11318_v8  ;;  %2966 = vmatpush.msrb.mxu1 %v11348_v58  ;;  %v11556_v8 = vand.u32 4294901760, %v2377_v26 }
 0x272   :  { %3027 = vmatpush.msrb.mxu2 %v15920_v28  ;;  %3070 = vmatpush.msrb.mxu3 %v11329_v62  ;;  %v3136_v62 = vsub.f32 %v11518_v34, %v3135_v60  ;;  %v3142_v54 = vsub.f32 %v11529_v13, %v3141_v53  ;;  %v3149_v0 = vand.u32 4294901760, %v3148_v47  ;;  %v2353_v28 = vld [vmem:[#allocation7 + $0x28] sm:$0xff] }
 0x273   :  { %2916 = vmatpush.msrb.mxu0 %v11332_v20  ;;  %2968 = vmatpush.msrb.mxu1 %v11364_v9  ;;  %v11572_v20 = vsub.f32 %v2380_v42, %v11544_v50  ;;  %v11582_v4 = vsub.f32 %v2377_v26, %v11556_v8  ;;  %v11635_v26 = vsub.f32 %v2365_v21, %v11613_v3 }
 0x274   :  { %3031 = vmatpush.msrb.mxu2 %v15921_v41  ;;  %3072 = vmatpush.msrb.mxu3 %v11334_v35  ;;  %v3131_v35 = vand.u32 4294901760, %v3130_v45  ;;  %v3143_v44 = vand.u32 4294901760, %v3142_v54 }
 0x275   :  { %2919 = vmatpush.msrb.mxu0 %v11346_v5  ;;  %2970 = vmatpush.msrb.mxu1 %v11379_v27  ;;  %v2368_v5 = vld [vmem:[#allocation7 + $0xa0] sm:$0xff]  ;;  %v3165_v24 = vand.u32 4294901760, %v11582_v4  ;;  %v3189_v54 = vand.u32 4294901760, %v11635_v26 }
 0x276   :  { %3035 = vmatpush.msrb.mxu2 %v15922_v49  ;;  %3074 = vmatpush.msrb.mxu3 %v11348_v58  ;;  %v3137_v58 = vand.u32 4294901760, %v3136_v62  ;;  %v11600_v10 = vand.u32 4294901760, %v2368_v5  ;;  %v11647_v62 = vsub.f32 %v2362_v18, %v11625_v15  ;;  %v2350_v49 = vld [vmem:[#allocation7 + $0x10] sm:$0xff] }
 0x277   :  { %2922 = vmatpush.msrb.mxu0 %v11351_v30  ;;  %2972 = vmatpush.msrb.mxu1 %v11398_v63  ;;  %v3159_v30 = vand.u32 4294901760, %v11572_v20  ;;  %v3166_v42 = vsub.f32 %v11582_v4, %v3165_v24  ;;  %v3190_v57 = vsub.f32 %v11635_v26, %v3189_v54 }
 0x278   :  { %3039 = vmatpush.msrb.mxu2 %v15923_v19  ;;  %3076 = vmatpush.msrb.mxu3 %v11364_v9  ;;  %v15924_v9 = vand.u32 4294901760, %v11414_v51  ;;  %v11623_v29 = vsub.f32 %v2368_v5, %v11600_v10  ;;  %v11659_v5 = vsub.f32 %v2359_v52, %v11637_v22  ;;  %v11661_v19 = vand.u32 4294901760, %v2353_v28 }
 0x279   :  { %2976 = vmatmul.f32.vlgmr.msrb.gmra.mxu1 %v11455_v43  ;;  %2925 = vmatpush.msrb.mxu0 %v11370_v25  ;;  %v11611_v25 = vsub.f32 %v2371_v16, %v11586_v37  ;;  %v3195_v47 = vand.u32 4294901760, %v11647_v62 }
 0x27a   :  { %3132 = vmatpush.msra.mxu1 %v3131_v35  ;;  %3043 = vmatpush.msrb.mxu2 %v15924_v9  ;;  %v3183_v41 = vand.u32 4294901760, %v11623_v29  ;;  %v11673_v9 = vand.u32 4294901760, %v2350_v49  ;;  %v3201_v18 = vand.u32 4294901760, %v11659_v5 }
 0x27b   :  { %3078 = vmatpush.msrb.mxu3 %v11379_v27  ;;  %3045 = vmatmul.f32.vlgmr.msrb.gmra.mxu2 %v11445_v17  ;;  %v3160_v27 = vsub.f32 %v11572_v20, %v3159_v30 }
 0x27c   :  { %3138 = vmatpush.msra.mxu1 %v3137_v58  ;;  %3230 = vmatpush.msra.mxu2 %v11508_v14  ;;  %v3184_v58 = vsub.f32 %v11623_v29, %v3183_v41  ;;  %v3522_v14 = vld [vmem:[#allocation7 + $0x138] sm:$0xff] }
 0x27d   :  { %2928 = vmatpush.msrb.mxu0 %v11388_v1  ;;  %3080 = vmatpush.msrb.mxu3 %v11398_v63  ;;  %v2356_v1 = vld [vmem:[#allocation7 + $0x40] sm:$0xff]  ;;  %v3177_v63 = vand.u32 4294901760, %v11611_v25  ;;  %v3161_v45 = vand.u32 4294901760, %v3160_v27  ;;  %v3196_v27 = vsub.f32 %v11647_v62, %v3195_v47 }
 0x27e   :  { %3082 = vmatmul.f32.vlgmr.msrb.gmra.mxu3 %v11445_v17  ;;  %3144 = vmatpush.msra.mxu1 %v3143_v44  ;;  %v11649_v16 = vand.u32 4294901760, %v2356_v1  ;;  %v3185_v52 = vand.u32 4294901760, %v3184_v58 }
 0x27f   :  { %3233 = vmatpush.msra.mxu2 %v11518_v34  ;;  %3283 = vmatpush.msra.mxu3 %v11493_v40  ;;  %v3178_v35 = vsub.f32 %v11611_v25, %v3177_v63 }
 0x280   :  { %2931 = vmatpush.msrb.mxu0 %v11401_v59  ;;  %3150 = vmatpush.msra.mxu1 %v3149_v0  ;;  %v3167_v59 = vand.u32 4294901760, %v3166_v42  ;;  %v11671_v21 = vsub.f32 %v2356_v1, %v11649_v16  ;;  %v11683_v0 = vsub.f32 %v2353_v28, %v11661_v19  ;;  %v11693_v42 = vsub.f32 %v2350_v49, %v11673_v9 }
 0x281   :  { %3236 = vmatpush.msra.mxu2 %v11529_v13  ;;  %3285 = vmatpush.msra.mxu3 %v11500_v46  ;;  %v3179_v44 = vand.u32 4294901760, %v3178_v35  ;;  %v3191_v1 = vand.u32 4294901760, %v3190_v57  ;;  %v3519_v13 = vld [vmem:[#allocation7 + $0x120] sm:$0xff] }
 0x282   :  { %2934 = vmatpush.msrb.mxu0 %v11414_v51  ;;  %3156 = vmatpush.msra.mxu1 %v3155_v31  ;;  %v3173_v51 = vand.u32 4294901760, %v3172_v39  ;;  %v3207_v31 = vand.u32 4294901760, %v11671_v21  ;;  %v3202_v39 = vsub.f32 %v11659_v5, %v3201_v18  ;;  %v3213_v28 = vand.u32 4294901760, %v11683_v0 }
 0x283   :  { %2937 = vmatmul.f32.vlgmr.msrb.gmra.mxu0 %v11450_v61  ;;  %3239 = vmatpush.msra.mxu2 %v11540_v2  ;;  %v3219_v49 = vand.u32 4294901760, %v11693_v42 }
 0x284   :  { %3087 = vmatpush.msra.mxu0 %v11493_v40  ;;  %3287 = vmatpush.msra.mxu3 %v11510_v48  ;;  %v3203_v35 = vand.u32 4294901760, %v3202_v39 }
 0x285   :  { %3162 = vmatpush.msra.mxu1 %v3161_v45  ;;  %3242 = vmatpush.msra.mxu2 %v11554_v23  ;;  %v3197_v45 = vand.u32 4294901760, %v3196_v27  ;;  %v11826_v23 = vand.u32 4294901760, %v3519_v13  ;;  %v3504_v27 = vld [vmem:[#allocation7 + $0xa8] sm:$0xff] }
 0x286   :  { %3089 = vmatpush.msra.mxu0 %v11500_v46  ;;  %3289 = vmatpush.msra.mxu3 %v11520_v33  ;;  %v11888_v39 = vand.u32 4294901760, %v3504_v27 }
 0x287   :  { %3168 = vmatpush.msra.mxu1 %v3167_v59  ;;  %3245 = vmatpush.msra.mxu2 %v11572_v20  ;;  %v3208_v59 = vsub.f32 %v11671_v21, %v3207_v31 }
 0x288   :  { %3091 = vmatpush.msra.mxu0 %v11510_v48  ;;  %3291 = vmatpush.msra.mxu3 %v11531_v7 }
 0x289   :  { %3174 = vmatpush.msra.mxu1 %v3173_v51  ;;  %3248 = vmatpush.msra.mxu2 %v11582_v4  ;;  %v3214_v51 = vsub.f32 %v11683_v0, %v3213_v28  ;;  %v3209_v58 = vand.u32 4294901760, %v3208_v59  ;;  %v3501_v59 = vld [vmem:[#allocation7 + $0x90] sm:$0xff] }
 0x28a   :  { %3093 = vmatpush.msra.mxu0 %v11520_v33  ;;  %3293 = vmatpush.msra.mxu3 %v11544_v50 }
 0x28b   :  { %3180 = vmatpush.msra.mxu1 %v3179_v44  ;;  %3251 = vmatpush.msra.mxu2 %v11595_v36  ;;  %v3220_v44 = vsub.f32 %v11693_v42, %v3219_v49  ;;  %v3215_v57 = vand.u32 4294901760, %v3214_v51 }
 0x28c   :  { %3095 = vmatpush.msra.mxu0 %v11531_v7  ;;  %3295 = vmatpush.msra.mxu3 %v11556_v8 }
 0x28d   :  { %3186 = vmatpush.msra.mxu1 %v3185_v52  ;;  %3254 = vmatpush.msra.mxu2 %v11611_v25  ;;  %v3221_v52 = vand.u32 4294901760, %v3220_v44  ;;  %v11899_v44 = vsub.f32 %v3504_v27, %v11888_v39  ;;  %v3483_v27 = vld [vmem:[#allocation7] sm:$0xff] }
 0x28e   :  { %3097 = vmatpush.msra.mxu0 %v11544_v50  ;;  %3297 = vmatpush.msra.mxu3 %v11567_v38 }
 0x28f   :  { %3192 = vmatpush.msra.mxu1 %v3191_v1  ;;  %3257 = vmatpush.msra.mxu2 %v11623_v29 }
 0x290   :  { %3099 = vmatpush.msra.mxu0 %v11556_v8  ;;  %3299 = vmatpush.msra.mxu3 %v11586_v37 }
 0x291   :  { %3198 = vmatpush.msra.mxu1 %v3197_v45  ;;  %3260 = vmatpush.msra.mxu2 %v11635_v26 }
 0x292   :  { %3101 = vmatpush.msra.mxu0 %v11567_v38  ;;  %3301 = vmatpush.msra.mxu3 %v11600_v10 }
 0x293   :  { %3204 = vmatpush.msra.mxu1 %v3203_v35  ;;  %3263 = vmatpush.msra.mxu2 %v11647_v62 }
 0x294   :  { %3103 = vmatpush.msra.mxu0 %v11586_v37  ;;  %3303 = vmatpush.msra.mxu3 %v11613_v3 }
 0x295   :  { %3210 = vmatpush.msra.mxu1 %v3209_v58  ;;  %3266 = vmatpush.msra.mxu2 %v11659_v5 }
 0x296   :  { %3105 = vmatpush.msra.mxu0 %v11600_v10  ;;  %3305 = vmatpush.msra.mxu3 %v11625_v15 }
 0x297   :  { %3216 = vmatpush.msra.mxu1 %v3215_v57  ;;  %3269 = vmatpush.msra.mxu2 %v11671_v21  ;;  %v11902_v57 = vand.u32 4294901760, %v3501_v59 }
 0x298   :  { %3107 = vmatpush.msra.mxu0 %v11613_v3  ;;  %3307 = vmatpush.msra.mxu3 %v11637_v22 }
 0x299   :  { %3222 = vmatpush.msra.mxu1 %v3221_v52  ;;  %3272 = vmatpush.msra.mxu2 %v11683_v0  ;;  %v3498_v52 = vld [vmem:[#allocation7 + $0x78] sm:$0xff] }
 0x29a   :  { %3109 = vmatpush.msra.mxu0 %v11625_v15  ;;  %3309 = vmatpush.msra.mxu3 %v11649_v16 }
 0x29b   :  { %3224 = vmatmul.f32.vlgmr.msra.gmra.mxu1 %v11445_v17  ;;  %3275 = vmatpush.msra.mxu2 %v11693_v42 }
 0x29c   :  { %3391 = vmatpush.msrb.mxu1 %v11493_v40  ;;  %3111 = vmatpush.msra.mxu0 %v11637_v22 }
 0x29d   :  { %3311 = vmatpush.msra.mxu3 %v11661_v19  ;;  %3278 = vmatmul.f32.vlgmr.msra.gmra.mxu2 %v11450_v61  ;;  %v3528_v61 = vld [vmem:[#allocation7 + $0x168] sm:$0xff] }
 0x29e   :  { %3393 = vmatpush.msrb.mxu1 %v11500_v46  ;;  %3113 = vmatpush.msra.mxu0 %v11649_v16 }
 0x29f   :  { %3313 = vmatpush.msra.mxu3 %v11673_v9 }
 0x2a0   :  { %3317 = vmatmul.f32.vlgmr.msra.gmra.mxu3 %v11455_v43  ;;  %3395 = vmatpush.msrb.mxu1 %v11510_v48  ;;  %v11796_v43 = vand.u32 4294901760, %v3528_v61  ;;  %v11805_v48 = vld [vmem:[#allocation8] sm:$0x7] }
 0x2a1   :  { %3115 = vmatpush.msra.mxu0 %v11661_v19 }
 0x2a2   :  { %3397 = vmatpush.msrb.mxu1 %v11520_v33  ;;  %v11799_v40 = vsub.f32 %v3528_v61, %v11796_v43  ;;  %3540 = vmatpush.msrb.mxu2 %v11796_v43  ;;  %v11812_v33 = vand.u32 4294901760, %v3522_v14 }
 0x2a3   :  { %3117 = vmatpush.msra.mxu0 %v11673_v9 }
 0x2a4   :  { %3123 = vmatmul.f32.vlgmr.msra.gmra.mxu0 %v11467_v55  ;;  %3399 = vmatpush.msrb.mxu1 %v11531_v7  ;;  %v3525_v55 = vld [vmem:[#allocation7 + $0x150] sm:$0xff]  ;;  %v3582_v34 = vand.u32 4294901760, %v11799_v40  ;;  %v11821_v2 = vsub.f32 %v3522_v14, %v11812_v33  ;;  %v11904_v14 = vand.u32 4294901760, %v3498_v52 }
 0x2a5   :  { %3324 = vmatpush.msrb.mxu0 %v3129_v11  ;;  %v11801_v46 = vand.u32 4294901760, %v3525_v55 }
 0x2a6   :  { %3401 = vmatpush.msrb.mxu1 %v11544_v50  ;;  %v3583_v7 = vsub.f32 %v11799_v40, %v3582_v34  ;;  %v2398_v50 = vperm.slane %v11805_v48, 0  ;;  %v3594_v20 = vand.u32 4294901760, %v11821_v2 }
 0x2a7   :  { %3328 = vmatpush.msrb.mxu0 %v3135_v60  ;;  %3542 = vmatpush.msrb.mxu2 %v11801_v46 }
 0x2a8   :  { %3403 = vmatpush.msrb.mxu1 %v11556_v8  ;;  %v3516_v8 = vld [vmem:[#allocation7 + $0x108] sm:$0xff] }
 0x2a9   :  { %3332 = vmatpush.msrb.mxu0 %v3141_v53  ;;  %3544 = vmatpush.msrb.mxu2 %v11812_v33  ;;  %v11837_v4 = vand.u32 4294901760, %v3516_v8 }
 0x2aa   :  { %3405 = vmatpush.msrb.mxu1 %v11567_v38 }
 0x2ab   :  { %3336 = vmatpush.msrb.mxu0 %v3147_v6  ;;  %v3584_v6 = vand.u32 4294901760, %v3583_v7  ;;  %3546 = vmatpush.msrb.mxu2 %v11826_v23  ;;  %v11850_v29 = vsub.f32 %v3516_v8, %v11837_v4  ;;  %v3495_v8 = vld [vmem:[#allocation7 + $0x60] sm:$0xff] }
 0x2ac   :  { %3407 = vmatpush.msrb.mxu1 %v11586_v37  ;;  %v3513_v37 = vld [vmem:[#allocation7 + $0xf0] sm:$0xff] }
 0x2ad   :  { %3340 = vmatpush.msrb.mxu0 %v3153_v32  ;;  %v11835_v32 = vsub.f32 %v3519_v13, %v11826_v23  ;;  %3585 = vmatpush.msrb.mxu3 %v3584_v6  ;;  %v3606_v62 = vand.u32 4294901760, %v11850_v29  ;;  %v11919_v6 = vsub.f32 %v3498_v52, %v11904_v14  ;;  %v11957_v52 = vand.u32 4294901760, %v3483_v27 }
 0x2ae   :  { %3409 = vmatpush.msrb.mxu1 %v11600_v10  ;;  %v11844_v10 = vand.u32 4294901760, %v3513_v37  ;;  %3548 = vmatpush.msrb.mxu2 %v11837_v4 }
 0x2af   :  { %3344 = vmatpush.msrb.mxu0 %v3159_v30  ;;  %v3595_v30 = vsub.f32 %v11821_v2, %v3594_v20  ;;  %v3607_v0 = vsub.f32 %v11850_v29, %v3606_v62 }
 0x2b0   :  { %3411 = vmatpush.msrb.mxu1 %v11613_v3  ;;  %v11855_v26 = vsub.f32 %v3513_v37, %v11844_v10  ;;  %3550 = vmatpush.msrb.mxu2 %v11844_v10 }
 0x2b1   :  { %3348 = vmatpush.msrb.mxu0 %v3165_v24  ;;  %v3608_v45 = vand.u32 4294901760, %v3607_v0  ;;  %v3486_v0 = vld [vmem:[#allocation7 + $0x18] sm:$0xff] }
 0x2b2   :  { %3413 = vmatpush.msrb.mxu1 %v11625_v15  ;;  %v3510_v15 = vld [vmem:[#allocation7 + $0xd8] sm:$0xff] }
 0x2b3   :  { %3352 = vmatpush.msrb.mxu0 %v3171_v12  ;;  %v3600_v12 = vand.u32 4294901760, %v11835_v32 }
 0x2b4   :  { %3415 = vmatpush.msrb.mxu1 %v11637_v22  ;;  %v11857_v22 = vand.u32 4294901760, %v3510_v15 }
 0x2b5   :  { %3356 = vmatpush.msrb.mxu0 %v3177_v63  ;;  %v3596_v63 = vand.u32 4294901760, %v3595_v30 }
 0x2b6   :  { %3417 = vmatpush.msrb.mxu1 %v11649_v16  ;;  %v3507_v16 = vld [vmem:[#allocation7 + $0xc0] sm:$0xff]  ;;  %v11868_v5 = vsub.f32 %v3510_v15, %v11857_v22  ;;  %3552 = vmatpush.msrb.mxu2 %v11857_v22  ;;  %v3492_v15 = vld [vmem:[#allocation7 + $0x48] sm:$0xff] }
 0x2b7   :  { %3360 = vmatpush.msrb.mxu0 %v3183_v41  ;;  %v3601_v41 = vsub.f32 %v11835_v32, %v3600_v12 }
 0x2b8   :  { %3419 = vmatpush.msrb.mxu1 %v11661_v19  ;;  %v11870_v19 = vand.u32 4294901760, %v3507_v16  ;;  %v3618_v42 = vand.u32 4294901760, %v11868_v5 }
 0x2b9   :  { %3364 = vmatpush.msrb.mxu0 %v3189_v54  ;;  %v3612_v54 = vand.u32 4294901760, %v11855_v26 }
 0x2ba   :  { %3421 = vmatpush.msrb.mxu1 %v11673_v9  ;;  %v2399_v9 = vperm.slane %v11805_v48, 1  ;;  %v11886_v1 = vsub.f32 %v3507_v16, %v11870_v19  ;;  %v3619_v35 = vsub.f32 %v11868_v5, %v3618_v42  ;;  %3554 = vmatpush.msrb.mxu2 %v11870_v19 }
 0x2bb   :  { %3368 = vmatpush.msrb.mxu0 %v3195_v47  ;;  %3423 = vmatmul.f32.vlgmr.msrb.gmra.mxu1 %v11445_v17 }
 0x2bc   :  { %3736 = vmatpush.msra.mxu1 %v11796_v43  ;;  %v3624_v58 = vand.u32 4294901760, %v11886_v1  ;;  %3556 = vmatpush.msrb.mxu2 %v11888_v39 }
 0x2bd   :  { %3372 = vmatpush.msrb.mxu0 %v3201_v18  ;;  %v3602_v18 = vand.u32 4294901760, %v3601_v41  ;;  %v3642_v41 = vand.u32 4294901760, %v11919_v6 }
 0x2be   :  { %3738 = vmatpush.msra.mxu1 %v11801_v46  ;;  %v3625_v7 = vsub.f32 %v11886_v1, %v3624_v58  ;;  %3558 = vmatpush.msrb.mxu2 %v11902_v57 }
 0x2bf   :  { %3376 = vmatpush.msrb.mxu0 %v3207_v31  ;;  %v3613_v31 = vsub.f32 %v11855_v26, %v3612_v54 }
 0x2c0   :  { %3740 = vmatpush.msra.mxu1 %v11812_v33  ;;  %v3626_v30 = vand.u32 4294901760, %v3625_v7  ;;  %3560 = vmatpush.msrb.mxu2 %v11904_v14 }
 0x2c1   :  { %3380 = vmatpush.msrb.mxu0 %v3213_v28 }
 0x2c2   :  { %3742 = vmatpush.msra.mxu1 %v11826_v23 }
 0x2c3   :  { %3384 = vmatpush.msrb.mxu0 %v3219_v49  ;;  %v3614_v49 = vand.u32 4294901760, %v3613_v31 }
 0x2c4   :  { %3386 = vmatmul.f32.vlgmr.msrb.gmra.mxu0 %v11445_v17  ;;  %v11809_v17 = vsub.f32 %v3525_v55, %v11801_v46  ;;  %3744 = vmatpush.msra.mxu1 %v11837_v4  ;;  %v3620_v55 = vand.u32 4294901760, %v3619_v35 }
 0x2c5   :  { %3683 = vmatpush.msra.mxu0 %v11799_v40 }
 0x2c6   :  { %v3588_v60 = vand.u32 4294901760, %v11809_v17  ;;  %3746 = vmatpush.msra.mxu1 %v11844_v10 }
 0x2c7   :  { %3686 = vmatpush.msra.mxu0 %v11809_v17 }
 0x2c8   :  { %v3589_v38 = vsub.f32 %v11809_v17, %v3588_v60  ;;  %3748 = vmatpush.msra.mxu1 %v11857_v22 }
 0x2c9   :  { %3689 = vmatpush.msra.mxu0 %v11821_v2  ;;  %v3517_v2 = vld [vmem:[#allocation7 + $0x110] sm:$0xff] }
 0x2ca   :  { %v3590_v36 = vand.u32 4294901760, %v3589_v38  ;;  %3750 = vmatpush.msra.mxu1 %v11870_v19  ;;  %v11921_v38 = vand.u32 4294901760, %v3495_v8 }
 0x2cb   :  { %3692 = vmatpush.msra.mxu0 %v11835_v32 }
 0x2cc   :  { %3591 = vmatpush.msrb.mxu3 %v3590_v36  ;;  %3752 = vmatpush.msra.mxu1 %v11888_v39  ;;  %v11933_v16 = vsub.f32 %v3495_v8, %v11921_v38 }
 0x2cd   :  { %3695 = vmatpush.msra.mxu0 %v11850_v29  ;;  %3562 = vmatpush.msrb.mxu2 %v11921_v38 }
 0x2ce   :  { %3597 = vmatpush.msrb.mxu3 %v3596_v63  ;;  %3754 = vmatpush.msra.mxu1 %v11902_v57 }
 0x2cf   :  { %3698 = vmatpush.msra.mxu0 %v11855_v26  ;;  %v3505_v26 = vld [vmem:[#allocation7 + $0xb0] sm:$0xff] }
 0x2d0   :  { %3603 = vmatpush.msrb.mxu3 %v3602_v18  ;;  %3756 = vmatpush.msra.mxu1 %v11904_v14  ;;  %v3489_v18 = vld [vmem:[#allocation7 + $0x30] sm:$0xff] }
 0x2d1   :  { %3701 = vmatpush.msra.mxu0 %v11868_v5  ;;  %v11953_v35 = vand.u32 4294901760, %v3489_v18 }
 0x2d2   :  { %3609 = vmatpush.msrb.mxu3 %v3608_v45  ;;  %v3648_v45 = vand.u32 4294901760, %v11933_v16  ;;  %3758 = vmatpush.msra.mxu1 %v11921_v38 }
 0x2d3   :  { %v2543_v24 = vpop.f32.mrf.mxu1  ;;  %3704 = vmatpush.msra.mxu0 %v11886_v1 }
 0x2d4   :  { %3615 = vmatpush.msrb.mxu3 %v3614_v49 }
 0x2d5   :  { %3707 = vmatpush.msra.mxu0 %v11899_v44 }
 0x2d6   :  { %3621 = vmatpush.msrb.mxu3 %v3620_v55 }
 0x2d8   :  { %3627 = vmatpush.msrb.mxu3 %v3626_v30 }
 0x2db   :  { %v2442_v11 = vpop.f32.mrf.mxu0  ;;  %v2597_v53 = vpop.f32.mrf.mxu2 }
 0x2dc   :  { %v2443_v25 = vadd.f32 %v2442_v11, %v2398_v50  ;;  %v11908_v11 = vpop.f32.mrf.mxu1  ;;  %v3630_v50 = vand.u32 4294901760, %v11899_v44 }
 0x2dd   :  { %v11846_v3 = vpop.f32.mrf.mxu3 }
 0x2de   :  { %v2544_v47 = vadd.f32 %v2543_v24, %v2443_v25  ;;  %v3631_v24 = vsub.f32 %v11899_v44, %v3630_v50 }
 0x2e0   :  { %v2598_v51 = vadd.f32 %v2597_v53, %v2544_v47  ;;  %v11915_v53 = vsub.f32 %v3501_v59, %v11902_v57  ;;  %v11935_v47 = vand.u32 4294901760, %v3492_v15 }
 0x2e2   :  { %v2637_v37 = vadd.f32 %v11846_v3, %v2598_v51  ;;  %v3636_v25 = vand.u32 4294901760, %v11915_v53  ;;  %3710 = vmatpush.msra.mxu0 %v11915_v53  ;;  %v3632_v3 = vand.u32 4294901760, %v3631_v24  ;;  %v11948_v59 = vsub.f32 %v3492_v15, %v11935_v47  ;;  %3760 = vmatpush.msra.mxu1 %v11935_v47 }
 0x2e3   :  { %v11955_v51 = vand.u32 4294901760, %v3486_v0  ;;  %3564 = vmatpush.msrb.mxu2 %v11935_v47 }
 0x2e4   :  { %v2783_v28 = vpop.f32.mrf.mxu2  ;;  %3713 = vmatpush.msra.mxu0 %v11919_v6  ;;  %3633 = vmatpush.msrb.mxu3 %v3632_v3  ;;  %v3654_v7 = vand.u32 4294901760, %v11948_v59 }
 0x2e5   :  { %v11873_v21 = vpop.f32.mrf.mxu0  ;;  %v2784_v61 = vadd.f32 %v2783_v28, %v2399_v9  ;;  %v3637_v9 = vsub.f32 %v11915_v53, %v3636_v25  ;;  %v3643_v28 = vsub.f32 %v11919_v6, %v3642_v41  ;;  %3762 = vmatpush.msra.mxu1 %v11953_v35  ;;  %3566 = vmatpush.msrb.mxu2 %v11953_v35 }
 0x2e6   :  { %3716 = vmatpush.msra.mxu0 %v11933_v16  ;;  %v3655_v15 = vsub.f32 %v11948_v59, %v3654_v7 }
 0x2e7   :  { %v2884_v13 = vpop.f32.mrf.mxu3  ;;  %v3638_v49 = vand.u32 4294901760, %v3637_v9  ;;  %v3644_v55 = vand.u32 4294901760, %v3643_v28  ;;  %3764 = vmatpush.msra.mxu1 %v11955_v51  ;;  %3568 = vmatpush.msrb.mxu2 %v11955_v51 }
 0x2e8   :  { %v2885_v63 = vadd.f32 %v2884_v13, %v2784_v61  ;;  %v2706_v61 = vadd.f32 %v11873_v21, %v2637_v37  ;;  %v3649_v13 = vsub.f32 %v11933_v16, %v3648_v45  ;;  %3719 = vmatpush.msra.mxu0 %v11948_v59  ;;  %v11971_v21 = vsub.f32 %v3486_v0, %v11955_v51 }
 0x2e9   :  { %3639 = vmatpush.msrb.mxu3 %v3638_v49  ;;  %v11974_v37 = vsub.f32 %v3483_v27, %v11957_v52  ;;  %v3656_v0 = vand.u32 4294901760, %v3655_v15  ;;  %3766 = vmatpush.msra.mxu1 %v11957_v52  ;;  %v3526_v15 = vld [vmem:[#allocation7 + $0x158] sm:$0xff] }
 0x2ea   :  { %v3650_v24 = vand.u32 4294901760, %v3649_v13  ;;  %v15834_v3 = vand.u32 4294901760, %v11971_v21  ;;  %3570 = vmatpush.msrb.mxu2 %v11957_v52 }
 0x2eb   :  { %3645 = vmatpush.msrb.mxu3 %v3644_v55  ;;  %v15833_v9 = vand.u32 4294901760, %v11974_v37  ;;  %v3529_v55 = vld [vmem:[#allocation7 + $0x170] sm:$0xff] }
 0x2ec   :  { %v3667_v28 = vsub.f32 %v11971_v21, %v15834_v3  ;;  %3777 = vmatpush.msra.mxu2 %v3582_v34 }
 0x2ed   :  { %3651 = vmatpush.msrb.mxu3 %v3650_v24  ;;  %v3673_v49 = vsub.f32 %v11974_v37, %v15833_v9  ;;  %v12003_v24 = vand.u32 4294901760, %v3529_v55 }
 0x2ee   :  { %3781 = vmatpush.msra.mxu2 %v3588_v60 }
 0x2ef   :  { %3657 = vmatpush.msrb.mxu3 %v3656_v0  ;;  %v12012_v0 = vand.u32 4294901760, %v3526_v15 }
 0x2f0   :  { %3785 = vmatpush.msra.mxu2 %v3594_v20  ;;  %v12037_v20 = vand.u32 4294901760, %v3517_v2 }
 0x2f2   :  { %3789 = vmatpush.msra.mxu2 %v3600_v12  ;;  %v12054_v32 = vsub.f32 %v3517_v2, %v12037_v20 }
 0x2f4   :  { %3793 = vmatpush.msra.mxu2 %v3606_v62 }
 0x2f6   :  { %v2977_v8 = vpop.f32.mrf.mxu1  ;;  %3797 = vmatpush.msra.mxu2 %v3612_v54 }
 0x2f8   :  { %3801 = vmatpush.msra.mxu2 %v3618_v42  ;;  %v3502_v42 = vld [vmem:[#allocation7 + $0x98] sm:$0xff] }
 0x2fa   :  { %3805 = vmatpush.msra.mxu2 %v3624_v58 }
 0x2fc   :  { %3809 = vmatpush.msra.mxu2 %v3630_v50  ;;  %v3496_v50 = vld [vmem:[#allocation7 + $0x68] sm:$0xff] }
 0x2fe   :  { %v3046_v27 = vpop.f32.mrf.mxu2  ;;  %3813 = vmatpush.msra.mxu2 %v3636_v25  ;;  %v12137_v25 = vand.u32 4294901760, %v3496_v50 }
 0x300   :  { %v2938_v36 = vpop.f32.mrf.mxu0  ;;  %3817 = vmatpush.msra.mxu2 %v3642_v41  ;;  %v3490_v41 = vld [vmem:[#allocation7 + $0x38] sm:$0xff] }
 0x301   :  { %v2939_v31 = vadd.f32 %v2938_v36, %v2885_v63  ;;  %v11967_v36 = vsub.f32 %v3489_v18, %v11953_v35  ;;  %v2743_v18 = vadd.f32 %v11908_v11, %v2706_v61  ;;  %v11998_v11 = vld [vmem:[#allocation2 + $0x6] sm:$0x7]  ;;  %v3083_v3 = vpop.f32.mrf.mxu3 }
 0x302   :  { %3821 = vmatpush.msra.mxu2 %v3648_v45  ;;  %v3487_v45 = vld [vmem:[#allocation7 + $0x20] sm:$0xff] }
 0x303   :  { %v2978_v30 = vadd.f32 %v2977_v8, %v2939_v31  ;;  %v15835_v63 = vand.u32 4294901760, %v11967_v36  ;;  %3722 = vmatpush.msra.mxu0 %v11967_v36  ;;  %v3668_v8 = vand.u32 4294901760, %v3667_v28  ;;  %v3427_v9 = vadd.f32 %v2743_v18, %v11998_v11 }
 0x304   :  { %v3448_v28 = vrot.slane %v11998_v11, 1  ;;  %v12022_v18 = vsub.f32 %v3526_v15, %v12012_v0  ;;  %v3514_v15 = vld [vmem:[#allocation7 + $0xf8] sm:$0xff]  ;;  %3825 = vmatpush.msra.mxu2 %v3654_v7  ;;  %v15925_v59 = vand.u32 4294901760, %v11967_v36 }
 0x305   :  { %v3661_v31 = vsub.f32 %v11967_v36, %v15835_v63  ;;  %3725 = vmatpush.msra.mxu0 %v11971_v21  ;;  %v3047_v61 = vadd.f32 %v3046_v27, %v2978_v30  ;;  %v3674_v30 = vand.u32 4294901760, %v3673_v49  ;;  %v12010_v27 = vsub.f32 %v3529_v55, %v12003_v24  ;;  %v3523_v63 = vld [vmem:[#allocation7 + $0x140] sm:$0xff]  ;;  %v3520_v49 = vld [vmem:[#allocation7 + $0x128] sm:$0xff] }
 0x306   :  { %v12019_v34 = vand.u32 4294901760, %v3523_v63  ;;  %v3929_v55 = vand.u32 4294901760, %v12022_v18  ;;  %3829 = vmatpush.msra.mxu2 %v15925_v59 }
 0x307   :  { %v3662_v13 = vand.u32 4294901760, %v3661_v31  ;;  %3728 = vmatpush.msra.mxu0 %v11974_v37  ;;  %v3084_v31 = vadd.f32 %v3083_v3, %v3047_v61  ;;  %v3923_v40 = vand.u32 4294901760, %v12010_v27  ;;  %v9181_v3 = vmul.f32 -1.442695, %v3427_v9 }
 0x308   :  { %v12026_v61 = vand.u32 4294901760, %v3520_v49 }
 0x309   :  { %3663 = vmatpush.msrb.mxu3 %v3662_v13  ;;  %3881 = vmatpush.msrb.mxu0 %v12003_v24  ;;  %v3450_v17 = vadd.f32 %v3448_v28, %v3084_v31  ;;  %v3924_v60 = vsub.f32 %v12010_v27, %v3923_v40  ;;  %v12035_v13 = vsub.f32 %v3523_v63, %v12019_v34  ;;  %9224 = vpow2.f32 %v9181_v3 }
 0x30a   :  { %v12040_v9 = vsub.f32 %v3520_v49, %v12026_v61  ;;  %v12051_v31 = vand.u32 4294901760, %v3514_v15  ;;  %v3511_v49 = vld [vmem:[#allocation7 + $0xe0] sm:$0xff] }
 0x30b   :  { %3669 = vmatpush.msrb.mxu3 %v3668_v8  ;;  %3883 = vmatpush.msrb.mxu0 %v12012_v0  ;;  %v3930_v8 = vsub.f32 %v12022_v18, %v3929_v55  ;;  %v3935_v63 = vand.u32 4294901760, %v12035_v13  ;;  %v12067_v29 = vand.u32 4294901760, %v3511_v49 }
 0x30c   :  { %v12070_v62 = vsub.f32 %v3514_v15, %v12051_v31 }
 0x30d   :  { %3675 = vmatpush.msrb.mxu3 %v3674_v30  ;;  %3885 = vmatpush.msrb.mxu0 %v12019_v34  ;;  %v15836_v30 = vand.u32 4294901760, %v12040_v9  ;;  %v3931_v12 = vand.u32 4294901760, %v3930_v8  ;;  %v3936_v28 = vsub.f32 %v12035_v13, %v3935_v63 }
 0x30e   :  { %v3953_v8 = vand.u32 4294901760, %v12070_v62 }
 0x30f   :  { %3844 = vmatpush.msra.mxu3 %v11796_v43  ;;  %v3925_v43 = vand.u32 4294901760, %v3924_v60  ;;  %3887 = vmatpush.msrb.mxu0 %v12026_v61  ;;  %v3942_v3 = vsub.f32 %v12040_v9, %v15836_v30  ;;  %v3947_v60 = vand.u32 4294901760, %v12054_v32  ;;  %v9225_v54 = vpop.eup %9224 }
 0x310   :  { %v12109_v1 = vadd.f32 1.0, %v9225_v54  ;;  %v3493_v54 = vld [vmem:[#allocation7 + $0x50] sm:$0xff] }
 0x311   :  { %3846 = vmatpush.msra.mxu3 %v11801_v46  ;;  %v9182_v46 = vmul.f32 -1.442695, %v3450_v17  ;;  %3926 = vmatpush.msrb.mxu1 %v3925_v43  ;;  %v3508_v17 = vld [vmem:[#allocation7 + $0xc8] sm:$0xff]  ;;  %v3943_v2 = vand.u32 4294901760, %v3942_v3  ;;  %v3948_v43 = vsub.f32 %v12054_v32, %v3947_v60 }
 0x312   :  { %3889 = vmatpush.msrb.mxu0 %v12037_v20  ;;  %v12080_v30 = vand.u32 4294901760, %v3508_v17  ;;  %vm3437_vm1 = vweird.f32 %v12109_v1 }
 0x313   :  { %3848 = vmatpush.msra.mxu3 %v11812_v33  ;;  %3932 = vmatpush.msrb.mxu1 %v3931_v12  ;;  %v3937_v33 = vand.u32 4294901760, %v3936_v28  ;;  %9226 = vpow2.f32 %v9182_v46  ;;  %v3949_v15 = vand.u32 4294901760, %v3948_v43  ;;  %v3954_v12 = vsub.f32 %v12070_v62, %v3953_v8 }
 0x314   :  { %3891 = vmatpush.msrb.mxu0 %v12051_v31  ;;  %v12092_v28 = vand.u32 4294901760, %v3505_v26  ;;  %v12099_v5 = vsub.f32 %v3508_v17, %v12080_v30  ;;  %9228 = vrcp.f32 %v12109_v1 }
 0x315   :  { %3850 = vmatpush.msra.mxu3 %v11826_v23  ;;  %3938 = vmatpush.msrb.mxu1 %v3937_v33  ;;  %v12086_v23 = vsub.f32 %v3511_v49, %v12067_v29  ;;  %v3955_v46 = vand.u32 4294901760, %v3954_v12  ;;  %v12102_v49 = vand.u32 4294901760, %v3502_v42  ;;  %v3499_v33 = vld [vmem:[#allocation7 + $0x80] sm:$0xff] }
 0x316   :  { %3893 = vmatpush.msrb.mxu0 %v12067_v29  ;;  %v12105_v3 = vsub.f32 %v3505_v26, %v12092_v28  ;;  %v3965_v58 = vand.u32 4294901760, %v12099_v5  ;;  %v12128_v26 = vand.u32 4294901760, %v3499_v33 }
 0x317   :  { %3852 = vmatpush.msra.mxu3 %v11837_v4  ;;  %3944 = vmatpush.msrb.mxu1 %v3943_v2  ;;  %v3959_v4 = vand.u32 4294901760, %v12086_v23  ;;  %v12131_v53 = vsub.f32 %v3502_v42, %v12102_v49 }
 0x318   :  { %3895 = vmatpush.msrb.mxu0 %v12080_v30  ;;  %v3971_v17 = vand.u32 4294901760, %v12105_v3  ;;  %v12142_v42 = vsub.f32 %v3499_v33, %v12128_v26 }
 0x319   :  { %3854 = vmatpush.msra.mxu3 %v11844_v10  ;;  %3950 = vmatpush.msrb.mxu1 %v3949_v15  ;;  %v3960_v10 = vsub.f32 %v12086_v23, %v3959_v4  ;;  %v9227_v2 = vpop.eup %9226  ;;  %v3977_v12 = vand.u32 4294901760, %v12131_v53 }
 0x31a   :  { %3897 = vmatpush.msrb.mxu0 %v12092_v28  ;;  %v3972_v43 = vsub.f32 %v12105_v3, %v3971_v17  ;;  %v12148_v6 = vadd.f32 1.0, %v9227_v2  ;;  %v15838_v33 = vand.u32 4294901760, %v12142_v42  ;;  %v12177_v7 = vpop.eup %9228 }
 0x31b   :  { %3856 = vmatpush.msra.mxu3 %v11857_v22  ;;  %3956 = vmatpush.msrb.mxu1 %v3955_v46  ;;  %v3961_v44 = vand.u32 4294901760, %v3960_v10  ;;  %v3966_v22 = vsub.f32 %v12099_v5, %v3965_v58  ;;  %v12144_v46 = vand.u32 4294901760, %v3493_v54  ;;  %v3978_v10 = vsub.f32 %v12131_v53, %v3977_v12 }
 0x31c   :  { %3899 = vmatpush.msrb.mxu0 %v12102_v49  ;;  %v3973_v15 = vand.u32 4294901760, %v3972_v43  ;;  %v12173_v43 = vand.u32 4294901760, %v3487_v45  ;;  %9230 = vrcp.f32 %v12148_v6  ;;  %vm3438_vm0 = vweird.f32 %v12177_v7 }
 0x31d   :  { %3858 = vmatpush.msra.mxu3 %v11870_v19  ;;  %3962 = vmatpush.msrb.mxu1 %v3961_v44  ;;  %v3967_v19 = vand.u32 4294901760, %v3966_v22  ;;  %v12159_v44 = vand.u32 4294901760, %v3490_v41  ;;  %v12162_v16 = vsub.f32 %v3493_v54, %v12144_v46  ;;  %v3979_v22 = vand.u32 4294901760, %v3978_v10  ;;  %vm3439_vm2 = vmor %vm3437_vm1, %vm3438_vm0 }
 0x31e   :  { %3901 = vmatpush.msrb.mxu0 %v12128_v26  ;;  %v2400_v54 = vperm.slane %v11805_v48, 2  ;;  %v15926_v48 = vand.u32 4294901760, %v11971_v21  ;;  %v15927_v21 = vand.u32 4294901760, %v11974_v37  ;;  %vm3460_vm5 = vweird.f32 %v12148_v6 }
 0x31f   :  { %3860 = vmatpush.msra.mxu3 %v11888_v39  ;;  %3968 = vmatpush.msrb.mxu1 %v3967_v19  ;;  %v12152_v39 = vsub.f32 %v3496_v50, %v12137_v25  ;;  %v3984_v50 = vsub.f32 %v12142_v42, %v15838_v33  ;;  %v15840_v2 = vand.u32 4294901760, %v12162_v16  ;;  %v12184_v19 = vsub.f32 %v3490_v41, %v12159_v44 }
 0x320   :  { %3903 = vmatpush.msrb.mxu0 %v12137_v25  ;;  %v12197_v33 = vsub.f32 %v3487_v45, %v12173_v43  ;;  %3833 = vmatpush.msra.mxu2 %v15926_v48 }
 0x321   :  { %3862 = vmatpush.msra.mxu3 %v11902_v57  ;;  %3974 = vmatpush.msrb.mxu1 %v3973_v15  ;;  %v15837_v57 = vand.u32 4294901760, %v12152_v39  ;;  %v3985_v15 = vand.u32 4294901760, %v3984_v50  ;;  %v3996_v36 = vsub.f32 %v12162_v16, %v15840_v2  ;;  %v3124_v10 = vpop.f32.mrf.mxu0  ;;  %v15839_v41 = vand.u32 4294901760, %v12184_v19 }
 0x322   :  { %3905 = vmatpush.msrb.mxu0 %v12144_v46  ;;  %3837 = vmatpush.msra.mxu2 %v15927_v21  ;;  %v3125_v48 = vadd.f32 %v3124_v10, %v2400_v54  ;;  %v3279_v21 = vpop.f32.mrf.mxu2 }
 0x323   :  { %3864 = vmatpush.msra.mxu3 %v11904_v14  ;;  %v3990_v14 = vsub.f32 %v12152_v39, %v15837_v57  ;;  %3980 = vmatpush.msrb.mxu1 %v3979_v22  ;;  %v3433_v22 = vmul.f32 %v12177_v7, %v12109_v1  ;;  %v3997_v50 = vand.u32 4294901760, %v3996_v36 }
 0x324   :  { %3907 = vmatpush.msrb.mxu0 %v12159_v44 }
 0x325   :  { %3866 = vmatpush.msra.mxu3 %v11921_v38  ;;  %v3484_v38 = vld [vmem:[#allocation7 + $0x8] sm:$0xff]  ;;  %v3991_v59 = vand.u32 4294901760, %v3990_v14  ;;  %3986 = vmatpush.msrb.mxu1 %v3985_v15  ;;  %v15841_v14 = vand.u32 4294901760, %v12197_v33  ;;  %v3434_v2 = vsub.f32 1.0, %v3433_v22 }
 0x326   :  { %v12194_v57 = vand.u32 4294901760, %v3484_v38  ;;  %3909 = vmatpush.msrb.mxu0 %v12173_v43 }
 0x327   :  { %3868 = vmatpush.msra.mxu3 %v11935_v47  ;;  %v4002_v47 = vsub.f32 %v12184_v19, %v15839_v41  ;;  %3992 = vmatpush.msrb.mxu1 %v3991_v59  ;;  %v9231_v41 = vpop.eup %9230 }
 0x328   :  { %v12210_v45 = vsub.f32 %v3484_v38, %v12194_v57  ;;  %3911 = vmatpush.msrb.mxu0 %v12194_v57  ;;  %v3225_v38 = vpop.f32.mrf.mxu1  ;;  %vm3461_vm4 = vweird.f32 %v9231_v41 }
 0x329   :  { %3870 = vmatpush.msra.mxu3 %v11953_v35  ;;  %v4003_v15 = vand.u32 4294901760, %v4002_v47  ;;  %v4008_v35 = vsub.f32 %v12197_v33, %v15841_v14  ;;  %3998 = vmatpush.msrb.mxu1 %v3997_v50  ;;  %v3226_v10 = vadd.f32 %v3225_v38, %v3125_v48  ;;  %v3435_v47 = vmul.f32 %v12177_v7, %v3434_v2  ;;  %vm3462_vm6 = vmor %vm3460_vm5, %vm3461_vm4 }
 0x32a   :  { %v15842_v36 = vand.u32 4294901760, %v12210_v45  ;;  %v3441_v48 = vand.u32 2147483647, %v12109_v1 }
 0x32b   :  { %3872 = vmatpush.msra.mxu3 %v11955_v51  ;;  %v4009_v37 = vand.u32 4294901760, %v4008_v35  ;;  %4004 = vmatpush.msrb.mxu1 %v4003_v15  ;;  %v3456_v51 = vmul.f32 %v9231_v41, %v12148_v6  ;;  %v3280_v14 = vadd.f32 %v3279_v21, %v3226_v10  ;;  %v3436_v50 = vadd.f32 %v12177_v7, %v3435_v47 }
 0x32c   :  { %v4014_v54 = vsub.f32 %v12210_v45, %v15842_v36  ;;  %v3443_v35 = vand.u32 2147483648, %v12109_v1  ;;  %vm3442_vm3 = vcmp.eq.f32.partialorder %v3441_v48, 8.507059e+37  ;;  %v3464_v1 = vand.u32 2147483647, %v12148_v6 }
 0x32d   :  { %3874 = vmatpush.msra.mxu3 %v11957_v52  ;;  %4010 = vmatpush.msrb.mxu1 %v4009_v37  ;;  %v3457_v22 = vsub.f32 1.0, %v3456_v51  ;;  %v3318_v52 = vpop.f32.mrf.mxu3  ;;  %v3440_v37 = vsel %vm3439_vm2, %v12177_v7, %v3436_v50 }
 0x32e   :  { %v4015_v59 = vand.u32 4294901760, %v4014_v54  ;;  %v3319_v36 = vadd.f32 %v3318_v52, %v3280_v14  ;;  %v3444_v10 = vor.u32 1.1754944e-38, %v3443_v35  ;;  %v3466_v14 = vand.u32 2147483648, %v12148_v6 }
 0x32f   :  { %v3458_v15 = vmul.f32 %v9231_v41, %v3457_v22  ;;  %vm3465_vm7 = vcmp.eq.f32.partialorder %v3464_v1, 8.507059e+37  ;;  %v15933_v1 = vand.u32 4294901760, %v12197_v33 }
 0x330   :  { %4016 = vmatpush.msrb.mxu1 %v4015_v59  ;;  %v3471_v59 = vrot.slane %v11998_v11, 2  ;;  %v3445_v21 = vsel %vm3442_vm3, %v3444_v10, %v3440_v37  ;;  %v3467_v7 = vor.u32 1.1754944e-38, %v3466_v14 }
 0x331   :  { %v3459_v47 = vadd.f32 %v9231_v41, %v3458_v15 }
 0x333   :  { %v3463_v22 = vsel %vm3462_vm6, %v9231_v41, %v3459_v47 }
 0x334   :  { %v3468_v50 = vsel %vm3465_vm7, %v3467_v7, %v3463_v22  ;;  %v3500_v7 = vld [vmem:[#allocation7 + $0x88] sm:$0xff] }
 0x335   :  { %v3475_v35 = vsub.f32 1.0, %v3468_v50  ;;  %v3477_v15 = vmul.f32 %v3468_v50, %v11441_v56 }
 0x338   :  { %v3424_v54 = vpop.f32.mrf.mxu1 }
 0x341   :  { %v3387_v38 = vpop.f32.mrf.mxu0 }
 0x342   :  { %v3388_v2 = vadd.f32 %v3387_v38, %v3319_v36 }
 0x344   :  { %v3425_v51 = vadd.f32 %v3424_v54, %v3388_v2 }
 0x346   :  { %v3470_v52 = vmul.f32 %v3445_v21, %v3425_v51  ;;  %v3506_v51 = vld [vmem:[#allocation7 + $0xb8] sm:$0xff] }
 0x348   :  { %v3473_v36 = vadd.f32 %v3471_v59, %v3470_v52  ;;  %v15932_v59 = vand.u32 4294901760, %v12184_v19  ;;  %v12382_v52 = vand.u32 4294901760, %v3506_v51 }
 0x34a   :  { %9232 = vtanh.f32 %v3473_v36 }
 0x350   :  { %v9233_v48 = vpop.eup %9232 }
 0x351   :  { %v3476_v11 = vmul.f32 %v9233_v48, %v3475_v35 }
 0x353   :  { %v12237_v38 = vadd.f32 %v3477_v15, %v3476_v11  ;;  %v3497_v15 = vld [vmem:[#allocation7 + $0x70] sm:$0xff] }
 0x355   :  { %3480 = vst [vmem:[#allocation10 + $0x2] sm:$0x1] %v12237_v38  ;;  %v12241_v2 = vand.u32 4294901760, %v12237_v38 }
 0x357   :  { %3677 = vmatmul.f32.vlgmr.msrb.gmra.mxu3 %v12241_v2  ;;  %v12246_v6 = vsub.f32 %v12237_v38, %v12241_v2 }
 0x358   :  { %4077 = vmatpush.msrb.mxu3 %v12003_v24 }
 0x359   :  { %3731 = vmatmul.f32.vlgmr.msra.gmra.mxu0 %v12246_v6  ;;  %v12251_v41 = vand.u32 4294901760, %v12246_v6 }
 0x35a   :  { %4079 = vmatpush.msrb.mxu3 %v12012_v0  ;;  %4118 = vmatpush.msra.mxu0 %v3923_v40  ;;  %v15928_v40 = vand.u32 4294901760, %v12040_v9 }
 0x35b   :  { %3770 = vmatmul.f32.vlgmr.msra.gmra.mxu1 %v12251_v41  ;;  %v3574_v56 = vsub.f32 %v12246_v6, %v12251_v41 }
 0x35c   :  { %4081 = vmatpush.msrb.mxu3 %v12019_v34  ;;  %4122 = vmatpush.msra.mxu0 %v3929_v55 }
 0x35d   :  { %4185 = vmatpush.msra.mxu1 %v12003_v24  ;;  %v12263_v37 = vand.u32 4294901760, %v3574_v56  ;;  %v3530_v24 = vld [vmem:[#allocation7 + $0x178] sm:$0xff]  ;;  %v12409_v56 = vand.u32 4294901760, %v3500_v7 }
 0x35e   :  { %4083 = vmatpush.msrb.mxu3 %v12026_v61  ;;  %4126 = vmatpush.msra.mxu0 %v3935_v63 }
 0x35f   :  { %4187 = vmatpush.msra.mxu1 %v12012_v0  ;;  %3576 = vmatmul.f32.vlgmr.msrb.gmra.mxu2 %v12263_v37  ;;  %v12289_v0 = vand.u32 4294901760, %v3530_v24 }
 0x360   :  { %3876 = vmatmul.f32.vlgmr.msra.gmra.mxu3 %v12241_v2  ;;  %4024 = vmatpush.msrb.mxu2 %v12010_v27  ;;  %v3527_v27 = vld [vmem:[#allocation7 + $0x160] sm:$0xff] }
 0x361   :  { %4085 = vmatpush.msrb.mxu3 %v12037_v20  ;;  %4130 = vmatpush.msra.mxu0 %v15928_v40  ;;  %v12304_v55 = vsub.f32 %v3530_v24, %v12289_v0 }
 0x362   :  { %4189 = vmatpush.msra.mxu1 %v12019_v34  ;;  %3917 = vmatmul.f32.vlgmr.msrb.gmra.mxu0 %v12263_v37  ;;  %v3524_v34 = vld [vmem:[#allocation7 + $0x148] sm:$0xff] }
 0x363   :  { %4027 = vmatpush.msrb.mxu2 %v12022_v18  ;;  %4087 = vmatpush.msrb.mxu3 %v12051_v31  ;;  %v12296_v18 = vand.u32 4294901760, %v3527_v27 }
 0x364   :  { %4134 = vmatpush.msra.mxu0 %v3947_v60  ;;  %4191 = vmatpush.msra.mxu1 %v12026_v61  ;;  %v3521_v61 = vld [vmem:[#allocation7 + $0x130] sm:$0xff]  ;;  %v3515_v60 = vld [vmem:[#allocation7 + $0x100] sm:$0xff] }
 0x365   :  { %4018 = vmatmul.f32.vlgmr.msrb.gmra.mxu1 %v12241_v2  ;;  %4030 = vmatpush.msrb.mxu2 %v12035_v13  ;;  %v12306_v13 = vand.u32 4294901760, %v3524_v34  ;;  %v12316_v63 = vand.u32 4294901760, %v3521_v61 }
 0x366   :  { %4089 = vmatpush.msrb.mxu3 %v12067_v29  ;;  %4138 = vmatpush.msra.mxu0 %v3953_v8 }
 0x367   :  { %4193 = vmatpush.msra.mxu1 %v12037_v20  ;;  %4033 = vmatpush.msrb.mxu2 %v12040_v9  ;;  %v3518_v20 = vld [vmem:[#allocation7 + $0x118] sm:$0xff]  ;;  %v12314_v9 = vsub.f32 %v3527_v27, %v12296_v18 }
 0x368   :  { %4091 = vmatpush.msrb.mxu3 %v12080_v30  ;;  %4142 = vmatpush.msra.mxu0 %v3959_v4  ;;  %v3509_v4 = vld [vmem:[#allocation7 + $0xd0] sm:$0xff]  ;;  %v3494_v27 = vld [vmem:[#allocation7 + $0x58] sm:$0xff] }
 0x369   :  { %4195 = vmatpush.msra.mxu1 %v12051_v31  ;;  %3839 = vmatmul.f32.vlgmr.msra.gmra.mxu2 %v12241_v2  ;;  %v4264_v31 = vand.u32 4294901760, %v12304_v55  ;;  %v4270_v8 = vand.u32 4294901760, %v12314_v9  ;;  %v12363_v10 = vand.u32 4294901760, %v3509_v4 }
 0x36a   :  { %4036 = vmatpush.msrb.mxu2 %v12054_v32  ;;  %4093 = vmatpush.msrb.mxu3 %v12092_v28  ;;  %v12325_v32 = vsub.f32 %v3524_v34, %v12306_v13 }
 0x36b   :  { %4146 = vmatpush.msra.mxu0 %v3965_v58  ;;  %4197 = vmatpush.msra.mxu1 %v12067_v29  ;;  %v3512_v29 = vld [vmem:[#allocation7 + $0xe8] sm:$0xff]  ;;  %v12391_v22 = vsub.f32 %v3509_v4, %v12363_v10 }
 0x36c   :  { %4039 = vmatpush.msrb.mxu2 %v12070_v62  ;;  %4095 = vmatpush.msrb.mxu3 %v12102_v49  ;;  %v15929_v62 = vand.u32 4294901760, %v12142_v42  ;;  %v4276_v58 = vand.u32 4294901760, %v12325_v32 }
 0x36d   :  { %4150 = vmatpush.msra.mxu0 %v3971_v17  ;;  %4199 = vmatpush.msra.mxu1 %v12080_v30  ;;  %v12327_v30 = vand.u32 4294901760, %v3518_v20  ;;  %v4306_v24 = vand.u32 4294901760, %v12391_v22 }
 0x36e   :  { %4042 = vmatpush.msrb.mxu2 %v12086_v23  ;;  %4097 = vmatpush.msrb.mxu3 %v12128_v26  ;;  %v12336_v23 = vsub.f32 %v3521_v61, %v12316_v63  ;;  %v4277_v47 = vsub.f32 %v12325_v32, %v4276_v58  ;;  %v12421_v61 = vand.u32 4294901760, %v3497_v15 }
 0x36f   :  { %4154 = vmatpush.msra.mxu0 %v3977_v12  ;;  %4201 = vmatpush.msra.mxu1 %v12092_v28  ;;  %v12340_v28 = vand.u32 4294901760, %v3515_v60  ;;  %v12350_v17 = vsub.f32 %v3518_v20, %v12327_v30  ;;  %v15931_v12 = vand.u32 4294901760, %v12162_v16  ;;  %v4307_v4 = vsub.f32 %v12391_v22, %v4306_v24 }
 0x370   :  { %4045 = vmatpush.msrb.mxu2 %v12099_v5  ;;  %4099 = vmatpush.msrb.mxu3 %v12137_v25  ;;  %v15930_v5 = vand.u32 4294901760, %v12152_v39  ;;  %v4282_v54 = vand.u32 4294901760, %v12336_v23  ;;  %v4278_v35 = vand.u32 4294901760, %v4277_v47 }
 0x371   :  { %4158 = vmatpush.msra.mxu0 %v15929_v62  ;;  %4203 = vmatpush.msra.mxu1 %v12102_v49  ;;  %v4265_v49 = vsub.f32 %v12304_v55, %v4264_v31  ;;  %v4288_v21 = vand.u32 4294901760, %v12350_v17  ;;  %v12433_v62 = vand.u32 4294901760, %v3494_v27 }
 0x372   :  { %4048 = vmatpush.msrb.mxu2 %v12105_v3  ;;  %4101 = vmatpush.msrb.mxu3 %v12144_v46  ;;  %v12352_v3 = vand.u32 4294901760, %v3512_v29  ;;  %v4283_v36 = vsub.f32 %v12336_v23, %v4282_v54 }
 0x373   :  { %4162 = vmatpush.msra.mxu0 %v15930_v5  ;;  %4205 = vmatpush.msra.mxu1 %v12128_v26  ;;  %v4271_v26 = vsub.f32 %v12314_v9, %v4270_v8  ;;  %v4289_v48 = vsub.f32 %v12350_v17, %v4288_v21  ;;  %v3488_v5 = vld [vmem:[#allocation7 + $0x28] sm:$0xff] }
 0x374   :  { %4051 = vmatpush.msrb.mxu2 %v12131_v53  ;;  %4103 = vmatpush.msrb.mxu3 %v12159_v44  ;;  %v12368_v53 = vsub.f32 %v3515_v60, %v12340_v28  ;;  %v12378_v14 = vsub.f32 %v3512_v29, %v12352_v3  ;;  %v4284_v40 = vand.u32 4294901760, %v4283_v36  ;;  %v12431_v29 = vsub.f32 %v3500_v7, %v12409_v56 }
 0x375   :  { %4166 = vmatpush.msra.mxu0 %v15931_v12  ;;  %4207 = vmatpush.msra.mxu1 %v12137_v25  ;;  %v4266_v25 = vand.u32 4294901760, %v4265_v49  ;;  %v4290_v20 = vand.u32 4294901760, %v4289_v48 }
 0x376   :  { %4054 = vmatpush.msrb.mxu2 %v12142_v42  ;;  %4105 = vmatpush.msrb.mxu3 %v12173_v43  ;;  %v3503_v42 = vld [vmem:[#allocation7 + $0xa0] sm:$0xff]  ;;  %v4300_v11 = vand.u32 4294901760, %v12378_v14  ;;  %v4324_v47 = vand.u32 4294901760, %v12431_v29 }
 0x377   :  { %4170 = vmatpush.msra.mxu0 %v15932_v59  ;;  %4209 = vmatpush.msra.mxu1 %v12144_v46  ;;  %v4272_v46 = vand.u32 4294901760, %v4271_v26  ;;  %v12396_v50 = vand.u32 4294901760, %v3503_v42  ;;  %v12443_v26 = vsub.f32 %v3497_v15, %v12421_v61  ;;  %v3485_v59 = vld [vmem:[#allocation7 + $0x10] sm:$0xff] }
 0x378   :  { %4057 = vmatpush.msrb.mxu2 %v12152_v39  ;;  %4107 = vmatpush.msrb.mxu3 %v12194_v57  ;;  %v4294_v39 = vand.u32 4294901760, %v12368_v53  ;;  %v4301_v60 = vsub.f32 %v12378_v14, %v4300_v11  ;;  %v4325_v48 = vsub.f32 %v12431_v29, %v4324_v47 }
 0x379   :  { %4174 = vmatpush.msra.mxu0 %v15933_v1  ;;  %4211 = vmatpush.msra.mxu1 %v12159_v44  ;;  %v15934_v44 = vand.u32 4294901760, %v12210_v45  ;;  %v12419_v34 = vsub.f32 %v3503_v42, %v12396_v50  ;;  %v12455_v42 = vsub.f32 %v3494_v27, %v12433_v62  ;;  %v12457_v1 = vand.u32 4294901760, %v3488_v5 }
 0x37a   :  { %4111 = vmatmul.f32.vlgmr.msrb.gmra.mxu3 %v12251_v41  ;;  %4060 = vmatpush.msrb.mxu2 %v12162_v16  ;;  %v12407_v16 = vsub.f32 %v3506_v51, %v12382_v52  ;;  %v4330_v36 = vand.u32 4294901760, %v12443_v26 }
 0x37b   :  { %4267 = vmatpush.msra.mxu3 %v4266_v25  ;;  %4178 = vmatpush.msra.mxu0 %v15934_v44  ;;  %v4318_v12 = vand.u32 4294901760, %v12419_v34  ;;  %v12469_v44 = vand.u32 4294901760, %v3485_v59  ;;  %v4336_v15 = vand.u32 4294901760, %v12455_v42 }
 0x37c   :  { %4213 = vmatpush.msra.mxu1 %v12173_v43  ;;  %4180 = vmatmul.f32.vlgmr.msra.gmra.mxu0 %v12241_v2  ;;  %v4295_v43 = vsub.f32 %v12368_v53, %v4294_v39 }
 0x37d   :  { %4273 = vmatpush.msra.mxu3 %v4272_v46  ;;  %4365 = vmatpush.msrb.mxu0 %v12304_v55  ;;  %v4319_v46 = vsub.f32 %v12419_v34, %v4318_v12  ;;  %v4657_v55 = vld [vmem:[#allocation7 + $0x138] sm:$0xff] }
 0x37e   :  { %4063 = vmatpush.msrb.mxu2 %v12184_v19  ;;  %4215 = vmatpush.msra.mxu1 %v12194_v57  ;;  %v3491_v19 = vld [vmem:[#allocation7 + $0x40] sm:$0xff]  ;;  %v4312_v57 = vand.u32 4294901760, %v12407_v16  ;;  %v4296_v49 = vand.u32 4294901760, %v4295_v43  ;;  %v4331_v43 = vsub.f32 %v12443_v26, %v4330_v36 }
 0x37f   :  { %4217 = vmatmul.f32.vlgmr.msra.gmra.mxu1 %v12241_v2  ;;  %4279 = vmatpush.msra.mxu3 %v4278_v35  ;;  %v12445_v51 = vand.u32 4294901760, %v3491_v19  ;;  %v4320_v27 = vand.u32 4294901760, %v4319_v46 }
 0x380   :  { %4368 = vmatpush.msrb.mxu0 %v12314_v9  ;;  %4418 = vmatpush.msrb.mxu1 %v12289_v0  ;;  %v4313_v25 = vsub.f32 %v12407_v16, %v4312_v57 }
 0x381   :  { %4066 = vmatpush.msrb.mxu2 %v12197_v33  ;;  %4285 = vmatpush.msra.mxu3 %v4284_v40  ;;  %v4302_v33 = vand.u32 4294901760, %v4301_v60  ;;  %v12467_v7 = vsub.f32 %v3491_v19, %v12445_v51  ;;  %v12479_v40 = vsub.f32 %v3488_v5, %v12457_v1  ;;  %v12489_v60 = vsub.f32 %v3485_v59, %v12469_v44 }
 0x382   :  { %4371 = vmatpush.msrb.mxu0 %v12325_v32  ;;  %4420 = vmatpush.msrb.mxu1 %v12296_v18  ;;  %v4314_v35 = vand.u32 4294901760, %v4313_v25  ;;  %v4326_v19 = vand.u32 4294901760, %v4325_v48  ;;  %v4654_v32 = vld [vmem:[#allocation7 + $0x120] sm:$0xff] }
 0x383   :  { %4069 = vmatpush.msrb.mxu2 %v12210_v45  ;;  %4291 = vmatpush.msra.mxu3 %v4290_v20  ;;  %v4308_v45 = vand.u32 4294901760, %v4307_v4  ;;  %v4342_v20 = vand.u32 4294901760, %v12467_v7  ;;  %v4337_v4 = vsub.f32 %v12455_v42, %v4336_v15  ;;  %v4348_v5 = vand.u32 4294901760, %v12479_v40 }
 0x384   :  { %4072 = vmatmul.f32.vlgmr.msrb.gmra.mxu2 %v12246_v6  ;;  %4374 = vmatpush.msrb.mxu0 %v12336_v23  ;;  %v4354_v59 = vand.u32 4294901760, %v12489_v60 }
 0x385   :  { %4222 = vmatpush.msra.mxu2 %v12289_v0  ;;  %4422 = vmatpush.msrb.mxu1 %v12306_v13  ;;  %v4338_v25 = vand.u32 4294901760, %v4337_v4 }
 0x386   :  { %4297 = vmatpush.msra.mxu3 %v4296_v49  ;;  %4377 = vmatpush.msrb.mxu0 %v12350_v17  ;;  %v4332_v49 = vand.u32 4294901760, %v4331_v43  ;;  %v4651_v17 = vld [vmem:[#allocation7 + $0x108] sm:$0xff] }
 0x387   :  { %4224 = vmatpush.msra.mxu2 %v12296_v18  ;;  %4424 = vmatpush.msrb.mxu1 %v12316_v63  ;;  %v4639_v43 = vld [vmem:[#allocation7 + $0xa8] sm:$0xff] }
 0x388   :  { %4303 = vmatpush.msra.mxu3 %v4302_v33  ;;  %4380 = vmatpush.msrb.mxu0 %v12368_v53  ;;  %v4343_v33 = vsub.f32 %v12467_v7, %v4342_v20 }
 0x389   :  { %4226 = vmatpush.msra.mxu2 %v12306_v13  ;;  %4426 = vmatpush.msrb.mxu1 %v12327_v30 }
 0x38a   :  { %4309 = vmatpush.msra.mxu3 %v4308_v45  ;;  %4383 = vmatpush.msrb.mxu0 %v12378_v14  ;;  %v4349_v45 = vsub.f32 %v12479_v40, %v4348_v5  ;;  %v4344_v46 = vand.u32 4294901760, %v4343_v33  ;;  %v4636_v33 = vld [vmem:[#allocation7 + $0x90] sm:$0xff] }
 0x38b   :  { %4228 = vmatpush.msra.mxu2 %v12316_v63  ;;  %4428 = vmatpush.msrb.mxu1 %v12340_v28 }
 0x38c   :  { %4315 = vmatpush.msra.mxu3 %v4314_v35  ;;  %4386 = vmatpush.msrb.mxu0 %v12391_v22  ;;  %v4355_v35 = vsub.f32 %v12489_v60, %v4354_v59  ;;  %v4350_v48 = vand.u32 4294901760, %v4349_v45  ;;  %v4648_v22 = vld [vmem:[#allocation7 + $0xf0] sm:$0xff] }
 0x38d   :  { %4230 = vmatpush.msra.mxu2 %v12327_v30  ;;  %4430 = vmatpush.msrb.mxu1 %v12352_v3 }
 0x38e   :  { %4321 = vmatpush.msra.mxu3 %v4320_v27  ;;  %4389 = vmatpush.msrb.mxu0 %v12407_v16  ;;  %v4356_v27 = vand.u32 4294901760, %v4355_v35 }
 0x38f   :  { %4232 = vmatpush.msra.mxu2 %v12340_v28  ;;  %4432 = vmatpush.msrb.mxu1 %v12363_v10 }
 0x390   :  { %4327 = vmatpush.msra.mxu3 %v4326_v19  ;;  %4392 = vmatpush.msrb.mxu0 %v12419_v34  ;;  %v4645_v34 = vld [vmem:[#allocation7 + $0xd8] sm:$0xff] }
 0x391   :  { %4234 = vmatpush.msra.mxu2 %v12352_v3  ;;  %4434 = vmatpush.msrb.mxu1 %v12382_v52 }
 0x392   :  { %4333 = vmatpush.msra.mxu3 %v4332_v49  ;;  %4395 = vmatpush.msrb.mxu0 %v12431_v29  ;;  %v12688_v49 = vand.u32 4294901760, %v4639_v43 }
 0x393   :  { %4236 = vmatpush.msra.mxu2 %v12363_v10  ;;  %4436 = vmatpush.msrb.mxu1 %v12396_v50 }
 0x394   :  { %4339 = vmatpush.msra.mxu3 %v4338_v25  ;;  %4398 = vmatpush.msrb.mxu0 %v12443_v26 }
 0x395   :  { %4238 = vmatpush.msra.mxu2 %v12382_v52  ;;  %4438 = vmatpush.msrb.mxu1 %v12409_v56 }
 0x396   :  { %4345 = vmatpush.msra.mxu3 %v4344_v46  ;;  %4401 = vmatpush.msrb.mxu0 %v12455_v42 }
 0x397   :  { %4240 = vmatpush.msra.mxu2 %v12396_v50  ;;  %4440 = vmatpush.msrb.mxu1 %v12421_v61 }
 0x398   :  { %4351 = vmatpush.msra.mxu3 %v4350_v48  ;;  %4404 = vmatpush.msrb.mxu0 %v12467_v7  ;;  %v12697_v48 = vsub.f32 %v4639_v43, %v12688_v49 }
 0x399   :  { %4242 = vmatpush.msra.mxu2 %v12409_v56  ;;  %4442 = vmatpush.msrb.mxu1 %v12433_v62 }
 0x39a   :  { %4357 = vmatpush.msra.mxu3 %v4356_v27  ;;  %4407 = vmatpush.msrb.mxu0 %v12479_v40  ;;  %v12700_v27 = vand.u32 4294901760, %v4636_v33 }
 0x39b   :  { %4244 = vmatpush.msra.mxu2 %v12421_v61  ;;  %4444 = vmatpush.msrb.mxu1 %v12445_v51 }
 0x39c   :  { %4359 = vmatmul.f32.vlgmr.msra.gmra.mxu3 %v12241_v2  ;;  %4410 = vmatpush.msrb.mxu0 %v12489_v60 }
 0x39d   :  { %4526 = vmatpush.msrb.mxu3 %v12289_v0  ;;  %4246 = vmatpush.msra.mxu2 %v12433_v62 }
 0x39e   :  { %4446 = vmatpush.msrb.mxu1 %v12457_v1  ;;  %4413 = vmatmul.f32.vlgmr.msrb.gmra.mxu0 %v12246_v6  ;;  %v4663_v6 = vld [vmem:[#allocation7 + $0x168] sm:$0xff] }
 0x39f   :  { %4528 = vmatpush.msrb.mxu3 %v12296_v18  ;;  %4248 = vmatpush.msra.mxu2 %v12445_v51 }
 0x3a0   :  { %4448 = vmatpush.msrb.mxu1 %v12469_v44 }
 0x3a1   :  { %4452 = vmatmul.f32.vlgmr.msrb.gmra.mxu1 %v12251_v41  ;;  %4530 = vmatpush.msrb.mxu3 %v12306_v13  ;;  %v12592_v41 = vand.u32 4294901760, %v4663_v6 }
 0x3a2   :  { %4250 = vmatpush.msra.mxu2 %v12457_v1 }
 0x3a3   :  { %4532 = vmatpush.msrb.mxu3 %v12316_v63  ;;  %v12595_v0 = vsub.f32 %v4663_v6, %v12592_v41  ;;  %4675 = vmatpush.msra.mxu0 %v12592_v41  ;;  %v4633_v6 = vld [vmem:[#allocation7 + $0x78] sm:$0xff] }
 0x3a4   :  { %4252 = vmatpush.msra.mxu2 %v12469_v44 }
 0x3a5   :  { %4258 = vmatmul.f32.vlgmr.msra.gmra.mxu2 %v12263_v37  ;;  %4534 = vmatpush.msrb.mxu3 %v12327_v30  ;;  %v4660_v37 = vld [vmem:[#allocation7 + $0x150] sm:$0xff]  ;;  %v4717_v13 = vand.u32 4294901760, %v12595_v0 }
 0x3a6   :  { %4459 = vmatpush.msrb.mxu2 %v4264_v31  ;;  %v12597_v18 = vand.u32 4294901760, %v4660_v37 }
 0x3a7   :  { %4536 = vmatpush.msrb.mxu3 %v12340_v28  ;;  %v4718_v30 = vsub.f32 %v12595_v0, %v4717_v13  ;;  %v12621_v28 = vld [vmem:[#allocation8] sm:$0x7] }
 0x3a8   :  { %4463 = vmatpush.msrb.mxu2 %v4270_v8  ;;  %v12603_v9 = vsub.f32 %v4660_v37, %v12597_v18  ;;  %4677 = vmatpush.msra.mxu0 %v12597_v18 }
 0x3a9   :  { %4538 = vmatpush.msrb.mxu3 %v12352_v3  ;;  %v3533_v3 = vperm.slane %v12621_v28, 0 }
 0x3aa   :  { %4467 = vmatpush.msrb.mxu2 %v4276_v58  ;;  %v4723_v8 = vand.u32 4294901760, %v12603_v9  ;;  %v12623_v58 = vand.u32 4294901760, %v4654_v32 }
 0x3ab   :  { %4540 = vmatpush.msrb.mxu3 %v12363_v10 }
 0x3ac   :  { %4471 = vmatpush.msrb.mxu2 %v4282_v54  ;;  %v4719_v54 = vand.u32 4294901760, %v4718_v30  ;;  %v4724_v10 = vsub.f32 %v12603_v9, %v4723_v8  ;;  %v12635_v14 = vsub.f32 %v4654_v32, %v12623_v58  ;;  %v12706_v32 = vand.u32 4294901760, %v4633_v6 }
 0x3ad   :  { %4542 = vmatpush.msrb.mxu3 %v12382_v52  ;;  %v12637_v52 = vand.u32 4294901760, %v4651_v17 }
 0x3ae   :  { %4475 = vmatpush.msrb.mxu2 %v4288_v21  ;;  %4720 = vmatpush.msra.mxu1 %v4719_v54  ;;  %v4627_v54 = vld [vmem:[#allocation7 + $0x48] sm:$0xff] }
 0x3af   :  { %4544 = vmatpush.msrb.mxu3 %v12396_v50 }
 0x3b0   :  { %4479 = vmatpush.msrb.mxu2 %v4294_v39  ;;  %v4725_v39 = vand.u32 4294901760, %v4724_v10  ;;  %v4624_v10 = vld [vmem:[#allocation7 + $0x30] sm:$0xff] }
 0x3b1   :  { %4546 = vmatpush.msrb.mxu3 %v12409_v56  ;;  %v4735_v56 = vand.u32 4294901760, %v12635_v14 }
 0x3b2   :  { %4483 = vmatpush.msrb.mxu2 %v4300_v11  ;;  %v12644_v11 = vand.u32 4294901760, %v4648_v22  ;;  %4726 = vmatpush.msra.mxu1 %v4725_v39 }
 0x3b3   :  { %4548 = vmatpush.msrb.mxu3 %v12421_v61 }
 0x3b4   :  { %4487 = vmatpush.msrb.mxu2 %v4306_v24  ;;  %v12648_v24 = vsub.f32 %v4651_v17, %v12637_v52  ;;  %v12653_v29 = vsub.f32 %v4648_v22, %v12644_v11  ;;  %v4765_v17 = vand.u32 4294901760, %v12697_v48 }
 0x3b5   :  { %4550 = vmatpush.msrb.mxu3 %v12433_v62  ;;  %v12655_v62 = vand.u32 4294901760, %v4645_v34 }
 0x3b6   :  { %4491 = vmatpush.msrb.mxu2 %v4312_v57  ;;  %v4741_v26 = vand.u32 4294901760, %v12648_v24  ;;  %v4747_v42 = vand.u32 4294901760, %v12653_v29 }
 0x3b7   :  { %4552 = vmatpush.msrb.mxu3 %v12445_v51  ;;  %v4642_v51 = vld [vmem:[#allocation7 + $0xc0] sm:$0xff] }
 0x3b8   :  { %4495 = vmatpush.msrb.mxu2 %v4318_v12  ;;  %v4736_v12 = vsub.f32 %v12635_v14, %v4735_v56  ;;  %v4742_v40 = vsub.f32 %v12648_v24, %v4741_v26  ;;  %v4748_v60 = vsub.f32 %v12653_v29, %v4747_v42 }
 0x3b9   :  { %4554 = vmatpush.msrb.mxu3 %v12457_v1  ;;  %v12667_v1 = vsub.f32 %v4645_v34, %v12655_v62  ;;  %v4621_v34 = vld [vmem:[#allocation7 + $0x18] sm:$0xff] }
 0x3ba   :  { %4499 = vmatpush.msrb.mxu2 %v4324_v47  ;;  %v3534_v47 = vperm.slane %v12621_v28, 1  ;;  %v4749_v25 = vand.u32 4294901760, %v4748_v60  ;;  %v12740_v43 = vand.u32 4294901760, %v4621_v34 }
 0x3bb   :  { %4556 = vmatpush.msrb.mxu3 %v12469_v44  ;;  %v4753_v19 = vand.u32 4294901760, %v12667_v1 }
 0x3bc   :  { %4503 = vmatpush.msrb.mxu2 %v4330_v36  ;;  %4558 = vmatmul.f32.vlgmr.msrb.gmra.mxu3 %v12241_v2  ;;  %v12669_v36 = vand.u32 4294901760, %v4642_v51 }
 0x3bd   :  { %4871 = vmatpush.msra.mxu3 %v12592_v41  ;;  %v4754_v45 = vsub.f32 %v12667_v1, %v4753_v19 }
 0x3be   :  { %4507 = vmatpush.msrb.mxu2 %v4336_v15  ;;  %v4737_v15 = vand.u32 4294901760, %v4736_v12  ;;  %v12684_v4 = vsub.f32 %v4642_v51, %v12669_v36  ;;  %v12729_v51 = vand.u32 4294901760, %v4627_v54 }
 0x3bf   :  { %4873 = vmatpush.msra.mxu3 %v12597_v18 }
 0x3c0   :  { %4511 = vmatpush.msrb.mxu2 %v4342_v20  ;;  %v4759_v46 = vand.u32 4294901760, %v12684_v4 }
 0x3c2   :  { %4515 = vmatpush.msrb.mxu2 %v4348_v5  ;;  %v4743_v5 = vand.u32 4294901760, %v4742_v40 }
 0x3c4   :  { %4519 = vmatpush.msrb.mxu2 %v4354_v59 }
 0x3c5   :  { %4521 = vmatmul.f32.vlgmr.msrb.gmra.mxu2 %v12241_v2  ;;  %v12606_v2 = vand.u32 4294901760, %v4657_v55 }
 0x3c6   :  { %4818 = vmatpush.msra.mxu2 %v12595_v0 }
 0x3c7   :  { %v12617_v23 = vsub.f32 %v4657_v55, %v12606_v2  ;;  %4875 = vmatpush.msra.mxu3 %v12606_v2  ;;  %4679 = vmatpush.msra.mxu0 %v12606_v2  ;;  %v4755_v55 = vand.u32 4294901760, %v4754_v45 }
 0x3c8   :  { %4821 = vmatpush.msra.mxu2 %v12603_v9 }
 0x3c9   :  { %v4729_v53 = vand.u32 4294901760, %v12617_v23  ;;  %4877 = vmatpush.msra.mxu3 %v12623_v58  ;;  %4681 = vmatpush.msra.mxu0 %v12623_v58 }
 0x3ca   :  { %4824 = vmatpush.msra.mxu2 %v12617_v23 }
 0x3cb   :  { %v4730_v50 = vsub.f32 %v12617_v23, %v4729_v53  ;;  %4879 = vmatpush.msra.mxu3 %v12637_v52  ;;  %4683 = vmatpush.msra.mxu0 %v12637_v52 }
 0x3cc   :  { %4827 = vmatpush.msra.mxu2 %v12635_v14 }
 0x3cd   :  { %v4731_v57 = vand.u32 4294901760, %v4730_v50  ;;  %4881 = vmatpush.msra.mxu3 %v12644_v11  ;;  %4685 = vmatpush.msra.mxu0 %v12644_v11  ;;  %v12718_v50 = vsub.f32 %v4633_v6, %v12706_v32 }
 0x3ce   :  { %4830 = vmatpush.msra.mxu2 %v12648_v24  ;;  %v4646_v24 = vld [vmem:[#allocation7 + $0xe0] sm:$0xff] }
 0x3cf   :  { %4732 = vmatpush.msra.mxu1 %v4731_v57  ;;  %4883 = vmatpush.msra.mxu3 %v12655_v62  ;;  %v4766_v57 = vsub.f32 %v12697_v48, %v4765_v17 }
 0x3d0   :  { %4833 = vmatpush.msra.mxu2 %v12653_v29  ;;  %4687 = vmatpush.msra.mxu0 %v12655_v62 }
 0x3d1   :  { %4738 = vmatpush.msra.mxu1 %v4737_v15  ;;  %4885 = vmatpush.msra.mxu3 %v12669_v36  ;;  %v4777_v15 = vand.u32 4294901760, %v12718_v50  ;;  %v4767_v60 = vand.u32 4294901760, %v4766_v57 }
 0x3d2   :  { %4836 = vmatpush.msra.mxu2 %v12667_v1  ;;  %4689 = vmatpush.msra.mxu0 %v12669_v36  ;;  %v4640_v1 = vld [vmem:[#allocation7 + $0xb0] sm:$0xff] }
 0x3d3   :  { %4744 = vmatpush.msra.mxu1 %v4743_v5  ;;  %4887 = vmatpush.msra.mxu3 %v12688_v49 }
 0x3d4   :  { %4839 = vmatpush.msra.mxu2 %v12684_v4  ;;  %4691 = vmatpush.msra.mxu0 %v12688_v49 }
 0x3d5   :  { %4750 = vmatpush.msra.mxu1 %v4749_v25  ;;  %4889 = vmatpush.msra.mxu3 %v12700_v27  ;;  %v4778_v25 = vsub.f32 %v12718_v50, %v4777_v15 }
 0x3d6   :  { %v12609_v63 = vpop.f32.mrf.mxu0  ;;  %4842 = vmatpush.msra.mxu2 %v12697_v48  ;;  %4693 = vmatpush.msra.mxu0 %v12700_v27 }
 0x3d7   :  { %4756 = vmatpush.msra.mxu1 %v4755_v55  ;;  %4891 = vmatpush.msra.mxu3 %v12706_v32 }
 0x3d8   :  { %v12632_v21 = vpop.f32.mrf.mxu1  ;;  %4695 = vmatpush.msra.mxu0 %v12706_v32 }
 0x3da   :  { %v3678_v16 = vpop.f32.mrf.mxu3 }
 0x3df   :  { %v3918_v7 = vpop.f32.mrf.mxu0 }
 0x3e0   :  { %v3919_v59 = vadd.f32 %v3918_v7, %v3534_v47  ;;  %v12731_v47 = vand.u32 4294901760, %v4624_v10 }
 0x3e2   :  { %v3577_v31 = vpop.f32.mrf.mxu2  ;;  %v4019_v35 = vpop.f32.mrf.mxu1 }
 0x3e3   :  { %v3578_v61 = vadd.f32 %v3577_v31, %v3533_v3  ;;  %v4760_v31 = vsub.f32 %v12684_v4, %v4759_v46  ;;  %v12710_v30 = vpop.f32.mrf.mxu3  ;;  %v12714_v3 = vsub.f32 %v4636_v33, %v12700_v27  ;;  %v4020_v22 = vadd.f32 %v4019_v35, %v3919_v59  ;;  %v4637_v4 = vld [vmem:[#allocation7 + $0x98] sm:$0xff] }
 0x3e4   :  { %v12750_v33 = vsub.f32 %v4624_v10, %v12731_v47  ;;  %v12758_v35 = vsub.f32 %v4621_v34, %v12740_v43 }
 0x3e5   :  { %v3679_v20 = vadd.f32 %v3678_v16, %v3578_v61  ;;  %v4761_v39 = vand.u32 4294901760, %v4760_v31  ;;  %v4771_v12 = vand.u32 4294901760, %v12714_v3  ;;  %4845 = vmatpush.msra.mxu2 %v12714_v3 }
 0x3e6   :  { %v15845_v55 = vand.u32 4294901760, %v12750_v33 }
 0x3e7   :  { %v3733_v37 = vadd.f32 %v12609_v63, %v3679_v20  ;;  %v4630_v63 = vld [vmem:[#allocation7 + $0x60] sm:$0xff]  ;;  %4762 = vmatpush.msra.mxu1 %v4761_v39  ;;  %v4772_v5 = vsub.f32 %v12714_v3, %v4771_v12  ;;  %4848 = vmatpush.msra.mxu2 %v12718_v50 }
 0x3e8   :  { %v12720_v16 = vand.u32 4294901760, %v4630_v63  ;;  %v4618_v20 = vld [vmem:[#allocation7] sm:$0xff] }
 0x3e9   :  { %v3772_v7 = vadd.f32 %v12632_v21, %v3733_v37  ;;  %v12747_v21 = vsub.f32 %v4627_v54, %v12729_v51  ;;  %4768 = vmatpush.msra.mxu1 %v4767_v60  ;;  %v4773_v6 = vand.u32 4294901760, %v4772_v5  ;;  %v12764_v31 = vand.u32 4294901760, %v4618_v20 }
 0x3ea   :  { %v12736_v40 = vsub.f32 %v4630_v63, %v12720_v16  ;;  %4893 = vmatpush.msra.mxu3 %v12720_v16  ;;  %4697 = vmatpush.msra.mxu0 %v12720_v16  ;;  %v4779_v54 = vand.u32 4294901760, %v4778_v25 }
 0x3eb   :  { %v4789_v37 = vand.u32 4294901760, %v12747_v21  ;;  %4774 = vmatpush.msra.mxu1 %v4773_v6 }
 0x3ec   :  { %v12672_v44 = vpop.f32.mrf.mxu2  ;;  %v4783_v45 = vand.u32 4294901760, %v12736_v40  ;;  %4851 = vmatpush.msra.mxu2 %v12736_v40  ;;  %4895 = vmatpush.msra.mxu3 %v12729_v51 }
 0x3ed   :  { %v3841_v63 = vadd.f32 %v12672_v44, %v3772_v7  ;;  %4699 = vmatpush.msra.mxu0 %v12729_v51  ;;  %v4790_v34 = vsub.f32 %v12747_v21, %v4789_v37  ;;  %v4796_v44 = vsub.f32 %v12750_v33, %v15845_v55  ;;  %4780 = vmatpush.msra.mxu1 %v4779_v54  ;;  %v4658_v55 = vld [vmem:[#allocation7 + $0x140] sm:$0xff] }
 0x3ee   :  { %v4784_v10 = vsub.f32 %v12736_v40, %v4783_v45  ;;  %4854 = vmatpush.msra.mxu2 %v12747_v21  ;;  %4897 = vmatpush.msra.mxu3 %v12731_v47  ;;  %v4622_v40 = vld [vmem:[#allocation7 + $0x20] sm:$0xff] }
 0x3ef   :  { %4701 = vmatpush.msra.mxu0 %v12731_v47  ;;  %v4791_v60 = vand.u32 4294901760, %v4790_v34  ;;  %v3878_v6 = vadd.f32 %v12710_v30, %v3841_v63  ;;  %v4797_v54 = vand.u32 4294901760, %v4796_v44  ;;  %v4664_v34 = vld [vmem:[#allocation7 + $0x170] sm:$0xff]  ;;  %v12974_v21 = vand.u32 4294901760, %v4622_v40 }
 0x3f0   :  { %v4785_v7 = vand.u32 4294901760, %v4784_v10  ;;  %4857 = vmatpush.msra.mxu2 %v12750_v33  ;;  %4899 = vmatpush.msra.mxu3 %v12740_v43  ;;  %v12802_v63 = vand.u32 4294901760, %v4664_v34 }
 0x3f1   :  { %4703 = vmatpush.msra.mxu0 %v12740_v43 }
 0x3f2   :  { %4786 = vmatpush.msra.mxu1 %v4785_v7  ;;  %4860 = vmatpush.msra.mxu2 %v12758_v35  ;;  %v4661_v7 = vld [vmem:[#allocation7 + $0x158] sm:$0xff] }
 0x3f3   :  { %4901 = vmatpush.msra.mxu3 %v12764_v31  ;;  %4705 = vmatpush.msra.mxu0 %v12764_v31 }
 0x3f4   :  { %4792 = vmatpush.msra.mxu1 %v4791_v60  ;;  %v12811_v60 = vand.u32 4294901760, %v4661_v7 }
 0x3f5   :  { %4912 = vmatpush.msrb.mxu0 %v4717_v13  ;;  %v12818_v13 = vand.u32 4294901760, %v4658_v55 }
 0x3f6   :  { %4798 = vmatpush.msra.mxu1 %v4797_v54 }
 0x3f7   :  { %4916 = vmatpush.msrb.mxu0 %v4723_v8 }
 0x3f9   :  { %4920 = vmatpush.msrb.mxu0 %v4729_v53 }
 0x3fb   :  { %4924 = vmatpush.msrb.mxu0 %v4735_v56 }
 0x3fd   :  { %v4112_v39 = vpop.f32.mrf.mxu3  ;;  %4928 = vmatpush.msrb.mxu0 %v4741_v26 }
 0x3ff   :  { %4932 = vmatpush.msrb.mxu0 %v4747_v42 }
 0x401   :  { %4936 = vmatpush.msrb.mxu0 %v4753_v19 }
 0x403   :  { %4940 = vmatpush.msrb.mxu0 %v4759_v46 }
 0x405   :  { %4944 = vmatpush.msrb.mxu0 %v4765_v17  ;;  %v4631_v17 = vld [vmem:[#allocation7 + $0x68] sm:$0xff] }
 0x406   :  { %v12929_v3 = vand.u32 4294901760, %v4631_v17 }
 0x407   :  { %v4073_v61 = vpop.f32.mrf.mxu2  ;;  %4948 = vmatpush.msrb.mxu0 %v4771_v12 }
 0x408   :  { %v4074_v59 = vadd.f32 %v4073_v61, %v4020_v22  ;;  %v15844_v22 = vand.u32 4294901760, %v12758_v35  ;;  %v12781_v61 = vsub.f32 %v4618_v20, %v12764_v31  ;;  %v12793_v20 = vld [vmem:[#allocation2 + $0x9] sm:$0x7] }
 0x409   :  { %v4562_v44 = vadd.f32 %v3878_v6, %v12793_v20  ;;  %v12821_v6 = vsub.f32 %v4661_v7, %v12811_v60  ;;  %4952 = vmatpush.msrb.mxu0 %v4777_v15  ;;  %v12946_v15 = vsub.f32 %v4631_v17, %v12929_v3 }
 0x40a   :  { %v4113_v57 = vadd.f32 %v4112_v39, %v4074_v59  ;;  %v4802_v5 = vsub.f32 %v12758_v35, %v15844_v22  ;;  %v15843_v25 = vand.u32 4294901760, %v12781_v61  ;;  %v4181_v59 = vpop.f32.mrf.mxu0  ;;  %4863 = vmatpush.msra.mxu2 %v12781_v61 }
 0x40b   :  { %v9183_v54 = vmul.f32 -1.442695, %v4562_v44  ;;  %v5064_v8 = vand.u32 4294901760, %v12821_v6  ;;  %4956 = vmatpush.msrb.mxu0 %v4783_v45 }
 0x40c   :  { %v4808_v10 = vsub.f32 %v12781_v61, %v15843_v25  ;;  %v4182_v39 = vadd.f32 %v4181_v59, %v4113_v57  ;;  %v4803_v30 = vand.u32 4294901760, %v4802_v5  ;;  %v4218_v25 = vpop.f32.mrf.mxu1  ;;  %5016 = vmatpush.msrb.mxu2 %v12802_v63  ;;  %v12809_v59 = vsub.f32 %v4664_v34, %v12802_v63 }
 0x40d   :  { %v4583_v5 = vrot.slane %v12793_v20, 1  ;;  %v5065_v53 = vsub.f32 %v12821_v6, %v5064_v8  ;;  %9234 = vpow2.f32 %v9183_v54  ;;  %4960 = vmatpush.msrb.mxu0 %v4789_v37 }
 0x40e   :  { %v4809_v57 = vand.u32 4294901760, %v4808_v10  ;;  %v4219_v22 = vadd.f32 %v4218_v25, %v4182_v39  ;;  %4804 = vmatpush.msra.mxu1 %v4803_v30  ;;  %5018 = vmatpush.msrb.mxu2 %v12811_v60  ;;  %v5058_v0 = vand.u32 4294901760, %v12809_v59  ;;  %v4655_v10 = vld [vmem:[#allocation7 + $0x128] sm:$0xff]  ;;  %v12833_v39 = vsub.f32 %v4658_v55, %v12818_v13  ;;  %v4652_v30 = vld [vmem:[#allocation7 + $0x110] sm:$0xff]  ;;  %v4649_v55 = vld [vmem:[#allocation7 + $0xf8] sm:$0xff] }
 0x40f   :  { %v12830_v25 = vand.u32 4294901760, %v4655_v10  ;;  %v12843_v7 = vand.u32 4294901760, %v4652_v30  ;;  %v5066_v14 = vand.u32 4294901760, %v5065_v53 }
 0x410   :  { %4810 = vmatpush.msra.mxu1 %v4809_v57  ;;  %v5059_v9 = vsub.f32 %v12809_v59, %v5058_v0  ;;  %5020 = vmatpush.msrb.mxu2 %v12818_v13  ;;  %v4585_v34 = vadd.f32 %v4583_v5, %v4219_v22  ;;  %v5070_v44 = vand.u32 4294901760, %v12833_v39  ;;  %v12855_v22 = vand.u32 4294901760, %v4649_v55 }
 0x411   :  { %v12858_v57 = vsub.f32 %v4652_v30, %v12843_v7 }
 0x412   :  { %4979 = vmatpush.msrb.mxu1 %v12592_v41  ;;  %v5060_v23 = vand.u32 4294901760, %v5059_v9  ;;  %5022 = vmatpush.msrb.mxu2 %v12830_v25  ;;  %v12847_v41 = vsub.f32 %v4655_v10, %v12830_v25  ;;  %v5071_v56 = vsub.f32 %v12833_v39, %v5070_v44  ;;  %v12866_v10 = vand.u32 4294901760, %v4646_v24 }
 0x413   :  { %v5082_v54 = vand.u32 4294901760, %v12858_v57  ;;  %v12869_v9 = vsub.f32 %v4649_v55, %v12855_v22 }
 0x414   :  { %4981 = vmatpush.msrb.mxu1 %v12597_v18  ;;  %5061 = vmatpush.msrb.mxu3 %v5060_v23  ;;  %v9184_v18 = vmul.f32 -1.442695, %v4585_v34  ;;  %v5076_v5 = vand.u32 4294901760, %v12847_v41  ;;  %v5072_v26 = vand.u32 4294901760, %v5071_v56  ;;  %v4643_v34 = vld [vmem:[#allocation7 + $0xc8] sm:$0xff]  ;;  %v9235_v23 = vpop.eup %9234  ;;  %v12896_v56 = vand.u32 4294901760, %v4640_v1 }
 0x415   :  { %5024 = vmatpush.msrb.mxu2 %v12843_v7  ;;  %v5083_v29 = vsub.f32 %v12858_v57, %v5082_v54  ;;  %v5088_v42 = vand.u32 4294901760, %v12869_v9  ;;  %v12882_v30 = vand.u32 4294901760, %v4643_v34 }
 0x416   :  { %4983 = vmatpush.msrb.mxu1 %v12606_v2  ;;  %5067 = vmatpush.msrb.mxu3 %v5066_v14  ;;  %v5077_v2 = vsub.f32 %v12847_v41, %v5076_v5  ;;  %9236 = vpow2.f32 %v9184_v18 }
 0x417   :  { %5026 = vmatpush.msrb.mxu2 %v12855_v22  ;;  %v5084_v19 = vand.u32 4294901760, %v5083_v29  ;;  %v5089_v55 = vsub.f32 %v12869_v9, %v5088_v42 }
 0x418   :  { %4985 = vmatpush.msrb.mxu1 %v12623_v58  ;;  %5073 = vmatpush.msrb.mxu3 %v5072_v26  ;;  %v12885_v58 = vsub.f32 %v4646_v24, %v12866_v10  ;;  %v5078_v53 = vand.u32 4294901760, %v5077_v2  ;;  %v12904_v24 = vand.u32 4294901760, %v4637_v4  ;;  %v12908_v26 = vadd.f32 1.0, %v9235_v23 }
 0x419   :  { %5028 = vmatpush.msrb.mxu2 %v12866_v10  ;;  %v5090_v46 = vand.u32 4294901760, %v5089_v55  ;;  %v12913_v2 = vsub.f32 %v4640_v1, %v12896_v56 }
 0x41a   :  { %4987 = vmatpush.msrb.mxu1 %v12637_v52  ;;  %v5094_v14 = vand.u32 4294901760, %v12885_v58  ;;  %5079 = vmatpush.msrb.mxu3 %v5078_v53  ;;  %v12899_v52 = vsub.f32 %v4643_v34, %v12882_v30  ;;  %v4634_v34 = vld [vmem:[#allocation7 + $0x80] sm:$0xff]  ;;  %v12927_v1 = vsub.f32 %v4637_v4, %v12904_v24  ;;  %9238 = vrcp.f32 %v12908_v26 }
 0x41b   :  { %5030 = vmatpush.msrb.mxu2 %v12882_v30  ;;  %v5106_v48 = vand.u32 4294901760, %v12913_v2  ;;  %v12924_v53 = vand.u32 4294901760, %v4634_v34  ;;  %vm4572_vm9 = vweird.f32 %v12908_v26 }
 0x41c   :  { %4989 = vmatpush.msrb.mxu1 %v12644_v11  ;;  %v5095_v18 = vsub.f32 %v12885_v58, %v5094_v14  ;;  %5085 = vmatpush.msrb.mxu3 %v5084_v19  ;;  %v5100_v11 = vand.u32 4294901760, %v12899_v52  ;;  %v9237_v23 = vpop.eup %9236  ;;  %v4628_v19 = vld [vmem:[#allocation7 + $0x50] sm:$0xff]  ;;  %v15848_v55 = vand.u32 4294901760, %v12927_v1 }
 0x41d   :  { %5032 = vmatpush.msrb.mxu2 %v12896_v56  ;;  %v5107_v12 = vsub.f32 %v12913_v2, %v5106_v48  ;;  %v12941_v4 = vsub.f32 %v4634_v34, %v12924_v53  ;;  %v12943_v50 = vand.u32 4294901760, %v4628_v19 }
 0x41e   :  { %4991 = vmatpush.msrb.mxu1 %v12655_v62  ;;  %v5096_v29 = vand.u32 4294901760, %v5095_v18  ;;  %5091 = vmatpush.msrb.mxu3 %v5090_v46  ;;  %v5101_v62 = vsub.f32 %v12899_v52, %v5100_v11  ;;  %v4625_v18 = vld [vmem:[#allocation7 + $0x38] sm:$0xff]  ;;  %v5113_v34 = vsub.f32 %v12927_v1, %v15848_v55  ;;  %v12996_v55 = vsub.f32 %v4622_v40, %v12974_v21 }
 0x41f   :  { %5034 = vmatpush.msrb.mxu2 %v12904_v24  ;;  %v5108_v46 = vand.u32 4294901760, %v5107_v12  ;;  %v12959_v17 = vand.u32 4294901760, %v4625_v18 }
 0x420   :  { %4993 = vmatpush.msrb.mxu1 %v12669_v36  ;;  %5097 = vmatpush.msrb.mxu3 %v5096_v29  ;;  %v5102_v36 = vand.u32 4294901760, %v5101_v62  ;;  %v15847_v29 = vand.u32 4294901760, %v12941_v4  ;;  %v15846_v62 = vand.u32 4294901760, %v12946_v15  ;;  %v5114_v45 = vand.u32 4294901760, %v5113_v34  ;;  %v12978_v37 = vpop.eup %9238 }
 0x421   :  { %5036 = vmatpush.msrb.mxu2 %v12924_v53  ;;  %vm4573_vm8 = vweird.f32 %v12978_v37 }
 0x422   :  { %4995 = vmatpush.msrb.mxu1 %v12688_v49  ;;  %v12950_v49 = vadd.f32 1.0, %v9237_v23  ;;  %5103 = vmatpush.msrb.mxu3 %v5102_v36  ;;  %v5119_v23 = vsub.f32 %v12941_v4, %v15847_v29  ;;  %v5125_v36 = vsub.f32 %v12946_v15, %v15846_v62  ;;  %vm4574_vm10 = vmor %vm4572_vm9, %vm4573_vm8 }
 0x423   :  { %5038 = vmatpush.msrb.mxu2 %v12929_v3 }
 0x424   :  { %4997 = vmatpush.msrb.mxu1 %v12700_v27  ;;  %5109 = vmatpush.msrb.mxu3 %v5108_v46  ;;  %v12965_v27 = vsub.f32 %v4628_v19, %v12943_v50  ;;  %v12983_v19 = vsub.f32 %v4625_v18, %v12959_v17  ;;  %9240 = vrcp.f32 %v12950_v49  ;;  %v3535_v46 = vperm.slane %v12621_v28, 2 }
 0x425   :  { %5040 = vmatpush.msrb.mxu2 %v12943_v50  ;;  %v5120_v34 = vand.u32 4294901760, %v5119_v23  ;;  %v5126_v62 = vand.u32 4294901760, %v5125_v36  ;;  %v15936_v28 = vand.u32 4294901760, %v12758_v35  ;;  %v15851_v36 = vand.u32 4294901760, %v12996_v55 }
 0x426   :  { %4999 = vmatpush.msrb.mxu1 %v12706_v32  ;;  %v15935_v32 = vand.u32 4294901760, %v12750_v33  ;;  %v15850_v12 = vand.u32 4294901760, %v12965_v27  ;;  %5115 = vmatpush.msrb.mxu3 %v5114_v45  ;;  %v4619_v33 = vld [vmem:[#allocation7 + $0x8] sm:$0xff]  ;;  %v15849_v18 = vand.u32 4294901760, %v12983_v19  ;;  %v4568_v45 = vmul.f32 %v12978_v37, %v12908_v26 }
 0x427   :  { %5042 = vmatpush.msrb.mxu2 %v12959_v17  ;;  %v12993_v29 = vand.u32 4294901760, %v4619_v33  ;;  %v15937_v35 = vand.u32 4294901760, %v12781_v61  ;;  %vm4595_vm13 = vweird.f32 %v12950_v49 }
 0x428   :  { %4964 = vmatpush.msrb.mxu0 %v15935_v32  ;;  %5001 = vmatpush.msrb.mxu1 %v12720_v16  ;;  %v4259_v32 = vpop.f32.mrf.mxu2  ;;  %v5131_v16 = vsub.f32 %v12965_v27, %v15850_v12  ;;  %v5137_v23 = vsub.f32 %v12983_v19, %v15849_v18  ;;  %v4569_v12 = vsub.f32 1.0, %v4568_v45 }
 0x429   :  { %5121 = vmatpush.msrb.mxu3 %v5120_v34  ;;  %5044 = vmatpush.msrb.mxu2 %v12974_v21  ;;  %v13009_v40 = vsub.f32 %v4619_v33, %v12993_v29  ;;  %v5143_v34 = vsub.f32 %v12996_v55, %v15851_v36  ;;  %v4360_v33 = vpop.f32.mrf.mxu3 }
 0x42a   :  { %5003 = vmatpush.msrb.mxu1 %v12729_v51  ;;  %4968 = vmatpush.msrb.mxu0 %v15936_v28  ;;  %v5132_v51 = vand.u32 4294901760, %v5131_v16  ;;  %v4260_v28 = vadd.f32 %v4259_v32, %v3535_v46  ;;  %v9241_v18 = vpop.eup %9240 }
 0x42b   :  { %5127 = vmatpush.msrb.mxu3 %v5126_v62  ;;  %5046 = vmatpush.msrb.mxu2 %v12993_v29  ;;  %v15852_v16 = vand.u32 4294901760, %v13009_v40  ;;  %v5144_v61 = vand.u32 4294901760, %v5143_v34  ;;  %v4578_v34 = vand.u32 2147483648, %v12908_v26  ;;  %vm4596_vm12 = vweird.f32 %v9241_v18 }
 0x42c   :  { %5005 = vmatpush.msrb.mxu1 %v12731_v47  ;;  %4972 = vmatpush.msrb.mxu0 %v15937_v35  ;;  %v5138_v47 = vand.u32 4294901760, %v5137_v23  ;;  %v4361_v46 = vadd.f32 %v4360_v33, %v4260_v28  ;;  %v4570_v23 = vmul.f32 %v12978_v37, %v4569_v12  ;;  %v4414_v35 = vpop.f32.mrf.mxu0  ;;  %v4576_v28 = vand.u32 2147483647, %v12908_v26  ;;  %vm4597_vm14 = vmor %vm4595_vm13, %vm4596_vm12 }
 0x42d   :  { %5133 = vmatpush.msrb.mxu3 %v5132_v51  ;;  %v5149_v62 = vsub.f32 %v13009_v40, %v15852_v16  ;;  %v4599_v26 = vand.u32 2147483647, %v12950_v49 }
 0x42e   :  { %5007 = vmatpush.msrb.mxu1 %v12740_v43  ;;  %v4591_v43 = vmul.f32 %v9241_v18, %v12950_v49  ;;  %v4415_v36 = vadd.f32 %v4414_v35, %v4361_v46  ;;  %v4571_v51 = vadd.f32 %v12978_v37, %v4570_v23  ;;  %v4579_v46 = vor.u32 1.1754944e-38, %v4578_v34 }
 0x42f   :  { %5139 = vmatpush.msrb.mxu3 %v5138_v47  ;;  %v5150_v32 = vand.u32 4294901760, %v5149_v62  ;;  %vm4577_vm11 = vcmp.eq.f32.partialorder %v4576_v28, 8.507059e+37  ;;  %vm4600_vm15 = vcmp.eq.f32.partialorder %v4599_v26, 8.507059e+37  ;;  %v15943_v26 = vand.u32 4294901760, %v12996_v55 }
 0x430   :  { %5009 = vmatpush.msrb.mxu1 %v12764_v31  ;;  %v4592_v45 = vsub.f32 1.0, %v4591_v43  ;;  %v4453_v31 = vpop.f32.mrf.mxu1 }
 0x431   :  { %5145 = vmatpush.msrb.mxu3 %v5144_v61  ;;  %v4454_v16 = vadd.f32 %v4453_v31, %v4415_v36  ;;  %v4575_v61 = vsel %vm4574_vm10, %v12978_v37, %v4571_v51  ;;  %v4601_v36 = vand.u32 2147483648, %v12950_v49 }
 0x432   :  { %v4593_v12 = vmul.f32 %v9241_v18, %v4592_v45  ;;  %v4580_v23 = vsel %vm4577_vm11, %v4579_v46, %v4575_v61 }
 0x433   :  { %5151 = vmatpush.msrb.mxu3 %v5150_v32  ;;  %v4606_v32 = vrot.slane %v12793_v20, 2  ;;  %v4602_v37 = vor.u32 1.1754944e-38, %v4601_v36 }
 0x434   :  { %v4594_v35 = vadd.f32 %v9241_v18, %v4593_v12 }
 0x436   :  { %v4598_v45 = vsel %vm4597_vm14, %v9241_v18, %v4594_v35 }
 0x437   :  { %v4603_v51 = vsel %vm4600_vm15, %v4602_v37, %v4598_v45  ;;  %v4635_v37 = vld [vmem:[#allocation7 + $0x88] sm:$0xff] }
 0x438   :  { %v4610_v34 = vsub.f32 1.0, %v4603_v51 }
 0x43f   :  { %v4559_v62 = vpop.f32.mrf.mxu3 }
 0x448   :  { %v4522_v47 = vpop.f32.mrf.mxu2 }
 0x449   :  { %v4523_v33 = vadd.f32 %v4522_v47, %v4454_v16  ;;  %v4612_v47 = vmul.f32 %v4603_v51, %v12237_v38 }
 0x44b   :  { %v4560_v43 = vadd.f32 %v4559_v62, %v4523_v33 }
 0x44d   :  { %v4605_v31 = vmul.f32 %v4580_v23, %v4560_v43  ;;  %v4641_v43 = vld [vmem:[#allocation7 + $0xb8] sm:$0xff] }
 0x44f   :  { %v4608_v16 = vadd.f32 %v4606_v32, %v4605_v31  ;;  %v15942_v32 = vand.u32 4294901760, %v12983_v19  ;;  %v13181_v31 = vand.u32 4294901760, %v4641_v43 }
 0x451   :  { %9242 = vtanh.f32 %v4608_v16 }
 0x457   :  { %v9243_v28 = vpop.eup %9242 }
 0x458   :  { %v4611_v20 = vmul.f32 %v9243_v28, %v4610_v34 }
 0x45a   :  { %v13036_v12 = vadd.f32 %v4612_v47, %v4611_v20  ;;  %v4632_v47 = vld [vmem:[#allocation7 + $0x70] sm:$0xff] }
 0x45c   :  { %4615 = vst [vmem:[#allocation10 + $0x3] sm:$0x1] %v13036_v12  ;;  %v13040_v33 = vand.u32 4294901760, %v13036_v12 }
 0x45e   :  { %4812 = vmatmul.f32.vlgmr.msra.gmra.mxu1 %v13040_v33  ;;  %v13045_v49 = vsub.f32 %v13036_v12, %v13040_v33 }
 0x45f   :  { %5212 = vmatpush.msra.mxu1 %v12802_v63 }
 0x460   :  { %4866 = vmatmul.f32.vlgmr.msra.gmra.mxu2 %v13045_v49  ;;  %v13050_v18 = vand.u32 4294901760, %v13045_v49 }
 0x461   :  { %5214 = vmatpush.msra.mxu1 %v12811_v60  ;;  %5253 = vmatpush.msra.mxu2 %v5058_v0  ;;  %v4659_v0 = vld [vmem:[#allocation7 + $0x148] sm:$0xff] }
 0x462   :  { %4905 = vmatmul.f32.vlgmr.msra.gmra.mxu3 %v13050_v18  ;;  %v4709_v38 = vsub.f32 %v13045_v49, %v13050_v18 }
 0x463   :  { %5216 = vmatpush.msra.mxu1 %v12818_v13  ;;  %5257 = vmatpush.msra.mxu2 %v5064_v8 }
 0x464   :  { %5320 = vmatpush.msra.mxu3 %v12802_v63  ;;  %v13062_v61 = vand.u32 4294901760, %v4709_v38  ;;  %v4665_v63 = vld [vmem:[#allocation7 + $0x178] sm:$0xff]  ;;  %v13208_v38 = vand.u32 4294901760, %v4635_v37 }
 0x465   :  { %5218 = vmatpush.msra.mxu1 %v12830_v25  ;;  %5261 = vmatpush.msra.mxu2 %v5070_v44 }
 0x466   :  { %5322 = vmatpush.msra.mxu3 %v12811_v60  ;;  %4711 = vmatmul.f32.vlgmr.msra.gmra.mxu0 %v13062_v61  ;;  %v13088_v60 = vand.u32 4294901760, %v4665_v63 }
 0x467   :  { %5011 = vmatmul.f32.vlgmr.msrb.gmra.mxu1 %v13040_v33  ;;  %5159 = vmatpush.msra.mxu0 %v12809_v59  ;;  %v4662_v59 = vld [vmem:[#allocation7 + $0x160] sm:$0xff] }
 0x468   :  { %5220 = vmatpush.msra.mxu1 %v12843_v7  ;;  %5265 = vmatpush.msra.mxu2 %v5076_v5  ;;  %v13103_v8 = vsub.f32 %v4665_v63, %v13088_v60 }
 0x469   :  { %5324 = vmatpush.msra.mxu3 %v12818_v13  ;;  %5052 = vmatmul.f32.vlgmr.msrb.gmra.mxu2 %v13062_v61  ;;  %v13095_v13 = vand.u32 4294901760, %v4662_v59 }
 0x46a   :  { %5162 = vmatpush.msra.mxu0 %v12821_v6  ;;  %5222 = vmatpush.msra.mxu1 %v12855_v22  ;;  %v4656_v6 = vld [vmem:[#allocation7 + $0x130] sm:$0xff] }
 0x46b   :  { %5269 = vmatpush.msra.mxu2 %v5082_v54  ;;  %5326 = vmatpush.msra.mxu3 %v12830_v25  ;;  %v13105_v25 = vand.u32 4294901760, %v4659_v0  ;;  %v13113_v44 = vsub.f32 %v4662_v59, %v13095_v13  ;;  %v4650_v54 = vld [vmem:[#allocation7 + $0x100] sm:$0xff] }
 0x46c   :  { %5153 = vmatmul.f32.vlgmr.msrb.gmra.mxu3 %v13040_v33  ;;  %5165 = vmatpush.msra.mxu0 %v12833_v39  ;;  %v4653_v39 = vld [vmem:[#allocation7 + $0x118] sm:$0xff] }
 0x46d   :  { %5224 = vmatpush.msra.mxu1 %v12866_v10  ;;  %5273 = vmatpush.msra.mxu2 %v5088_v42  ;;  %v13126_v5 = vand.u32 4294901760, %v4653_v39  ;;  %v5405_v42 = vand.u32 4294901760, %v13113_v44 }
 0x46e   :  { %5328 = vmatpush.msra.mxu3 %v12843_v7  ;;  %5168 = vmatpush.msra.mxu0 %v12847_v41  ;;  %v13115_v7 = vand.u32 4294901760, %v4656_v6  ;;  %v15938_v41 = vand.u32 4294901760, %v12927_v1 }
 0x46f   :  { %5226 = vmatpush.msra.mxu1 %v12882_v30  ;;  %5277 = vmatpush.msra.mxu2 %v5094_v14  ;;  %v4644_v14 = vld [vmem:[#allocation7 + $0xd0] sm:$0xff] }
 0x470   :  { %5330 = vmatpush.msra.mxu3 %v12855_v22  ;;  %4974 = vmatmul.f32.vlgmr.msrb.gmra.mxu0 %v13040_v33  ;;  %v5399_v22 = vand.u32 4294901760, %v13103_v8  ;;  %v13162_v46 = vand.u32 4294901760, %v4644_v14 }
 0x471   :  { %5171 = vmatpush.msra.mxu0 %v12858_v57  ;;  %5228 = vmatpush.msra.mxu1 %v12896_v56  ;;  %v13124_v57 = vsub.f32 %v4659_v0, %v13105_v25  ;;  %v4629_v0 = vld [vmem:[#allocation7 + $0x58] sm:$0xff] }
 0x472   :  { %5281 = vmatpush.msra.mxu2 %v5100_v11  ;;  %5332 = vmatpush.msra.mxu3 %v12866_v10  ;;  %v4647_v10 = vld [vmem:[#allocation7 + $0xe8] sm:$0xff]  ;;  %v13149_v11 = vsub.f32 %v4653_v39, %v13126_v5  ;;  %v13190_v45 = vsub.f32 %v4644_v14, %v13162_v46  ;;  %v13220_v39 = vand.u32 4294901760, %v4632_v47 }
 0x473   :  { %5174 = vmatpush.msra.mxu0 %v12869_v9  ;;  %5230 = vmatpush.msra.mxu1 %v12904_v24  ;;  %v15939_v9 = vand.u32 4294901760, %v12941_v4 }
 0x474   :  { %5285 = vmatpush.msra.mxu2 %v5106_v48  ;;  %5334 = vmatpush.msra.mxu3 %v12882_v30  ;;  %v13135_v30 = vsub.f32 %v4656_v6, %v13115_v7  ;;  %v15941_v48 = vand.u32 4294901760, %v12965_v27  ;;  %v5423_v35 = vand.u32 4294901760, %v13149_v11  ;;  %v5441_v59 = vand.u32 4294901760, %v13190_v45 }
 0x475   :  { %5177 = vmatpush.msra.mxu0 %v12885_v58  ;;  %5232 = vmatpush.msra.mxu1 %v12924_v53  ;;  %v13139_v58 = vand.u32 4294901760, %v4650_v54 }
 0x476   :  { %5289 = vmatpush.msra.mxu2 %v15938_v41  ;;  %5336 = vmatpush.msra.mxu3 %v12896_v56  ;;  %v15940_v56 = vand.u32 4294901760, %v12946_v15  ;;  %v5417_v62 = vand.u32 4294901760, %v13135_v30  ;;  %v5424_v28 = vsub.f32 %v13149_v11, %v5423_v35  ;;  %v5442_v14 = vsub.f32 %v13190_v45, %v5441_v59 }
 0x477   :  { %5180 = vmatpush.msra.mxu0 %v12899_v52  ;;  %5234 = vmatpush.msra.mxu1 %v12929_v3  ;;  %v5400_v52 = vsub.f32 %v13103_v8, %v5399_v22 }
 0x478   :  { %5293 = vmatpush.msra.mxu2 %v15939_v9  ;;  %5338 = vmatpush.msra.mxu3 %v12904_v24  ;;  %v5411_v24 = vand.u32 4294901760, %v13124_v57  ;;  %v5418_v16 = vsub.f32 %v13135_v30, %v5417_v62  ;;  %v5425_v41 = vand.u32 4294901760, %v5424_v28  ;;  %v13232_v9 = vand.u32 4294901760, %v4629_v0 }
 0x479   :  { %5183 = vmatpush.msra.mxu0 %v12913_v2  ;;  %5236 = vmatpush.msra.mxu1 %v12943_v50  ;;  %v13151_v2 = vand.u32 4294901760, %v4647_v10 }
 0x47a   :  { %5297 = vmatpush.msra.mxu2 %v15940_v56  ;;  %5340 = vmatpush.msra.mxu3 %v12924_v53  ;;  %v5406_v53 = vsub.f32 %v13113_v44, %v5405_v42  ;;  %v5412_v23 = vsub.f32 %v13124_v57, %v5411_v24  ;;  %v5419_v63 = vand.u32 4294901760, %v5418_v16  ;;  %v4623_v56 = vld [vmem:[#allocation7 + $0x28] sm:$0xff] }
 0x47b   :  { %5186 = vmatpush.msra.mxu0 %v12927_v1  ;;  %5238 = vmatpush.msra.mxu1 %v12959_v17  ;;  %v13167_v1 = vsub.f32 %v4650_v54, %v13139_v58  ;;  %v13177_v36 = vsub.f32 %v4647_v10, %v13151_v2  ;;  %v13230_v10 = vsub.f32 %v4635_v37, %v13208_v38 }
 0x47c   :  { %5301 = vmatpush.msra.mxu2 %v15941_v48  ;;  %5342 = vmatpush.msra.mxu3 %v12929_v3  ;;  %v5401_v3 = vand.u32 4294901760, %v5400_v52  ;;  %v5413_v34 = vand.u32 4294901760, %v5412_v23 }
 0x47d   :  { %5189 = vmatpush.msra.mxu0 %v12941_v4  ;;  %5240 = vmatpush.msra.mxu1 %v12974_v21  ;;  %v4638_v4 = vld [vmem:[#allocation7 + $0xa0] sm:$0xff]  ;;  %v5435_v20 = vand.u32 4294901760, %v13177_v36  ;;  %v5459_v23 = vand.u32 4294901760, %v13230_v10 }
 0x47e   :  { %5305 = vmatpush.msra.mxu2 %v15942_v32  ;;  %5344 = vmatpush.msra.mxu3 %v12943_v50  ;;  %v5407_v50 = vand.u32 4294901760, %v5406_v53  ;;  %v13195_v51 = vand.u32 4294901760, %v4638_v4  ;;  %v13242_v53 = vsub.f32 %v4632_v47, %v13220_v39  ;;  %v4620_v32 = vld [vmem:[#allocation7 + $0x10] sm:$0xff] }
 0x47f   :  { %5192 = vmatpush.msra.mxu0 %v12946_v15  ;;  %5242 = vmatpush.msra.mxu1 %v12993_v29  ;;  %v5429_v15 = vand.u32 4294901760, %v13167_v1  ;;  %v5436_v54 = vsub.f32 %v13177_v36, %v5435_v20  ;;  %v5460_v28 = vsub.f32 %v13230_v10, %v5459_v23 }
 0x480   :  { %5309 = vmatpush.msra.mxu2 %v15943_v26  ;;  %5346 = vmatpush.msra.mxu3 %v12959_v17  ;;  %v15944_v17 = vand.u32 4294901760, %v13009_v40  ;;  %v13218_v6 = vsub.f32 %v4638_v4, %v13195_v51  ;;  %v13254_v4 = vsub.f32 %v4629_v0, %v13232_v9  ;;  %v13256_v26 = vand.u32 4294901760, %v4623_v56 }
 0x481   :  { %5246 = vmatmul.f32.vlgmr.msra.gmra.mxu1 %v13050_v18  ;;  %5195 = vmatpush.msra.mxu0 %v12965_v27  ;;  %v13206_v27 = vsub.f32 %v4641_v43, %v13181_v31  ;;  %v5465_v16 = vand.u32 4294901760, %v13242_v53 }
 0x482   :  { %5402 = vmatpush.msrb.mxu1 %v5401_v3  ;;  %5313 = vmatpush.msra.mxu2 %v15944_v17  ;;  %v5453_v48 = vand.u32 4294901760, %v13218_v6  ;;  %v13268_v17 = vand.u32 4294901760, %v4620_v32  ;;  %v5471_v47 = vand.u32 4294901760, %v13254_v4 }
 0x483   :  { %5348 = vmatpush.msra.mxu3 %v12974_v21  ;;  %5315 = vmatmul.f32.vlgmr.msra.gmra.mxu2 %v13040_v33  ;;  %v5430_v21 = vsub.f32 %v13167_v1, %v5429_v15 }
 0x484   :  { %5408 = vmatpush.msrb.mxu1 %v5407_v50  ;;  %5500 = vmatpush.msrb.mxu2 %v13103_v8  ;;  %v5454_v50 = vsub.f32 %v13218_v6, %v5453_v48  ;;  %v5792_v8 = vld [vmem:[#allocation7 + $0x138] sm:$0xff] }
 0x485   :  { %5198 = vmatpush.msra.mxu0 %v12983_v19  ;;  %5350 = vmatpush.msra.mxu3 %v12993_v29  ;;  %v4626_v19 = vld [vmem:[#allocation7 + $0x40] sm:$0xff]  ;;  %v5447_v29 = vand.u32 4294901760, %v13206_v27  ;;  %v5431_v52 = vand.u32 4294901760, %v5430_v21  ;;  %v5466_v21 = vsub.f32 %v13242_v53, %v5465_v16 }
 0x486   :  { %5352 = vmatmul.f32.vlgmr.msra.gmra.mxu3 %v13040_v33  ;;  %5414 = vmatpush.msrb.mxu1 %v5413_v34  ;;  %v13244_v43 = vand.u32 4294901760, %v4626_v19  ;;  %v5455_v0 = vand.u32 4294901760, %v5454_v50 }
 0x487   :  { %5503 = vmatpush.msrb.mxu2 %v13113_v44  ;;  %5553 = vmatpush.msrb.mxu3 %v13088_v60  ;;  %v5448_v3 = vsub.f32 %v13206_v27, %v5447_v29 }
 0x488   :  { %5201 = vmatpush.msra.mxu0 %v12996_v55  ;;  %5420 = vmatpush.msrb.mxu1 %v5419_v63  ;;  %v5437_v55 = vand.u32 4294901760, %v5436_v54  ;;  %v13266_v37 = vsub.f32 %v4626_v19, %v13244_v43  ;;  %v13278_v63 = vsub.f32 %v4623_v56, %v13256_v26  ;;  %v13288_v54 = vsub.f32 %v4620_v32, %v13268_v17 }
 0x489   :  { %5506 = vmatpush.msrb.mxu2 %v13124_v57  ;;  %5555 = vmatpush.msrb.mxu3 %v13095_v13  ;;  %v5449_v34 = vand.u32 4294901760, %v5448_v3  ;;  %v5461_v19 = vand.u32 4294901760, %v5460_v28  ;;  %v5789_v57 = vld [vmem:[#allocation7 + $0x120] sm:$0xff] }
 0x48a   :  { %5204 = vmatpush.msra.mxu0 %v13009_v40  ;;  %5426 = vmatpush.msrb.mxu1 %v5425_v41  ;;  %v5443_v40 = vand.u32 4294901760, %v5442_v14  ;;  %v5477_v41 = vand.u32 4294901760, %v13266_v37  ;;  %v5472_v14 = vsub.f32 %v13254_v4, %v5471_v47  ;;  %v5483_v56 = vand.u32 4294901760, %v13278_v63 }
 0x48b   :  { %5207 = vmatmul.f32.vlgmr.msra.gmra.mxu0 %v13045_v49  ;;  %5509 = vmatpush.msrb.mxu2 %v13135_v30  ;;  %v5489_v32 = vand.u32 4294901760, %v13288_v54 }
 0x48c   :  { %5357 = vmatpush.msrb.mxu0 %v13088_v60  ;;  %5557 = vmatpush.msrb.mxu3 %v13105_v25  ;;  %v5473_v3 = vand.u32 4294901760, %v5472_v14 }
 0x48d   :  { %5432 = vmatpush.msrb.mxu1 %v5431_v52  ;;  %5512 = vmatpush.msrb.mxu2 %v13149_v11  ;;  %v5467_v52 = vand.u32 4294901760, %v5466_v21  ;;  %v13421_v11 = vand.u32 4294901760, %v5789_v57  ;;  %v5774_v21 = vld [vmem:[#allocation7 + $0xa8] sm:$0xff] }
 0x48e   :  { %5359 = vmatpush.msrb.mxu0 %v13095_v13  ;;  %5559 = vmatpush.msrb.mxu3 %v13115_v7  ;;  %v13483_v14 = vand.u32 4294901760, %v5774_v21 }
 0x48f   :  { %5438 = vmatpush.msrb.mxu1 %v5437_v55  ;;  %5515 = vmatpush.msrb.mxu2 %v13167_v1  ;;  %v5478_v55 = vsub.f32 %v13266_v37, %v5477_v41 }
 0x490   :  { %5361 = vmatpush.msrb.mxu0 %v13105_v25  ;;  %5561 = vmatpush.msrb.mxu3 %v13126_v5 }
 0x491   :  { %5444 = vmatpush.msrb.mxu1 %v5443_v40  ;;  %5518 = vmatpush.msrb.mxu2 %v13177_v36  ;;  %v5484_v40 = vsub.f32 %v13278_v63, %v5483_v56  ;;  %v5479_v50 = vand.u32 4294901760, %v5478_v55  ;;  %v5771_v55 = vld [vmem:[#allocation7 + $0x90] sm:$0xff] }
 0x492   :  { %5363 = vmatpush.msrb.mxu0 %v13115_v7  ;;  %5563 = vmatpush.msrb.mxu3 %v13139_v58 }
 0x493   :  { %5450 = vmatpush.msrb.mxu1 %v5449_v34  ;;  %5521 = vmatpush.msrb.mxu2 %v13190_v45  ;;  %v5490_v34 = vsub.f32 %v13288_v54, %v5489_v32  ;;  %v5485_v28 = vand.u32 4294901760, %v5484_v40 }
 0x494   :  { %5365 = vmatpush.msrb.mxu0 %v13126_v5  ;;  %5565 = vmatpush.msrb.mxu3 %v13151_v2 }
 0x495   :  { %5456 = vmatpush.msrb.mxu1 %v5455_v0  ;;  %5524 = vmatpush.msrb.mxu2 %v13206_v27  ;;  %v5491_v0 = vand.u32 4294901760, %v5490_v34  ;;  %v13494_v34 = vsub.f32 %v5774_v21, %v13483_v14  ;;  %v5753_v21 = vld [vmem:[#allocation7] sm:$0xff] }
 0x496   :  { %5367 = vmatpush.msrb.mxu0 %v13139_v58  ;;  %5567 = vmatpush.msrb.mxu3 %v13162_v46 }
 0x497   :  { %5462 = vmatpush.msrb.mxu1 %v5461_v19  ;;  %5527 = vmatpush.msrb.mxu2 %v13218_v6 }
 0x498   :  { %5369 = vmatpush.msrb.mxu0 %v13151_v2  ;;  %5569 = vmatpush.msrb.mxu3 %v13181_v31 }
 0x499   :  { %5468 = vmatpush.msrb.mxu1 %v5467_v52  ;;  %5530 = vmatpush.msrb.mxu2 %v13230_v10 }
 0x49a   :  { %5371 = vmatpush.msrb.mxu0 %v13162_v46  ;;  %5571 = vmatpush.msrb.mxu3 %v13195_v51 }
 0x49b   :  { %5474 = vmatpush.msrb.mxu1 %v5473_v3  ;;  %5533 = vmatpush.msrb.mxu2 %v13242_v53 }
 0x49c   :  { %5373 = vmatpush.msrb.mxu0 %v13181_v31  ;;  %5573 = vmatpush.msrb.mxu3 %v13208_v38 }
 0x49d   :  { %5480 = vmatpush.msrb.mxu1 %v5479_v50  ;;  %5536 = vmatpush.msrb.mxu2 %v13254_v4 }
 0x49e   :  { %5375 = vmatpush.msrb.mxu0 %v13195_v51  ;;  %5575 = vmatpush.msrb.mxu3 %v13220_v39 }
 0x49f   :  { %5486 = vmatpush.msrb.mxu1 %v5485_v28  ;;  %5539 = vmatpush.msrb.mxu2 %v13266_v37  ;;  %v13497_v28 = vand.u32 4294901760, %v5771_v55 }
 0x4a0   :  { %5377 = vmatpush.msrb.mxu0 %v13208_v38  ;;  %5577 = vmatpush.msrb.mxu3 %v13232_v9 }
 0x4a1   :  { %5492 = vmatpush.msrb.mxu1 %v5491_v0  ;;  %5542 = vmatpush.msrb.mxu2 %v13278_v63  ;;  %v5768_v0 = vld [vmem:[#allocation7 + $0x78] sm:$0xff] }
 0x4a2   :  { %5379 = vmatpush.msrb.mxu0 %v13220_v39  ;;  %5579 = vmatpush.msrb.mxu3 %v13244_v43 }
 0x4a3   :  { %5494 = vmatmul.f32.vlgmr.msrb.gmra.mxu1 %v13040_v33  ;;  %5545 = vmatpush.msrb.mxu2 %v13288_v54 }
 0x4a4   :  { %5661 = vmatpush.msra.mxu1 %v13088_v60  ;;  %5381 = vmatpush.msrb.mxu0 %v13232_v9 }
 0x4a5   :  { %5581 = vmatpush.msrb.mxu3 %v13256_v26  ;;  %5548 = vmatmul.f32.vlgmr.msrb.gmra.mxu2 %v13045_v49  ;;  %v5798_v49 = vld [vmem:[#allocation7 + $0x168] sm:$0xff] }
 0x4a6   :  { %5663 = vmatpush.msra.mxu1 %v13095_v13  ;;  %5383 = vmatpush.msrb.mxu0 %v13244_v43 }
 0x4a7   :  { %5583 = vmatpush.msrb.mxu3 %v13268_v17 }
 0x4a8   :  { %5587 = vmatmul.f32.vlgmr.msrb.gmra.mxu3 %v13050_v18  ;;  %5665 = vmatpush.msra.mxu1 %v13105_v25  ;;  %v13391_v18 = vand.u32 4294901760, %v5798_v49  ;;  %v13400_v25 = vld [vmem:[#allocation8] sm:$0x7] }
 0x4a9   :  { %5385 = vmatpush.msrb.mxu0 %v13256_v26 }
 0x4aa   :  { %5667 = vmatpush.msra.mxu1 %v13115_v7  ;;  %v13394_v60 = vsub.f32 %v5798_v49, %v13391_v18  ;;  %5810 = vmatpush.msra.mxu2 %v13391_v18  ;;  %v13407_v7 = vand.u32 4294901760, %v5792_v8 }
 0x4ab   :  { %5387 = vmatpush.msrb.mxu0 %v13268_v17 }
 0x4ac   :  { %5393 = vmatmul.f32.vlgmr.msrb.gmra.mxu0 %v13062_v61  ;;  %5669 = vmatpush.msra.mxu1 %v13126_v5  ;;  %v5795_v61 = vld [vmem:[#allocation7 + $0x150] sm:$0xff]  ;;  %v5852_v44 = vand.u32 4294901760, %v13394_v60  ;;  %v13416_v30 = vsub.f32 %v5792_v8, %v13407_v7  ;;  %v13499_v8 = vand.u32 4294901760, %v5768_v0 }
 0x4ad   :  { %5594 = vmatpush.msra.mxu0 %v5399_v22  ;;  %v13396_v13 = vand.u32 4294901760, %v5795_v61 }
 0x4ae   :  { %5671 = vmatpush.msra.mxu1 %v13139_v58  ;;  %v5853_v5 = vsub.f32 %v13394_v60, %v5852_v44  ;;  %v4668_v58 = vperm.slane %v13400_v25, 0  ;;  %v5864_v1 = vand.u32 4294901760, %v13416_v30 }
 0x4af   :  { %5598 = vmatpush.msra.mxu0 %v5405_v42  ;;  %5812 = vmatpush.msra.mxu2 %v13396_v13 }
 0x4b0   :  { %5673 = vmatpush.msra.mxu1 %v13151_v2  ;;  %v5786_v2 = vld [vmem:[#allocation7 + $0x108] sm:$0xff] }
 0x4b1   :  { %5602 = vmatpush.msra.mxu0 %v5411_v24  ;;  %5814 = vmatpush.msra.mxu2 %v13407_v7  ;;  %v13432_v36 = vand.u32 4294901760, %v5786_v2 }
 0x4b2   :  { %5675 = vmatpush.msra.mxu1 %v13162_v46 }
 0x4b3   :  { %5606 = vmatpush.msra.mxu0 %v5417_v62  ;;  %v5854_v62 = vand.u32 4294901760, %v5853_v5  ;;  %5816 = vmatpush.msra.mxu2 %v13421_v11  ;;  %v13445_v6 = vsub.f32 %v5786_v2, %v13432_v36  ;;  %v5765_v2 = vld [vmem:[#allocation7 + $0x60] sm:$0xff] }
 0x4b4   :  { %5677 = vmatpush.msra.mxu1 %v13181_v31  ;;  %v5783_v31 = vld [vmem:[#allocation7 + $0xf0] sm:$0xff] }
 0x4b5   :  { %5610 = vmatpush.msra.mxu0 %v5423_v35  ;;  %v13430_v35 = vsub.f32 %v5789_v57, %v13421_v11  ;;  %5855 = vmatpush.msra.mxu3 %v5854_v62  ;;  %v5876_v53 = vand.u32 4294901760, %v13445_v6  ;;  %v13514_v62 = vsub.f32 %v5768_v0, %v13499_v8  ;;  %v13552_v0 = vand.u32 4294901760, %v5753_v21 }
 0x4b6   :  { %5679 = vmatpush.msra.mxu1 %v13195_v51  ;;  %v13439_v51 = vand.u32 4294901760, %v5783_v31  ;;  %5818 = vmatpush.msra.mxu2 %v13432_v36 }
 0x4b7   :  { %5614 = vmatpush.msra.mxu0 %v5429_v15  ;;  %v5865_v15 = vsub.f32 %v13416_v30, %v5864_v1  ;;  %v5877_v63 = vsub.f32 %v13445_v6, %v5876_v53 }
 0x4b8   :  { %5681 = vmatpush.msra.mxu1 %v13208_v38  ;;  %v13450_v10 = vsub.f32 %v5783_v31, %v13439_v51  ;;  %5820 = vmatpush.msra.mxu2 %v13439_v51 }
 0x4b9   :  { %5618 = vmatpush.msra.mxu0 %v5435_v20  ;;  %v5878_v52 = vand.u32 4294901760, %v5877_v63  ;;  %v5756_v63 = vld [vmem:[#allocation7 + $0x18] sm:$0xff] }
 0x4ba   :  { %5683 = vmatpush.msra.mxu1 %v13220_v39  ;;  %v5780_v39 = vld [vmem:[#allocation7 + $0xd8] sm:$0xff] }
 0x4bb   :  { %5622 = vmatpush.msra.mxu0 %v5441_v59  ;;  %v5870_v59 = vand.u32 4294901760, %v13430_v35 }
 0x4bc   :  { %5685 = vmatpush.msra.mxu1 %v13232_v9  ;;  %v13452_v9 = vand.u32 4294901760, %v5780_v39 }
 0x4bd   :  { %5626 = vmatpush.msra.mxu0 %v5447_v29  ;;  %v5866_v29 = vand.u32 4294901760, %v5865_v15 }
 0x4be   :  { %5687 = vmatpush.msra.mxu1 %v13244_v43  ;;  %v5777_v43 = vld [vmem:[#allocation7 + $0xc0] sm:$0xff]  ;;  %v13463_v4 = vsub.f32 %v5780_v39, %v13452_v9  ;;  %5822 = vmatpush.msra.mxu2 %v13452_v9  ;;  %v5762_v39 = vld [vmem:[#allocation7 + $0x48] sm:$0xff] }
 0x4bf   :  { %5630 = vmatpush.msra.mxu0 %v5453_v48  ;;  %v5871_v48 = vsub.f32 %v13430_v35, %v5870_v59 }
 0x4c0   :  { %5689 = vmatpush.msra.mxu1 %v13256_v26  ;;  %v13465_v26 = vand.u32 4294901760, %v5777_v43  ;;  %v5888_v54 = vand.u32 4294901760, %v13463_v4 }
 0x4c1   :  { %5634 = vmatpush.msra.mxu0 %v5459_v23  ;;  %v5882_v23 = vand.u32 4294901760, %v13450_v10 }
 0x4c2   :  { %5691 = vmatpush.msra.mxu1 %v13268_v17  ;;  %v4669_v17 = vperm.slane %v13400_v25, 1  ;;  %v13481_v19 = vsub.f32 %v5777_v43, %v13465_v26  ;;  %v5889_v3 = vsub.f32 %v13463_v4, %v5888_v54  ;;  %5824 = vmatpush.msra.mxu2 %v13465_v26 }
 0x4c3   :  { %5638 = vmatpush.msra.mxu0 %v5465_v16  ;;  %5693 = vmatmul.f32.vlgmr.msra.gmra.mxu1 %v13040_v33 }
 0x4c4   :  { %6006 = vmatpush.msrb.mxu1 %v13391_v18  ;;  %v5894_v50 = vand.u32 4294901760, %v13481_v19  ;;  %5826 = vmatpush.msra.mxu2 %v13483_v14 }
 0x4c5   :  { %5642 = vmatpush.msra.mxu0 %v5471_v47  ;;  %v5872_v47 = vand.u32 4294901760, %v5871_v48  ;;  %v5912_v48 = vand.u32 4294901760, %v13514_v62 }
 0x4c6   :  { %6008 = vmatpush.msrb.mxu1 %v13396_v13  ;;  %v5895_v5 = vsub.f32 %v13481_v19, %v5894_v50  ;;  %5828 = vmatpush.msra.mxu2 %v13497_v28 }
 0x4c7   :  { %5646 = vmatpush.msra.mxu0 %v5477_v41  ;;  %v5883_v41 = vsub.f32 %v13450_v10, %v5882_v23 }
 0x4c8   :  { %6010 = vmatpush.msrb.mxu1 %v13407_v7  ;;  %v5896_v15 = vand.u32 4294901760, %v5895_v5  ;;  %5830 = vmatpush.msra.mxu2 %v13499_v8 }
 0x4c9   :  { %5650 = vmatpush.msra.mxu0 %v5483_v56 }
 0x4ca   :  { %6012 = vmatpush.msrb.mxu1 %v13421_v11 }
 0x4cb   :  { %5654 = vmatpush.msra.mxu0 %v5489_v32  ;;  %v5884_v32 = vand.u32 4294901760, %v5883_v41 }
 0x4cc   :  { %5656 = vmatmul.f32.vlgmr.msra.gmra.mxu0 %v13040_v33  ;;  %v13404_v33 = vsub.f32 %v5795_v61, %v13396_v13  ;;  %6014 = vmatpush.msrb.mxu1 %v13432_v36  ;;  %v5890_v61 = vand.u32 4294901760, %v5889_v3 }
 0x4cd   :  { %5953 = vmatpush.msrb.mxu0 %v13394_v60 }
 0x4ce   :  { %v5858_v42 = vand.u32 4294901760, %v13404_v33  ;;  %6016 = vmatpush.msrb.mxu1 %v13439_v51 }
 0x4cf   :  { %5956 = vmatpush.msrb.mxu0 %v13404_v33 }
 0x4d0   :  { %v5859_v46 = vsub.f32 %v13404_v33, %v5858_v42  ;;  %6018 = vmatpush.msrb.mxu1 %v13452_v9 }
 0x4d1   :  { %5959 = vmatpush.msrb.mxu0 %v13416_v30  ;;  %v5787_v30 = vld [vmem:[#allocation7 + $0x110] sm:$0xff] }
 0x4d2   :  { %v5860_v45 = vand.u32 4294901760, %v5859_v46  ;;  %6020 = vmatpush.msrb.mxu1 %v13465_v26  ;;  %v13516_v46 = vand.u32 4294901760, %v5765_v2 }
 0x4d3   :  { %5962 = vmatpush.msrb.mxu0 %v13430_v35 }
 0x4d4   :  { %5861 = vmatpush.msra.mxu3 %v5860_v45  ;;  %6022 = vmatpush.msrb.mxu1 %v13483_v14  ;;  %v13528_v43 = vsub.f32 %v5765_v2, %v13516_v46 }
 0x4d5   :  { %5965 = vmatpush.msrb.mxu0 %v13445_v6  ;;  %5832 = vmatpush.msra.mxu2 %v13516_v46 }
 0x4d6   :  { %5867 = vmatpush.msra.mxu3 %v5866_v29  ;;  %6024 = vmatpush.msrb.mxu1 %v13497_v28 }
 0x4d7   :  { %5968 = vmatpush.msrb.mxu0 %v13450_v10  ;;  %v5775_v10 = vld [vmem:[#allocation7 + $0xb0] sm:$0xff] }
 0x4d8   :  { %5873 = vmatpush.msra.mxu3 %v5872_v47  ;;  %6026 = vmatpush.msrb.mxu1 %v13499_v8  ;;  %v5759_v47 = vld [vmem:[#allocation7 + $0x30] sm:$0xff] }
 0x4d9   :  { %5971 = vmatpush.msrb.mxu0 %v13463_v4  ;;  %v13548_v3 = vand.u32 4294901760, %v5759_v47 }
 0x4da   :  { %5879 = vmatpush.msra.mxu3 %v5878_v52  ;;  %v5918_v52 = vand.u32 4294901760, %v13528_v43  ;;  %6028 = vmatpush.msrb.mxu1 %v13516_v46 }
 0x4db   :  { %v4813_v20 = vpop.f32.mrf.mxu1  ;;  %5974 = vmatpush.msrb.mxu0 %v13481_v19 }
 0x4dc   :  { %5885 = vmatpush.msra.mxu3 %v5884_v32 }
 0x4dd   :  { %5977 = vmatpush.msrb.mxu0 %v13494_v34 }
 0x4de   :  { %5891 = vmatpush.msra.mxu3 %v5890_v61 }
 0x4e0   :  { %5897 = vmatpush.msra.mxu3 %v5896_v15 }
 0x4e3   :  { %v4712_v22 = vpop.f32.mrf.mxu0  ;;  %v4867_v24 = vpop.f32.mrf.mxu2 }
 0x4e4   :  { %v4713_v27 = vadd.f32 %v4712_v22, %v4668_v58  ;;  %v13503_v22 = vpop.f32.mrf.mxu1  ;;  %v5900_v58 = vand.u32 4294901760, %v13494_v34 }
 0x4e5   :  { %v13441_v38 = vpop.f32.mrf.mxu3 }
 0x4e6   :  { %v4814_v16 = vadd.f32 %v4813_v20, %v4713_v27  ;;  %v5901_v20 = vsub.f32 %v13494_v34, %v5900_v58 }
 0x4e8   :  { %v4868_v40 = vadd.f32 %v4867_v24, %v4814_v16  ;;  %v13510_v24 = vsub.f32 %v5771_v55, %v13497_v28  ;;  %v13530_v16 = vand.u32 4294901760, %v5762_v39 }
 0x4ea   :  { %v4907_v31 = vadd.f32 %v13441_v38, %v4868_v40  ;;  %v5906_v27 = vand.u32 4294901760, %v13510_v24  ;;  %5980 = vmatpush.msrb.mxu0 %v13510_v24  ;;  %v5902_v38 = vand.u32 4294901760, %v5901_v20  ;;  %v13543_v55 = vsub.f32 %v5762_v39, %v13530_v16  ;;  %6030 = vmatpush.msrb.mxu1 %v13530_v16 }
 0x4eb   :  { %v13550_v40 = vand.u32 4294901760, %v5756_v63  ;;  %5834 = vmatpush.msra.mxu2 %v13530_v16 }
 0x4ec   :  { %v5053_v56 = vpop.f32.mrf.mxu2  ;;  %5983 = vmatpush.msrb.mxu0 %v13514_v62  ;;  %5903 = vmatpush.msra.mxu3 %v5902_v38  ;;  %v5924_v5 = vand.u32 4294901760, %v13543_v55 }
 0x4ed   :  { %v13468_v37 = vpop.f32.mrf.mxu0  ;;  %v5054_v49 = vadd.f32 %v5053_v56, %v4669_v17  ;;  %v5907_v17 = vsub.f32 %v13510_v24, %v5906_v27  ;;  %v5913_v56 = vsub.f32 %v13514_v62, %v5912_v48  ;;  %6032 = vmatpush.msrb.mxu1 %v13548_v3  ;;  %5836 = vmatpush.msra.mxu2 %v13548_v3 }
 0x4ee   :  { %5986 = vmatpush.msrb.mxu0 %v13528_v43  ;;  %v5925_v39 = vsub.f32 %v13543_v55, %v5924_v5 }
 0x4ef   :  { %v5154_v57 = vpop.f32.mrf.mxu3  ;;  %v5908_v32 = vand.u32 4294901760, %v5907_v17  ;;  %v5914_v61 = vand.u32 4294901760, %v5913_v56  ;;  %6034 = vmatpush.msrb.mxu1 %v13550_v40  ;;  %5838 = vmatpush.msra.mxu2 %v13550_v40 }
 0x4f0   :  { %v5155_v29 = vadd.f32 %v5154_v57, %v5054_v49  ;;  %v4976_v49 = vadd.f32 %v13468_v37, %v4907_v31  ;;  %v5919_v57 = vsub.f32 %v13528_v43, %v5918_v52  ;;  %5989 = vmatpush.msrb.mxu0 %v13543_v55  ;;  %v13566_v37 = vsub.f32 %v5756_v63, %v13550_v40 }
 0x4f1   :  { %5909 = vmatpush.msra.mxu3 %v5908_v32  ;;  %v13569_v31 = vsub.f32 %v5753_v21, %v13552_v0  ;;  %v5926_v63 = vand.u32 4294901760, %v5925_v39  ;;  %6036 = vmatpush.msrb.mxu1 %v13552_v0  ;;  %v5796_v39 = vld [vmem:[#allocation7 + $0x158] sm:$0xff] }
 0x4f2   :  { %v5920_v20 = vand.u32 4294901760, %v5919_v57  ;;  %v15854_v38 = vand.u32 4294901760, %v13566_v37  ;;  %5840 = vmatpush.msra.mxu2 %v13552_v0 }
 0x4f3   :  { %5915 = vmatpush.msra.mxu3 %v5914_v61  ;;  %v15853_v17 = vand.u32 4294901760, %v13569_v31  ;;  %v5799_v61 = vld [vmem:[#allocation7 + $0x170] sm:$0xff] }
 0x4f4   :  { %v5937_v56 = vsub.f32 %v13566_v37, %v15854_v38  ;;  %6047 = vmatpush.msrb.mxu2 %v5852_v44 }
 0x4f5   :  { %5921 = vmatpush.msra.mxu3 %v5920_v20  ;;  %v5943_v32 = vsub.f32 %v13569_v31, %v15853_v17  ;;  %v13598_v20 = vand.u32 4294901760, %v5799_v61 }
 0x4f6   :  { %6051 = vmatpush.msrb.mxu2 %v5858_v42 }
 0x4f7   :  { %5927 = vmatpush.msra.mxu3 %v5926_v63  ;;  %v13607_v63 = vand.u32 4294901760, %v5796_v39 }
 0x4f8   :  { %6055 = vmatpush.msrb.mxu2 %v5864_v1  ;;  %v13632_v1 = vand.u32 4294901760, %v5787_v30 }
 0x4fa   :  { %6059 = vmatpush.msrb.mxu2 %v5870_v59  ;;  %v13649_v35 = vsub.f32 %v5787_v30, %v13632_v1 }
 0x4fc   :  { %6063 = vmatpush.msrb.mxu2 %v5876_v53 }
 0x4fe   :  { %v5247_v2 = vpop.f32.mrf.mxu1  ;;  %6067 = vmatpush.msrb.mxu2 %v5882_v23 }
 0x500   :  { %6071 = vmatpush.msrb.mxu2 %v5888_v54  ;;  %v5772_v54 = vld [vmem:[#allocation7 + $0x98] sm:$0xff] }
 0x502   :  { %6075 = vmatpush.msrb.mxu2 %v5894_v50 }
 0x504   :  { %6079 = vmatpush.msrb.mxu2 %v5900_v58  ;;  %v5766_v58 = vld [vmem:[#allocation7 + $0x68] sm:$0xff] }
 0x506   :  { %v5316_v21 = vpop.f32.mrf.mxu2  ;;  %6083 = vmatpush.msrb.mxu2 %v5906_v27  ;;  %v13732_v27 = vand.u32 4294901760, %v5766_v58 }
 0x508   :  { %v5208_v45 = vpop.f32.mrf.mxu0  ;;  %6087 = vmatpush.msrb.mxu2 %v5912_v48  ;;  %v5760_v48 = vld [vmem:[#allocation7 + $0x38] sm:$0xff] }
 0x509   :  { %v5209_v41 = vadd.f32 %v5208_v45, %v5155_v29  ;;  %v13562_v45 = vsub.f32 %v5759_v47, %v13548_v3  ;;  %v5013_v47 = vadd.f32 %v13503_v22, %v4976_v49  ;;  %v13593_v22 = vld [vmem:[#allocation2 + $0xc] sm:$0x7]  ;;  %v5353_v38 = vpop.f32.mrf.mxu3 }
 0x50a   :  { %6091 = vmatpush.msrb.mxu2 %v5918_v52  ;;  %v5757_v52 = vld [vmem:[#allocation7 + $0x20] sm:$0xff] }
 0x50b   :  { %v5248_v15 = vadd.f32 %v5247_v2, %v5209_v41  ;;  %v15855_v29 = vand.u32 4294901760, %v13562_v45  ;;  %5992 = vmatpush.msrb.mxu0 %v13562_v45  ;;  %v5938_v2 = vand.u32 4294901760, %v5937_v56  ;;  %v5697_v17 = vadd.f32 %v5013_v47, %v13593_v22 }
 0x50c   :  { %v5718_v56 = vrot.slane %v13593_v22, 1  ;;  %v13617_v47 = vsub.f32 %v5796_v39, %v13607_v63  ;;  %v5784_v39 = vld [vmem:[#allocation7 + $0xf8] sm:$0xff]  ;;  %6095 = vmatpush.msrb.mxu2 %v5924_v5  ;;  %v15945_v55 = vand.u32 4294901760, %v13562_v45 }
 0x50d   :  { %v5931_v41 = vsub.f32 %v13562_v45, %v15855_v29  ;;  %5995 = vmatpush.msrb.mxu0 %v13566_v37  ;;  %v5317_v49 = vadd.f32 %v5316_v21, %v5248_v15  ;;  %v5944_v15 = vand.u32 4294901760, %v5943_v32  ;;  %v13605_v21 = vsub.f32 %v5799_v61, %v13598_v20  ;;  %v5793_v29 = vld [vmem:[#allocation7 + $0x140] sm:$0xff]  ;;  %v5790_v32 = vld [vmem:[#allocation7 + $0x128] sm:$0xff] }
 0x50e   :  { %v13614_v44 = vand.u32 4294901760, %v5793_v29  ;;  %v6199_v61 = vand.u32 4294901760, %v13617_v47  ;;  %6099 = vmatpush.msrb.mxu2 %v15945_v55 }
 0x50f   :  { %v5932_v57 = vand.u32 4294901760, %v5931_v41  ;;  %5998 = vmatpush.msrb.mxu0 %v13569_v31  ;;  %v5354_v41 = vadd.f32 %v5353_v38, %v5317_v49  ;;  %v6193_v60 = vand.u32 4294901760, %v13605_v21  ;;  %v9185_v38 = vmul.f32 -1.442695, %v5697_v17 }
 0x510   :  { %v13621_v49 = vand.u32 4294901760, %v5790_v32 }
 0x511   :  { %5933 = vmatpush.msra.mxu3 %v5932_v57  ;;  %6151 = vmatpush.msra.mxu0 %v13598_v20  ;;  %v5720_v33 = vadd.f32 %v5718_v56, %v5354_v41  ;;  %v6194_v42 = vsub.f32 %v13605_v21, %v6193_v60  ;;  %v13630_v57 = vsub.f32 %v5793_v29, %v13614_v44  ;;  %9244 = vpow2.f32 %v9185_v38 }
 0x512   :  { %v13635_v17 = vsub.f32 %v5790_v32, %v13621_v49  ;;  %v13646_v41 = vand.u32 4294901760, %v5784_v39  ;;  %v5781_v32 = vld [vmem:[#allocation7 + $0xe0] sm:$0xff] }
 0x513   :  { %5939 = vmatpush.msra.mxu3 %v5938_v2  ;;  %6153 = vmatpush.msra.mxu0 %v13607_v63  ;;  %v6200_v2 = vsub.f32 %v13617_v47, %v6199_v61  ;;  %v6205_v29 = vand.u32 4294901760, %v13630_v57  ;;  %v13662_v6 = vand.u32 4294901760, %v5781_v32 }
 0x514   :  { %v13665_v53 = vsub.f32 %v5784_v39, %v13646_v41 }
 0x515   :  { %5945 = vmatpush.msra.mxu3 %v5944_v15  ;;  %6155 = vmatpush.msra.mxu0 %v13614_v44  ;;  %v15856_v15 = vand.u32 4294901760, %v13635_v17  ;;  %v6201_v59 = vand.u32 4294901760, %v6200_v2  ;;  %v6206_v56 = vsub.f32 %v13630_v57, %v6205_v29 }
 0x516   :  { %v6223_v2 = vand.u32 4294901760, %v13665_v53 }
 0x517   :  { %6114 = vmatpush.msrb.mxu3 %v13391_v18  ;;  %v6195_v18 = vand.u32 4294901760, %v6194_v42  ;;  %6157 = vmatpush.msra.mxu0 %v13621_v49  ;;  %v6212_v38 = vsub.f32 %v13635_v17, %v15856_v15  ;;  %v6217_v42 = vand.u32 4294901760, %v13649_v35  ;;  %v9245_v23 = vpop.eup %9244 }
 0x518   :  { %v13704_v19 = vadd.f32 1.0, %v9245_v23  ;;  %v5763_v23 = vld [vmem:[#allocation7 + $0x50] sm:$0xff] }
 0x519   :  { %6116 = vmatpush.msrb.mxu3 %v13396_v13  ;;  %v9186_v13 = vmul.f32 -1.442695, %v5720_v33  ;;  %6196 = vmatpush.msra.mxu1 %v6195_v18  ;;  %v5778_v33 = vld [vmem:[#allocation7 + $0xc8] sm:$0xff]  ;;  %v6213_v30 = vand.u32 4294901760, %v6212_v38  ;;  %v6218_v18 = vsub.f32 %v13649_v35, %v6217_v42 }
 0x51a   :  { %6159 = vmatpush.msra.mxu0 %v13632_v1  ;;  %v13675_v15 = vand.u32 4294901760, %v5778_v33  ;;  %vm5707_vm1 = vweird.f32 %v13704_v19 }
 0x51b   :  { %6118 = vmatpush.msrb.mxu3 %v13407_v7  ;;  %6202 = vmatpush.msra.mxu1 %v6201_v59  ;;  %v6207_v7 = vand.u32 4294901760, %v6206_v56  ;;  %9246 = vpow2.f32 %v9186_v13  ;;  %v6219_v39 = vand.u32 4294901760, %v6218_v18  ;;  %v6224_v59 = vsub.f32 %v13665_v53, %v6223_v2 }
 0x51c   :  { %6161 = vmatpush.msra.mxu0 %v13646_v41  ;;  %v13687_v56 = vand.u32 4294901760, %v5775_v10  ;;  %v13694_v4 = vsub.f32 %v5778_v33, %v13675_v15  ;;  %9248 = vrcp.f32 %v13704_v19 }
 0x51d   :  { %6120 = vmatpush.msrb.mxu3 %v13421_v11  ;;  %6208 = vmatpush.msra.mxu1 %v6207_v7  ;;  %v13681_v11 = vsub.f32 %v5781_v32, %v13662_v6  ;;  %v6225_v13 = vand.u32 4294901760, %v6224_v59  ;;  %v13697_v32 = vand.u32 4294901760, %v5772_v54  ;;  %v5769_v7 = vld [vmem:[#allocation7 + $0x80] sm:$0xff] }
 0x51e   :  { %6163 = vmatpush.msra.mxu0 %v13662_v6  ;;  %v13700_v38 = vsub.f32 %v5775_v10, %v13687_v56  ;;  %v6235_v50 = vand.u32 4294901760, %v13694_v4  ;;  %v13723_v10 = vand.u32 4294901760, %v5769_v7 }
 0x51f   :  { %6122 = vmatpush.msrb.mxu3 %v13432_v36  ;;  %6214 = vmatpush.msra.mxu1 %v6213_v30  ;;  %v6229_v36 = vand.u32 4294901760, %v13681_v11  ;;  %v13726_v24 = vsub.f32 %v5772_v54, %v13697_v32 }
 0x520   :  { %6165 = vmatpush.msra.mxu0 %v13675_v15  ;;  %v6241_v33 = vand.u32 4294901760, %v13700_v38  ;;  %v13737_v54 = vsub.f32 %v5769_v7, %v13723_v10 }
 0x521   :  { %6124 = vmatpush.msrb.mxu3 %v13439_v51  ;;  %6220 = vmatpush.msra.mxu1 %v6219_v39  ;;  %v6230_v51 = vsub.f32 %v13681_v11, %v6229_v36  ;;  %v9247_v30 = vpop.eup %9246  ;;  %v6247_v59 = vand.u32 4294901760, %v13726_v24 }
 0x522   :  { %6167 = vmatpush.msra.mxu0 %v13687_v56  ;;  %v6242_v18 = vsub.f32 %v13700_v38, %v6241_v33  ;;  %v13743_v62 = vadd.f32 1.0, %v9247_v30  ;;  %v15858_v7 = vand.u32 4294901760, %v13737_v54  ;;  %v13772_v5 = vpop.eup %9248 }
 0x523   :  { %6126 = vmatpush.msrb.mxu3 %v13452_v9  ;;  %6226 = vmatpush.msra.mxu1 %v6225_v13  ;;  %v6231_v34 = vand.u32 4294901760, %v6230_v51  ;;  %v6236_v9 = vsub.f32 %v13694_v4, %v6235_v50  ;;  %v13739_v13 = vand.u32 4294901760, %v5763_v23  ;;  %v6248_v51 = vsub.f32 %v13726_v24, %v6247_v59 }
 0x524   :  { %6169 = vmatpush.msra.mxu0 %v13697_v32  ;;  %v6243_v39 = vand.u32 4294901760, %v6242_v18  ;;  %v13768_v18 = vand.u32 4294901760, %v5757_v52  ;;  %9250 = vrcp.f32 %v13743_v62  ;;  %vm5708_vm0 = vweird.f32 %v13772_v5 }
 0x525   :  { %6128 = vmatpush.msrb.mxu3 %v13465_v26  ;;  %6232 = vmatpush.msra.mxu1 %v6231_v34  ;;  %v6237_v26 = vand.u32 4294901760, %v6236_v9  ;;  %v13754_v34 = vand.u32 4294901760, %v5760_v48  ;;  %v13757_v43 = vsub.f32 %v5763_v23, %v13739_v13  ;;  %v6249_v9 = vand.u32 4294901760, %v6248_v51  ;;  %vm5709_vm2 = vmor %vm5707_vm1, %vm5708_vm0 }
 0x526   :  { %6171 = vmatpush.msra.mxu0 %v13723_v10  ;;  %v4670_v23 = vperm.slane %v13400_v25, 2  ;;  %v15946_v25 = vand.u32 4294901760, %v13566_v37  ;;  %v15947_v37 = vand.u32 4294901760, %v13569_v31  ;;  %vm5730_vm5 = vweird.f32 %v13743_v62 }
 0x527   :  { %6130 = vmatpush.msrb.mxu3 %v13483_v14  ;;  %6238 = vmatpush.msra.mxu1 %v6237_v26  ;;  %v13747_v14 = vsub.f32 %v5766_v58, %v13732_v27  ;;  %v6254_v58 = vsub.f32 %v13737_v54, %v15858_v7  ;;  %v15860_v30 = vand.u32 4294901760, %v13757_v43  ;;  %v13779_v26 = vsub.f32 %v5760_v48, %v13754_v34 }
 0x528   :  { %6173 = vmatpush.msra.mxu0 %v13732_v27  ;;  %v13792_v7 = vsub.f32 %v5757_v52, %v13768_v18  ;;  %6103 = vmatpush.msrb.mxu2 %v15946_v25 }
 0x529   :  { %6132 = vmatpush.msrb.mxu3 %v13497_v28  ;;  %6244 = vmatpush.msra.mxu1 %v6243_v39  ;;  %v15857_v28 = vand.u32 4294901760, %v13747_v14  ;;  %v6255_v39 = vand.u32 4294901760, %v6254_v58  ;;  %v6266_v45 = vsub.f32 %v13757_v43, %v15860_v30  ;;  %v5394_v51 = vpop.f32.mrf.mxu0  ;;  %v15859_v48 = vand.u32 4294901760, %v13779_v26 }
 0x52a   :  { %6175 = vmatpush.msra.mxu0 %v13739_v13  ;;  %6107 = vmatpush.msrb.mxu2 %v15947_v37  ;;  %v5395_v25 = vadd.f32 %v5394_v51, %v4670_v23  ;;  %v5549_v37 = vpop.f32.mrf.mxu2 }
 0x52b   :  { %6134 = vmatpush.msrb.mxu3 %v13499_v8  ;;  %v6260_v8 = vsub.f32 %v13747_v14, %v15857_v28  ;;  %6250 = vmatpush.msra.mxu1 %v6249_v9  ;;  %v5703_v9 = vmul.f32 %v13772_v5, %v13704_v19  ;;  %v6267_v58 = vand.u32 4294901760, %v6266_v45 }
 0x52c   :  { %6177 = vmatpush.msra.mxu0 %v13754_v34 }
 0x52d   :  { %6136 = vmatpush.msrb.mxu3 %v13516_v46  ;;  %v5754_v46 = vld [vmem:[#allocation7 + $0x8] sm:$0xff]  ;;  %v6261_v55 = vand.u32 4294901760, %v6260_v8  ;;  %6256 = vmatpush.msra.mxu1 %v6255_v39  ;;  %v15861_v8 = vand.u32 4294901760, %v13792_v7  ;;  %v5704_v30 = vsub.f32 1.0, %v5703_v9 }
 0x52e   :  { %v13789_v28 = vand.u32 4294901760, %v5754_v46  ;;  %6179 = vmatpush.msra.mxu0 %v13768_v18 }
 0x52f   :  { %6138 = vmatpush.msrb.mxu3 %v13530_v16  ;;  %v6272_v16 = vsub.f32 %v13779_v26, %v15859_v48  ;;  %6262 = vmatpush.msra.mxu1 %v6261_v55  ;;  %v9251_v48 = vpop.eup %9250 }
 0x530   :  { %v13805_v52 = vsub.f32 %v5754_v46, %v13789_v28  ;;  %6181 = vmatpush.msra.mxu0 %v13789_v28  ;;  %v5495_v46 = vpop.f32.mrf.mxu1  ;;  %vm5731_vm4 = vweird.f32 %v9251_v48 }
 0x531   :  { %6140 = vmatpush.msrb.mxu3 %v13548_v3  ;;  %v6273_v39 = vand.u32 4294901760, %v6272_v16  ;;  %v6278_v3 = vsub.f32 %v13792_v7, %v15861_v8  ;;  %6268 = vmatpush.msra.mxu1 %v6267_v58  ;;  %v5496_v51 = vadd.f32 %v5495_v46, %v5395_v25  ;;  %v5705_v16 = vmul.f32 %v13772_v5, %v5704_v30  ;;  %vm5732_vm6 = vmor %vm5730_vm5, %vm5731_vm4 }
 0x532   :  { %v15862_v45 = vand.u32 4294901760, %v13805_v52  ;;  %v5711_v25 = vand.u32 2147483647, %v13704_v19 }
 0x533   :  { %6142 = vmatpush.msrb.mxu3 %v13550_v40  ;;  %v6279_v31 = vand.u32 4294901760, %v6278_v3  ;;  %6274 = vmatpush.msra.mxu1 %v6273_v39  ;;  %v5726_v40 = vmul.f32 %v9251_v48, %v13743_v62  ;;  %v5550_v8 = vadd.f32 %v5549_v37, %v5496_v51  ;;  %v5706_v58 = vadd.f32 %v13772_v5, %v5705_v16 }
 0x534   :  { %v6284_v23 = vsub.f32 %v13805_v52, %v15862_v45  ;;  %v5713_v3 = vand.u32 2147483648, %v13704_v19  ;;  %vm5712_vm3 = vcmp.eq.f32.partialorder %v5711_v25, 8.507059e+37  ;;  %v5734_v19 = vand.u32 2147483647, %v13743_v62 }
 0x535   :  { %6144 = vmatpush.msrb.mxu3 %v13552_v0  ;;  %6280 = vmatpush.msra.mxu1 %v6279_v31  ;;  %v5727_v9 = vsub.f32 1.0, %v5726_v40  ;;  %v5588_v0 = vpop.f32.mrf.mxu3  ;;  %v5710_v31 = vsel %vm5709_vm2, %v13772_v5, %v5706_v58 }
 0x536   :  { %v6285_v55 = vand.u32 4294901760, %v6284_v23  ;;  %v5589_v45 = vadd.f32 %v5588_v0, %v5550_v8  ;;  %v5714_v51 = vor.u32 1.1754944e-38, %v5713_v3  ;;  %v5736_v8 = vand.u32 2147483648, %v13743_v62 }
 0x537   :  { %v5728_v39 = vmul.f32 %v9251_v48, %v5727_v9  ;;  %vm5735_vm7 = vcmp.eq.f32.partialorder %v5734_v19, 8.507059e+37  ;;  %v15953_v19 = vand.u32 4294901760, %v13792_v7 }
 0x538   :  { %6286 = vmatpush.msra.mxu1 %v6285_v55  ;;  %v5741_v55 = vrot.slane %v13593_v22, 2  ;;  %v5715_v37 = vsel %vm5712_vm3, %v5714_v51, %v5710_v31  ;;  %v5737_v5 = vor.u32 1.1754944e-38, %v5736_v8 }
 0x539   :  { %v5729_v16 = vadd.f32 %v9251_v48, %v5728_v39 }
 0x53b   :  { %v5733_v9 = vsel %vm5732_vm6, %v9251_v48, %v5729_v16 }
 0x53c   :  { %v5738_v58 = vsel %vm5735_vm7, %v5737_v5, %v5733_v9  ;;  %v5770_v5 = vld [vmem:[#allocation7 + $0x88] sm:$0xff] }
 0x53d   :  { %v5745_v3 = vsub.f32 1.0, %v5738_v58  ;;  %v5747_v39 = vmul.f32 %v5738_v58, %v13036_v12 }
 0x540   :  { %v5694_v23 = vpop.f32.mrf.mxu1 }
 0x549   :  { %v5657_v46 = vpop.f32.mrf.mxu0 }
 0x54a   :  { %v5658_v30 = vadd.f32 %v5657_v46, %v5589_v45 }
 0x54c   :  { %v5695_v40 = vadd.f32 %v5694_v23, %v5658_v30 }
 0x54e   :  { %v5740_v0 = vmul.f32 %v5715_v37, %v5695_v40  ;;  %v5776_v40 = vld [vmem:[#allocation7 + $0xb8] sm:$0xff] }
 0x550   :  { %v5743_v45 = vadd.f32 %v5741_v55, %v5740_v0  ;;  %v15952_v55 = vand.u32 4294901760, %v13779_v26  ;;  %v13977_v0 = vand.u32 4294901760, %v5776_v40 }
 0x552   :  { %9252 = vtanh.f32 %v5743_v45 }
 0x558   :  { %v9253_v25 = vpop.eup %9252 }
 0x559   :  { %v5746_v22 = vmul.f32 %v9253_v25, %v5745_v3 }
 0x55b   :  { %v13832_v46 = vadd.f32 %v5747_v39, %v5746_v22  ;;  %v5767_v39 = vld [vmem:[#allocation7 + $0x70] sm:$0xff] }
 0x55d   :  { %5750 = vst [vmem:[#allocation10 + $0x4] sm:$0x1] %v13832_v46  ;;  %v13836_v30 = vand.u32 4294901760, %v13832_v46 }
 0x55f   :  { %5947 = vmatmul.f32.vlgmr.msra.gmra.mxu3 %v13836_v30  ;;  %v13841_v62 = vsub.f32 %v13832_v46, %v13836_v30 }
 0x560   :  { %6347 = vmatpush.msra.mxu3 %v13598_v20 }
 0x561   :  { %6001 = vmatmul.f32.vlgmr.msrb.gmra.mxu0 %v13841_v62  ;;  %v13846_v48 = vand.u32 4294901760, %v13841_v62 }
 0x562   :  { %6349 = vmatpush.msra.mxu3 %v13607_v63  ;;  %6388 = vmatpush.msrb.mxu0 %v6193_v60  ;;  %v15948_v60 = vand.u32 4294901760, %v13635_v17 }
 0x563   :  { %6040 = vmatmul.f32.vlgmr.msrb.gmra.mxu1 %v13846_v48  ;;  %v5844_v12 = vsub.f32 %v13841_v62, %v13846_v48 }
 0x564   :  { %6351 = vmatpush.msra.mxu3 %v13614_v44  ;;  %6392 = vmatpush.msrb.mxu0 %v6199_v61 }
 0x565   :  { %6455 = vmatpush.msrb.mxu1 %v13598_v20  ;;  %v13858_v31 = vand.u32 4294901760, %v5844_v12  ;;  %v5800_v20 = vld [vmem:[#allocation7 + $0x178] sm:$0xff]  ;;  %v14004_v12 = vand.u32 4294901760, %v5770_v5 }
 0x566   :  { %6353 = vmatpush.msra.mxu3 %v13621_v49  ;;  %6396 = vmatpush.msrb.mxu0 %v6205_v29 }
 0x567   :  { %6457 = vmatpush.msrb.mxu1 %v13607_v63  ;;  %5846 = vmatmul.f32.vlgmr.msra.gmra.mxu2 %v13858_v31  ;;  %v13884_v63 = vand.u32 4294901760, %v5800_v20 }
 0x568   :  { %6146 = vmatmul.f32.vlgmr.msrb.gmra.mxu3 %v13836_v30  ;;  %6294 = vmatpush.msra.mxu2 %v13605_v21  ;;  %v5797_v21 = vld [vmem:[#allocation7 + $0x160] sm:$0xff] }
 0x569   :  { %6355 = vmatpush.msra.mxu3 %v13632_v1  ;;  %6400 = vmatpush.msrb.mxu0 %v15948_v60  ;;  %v13899_v61 = vsub.f32 %v5800_v20, %v13884_v63 }
 0x56a   :  { %6459 = vmatpush.msrb.mxu1 %v13614_v44  ;;  %6187 = vmatmul.f32.vlgmr.msra.gmra.mxu0 %v13858_v31  ;;  %v5794_v44 = vld [vmem:[#allocation7 + $0x148] sm:$0xff] }
 0x56b   :  { %6297 = vmatpush.msra.mxu2 %v13617_v47  ;;  %6357 = vmatpush.msra.mxu3 %v13646_v41  ;;  %v13891_v47 = vand.u32 4294901760, %v5797_v21 }
 0x56c   :  { %6404 = vmatpush.msrb.mxu0 %v6217_v42  ;;  %6461 = vmatpush.msrb.mxu1 %v13621_v49  ;;  %v5791_v49 = vld [vmem:[#allocation7 + $0x130] sm:$0xff]  ;;  %v5785_v42 = vld [vmem:[#allocation7 + $0x100] sm:$0xff] }
 0x56d   :  { %6288 = vmatmul.f32.vlgmr.msra.gmra.mxu1 %v13836_v30  ;;  %6300 = vmatpush.msra.mxu2 %v13630_v57  ;;  %v13901_v57 = vand.u32 4294901760, %v5794_v44  ;;  %v13911_v29 = vand.u32 4294901760, %v5791_v49 }
 0x56e   :  { %6359 = vmatpush.msra.mxu3 %v13662_v6  ;;  %6408 = vmatpush.msrb.mxu0 %v6223_v2 }
 0x56f   :  { %6463 = vmatpush.msrb.mxu1 %v13632_v1  ;;  %6303 = vmatpush.msra.mxu2 %v13635_v17  ;;  %v5788_v1 = vld [vmem:[#allocation7 + $0x118] sm:$0xff]  ;;  %v13909_v17 = vsub.f32 %v5797_v21, %v13891_v47 }
 0x570   :  { %6361 = vmatpush.msra.mxu3 %v13675_v15  ;;  %6412 = vmatpush.msrb.mxu0 %v6229_v36  ;;  %v5779_v36 = vld [vmem:[#allocation7 + $0xd0] sm:$0xff]  ;;  %v5764_v21 = vld [vmem:[#allocation7 + $0x58] sm:$0xff] }
 0x571   :  { %6465 = vmatpush.msrb.mxu1 %v13646_v41  ;;  %6109 = vmatmul.f32.vlgmr.msrb.gmra.mxu2 %v13836_v30  ;;  %v6534_v41 = vand.u32 4294901760, %v13899_v61  ;;  %v6540_v2 = vand.u32 4294901760, %v13909_v17  ;;  %v13958_v51 = vand.u32 4294901760, %v5779_v36 }
 0x572   :  { %6306 = vmatpush.msra.mxu2 %v13649_v35  ;;  %6363 = vmatpush.msra.mxu3 %v13687_v56  ;;  %v13920_v35 = vsub.f32 %v5794_v44, %v13901_v57 }
 0x573   :  { %6416 = vmatpush.msrb.mxu0 %v6235_v50  ;;  %6467 = vmatpush.msrb.mxu1 %v13662_v6  ;;  %v5782_v6 = vld [vmem:[#allocation7 + $0xe8] sm:$0xff]  ;;  %v13986_v9 = vsub.f32 %v5779_v36, %v13958_v51 }
 0x574   :  { %6309 = vmatpush.msra.mxu2 %v13665_v53  ;;  %6365 = vmatpush.msra.mxu3 %v13697_v32  ;;  %v15949_v53 = vand.u32 4294901760, %v13737_v54  ;;  %v6546_v50 = vand.u32 4294901760, %v13920_v35 }
 0x575   :  { %6420 = vmatpush.msrb.mxu0 %v6241_v33  ;;  %6469 = vmatpush.msrb.mxu1 %v13675_v15  ;;  %v13922_v15 = vand.u32 4294901760, %v5788_v1  ;;  %v6576_v20 = vand.u32 4294901760, %v13986_v9 }
 0x576   :  { %6312 = vmatpush.msra.mxu2 %v13681_v11  ;;  %6367 = vmatpush.msra.mxu3 %v13723_v10  ;;  %v13931_v11 = vsub.f32 %v5791_v49, %v13911_v29  ;;  %v6547_v16 = vsub.f32 %v13920_v35, %v6546_v50  ;;  %v14016_v49 = vand.u32 4294901760, %v5767_v39 }
 0x577   :  { %6424 = vmatpush.msrb.mxu0 %v6247_v59  ;;  %6471 = vmatpush.msrb.mxu1 %v13687_v56  ;;  %v13935_v56 = vand.u32 4294901760, %v5785_v42  ;;  %v13945_v33 = vsub.f32 %v5788_v1, %v13922_v15  ;;  %v15951_v59 = vand.u32 4294901760, %v13757_v43  ;;  %v6577_v36 = vsub.f32 %v13986_v9, %v6576_v20 }
 0x578   :  { %6315 = vmatpush.msra.mxu2 %v13694_v4  ;;  %6369 = vmatpush.msra.mxu3 %v13732_v27  ;;  %v15950_v4 = vand.u32 4294901760, %v13747_v14  ;;  %v6552_v23 = vand.u32 4294901760, %v13931_v11  ;;  %v6548_v3 = vand.u32 4294901760, %v6547_v16 }
 0x579   :  { %6428 = vmatpush.msrb.mxu0 %v15949_v53  ;;  %6473 = vmatpush.msrb.mxu1 %v13697_v32  ;;  %v6535_v32 = vsub.f32 %v13899_v61, %v6534_v41  ;;  %v6558_v37 = vand.u32 4294901760, %v13945_v33  ;;  %v14028_v53 = vand.u32 4294901760, %v5764_v21 }
 0x57a   :  { %6318 = vmatpush.msra.mxu2 %v13700_v38  ;;  %6371 = vmatpush.msra.mxu3 %v13739_v13  ;;  %v13947_v38 = vand.u32 4294901760, %v5782_v6  ;;  %v6553_v45 = vsub.f32 %v13931_v11, %v6552_v23 }
 0x57b   :  { %6432 = vmatpush.msrb.mxu0 %v15950_v4  ;;  %6475 = vmatpush.msrb.mxu1 %v13723_v10  ;;  %v6541_v10 = vsub.f32 %v13909_v17, %v6540_v2  ;;  %v6559_v25 = vsub.f32 %v13945_v33, %v6558_v37  ;;  %v5758_v4 = vld [vmem:[#allocation7 + $0x28] sm:$0xff] }
 0x57c   :  { %6321 = vmatpush.msra.mxu2 %v13726_v24  ;;  %6373 = vmatpush.msra.mxu3 %v13754_v34  ;;  %v13963_v24 = vsub.f32 %v5785_v42, %v13935_v56  ;;  %v13973_v8 = vsub.f32 %v5782_v6, %v13947_v38  ;;  %v6554_v60 = vand.u32 4294901760, %v6553_v45  ;;  %v14026_v6 = vsub.f32 %v5770_v5, %v14004_v12 }
 0x57d   :  { %6436 = vmatpush.msrb.mxu0 %v15951_v59  ;;  %6477 = vmatpush.msrb.mxu1 %v13732_v27  ;;  %v6536_v27 = vand.u32 4294901760, %v6535_v32  ;;  %v6560_v1 = vand.u32 4294901760, %v6559_v25 }
 0x57e   :  { %6324 = vmatpush.msra.mxu2 %v13737_v54  ;;  %6375 = vmatpush.msra.mxu3 %v13768_v18  ;;  %v5773_v54 = vld [vmem:[#allocation7 + $0xa0] sm:$0xff]  ;;  %v6570_v22 = vand.u32 4294901760, %v13973_v8  ;;  %v6594_v16 = vand.u32 4294901760, %v14026_v6 }
 0x57f   :  { %6440 = vmatpush.msrb.mxu0 %v15952_v55  ;;  %6479 = vmatpush.msrb.mxu1 %v13739_v13  ;;  %v6542_v13 = vand.u32 4294901760, %v6541_v10  ;;  %v13991_v58 = vand.u32 4294901760, %v5773_v54  ;;  %v14038_v10 = vsub.f32 %v5767_v39, %v14016_v49  ;;  %v5755_v55 = vld [vmem:[#allocation7 + $0x10] sm:$0xff] }
 0x580   :  { %6327 = vmatpush.msra.mxu2 %v13747_v14  ;;  %6377 = vmatpush.msra.mxu3 %v13789_v28  ;;  %v6564_v14 = vand.u32 4294901760, %v13963_v24  ;;  %v6571_v42 = vsub.f32 %v13973_v8, %v6570_v22  ;;  %v6595_v25 = vsub.f32 %v14026_v6, %v6594_v16 }
 0x581   :  { %6444 = vmatpush.msrb.mxu0 %v15953_v19  ;;  %6481 = vmatpush.msrb.mxu1 %v13754_v34  ;;  %v15954_v34 = vand.u32 4294901760, %v13805_v52  ;;  %v14014_v44 = vsub.f32 %v5773_v54, %v13991_v58  ;;  %v14050_v54 = vsub.f32 %v5764_v21, %v14028_v53  ;;  %v14052_v19 = vand.u32 4294901760, %v5758_v4 }
 0x582   :  { %6381 = vmatmul.f32.vlgmr.msra.gmra.mxu3 %v13846_v48  ;;  %6330 = vmatpush.msra.mxu2 %v13757_v43  ;;  %v14002_v43 = vsub.f32 %v5776_v40, %v13977_v0  ;;  %v6600_v45 = vand.u32 4294901760, %v14038_v10 }
 0x583   :  { %6537 = vmatpush.msrb.mxu3 %v6536_v27  ;;  %6448 = vmatpush.msrb.mxu0 %v15954_v34  ;;  %v6588_v59 = vand.u32 4294901760, %v14014_v44  ;;  %v14064_v34 = vand.u32 4294901760, %v5755_v55  ;;  %v6606_v39 = vand.u32 4294901760, %v14050_v54 }
 0x584   :  { %6483 = vmatpush.msrb.mxu1 %v13768_v18  ;;  %6450 = vmatmul.f32.vlgmr.msrb.gmra.mxu0 %v13836_v30  ;;  %v6565_v18 = vsub.f32 %v13963_v24, %v6564_v14 }
 0x585   :  { %6543 = vmatpush.msrb.mxu3 %v6542_v13  ;;  %6635 = vmatpush.msra.mxu0 %v13899_v61  ;;  %v6589_v13 = vsub.f32 %v14014_v44, %v6588_v59  ;;  %v6927_v61 = vld [vmem:[#allocation7 + $0x138] sm:$0xff] }
 0x586   :  { %6333 = vmatpush.msra.mxu2 %v13779_v26  ;;  %6485 = vmatpush.msrb.mxu1 %v13789_v28  ;;  %v5761_v26 = vld [vmem:[#allocation7 + $0x40] sm:$0xff]  ;;  %v6582_v28 = vand.u32 4294901760, %v14002_v43  ;;  %v6566_v32 = vand.u32 4294901760, %v6565_v18  ;;  %v6601_v18 = vsub.f32 %v14038_v10, %v6600_v45 }
 0x587   :  { %6487 = vmatmul.f32.vlgmr.msrb.gmra.mxu1 %v13836_v30  ;;  %6549 = vmatpush.msrb.mxu3 %v6548_v3  ;;  %v14040_v40 = vand.u32 4294901760, %v5761_v26  ;;  %v6590_v21 = vand.u32 4294901760, %v6589_v13 }
 0x588   :  { %6638 = vmatpush.msra.mxu0 %v13909_v17  ;;  %6688 = vmatpush.msra.mxu1 %v13884_v63  ;;  %v6583_v27 = vsub.f32 %v14002_v43, %v6582_v28 }
 0x589   :  { %6336 = vmatpush.msra.mxu2 %v13792_v7  ;;  %6555 = vmatpush.msrb.mxu3 %v6554_v60  ;;  %v6572_v7 = vand.u32 4294901760, %v6571_v42  ;;  %v14062_v5 = vsub.f32 %v5761_v26, %v14040_v40  ;;  %v14074_v60 = vsub.f32 %v5758_v4, %v14052_v19  ;;  %v14084_v42 = vsub.f32 %v5755_v55, %v14064_v34 }
 0x58a   :  { %6641 = vmatpush.msra.mxu0 %v13920_v35  ;;  %6690 = vmatpush.msra.mxu1 %v13891_v47  ;;  %v6584_v3 = vand.u32 4294901760, %v6583_v27  ;;  %v6596_v26 = vand.u32 4294901760, %v6595_v25  ;;  %v6924_v35 = vld [vmem:[#allocation7 + $0x120] sm:$0xff] }
 0x58b   :  { %6339 = vmatpush.msra.mxu2 %v13805_v52  ;;  %6561 = vmatpush.msrb.mxu3 %v6560_v1  ;;  %v6578_v52 = vand.u32 4294901760, %v6577_v36  ;;  %v6612_v1 = vand.u32 4294901760, %v14062_v5  ;;  %v6607_v36 = vsub.f32 %v14050_v54, %v6606_v39  ;;  %v6618_v4 = vand.u32 4294901760, %v14074_v60 }
 0x58c   :  { %6342 = vmatmul.f32.vlgmr.msra.gmra.mxu2 %v13841_v62  ;;  %6644 = vmatpush.msra.mxu0 %v13931_v11  ;;  %v6624_v55 = vand.u32 4294901760, %v14084_v42 }
 0x58d   :  { %6492 = vmatpush.msrb.mxu2 %v13884_v63  ;;  %6692 = vmatpush.msra.mxu1 %v13901_v57  ;;  %v6608_v27 = vand.u32 4294901760, %v6607_v36 }
 0x58e   :  { %6567 = vmatpush.msrb.mxu3 %v6566_v32  ;;  %6647 = vmatpush.msra.mxu0 %v13945_v33  ;;  %v6602_v32 = vand.u32 4294901760, %v6601_v18  ;;  %v6921_v33 = vld [vmem:[#allocation7 + $0x108] sm:$0xff] }
 0x58f   :  { %6494 = vmatpush.msrb.mxu2 %v13891_v47  ;;  %6694 = vmatpush.msra.mxu1 %v13911_v29  ;;  %v6909_v18 = vld [vmem:[#allocation7 + $0xa8] sm:$0xff] }
 0x590   :  { %6573 = vmatpush.msrb.mxu3 %v6572_v7  ;;  %6650 = vmatpush.msra.mxu0 %v13963_v24  ;;  %v6613_v7 = vsub.f32 %v14062_v5, %v6612_v1 }
 0x591   :  { %6496 = vmatpush.msrb.mxu2 %v13901_v57  ;;  %6696 = vmatpush.msra.mxu1 %v13922_v15 }
 0x592   :  { %6579 = vmatpush.msrb.mxu3 %v6578_v52  ;;  %6653 = vmatpush.msra.mxu0 %v13973_v8  ;;  %v6619_v52 = vsub.f32 %v14074_v60, %v6618_v4  ;;  %v6614_v13 = vand.u32 4294901760, %v6613_v7  ;;  %v6906_v7 = vld [vmem:[#allocation7 + $0x90] sm:$0xff] }
 0x593   :  { %6498 = vmatpush.msrb.mxu2 %v13911_v29  ;;  %6698 = vmatpush.msra.mxu1 %v13935_v56 }
 0x594   :  { %6585 = vmatpush.msrb.mxu3 %v6584_v3  ;;  %6656 = vmatpush.msra.mxu0 %v13986_v9  ;;  %v6625_v3 = vsub.f32 %v14084_v42, %v6624_v55  ;;  %v6620_v25 = vand.u32 4294901760, %v6619_v52  ;;  %v6918_v9 = vld [vmem:[#allocation7 + $0xf0] sm:$0xff] }
 0x595   :  { %6500 = vmatpush.msrb.mxu2 %v13922_v15  ;;  %6700 = vmatpush.msra.mxu1 %v13947_v38 }
 0x596   :  { %6591 = vmatpush.msrb.mxu3 %v6590_v21  ;;  %6659 = vmatpush.msra.mxu0 %v14002_v43  ;;  %v6626_v21 = vand.u32 4294901760, %v6625_v3 }
 0x597   :  { %6502 = vmatpush.msrb.mxu2 %v13935_v56  ;;  %6702 = vmatpush.msra.mxu1 %v13958_v51 }
 0x598   :  { %6597 = vmatpush.msrb.mxu3 %v6596_v26  ;;  %6662 = vmatpush.msra.mxu0 %v14014_v44  ;;  %v6915_v44 = vld [vmem:[#allocation7 + $0xd8] sm:$0xff] }
 0x599   :  { %6504 = vmatpush.msrb.mxu2 %v13947_v38  ;;  %6704 = vmatpush.msra.mxu1 %v13977_v0 }
 0x59a   :  { %6603 = vmatpush.msrb.mxu3 %v6602_v32  ;;  %6665 = vmatpush.msra.mxu0 %v14026_v6  ;;  %v14283_v32 = vand.u32 4294901760, %v6909_v18 }
 0x59b   :  { %6506 = vmatpush.msrb.mxu2 %v13958_v51  ;;  %6706 = vmatpush.msra.mxu1 %v13991_v58 }
 0x59c   :  { %6609 = vmatpush.msrb.mxu3 %v6608_v27  ;;  %6668 = vmatpush.msra.mxu0 %v14038_v10 }
 0x59d   :  { %6508 = vmatpush.msrb.mxu2 %v13977_v0  ;;  %6708 = vmatpush.msra.mxu1 %v14004_v12 }
 0x59e   :  { %6615 = vmatpush.msrb.mxu3 %v6614_v13  ;;  %6671 = vmatpush.msra.mxu0 %v14050_v54 }
 0x59f   :  { %6510 = vmatpush.msrb.mxu2 %v13991_v58  ;;  %6710 = vmatpush.msra.mxu1 %v14016_v49 }
 0x5a0   :  { %6621 = vmatpush.msrb.mxu3 %v6620_v25  ;;  %6674 = vmatpush.msra.mxu0 %v14062_v5  ;;  %v14292_v25 = vsub.f32 %v6909_v18, %v14283_v32 }
 0x5a1   :  { %6512 = vmatpush.msrb.mxu2 %v14004_v12  ;;  %6712 = vmatpush.msra.mxu1 %v14028_v53 }
 0x5a2   :  { %6627 = vmatpush.msrb.mxu3 %v6626_v21  ;;  %6677 = vmatpush.msra.mxu0 %v14074_v60  ;;  %v14295_v21 = vand.u32 4294901760, %v6906_v7 }
 0x5a3   :  { %6514 = vmatpush.msrb.mxu2 %v14016_v49  ;;  %6714 = vmatpush.msra.mxu1 %v14040_v40 }
 0x5a4   :  { %6629 = vmatmul.f32.vlgmr.msrb.gmra.mxu3 %v13836_v30  ;;  %6680 = vmatpush.msra.mxu0 %v14084_v42 }
 0x5a5   :  { %6796 = vmatpush.msra.mxu3 %v13884_v63  ;;  %6516 = vmatpush.msrb.mxu2 %v14028_v53 }
 0x5a6   :  { %6716 = vmatpush.msra.mxu1 %v14052_v19  ;;  %6683 = vmatmul.f32.vlgmr.msra.gmra.mxu0 %v13841_v62  ;;  %v6933_v62 = vld [vmem:[#allocation7 + $0x168] sm:$0xff] }
 0x5a7   :  { %6798 = vmatpush.msra.mxu3 %v13891_v47  ;;  %6518 = vmatpush.msrb.mxu2 %v14040_v40 }
 0x5a8   :  { %6718 = vmatpush.msra.mxu1 %v14064_v34 }
 0x5a9   :  { %6722 = vmatmul.f32.vlgmr.msra.gmra.mxu1 %v13846_v48  ;;  %6800 = vmatpush.msra.mxu3 %v13901_v57  ;;  %v14187_v48 = vand.u32 4294901760, %v6933_v62 }
 0x5aa   :  { %6520 = vmatpush.msrb.mxu2 %v14052_v19 }
 0x5ab   :  { %6802 = vmatpush.msra.mxu3 %v13911_v29  ;;  %v14190_v63 = vsub.f32 %v6933_v62, %v14187_v48  ;;  %6945 = vmatpush.msrb.mxu0 %v14187_v48  ;;  %v6903_v62 = vld [vmem:[#allocation7 + $0x78] sm:$0xff] }
 0x5ac   :  { %6522 = vmatpush.msrb.mxu2 %v14064_v34 }
 0x5ad   :  { %6528 = vmatmul.f32.vlgmr.msrb.gmra.mxu2 %v13858_v31  ;;  %6804 = vmatpush.msra.mxu3 %v13922_v15  ;;  %v6930_v31 = vld [vmem:[#allocation7 + $0x150] sm:$0xff]  ;;  %v6987_v57 = vand.u32 4294901760, %v14190_v63 }
 0x5ae   :  { %6729 = vmatpush.msra.mxu2 %v6534_v41  ;;  %v14192_v47 = vand.u32 4294901760, %v6930_v31 }
 0x5af   :  { %6806 = vmatpush.msra.mxu3 %v13935_v56  ;;  %v6988_v15 = vsub.f32 %v14190_v63, %v6987_v57  ;;  %v14216_v56 = vld [vmem:[#allocation8] sm:$0x7] }
 0x5b0   :  { %6733 = vmatpush.msra.mxu2 %v6540_v2  ;;  %v14198_v17 = vsub.f32 %v6930_v31, %v14192_v47  ;;  %6947 = vmatpush.msrb.mxu0 %v14192_v47 }
 0x5b1   :  { %6808 = vmatpush.msra.mxu3 %v13947_v38  ;;  %v5803_v38 = vperm.slane %v14216_v56, 0 }
 0x5b2   :  { %6737 = vmatpush.msra.mxu2 %v6546_v50  ;;  %v6993_v2 = vand.u32 4294901760, %v14198_v17  ;;  %v14218_v50 = vand.u32 4294901760, %v6924_v35 }
 0x5b3   :  { %6810 = vmatpush.msra.mxu3 %v13958_v51 }
 0x5b4   :  { %6741 = vmatpush.msra.mxu2 %v6552_v23  ;;  %v6989_v23 = vand.u32 4294901760, %v6988_v15  ;;  %v6994_v51 = vsub.f32 %v14198_v17, %v6993_v2  ;;  %v14230_v8 = vsub.f32 %v6924_v35, %v14218_v50  ;;  %v14301_v35 = vand.u32 4294901760, %v6903_v62 }
 0x5b5   :  { %6812 = vmatpush.msra.mxu3 %v13977_v0  ;;  %v14232_v0 = vand.u32 4294901760, %v6921_v33 }
 0x5b6   :  { %6745 = vmatpush.msra.mxu2 %v6558_v37  ;;  %6990 = vmatpush.msrb.mxu1 %v6989_v23  ;;  %v6897_v23 = vld [vmem:[#allocation7 + $0x48] sm:$0xff] }
 0x5b7   :  { %6814 = vmatpush.msra.mxu3 %v13991_v58 }
 0x5b8   :  { %6749 = vmatpush.msra.mxu2 %v6564_v14  ;;  %v6995_v14 = vand.u32 4294901760, %v6994_v51  ;;  %v6894_v51 = vld [vmem:[#allocation7 + $0x30] sm:$0xff] }
 0x5b9   :  { %6816 = vmatpush.msra.mxu3 %v14004_v12  ;;  %v7005_v12 = vand.u32 4294901760, %v14230_v8 }
 0x5ba   :  { %6753 = vmatpush.msra.mxu2 %v6570_v22  ;;  %v14239_v22 = vand.u32 4294901760, %v6918_v9  ;;  %6996 = vmatpush.msrb.mxu1 %v6995_v14 }
 0x5bb   :  { %6818 = vmatpush.msra.mxu3 %v14016_v49 }
 0x5bc   :  { %6757 = vmatpush.msra.mxu2 %v6576_v20  ;;  %v14243_v20 = vsub.f32 %v6921_v33, %v14232_v0  ;;  %v14248_v6 = vsub.f32 %v6918_v9, %v14239_v22  ;;  %v7035_v33 = vand.u32 4294901760, %v14292_v25 }
 0x5bd   :  { %6820 = vmatpush.msra.mxu3 %v14028_v53  ;;  %v14250_v53 = vand.u32 4294901760, %v6915_v44 }
 0x5be   :  { %6761 = vmatpush.msra.mxu2 %v6582_v28  ;;  %v7011_v10 = vand.u32 4294901760, %v14243_v20  ;;  %v7017_v54 = vand.u32 4294901760, %v14248_v6 }
 0x5bf   :  { %6822 = vmatpush.msra.mxu3 %v14040_v40  ;;  %v6912_v40 = vld [vmem:[#allocation7 + $0xc0] sm:$0xff] }
 0x5c0   :  { %6765 = vmatpush.msra.mxu2 %v6588_v59  ;;  %v7006_v59 = vsub.f32 %v14230_v8, %v7005_v12  ;;  %v7012_v60 = vsub.f32 %v14243_v20, %v7011_v10  ;;  %v7018_v42 = vsub.f32 %v14248_v6, %v7017_v54 }
 0x5c1   :  { %6824 = vmatpush.msra.mxu3 %v14052_v19  ;;  %v14262_v19 = vsub.f32 %v6915_v44, %v14250_v53  ;;  %v6891_v44 = vld [vmem:[#allocation7 + $0x18] sm:$0xff] }
 0x5c2   :  { %6769 = vmatpush.msra.mxu2 %v6594_v16  ;;  %v5804_v16 = vperm.slane %v14216_v56, 1  ;;  %v7019_v27 = vand.u32 4294901760, %v7018_v42  ;;  %v14335_v18 = vand.u32 4294901760, %v6891_v44 }
 0x5c3   :  { %6826 = vmatpush.msra.mxu3 %v14064_v34  ;;  %v7023_v26 = vand.u32 4294901760, %v14262_v19 }
 0x5c4   :  { %6773 = vmatpush.msra.mxu2 %v6600_v45  ;;  %6828 = vmatmul.f32.vlgmr.msra.gmra.mxu3 %v13836_v30  ;;  %v14264_v45 = vand.u32 4294901760, %v6912_v40 }
 0x5c5   :  { %7141 = vmatpush.msrb.mxu3 %v14187_v48  ;;  %v7024_v52 = vsub.f32 %v14262_v19, %v7023_v26 }
 0x5c6   :  { %6777 = vmatpush.msra.mxu2 %v6606_v39  ;;  %v7007_v39 = vand.u32 4294901760, %v7006_v59  ;;  %v14279_v36 = vsub.f32 %v6912_v40, %v14264_v45  ;;  %v14324_v40 = vand.u32 4294901760, %v6897_v23 }
 0x5c7   :  { %7143 = vmatpush.msrb.mxu3 %v14192_v47 }
 0x5c8   :  { %6781 = vmatpush.msra.mxu2 %v6612_v1  ;;  %v7029_v13 = vand.u32 4294901760, %v14279_v36 }
 0x5ca   :  { %6785 = vmatpush.msra.mxu2 %v6618_v4  ;;  %v7013_v4 = vand.u32 4294901760, %v7012_v60 }
 0x5cc   :  { %6789 = vmatpush.msra.mxu2 %v6624_v55 }
 0x5cd   :  { %6791 = vmatmul.f32.vlgmr.msra.gmra.mxu2 %v13836_v30  ;;  %v14201_v30 = vand.u32 4294901760, %v6927_v61 }
 0x5ce   :  { %7088 = vmatpush.msrb.mxu2 %v14190_v63 }
 0x5cf   :  { %v14212_v11 = vsub.f32 %v6927_v61, %v14201_v30  ;;  %7145 = vmatpush.msrb.mxu3 %v14201_v30  ;;  %6949 = vmatpush.msrb.mxu0 %v14201_v30  ;;  %v7025_v61 = vand.u32 4294901760, %v7024_v52 }
 0x5d0   :  { %7091 = vmatpush.msrb.mxu2 %v14198_v17 }
 0x5d1   :  { %v6999_v24 = vand.u32 4294901760, %v14212_v11  ;;  %7147 = vmatpush.msrb.mxu3 %v14218_v50  ;;  %6951 = vmatpush.msrb.mxu0 %v14218_v50 }
 0x5d2   :  { %7094 = vmatpush.msrb.mxu2 %v14212_v11 }
 0x5d3   :  { %v7000_v58 = vsub.f32 %v14212_v11, %v6999_v24  ;;  %7149 = vmatpush.msrb.mxu3 %v14232_v0  ;;  %6953 = vmatpush.msrb.mxu0 %v14232_v0 }
 0x5d4   :  { %7097 = vmatpush.msrb.mxu2 %v14230_v8 }
 0x5d5   :  { %v7001_v28 = vand.u32 4294901760, %v7000_v58  ;;  %7151 = vmatpush.msrb.mxu3 %v14239_v22  ;;  %6955 = vmatpush.msrb.mxu0 %v14239_v22  ;;  %v14313_v58 = vsub.f32 %v6903_v62, %v14301_v35 }
 0x5d6   :  { %7100 = vmatpush.msrb.mxu2 %v14243_v20  ;;  %v6916_v20 = vld [vmem:[#allocation7 + $0xe0] sm:$0xff] }
 0x5d7   :  { %7002 = vmatpush.msrb.mxu1 %v7001_v28  ;;  %7153 = vmatpush.msrb.mxu3 %v14250_v53  ;;  %v7036_v28 = vsub.f32 %v14292_v25, %v7035_v33 }
 0x5d8   :  { %7103 = vmatpush.msrb.mxu2 %v14248_v6  ;;  %6957 = vmatpush.msrb.mxu0 %v14250_v53 }
 0x5d9   :  { %7008 = vmatpush.msrb.mxu1 %v7007_v39  ;;  %7155 = vmatpush.msrb.mxu3 %v14264_v45  ;;  %v7047_v39 = vand.u32 4294901760, %v14313_v58  ;;  %v7037_v42 = vand.u32 4294901760, %v7036_v28 }
 0x5da   :  { %7106 = vmatpush.msrb.mxu2 %v14262_v19  ;;  %6959 = vmatpush.msrb.mxu0 %v14264_v45  ;;  %v6910_v19 = vld [vmem:[#allocation7 + $0xb0] sm:$0xff] }
 0x5db   :  { %7014 = vmatpush.msrb.mxu1 %v7013_v4  ;;  %7157 = vmatpush.msrb.mxu3 %v14283_v32 }
 0x5dc   :  { %7109 = vmatpush.msrb.mxu2 %v14279_v36  ;;  %6961 = vmatpush.msrb.mxu0 %v14283_v32 }
 0x5dd   :  { %7020 = vmatpush.msrb.mxu1 %v7019_v27  ;;  %7159 = vmatpush.msrb.mxu3 %v14295_v21  ;;  %v7048_v27 = vsub.f32 %v14313_v58, %v7047_v39 }
 0x5de   :  { %v14204_v29 = vpop.f32.mrf.mxu0  ;;  %7112 = vmatpush.msrb.mxu2 %v14292_v25  ;;  %6963 = vmatpush.msrb.mxu0 %v14295_v21 }
 0x5df   :  { %7026 = vmatpush.msrb.mxu1 %v7025_v61  ;;  %7161 = vmatpush.msrb.mxu3 %v14301_v35 }
 0x5e0   :  { %v14227_v37 = vpop.f32.mrf.mxu1  ;;  %6965 = vmatpush.msrb.mxu0 %v14301_v35 }
 0x5e2   :  { %v5948_v43 = vpop.f32.mrf.mxu3 }
 0x5e7   :  { %v6188_v5 = vpop.f32.mrf.mxu0 }
 0x5e8   :  { %v6189_v55 = vadd.f32 %v6188_v5, %v5804_v16  ;;  %v14326_v16 = vand.u32 4294901760, %v6894_v51 }
 0x5ea   :  { %v5847_v41 = vpop.f32.mrf.mxu2  ;;  %v6289_v3 = vpop.f32.mrf.mxu1 }
 0x5eb   :  { %v5848_v49 = vadd.f32 %v5847_v41, %v5803_v38  ;;  %v7030_v41 = vsub.f32 %v14279_v36, %v7029_v13  ;;  %v14305_v15 = vpop.f32.mrf.mxu3  ;;  %v14309_v38 = vsub.f32 %v6906_v7, %v14295_v21  ;;  %v6290_v9 = vadd.f32 %v6289_v3, %v6189_v55  ;;  %v6907_v36 = vld [vmem:[#allocation7 + $0x98] sm:$0xff] }
 0x5ec   :  { %v14345_v7 = vsub.f32 %v6894_v51, %v14326_v16  ;;  %v14353_v3 = vsub.f32 %v6891_v44, %v14335_v18 }
 0x5ed   :  { %v5949_v1 = vadd.f32 %v5948_v43, %v5848_v49  ;;  %v7031_v14 = vand.u32 4294901760, %v7030_v41  ;;  %v7041_v59 = vand.u32 4294901760, %v14309_v38  ;;  %7115 = vmatpush.msrb.mxu2 %v14309_v38 }
 0x5ee   :  { %v15865_v61 = vand.u32 4294901760, %v14345_v7 }
 0x5ef   :  { %v6003_v31 = vadd.f32 %v14204_v29, %v5949_v1  ;;  %v6900_v29 = vld [vmem:[#allocation7 + $0x60] sm:$0xff]  ;;  %7032 = vmatpush.msrb.mxu1 %v7031_v14  ;;  %v7042_v4 = vsub.f32 %v14309_v38, %v7041_v59  ;;  %7118 = vmatpush.msrb.mxu2 %v14313_v58 }
 0x5f0   :  { %v14315_v43 = vand.u32 4294901760, %v6900_v29  ;;  %v6888_v1 = vld [vmem:[#allocation7] sm:$0xff] }
 0x5f1   :  { %v6042_v5 = vadd.f32 %v14227_v37, %v6003_v31  ;;  %v14342_v37 = vsub.f32 %v6897_v23, %v14324_v40  ;;  %7038 = vmatpush.msrb.mxu1 %v7037_v42  ;;  %v7043_v62 = vand.u32 4294901760, %v7042_v4  ;;  %v14359_v41 = vand.u32 4294901760, %v6888_v1 }
 0x5f2   :  { %v14331_v60 = vsub.f32 %v6900_v29, %v14315_v43  ;;  %7163 = vmatpush.msrb.mxu3 %v14315_v43  ;;  %6967 = vmatpush.msrb.mxu0 %v14315_v43  ;;  %v7049_v23 = vand.u32 4294901760, %v7048_v27 }
 0x5f3   :  { %v7059_v31 = vand.u32 4294901760, %v14342_v37  ;;  %7044 = vmatpush.msrb.mxu1 %v7043_v62 }
 0x5f4   :  { %v14267_v34 = vpop.f32.mrf.mxu2  ;;  %v7053_v52 = vand.u32 4294901760, %v14331_v60  ;;  %7121 = vmatpush.msrb.mxu2 %v14331_v60  ;;  %7165 = vmatpush.msrb.mxu3 %v14324_v40 }
 0x5f5   :  { %v6111_v29 = vadd.f32 %v14267_v34, %v6042_v5  ;;  %6969 = vmatpush.msrb.mxu0 %v14324_v40  ;;  %v7060_v44 = vsub.f32 %v14342_v37, %v7059_v31  ;;  %v7066_v34 = vsub.f32 %v14345_v7, %v15865_v61  ;;  %7050 = vmatpush.msrb.mxu1 %v7049_v23  ;;  %v6928_v61 = vld [vmem:[#allocation7 + $0x140] sm:$0xff] }
 0x5f6   :  { %v7054_v51 = vsub.f32 %v14331_v60, %v7053_v52  ;;  %7124 = vmatpush.msrb.mxu2 %v14342_v37  ;;  %7167 = vmatpush.msrb.mxu3 %v14326_v16  ;;  %v6892_v60 = vld [vmem:[#allocation7 + $0x20] sm:$0xff] }
 0x5f7   :  { %6971 = vmatpush.msrb.mxu0 %v14326_v16  ;;  %v7061_v42 = vand.u32 4294901760, %v7060_v44  ;;  %v6148_v62 = vadd.f32 %v14305_v15, %v6111_v29  ;;  %v7067_v23 = vand.u32 4294901760, %v7066_v34  ;;  %v6934_v44 = vld [vmem:[#allocation7 + $0x170] sm:$0xff]  ;;  %v14569_v37 = vand.u32 4294901760, %v6892_v60 }
 0x5f8   :  { %v7055_v5 = vand.u32 4294901760, %v7054_v51  ;;  %7127 = vmatpush.msrb.mxu2 %v14345_v7  ;;  %7169 = vmatpush.msrb.mxu3 %v14335_v18  ;;  %v14397_v29 = vand.u32 4294901760, %v6934_v44 }
 0x5f9   :  { %6973 = vmatpush.msrb.mxu0 %v14335_v18 }
 0x5fa   :  { %7056 = vmatpush.msrb.mxu1 %v7055_v5  ;;  %7130 = vmatpush.msrb.mxu2 %v14353_v3  ;;  %v6931_v5 = vld [vmem:[#allocation7 + $0x158] sm:$0xff] }
 0x5fb   :  { %7171 = vmatpush.msrb.mxu3 %v14359_v41  ;;  %6975 = vmatpush.msrb.mxu0 %v14359_v41 }
 0x5fc   :  { %7062 = vmatpush.msrb.mxu1 %v7061_v42  ;;  %v14406_v42 = vand.u32 4294901760, %v6931_v5 }
 0x5fd   :  { %7182 = vmatpush.msra.mxu0 %v6987_v57  ;;  %v14413_v57 = vand.u32 4294901760, %v6928_v61 }
 0x5fe   :  { %7068 = vmatpush.msrb.mxu1 %v7067_v23 }
 0x5ff   :  { %7186 = vmatpush.msra.mxu0 %v6993_v2 }
 0x601   :  { %7190 = vmatpush.msra.mxu0 %v6999_v24 }
 0x603   :  { %7194 = vmatpush.msra.mxu0 %v7005_v12 }
 0x605   :  { %v6382_v14 = vpop.f32.mrf.mxu3  ;;  %7198 = vmatpush.msra.mxu0 %v7011_v10 }
 0x607   :  { %7202 = vmatpush.msra.mxu0 %v7017_v54 }
 0x609   :  { %7206 = vmatpush.msra.mxu0 %v7023_v26 }
 0x60b   :  { %7210 = vmatpush.msra.mxu0 %v7029_v13 }
 0x60d   :  { %7214 = vmatpush.msra.mxu0 %v7035_v33  ;;  %v6901_v33 = vld [vmem:[#allocation7 + $0x68] sm:$0xff] }
 0x60e   :  { %v14524_v38 = vand.u32 4294901760, %v6901_v33 }
 0x60f   :  { %v6343_v49 = vpop.f32.mrf.mxu2  ;;  %7218 = vmatpush.msra.mxu0 %v7041_v59 }
 0x610   :  { %v6344_v55 = vadd.f32 %v6343_v49, %v6290_v9  ;;  %v15864_v9 = vand.u32 4294901760, %v14353_v3  ;;  %v14376_v49 = vsub.f32 %v6888_v1, %v14359_v41  ;;  %v14388_v1 = vld [vmem:[#allocation2 + $0xf] sm:$0x7] }
 0x611   :  { %v6832_v34 = vadd.f32 %v6148_v62, %v14388_v1  ;;  %v14416_v62 = vsub.f32 %v6931_v5, %v14406_v42  ;;  %7222 = vmatpush.msra.mxu0 %v7047_v39  ;;  %v14541_v39 = vsub.f32 %v6901_v33, %v14524_v38 }
 0x612   :  { %v6383_v28 = vadd.f32 %v6382_v14, %v6344_v55  ;;  %v7072_v4 = vsub.f32 %v14353_v3, %v15864_v9  ;;  %v15863_v27 = vand.u32 4294901760, %v14376_v49  ;;  %v6451_v55 = vpop.f32.mrf.mxu0  ;;  %7133 = vmatpush.msrb.mxu2 %v14376_v49 }
 0x613   :  { %v9187_v23 = vmul.f32 -1.442695, %v6832_v34  ;;  %v7334_v2 = vand.u32 4294901760, %v14416_v62  ;;  %7226 = vmatpush.msra.mxu0 %v7053_v52 }
 0x614   :  { %v7078_v51 = vsub.f32 %v14376_v49, %v15863_v27  ;;  %v6452_v14 = vadd.f32 %v6451_v55, %v6383_v28  ;;  %v7073_v15 = vand.u32 4294901760, %v7072_v4  ;;  %v6488_v27 = vpop.f32.mrf.mxu1  ;;  %7286 = vmatpush.msra.mxu2 %v14397_v29  ;;  %v14404_v55 = vsub.f32 %v6934_v44, %v14397_v29 }
 0x615   :  { %v6853_v4 = vrot.slane %v14388_v1, 1  ;;  %v7335_v24 = vsub.f32 %v14416_v62, %v7334_v2  ;;  %9254 = vpow2.f32 %v9187_v23  ;;  %7230 = vmatpush.msra.mxu0 %v7059_v31 }
 0x616   :  { %v7079_v28 = vand.u32 4294901760, %v7078_v51  ;;  %v6489_v9 = vadd.f32 %v6488_v27, %v6452_v14  ;;  %7074 = vmatpush.msrb.mxu1 %v7073_v15  ;;  %7288 = vmatpush.msra.mxu2 %v14406_v42  ;;  %v7328_v63 = vand.u32 4294901760, %v14404_v55  ;;  %v6925_v51 = vld [vmem:[#allocation7 + $0x128] sm:$0xff]  ;;  %v14428_v14 = vsub.f32 %v6928_v61, %v14413_v57  ;;  %v6922_v15 = vld [vmem:[#allocation7 + $0x110] sm:$0xff]  ;;  %v6919_v61 = vld [vmem:[#allocation7 + $0xf8] sm:$0xff] }
 0x617   :  { %v14425_v27 = vand.u32 4294901760, %v6925_v51  ;;  %v14438_v5 = vand.u32 4294901760, %v6922_v15  ;;  %v7336_v8 = vand.u32 4294901760, %v7335_v24 }
 0x618   :  { %7080 = vmatpush.msrb.mxu1 %v7079_v28  ;;  %v7329_v17 = vsub.f32 %v14404_v55, %v7328_v63  ;;  %7290 = vmatpush.msra.mxu2 %v14413_v57  ;;  %v6855_v44 = vadd.f32 %v6853_v4, %v6489_v9  ;;  %v7340_v34 = vand.u32 4294901760, %v14428_v14  ;;  %v14450_v9 = vand.u32 4294901760, %v6919_v61 }
 0x619   :  { %v14453_v28 = vsub.f32 %v6922_v15, %v14438_v5 }
 0x61a   :  { %7249 = vmatpush.msra.mxu1 %v14187_v48  ;;  %v7330_v11 = vand.u32 4294901760, %v7329_v17  ;;  %7292 = vmatpush.msra.mxu2 %v14425_v27  ;;  %v14442_v48 = vsub.f32 %v6925_v51, %v14425_v27  ;;  %v7341_v12 = vsub.f32 %v14428_v14, %v7340_v34  ;;  %v14461_v51 = vand.u32 4294901760, %v6916_v20 }
 0x61b   :  { %v7352_v23 = vand.u32 4294901760, %v14453_v28  ;;  %v14464_v17 = vsub.f32 %v6919_v61, %v14450_v9 }
 0x61c   :  { %7251 = vmatpush.msra.mxu1 %v14192_v47  ;;  %7331 = vmatpush.msra.mxu3 %v7330_v11  ;;  %v9188_v47 = vmul.f32 -1.442695, %v6855_v44  ;;  %v7346_v4 = vand.u32 4294901760, %v14442_v48  ;;  %v7342_v10 = vand.u32 4294901760, %v7341_v12  ;;  %v6913_v44 = vld [vmem:[#allocation7 + $0xc8] sm:$0xff]  ;;  %v9255_v11 = vpop.eup %9254  ;;  %v14491_v12 = vand.u32 4294901760, %v6910_v19 }
 0x61d   :  { %7294 = vmatpush.msra.mxu2 %v14438_v5  ;;  %v7353_v6 = vsub.f32 %v14453_v28, %v7352_v23  ;;  %v7358_v54 = vand.u32 4294901760, %v14464_v17  ;;  %v14477_v15 = vand.u32 4294901760, %v6913_v44 }
 0x61e   :  { %7253 = vmatpush.msra.mxu1 %v14201_v30  ;;  %7337 = vmatpush.msra.mxu3 %v7336_v8  ;;  %v7347_v30 = vsub.f32 %v14442_v48, %v7346_v4  ;;  %9256 = vpow2.f32 %v9188_v47 }
 0x61f   :  { %7296 = vmatpush.msra.mxu2 %v14450_v9  ;;  %v7354_v26 = vand.u32 4294901760, %v7353_v6  ;;  %v7359_v61 = vsub.f32 %v14464_v17, %v7358_v54 }
 0x620   :  { %7255 = vmatpush.msra.mxu1 %v14218_v50  ;;  %7343 = vmatpush.msra.mxu3 %v7342_v10  ;;  %v14480_v50 = vsub.f32 %v6916_v20, %v14461_v51  ;;  %v7348_v24 = vand.u32 4294901760, %v7347_v30  ;;  %v14499_v20 = vand.u32 4294901760, %v6907_v36  ;;  %v14503_v10 = vadd.f32 1.0, %v9255_v11 }
 0x621   :  { %7298 = vmatpush.msra.mxu2 %v14461_v51  ;;  %v7360_v13 = vand.u32 4294901760, %v7359_v61  ;;  %v14508_v30 = vsub.f32 %v6910_v19, %v14491_v12 }
 0x622   :  { %7257 = vmatpush.msra.mxu1 %v14232_v0  ;;  %v7364_v8 = vand.u32 4294901760, %v14480_v50  ;;  %7349 = vmatpush.msra.mxu3 %v7348_v24  ;;  %v14494_v0 = vsub.f32 %v6913_v44, %v14477_v15  ;;  %v6904_v44 = vld [vmem:[#allocation7 + $0x80] sm:$0xff]  ;;  %v14522_v19 = vsub.f32 %v6907_v36, %v14499_v20  ;;  %9258 = vrcp.f32 %v14503_v10 }
 0x623   :  { %7300 = vmatpush.msra.mxu2 %v14477_v15  ;;  %v7376_v25 = vand.u32 4294901760, %v14508_v30  ;;  %v14519_v24 = vand.u32 4294901760, %v6904_v44  ;;  %vm6842_vm9 = vweird.f32 %v14503_v10 }
 0x624   :  { %7259 = vmatpush.msra.mxu1 %v14239_v22  ;;  %v7365_v47 = vsub.f32 %v14480_v50, %v7364_v8  ;;  %7355 = vmatpush.msra.mxu3 %v7354_v26  ;;  %v7370_v22 = vand.u32 4294901760, %v14494_v0  ;;  %v9257_v11 = vpop.eup %9256  ;;  %v6898_v26 = vld [vmem:[#allocation7 + $0x50] sm:$0xff]  ;;  %v15868_v61 = vand.u32 4294901760, %v14522_v19 }
 0x625   :  { %7302 = vmatpush.msra.mxu2 %v14491_v12  ;;  %v7377_v59 = vsub.f32 %v14508_v30, %v7376_v25  ;;  %v14536_v36 = vsub.f32 %v6904_v44, %v14519_v24  ;;  %v14538_v58 = vand.u32 4294901760, %v6898_v26 }
 0x626   :  { %7261 = vmatpush.msra.mxu1 %v14250_v53  ;;  %v7366_v6 = vand.u32 4294901760, %v7365_v47  ;;  %7361 = vmatpush.msra.mxu3 %v7360_v13  ;;  %v7371_v53 = vsub.f32 %v14494_v0, %v7370_v22  ;;  %v6895_v47 = vld [vmem:[#allocation7 + $0x38] sm:$0xff]  ;;  %v7383_v44 = vsub.f32 %v14522_v19, %v15868_v61  ;;  %v14591_v61 = vsub.f32 %v6892_v60, %v14569_v37 }
 0x627   :  { %7304 = vmatpush.msra.mxu2 %v14499_v20  ;;  %v7378_v13 = vand.u32 4294901760, %v7377_v59  ;;  %v14554_v33 = vand.u32 4294901760, %v6895_v47 }
 0x628   :  { %7263 = vmatpush.msra.mxu1 %v14264_v45  ;;  %7367 = vmatpush.msra.mxu3 %v7366_v6  ;;  %v7372_v45 = vand.u32 4294901760, %v7371_v53  ;;  %v15867_v6 = vand.u32 4294901760, %v14536_v36  ;;  %v15866_v53 = vand.u32 4294901760, %v14541_v39  ;;  %v7384_v52 = vand.u32 4294901760, %v7383_v44  ;;  %v14573_v31 = vpop.eup %9258 }
 0x629   :  { %7306 = vmatpush.msra.mxu2 %v14519_v24  ;;  %vm6843_vm8 = vweird.f32 %v14573_v31 }
 0x62a   :  { %7265 = vmatpush.msra.mxu1 %v14283_v32  ;;  %v14545_v32 = vadd.f32 1.0, %v9257_v11  ;;  %7373 = vmatpush.msra.mxu3 %v7372_v45  ;;  %v7389_v11 = vsub.f32 %v14536_v36, %v15867_v6  ;;  %v7395_v45 = vsub.f32 %v14541_v39, %v15866_v53  ;;  %vm6844_vm10 = vmor %vm6842_vm9, %vm6843_vm8 }
 0x62b   :  { %7308 = vmatpush.msra.mxu2 %v14524_v38 }
 0x62c   :  { %7267 = vmatpush.msra.mxu1 %v14295_v21  ;;  %7379 = vmatpush.msra.mxu3 %v7378_v13  ;;  %v14560_v21 = vsub.f32 %v6898_v26, %v14538_v58  ;;  %v14578_v26 = vsub.f32 %v6895_v47, %v14554_v33  ;;  %9260 = vrcp.f32 %v14545_v32  ;;  %v5805_v13 = vperm.slane %v14216_v56, 2 }
 0x62d   :  { %7310 = vmatpush.msra.mxu2 %v14538_v58  ;;  %v7390_v44 = vand.u32 4294901760, %v7389_v11  ;;  %v7396_v53 = vand.u32 4294901760, %v7395_v45  ;;  %v15956_v56 = vand.u32 4294901760, %v14353_v3  ;;  %v15871_v45 = vand.u32 4294901760, %v14591_v61 }
 0x62e   :  { %7269 = vmatpush.msra.mxu1 %v14301_v35  ;;  %v15955_v35 = vand.u32 4294901760, %v14345_v7  ;;  %v15870_v59 = vand.u32 4294901760, %v14560_v21  ;;  %7385 = vmatpush.msra.mxu3 %v7384_v52  ;;  %v6889_v7 = vld [vmem:[#allocation7 + $0x8] sm:$0xff]  ;;  %v15869_v47 = vand.u32 4294901760, %v14578_v26  ;;  %v6838_v52 = vmul.f32 %v14573_v31, %v14503_v10 }
 0x62f   :  { %7312 = vmatpush.msra.mxu2 %v14554_v33  ;;  %v14588_v6 = vand.u32 4294901760, %v6889_v7  ;;  %v15957_v3 = vand.u32 4294901760, %v14376_v49  ;;  %vm6865_vm13 = vweird.f32 %v14545_v32 }
 0x630   :  { %7234 = vmatpush.msra.mxu0 %v15955_v35  ;;  %7271 = vmatpush.msra.mxu1 %v14315_v43  ;;  %v6529_v35 = vpop.f32.mrf.mxu2  ;;  %v7401_v43 = vsub.f32 %v14560_v21, %v15870_v59  ;;  %v7407_v11 = vsub.f32 %v14578_v26, %v15869_v47  ;;  %v6839_v59 = vsub.f32 1.0, %v6838_v52 }
 0x631   :  { %7391 = vmatpush.msra.mxu3 %v7390_v44  ;;  %7314 = vmatpush.msra.mxu2 %v14569_v37  ;;  %v14604_v60 = vsub.f32 %v6889_v7, %v14588_v6  ;;  %v7413_v44 = vsub.f32 %v14591_v61, %v15871_v45  ;;  %v6630_v7 = vpop.f32.mrf.mxu3 }
 0x632   :  { %7273 = vmatpush.msra.mxu1 %v14324_v40  ;;  %7238 = vmatpush.msra.mxu0 %v15956_v56  ;;  %v7402_v40 = vand.u32 4294901760, %v7401_v43  ;;  %v6530_v56 = vadd.f32 %v6529_v35, %v5805_v13  ;;  %v9261_v47 = vpop.eup %9260 }
 0x633   :  { %7397 = vmatpush.msra.mxu3 %v7396_v53  ;;  %7316 = vmatpush.msra.mxu2 %v14588_v6  ;;  %v15872_v43 = vand.u32 4294901760, %v14604_v60  ;;  %v7414_v49 = vand.u32 4294901760, %v7413_v44  ;;  %v6848_v44 = vand.u32 2147483648, %v14503_v10  ;;  %vm6866_vm12 = vweird.f32 %v9261_v47 }
 0x634   :  { %7275 = vmatpush.msra.mxu1 %v14326_v16  ;;  %7242 = vmatpush.msra.mxu0 %v15957_v3  ;;  %v7408_v16 = vand.u32 4294901760, %v7407_v11  ;;  %v6631_v13 = vadd.f32 %v6630_v7, %v6530_v56  ;;  %v6840_v11 = vmul.f32 %v14573_v31, %v6839_v59  ;;  %v6684_v3 = vpop.f32.mrf.mxu0  ;;  %v6846_v56 = vand.u32 2147483647, %v14503_v10  ;;  %vm6867_vm14 = vmor %vm6865_vm13, %vm6866_vm12 }
 0x635   :  { %7403 = vmatpush.msra.mxu3 %v7402_v40  ;;  %v7419_v53 = vsub.f32 %v14604_v60, %v15872_v43  ;;  %v6869_v10 = vand.u32 2147483647, %v14545_v32 }
 0x636   :  { %7277 = vmatpush.msra.mxu1 %v14335_v18  ;;  %v6861_v18 = vmul.f32 %v9261_v47, %v14545_v32  ;;  %v6685_v45 = vadd.f32 %v6684_v3, %v6631_v13  ;;  %v6841_v40 = vadd.f32 %v14573_v31, %v6840_v11  ;;  %v6849_v13 = vor.u32 1.1754944e-38, %v6848_v44 }
 0x637   :  { %7409 = vmatpush.msra.mxu3 %v7408_v16  ;;  %v7420_v35 = vand.u32 4294901760, %v7419_v53  ;;  %vm6847_vm11 = vcmp.eq.f32.partialorder %v6846_v56, 8.507059e+37  ;;  %vm6870_vm15 = vcmp.eq.f32.partialorder %v6869_v10, 8.507059e+37  ;;  %v15963_v10 = vand.u32 4294901760, %v14591_v61 }
 0x638   :  { %7279 = vmatpush.msra.mxu1 %v14359_v41  ;;  %v6862_v52 = vsub.f32 1.0, %v6861_v18  ;;  %v6723_v41 = vpop.f32.mrf.mxu1 }
 0x639   :  { %7415 = vmatpush.msra.mxu3 %v7414_v49  ;;  %v6724_v43 = vadd.f32 %v6723_v41, %v6685_v45  ;;  %v6845_v49 = vsel %vm6844_vm10, %v14573_v31, %v6841_v40  ;;  %v6871_v45 = vand.u32 2147483648, %v14545_v32 }
 0x63a   :  { %v6863_v59 = vmul.f32 %v9261_v47, %v6862_v52  ;;  %v6850_v11 = vsel %vm6847_vm11, %v6849_v13, %v6845_v49 }
 0x63b   :  { %7421 = vmatpush.msra.mxu3 %v7420_v35  ;;  %v6876_v35 = vrot.slane %v14388_v1, 2  ;;  %v6872_v31 = vor.u32 1.1754944e-38, %v6871_v45 }
 0x63c   :  { %v6864_v3 = vadd.f32 %v9261_v47, %v6863_v59 }
 0x63e   :  { %v6868_v52 = vsel %vm6867_vm14, %v9261_v47, %v6864_v3 }
 0x63f   :  { %v6873_v40 = vsel %vm6870_vm15, %v6872_v31, %v6868_v52  ;;  %v6905_v31 = vld [vmem:[#allocation7 + $0x88] sm:$0xff] }
 0x640   :  { %v6880_v44 = vsub.f32 1.0, %v6873_v40 }
 0x647   :  { %v6829_v53 = vpop.f32.mrf.mxu3 }
 0x650   :  { %v6792_v16 = vpop.f32.mrf.mxu2 }
 0x651   :  { %v6793_v7 = vadd.f32 %v6792_v16, %v6724_v43  ;;  %v6882_v16 = vmul.f32 %v6873_v40, %v13832_v46 }
 0x653   :  { %v6830_v18 = vadd.f32 %v6829_v53, %v6793_v7 }
 0x655   :  { %v6875_v41 = vmul.f32 %v6850_v11, %v6830_v18  ;;  %v6911_v18 = vld [vmem:[#allocation7 + $0xb8] sm:$0xff] }
 0x657   :  { %v6878_v43 = vadd.f32 %v6876_v35, %v6875_v41  ;;  %v15962_v35 = vand.u32 4294901760, %v14578_v26  ;;  %v14776_v41 = vand.u32 4294901760, %v6911_v18 }
 0x659   :  { %9262 = vtanh.f32 %v6878_v43 }
 0x65f   :  { %v9263_v56 = vpop.eup %9262 }
 0x660   :  { %v6881_v1 = vmul.f32 %v9263_v56, %v6880_v44 }
 0x662   :  { %v14631_v59 = vadd.f32 %v6882_v16, %v6881_v1  ;;  %v6902_v16 = vld [vmem:[#allocation7 + $0x70] sm:$0xff] }
 0x664   :  { %6885 = vst [vmem:[#allocation10 + $0x5] sm:$0x1] %v14631_v59  ;;  %v14635_v7 = vand.u32 4294901760, %v14631_v59 }
 0x666   :  { %7082 = vmatmul.f32.vlgmr.msrb.gmra.mxu1 %v14635_v7  ;;  %v14640_v32 = vsub.f32 %v14631_v59, %v14635_v7 }
 0x667   :  { %7482 = vmatpush.msrb.mxu1 %v14397_v29 }
 0x668   :  { %7136 = vmatmul.f32.vlgmr.msrb.gmra.mxu2 %v14640_v32  ;;  %v14645_v47 = vand.u32 4294901760, %v14640_v32 }
 0x669   :  { %7484 = vmatpush.msrb.mxu1 %v14406_v42  ;;  %7523 = vmatpush.msrb.mxu2 %v7328_v63  ;;  %v6929_v63 = vld [vmem:[#allocation7 + $0x148] sm:$0xff] }
 0x66a   :  { %7175 = vmatmul.f32.vlgmr.msrb.gmra.mxu3 %v14645_v47  ;;  %v6979_v46 = vsub.f32 %v14640_v32, %v14645_v47 }
 0x66b   :  { %7486 = vmatpush.msrb.mxu1 %v14413_v57  ;;  %7527 = vmatpush.msrb.mxu2 %v7334_v2 }
 0x66c   :  { %7590 = vmatpush.msrb.mxu3 %v14397_v29  ;;  %v14657_v49 = vand.u32 4294901760, %v6979_v46  ;;  %v6935_v29 = vld [vmem:[#allocation7 + $0x178] sm:$0xff]  ;;  %v14803_v46 = vand.u32 4294901760, %v6905_v31 }
 0x66d   :  { %7488 = vmatpush.msrb.mxu1 %v14425_v27  ;;  %7531 = vmatpush.msrb.mxu2 %v7340_v34 }
 0x66e   :  { %7592 = vmatpush.msrb.mxu3 %v14406_v42  ;;  %6981 = vmatmul.f32.vlgmr.msrb.gmra.mxu0 %v14657_v49  ;;  %v14683_v42 = vand.u32 4294901760, %v6935_v29 }
 0x66f   :  { %7281 = vmatmul.f32.vlgmr.msra.gmra.mxu1 %v14635_v7  ;;  %7429 = vmatpush.msrb.mxu0 %v14404_v55  ;;  %v6932_v55 = vld [vmem:[#allocation7 + $0x160] sm:$0xff] }
 0x670   :  { %7490 = vmatpush.msrb.mxu1 %v14438_v5  ;;  %7535 = vmatpush.msrb.mxu2 %v7346_v4  ;;  %v14698_v2 = vsub.f32 %v6935_v29, %v14683_v42 }
 0x671   :  { %7594 = vmatpush.msrb.mxu3 %v14413_v57  ;;  %7322 = vmatmul.f32.vlgmr.msra.gmra.mxu2 %v14657_v49  ;;  %v14690_v57 = vand.u32 4294901760, %v6932_v55 }
 0x672   :  { %7432 = vmatpush.msrb.mxu0 %v14416_v62  ;;  %7492 = vmatpush.msrb.mxu1 %v14450_v9  ;;  %v6926_v62 = vld [vmem:[#allocation7 + $0x130] sm:$0xff] }
 0x673   :  { %7539 = vmatpush.msrb.mxu2 %v7352_v23  ;;  %7596 = vmatpush.msrb.mxu3 %v14425_v27  ;;  %v14700_v27 = vand.u32 4294901760, %v6929_v63  ;;  %v14708_v34 = vsub.f32 %v6932_v55, %v14690_v57  ;;  %v6920_v23 = vld [vmem:[#allocation7 + $0x100] sm:$0xff] }
 0x674   :  { %7423 = vmatmul.f32.vlgmr.msra.gmra.mxu3 %v14635_v7  ;;  %7435 = vmatpush.msrb.mxu0 %v14428_v14  ;;  %v6923_v14 = vld [vmem:[#allocation7 + $0x118] sm:$0xff] }
 0x675   :  { %7494 = vmatpush.msrb.mxu1 %v14461_v51  ;;  %7543 = vmatpush.msrb.mxu2 %v7358_v54  ;;  %v14721_v4 = vand.u32 4294901760, %v6923_v14  ;;  %v7675_v54 = vand.u32 4294901760, %v14708_v34 }
 0x676   :  { %7598 = vmatpush.msrb.mxu3 %v14438_v5  ;;  %7438 = vmatpush.msrb.mxu0 %v14442_v48  ;;  %v14710_v5 = vand.u32 4294901760, %v6926_v62  ;;  %v15958_v48 = vand.u32 4294901760, %v14522_v19 }
 0x677   :  { %7496 = vmatpush.msrb.mxu1 %v14477_v15  ;;  %7547 = vmatpush.msrb.mxu2 %v7364_v8  ;;  %v6914_v8 = vld [vmem:[#allocation7 + $0xd0] sm:$0xff] }
 0x678   :  { %7600 = vmatpush.msrb.mxu3 %v14450_v9  ;;  %7244 = vmatmul.f32.vlgmr.msra.gmra.mxu0 %v14635_v7  ;;  %v7669_v9 = vand.u32 4294901760, %v14698_v2  ;;  %v14757_v13 = vand.u32 4294901760, %v6914_v8 }
 0x679   :  { %7441 = vmatpush.msrb.mxu0 %v14453_v28  ;;  %7498 = vmatpush.msrb.mxu1 %v14491_v12  ;;  %v14719_v28 = vsub.f32 %v6929_v63, %v14700_v27  ;;  %v6899_v63 = vld [vmem:[#allocation7 + $0x58] sm:$0xff] }
 0x67a   :  { %7551 = vmatpush.msrb.mxu2 %v7370_v22  ;;  %7602 = vmatpush.msrb.mxu3 %v14461_v51  ;;  %v6917_v51 = vld [vmem:[#allocation7 + $0xe8] sm:$0xff]  ;;  %v14744_v22 = vsub.f32 %v6923_v14, %v14721_v4  ;;  %v14785_v52 = vsub.f32 %v6914_v8, %v14757_v13  ;;  %v14815_v14 = vand.u32 4294901760, %v6902_v16 }
 0x67b   :  { %7444 = vmatpush.msrb.mxu0 %v14464_v17  ;;  %7500 = vmatpush.msrb.mxu1 %v14499_v20  ;;  %v15959_v17 = vand.u32 4294901760, %v14536_v36 }
 0x67c   :  { %7555 = vmatpush.msrb.mxu2 %v7376_v25  ;;  %7604 = vmatpush.msrb.mxu3 %v14477_v15  ;;  %v14730_v15 = vsub.f32 %v6926_v62, %v14710_v5  ;;  %v15961_v25 = vand.u32 4294901760, %v14560_v21  ;;  %v7693_v3 = vand.u32 4294901760, %v14744_v22  ;;  %v7711_v55 = vand.u32 4294901760, %v14785_v52 }
 0x67d   :  { %7447 = vmatpush.msrb.mxu0 %v14480_v50  ;;  %7502 = vmatpush.msrb.mxu1 %v14519_v24  ;;  %v14734_v50 = vand.u32 4294901760, %v6920_v23 }
 0x67e   :  { %7559 = vmatpush.msrb.mxu2 %v15958_v48  ;;  %7606 = vmatpush.msrb.mxu3 %v14491_v12  ;;  %v15960_v12 = vand.u32 4294901760, %v14541_v39  ;;  %v7687_v53 = vand.u32 4294901760, %v14730_v15  ;;  %v7694_v56 = vsub.f32 %v14744_v22, %v7693_v3  ;;  %v7712_v8 = vsub.f32 %v14785_v52, %v7711_v55 }
 0x67f   :  { %7450 = vmatpush.msrb.mxu0 %v14494_v0  ;;  %7504 = vmatpush.msrb.mxu1 %v14524_v38  ;;  %v7670_v0 = vsub.f32 %v14698_v2, %v7669_v9 }
 0x680   :  { %7563 = vmatpush.msrb.mxu2 %v15959_v17  ;;  %7608 = vmatpush.msrb.mxu3 %v14499_v20  ;;  %v7681_v20 = vand.u32 4294901760, %v14719_v28  ;;  %v7688_v43 = vsub.f32 %v14730_v15, %v7687_v53  ;;  %v7695_v48 = vand.u32 4294901760, %v7694_v56  ;;  %v14827_v17 = vand.u32 4294901760, %v6899_v63 }
 0x681   :  { %7453 = vmatpush.msrb.mxu0 %v14508_v30  ;;  %7506 = vmatpush.msrb.mxu1 %v14538_v58  ;;  %v14746_v30 = vand.u32 4294901760, %v6917_v51 }
 0x682   :  { %7567 = vmatpush.msrb.mxu2 %v15960_v12  ;;  %7610 = vmatpush.msrb.mxu3 %v14519_v24  ;;  %v7676_v24 = vsub.f32 %v14708_v34, %v7675_v54  ;;  %v7682_v11 = vsub.f32 %v14719_v28, %v7681_v20  ;;  %v7689_v29 = vand.u32 4294901760, %v7688_v43  ;;  %v6893_v12 = vld [vmem:[#allocation7 + $0x28] sm:$0xff] }
 0x683   :  { %7456 = vmatpush.msrb.mxu0 %v14522_v19  ;;  %7508 = vmatpush.msrb.mxu1 %v14554_v33  ;;  %v14762_v19 = vsub.f32 %v6920_v23, %v14734_v50  ;;  %v14772_v45 = vsub.f32 %v6917_v51, %v14746_v30  ;;  %v14825_v51 = vsub.f32 %v6905_v31, %v14803_v46 }
 0x684   :  { %7571 = vmatpush.msrb.mxu2 %v15961_v25  ;;  %7612 = vmatpush.msrb.mxu3 %v14524_v38  ;;  %v7671_v38 = vand.u32 4294901760, %v7670_v0  ;;  %v7683_v44 = vand.u32 4294901760, %v7682_v11 }
 0x685   :  { %7459 = vmatpush.msrb.mxu0 %v14536_v36  ;;  %7510 = vmatpush.msrb.mxu1 %v14569_v37  ;;  %v6908_v36 = vld [vmem:[#allocation7 + $0xa0] sm:$0xff]  ;;  %v7705_v1 = vand.u32 4294901760, %v14772_v45  ;;  %v7729_v11 = vand.u32 4294901760, %v14825_v51 }
 0x686   :  { %7575 = vmatpush.msrb.mxu2 %v15962_v35  ;;  %7614 = vmatpush.msrb.mxu3 %v14538_v58  ;;  %v7677_v58 = vand.u32 4294901760, %v7676_v24  ;;  %v14790_v40 = vand.u32 4294901760, %v6908_v36  ;;  %v14837_v24 = vsub.f32 %v6902_v16, %v14815_v14  ;;  %v6890_v35 = vld [vmem:[#allocation7 + $0x10] sm:$0xff] }
 0x687   :  { %7462 = vmatpush.msrb.mxu0 %v14541_v39  ;;  %7512 = vmatpush.msrb.mxu1 %v14588_v6  ;;  %v7699_v39 = vand.u32 4294901760, %v14762_v19  ;;  %v7706_v23 = vsub.f32 %v14772_v45, %v7705_v1  ;;  %v7730_v56 = vsub.f32 %v14825_v51, %v7729_v11 }
 0x688   :  { %7579 = vmatpush.msrb.mxu2 %v15963_v10  ;;  %7616 = vmatpush.msrb.mxu3 %v14554_v33  ;;  %v15964_v33 = vand.u32 4294901760, %v14604_v60  ;;  %v14813_v62 = vsub.f32 %v6908_v36, %v14790_v40  ;;  %v14849_v36 = vsub.f32 %v6899_v63, %v14827_v17  ;;  %v14851_v10 = vand.u32 4294901760, %v6893_v12 }
 0x689   :  { %7516 = vmatmul.f32.vlgmr.msrb.gmra.mxu1 %v14645_v47  ;;  %7465 = vmatpush.msrb.mxu0 %v14560_v21  ;;  %v14801_v21 = vsub.f32 %v6911_v18, %v14776_v41  ;;  %v7735_v43 = vand.u32 4294901760, %v14837_v24 }
 0x68a   :  { %7672 = vmatpush.msra.mxu1 %v7671_v38  ;;  %7583 = vmatpush.msrb.mxu2 %v15964_v33  ;;  %v7723_v25 = vand.u32 4294901760, %v14813_v62  ;;  %v14863_v33 = vand.u32 4294901760, %v6890_v35  ;;  %v7741_v16 = vand.u32 4294901760, %v14849_v36 }
 0x68b   :  { %7618 = vmatpush.msrb.mxu3 %v14569_v37  ;;  %7585 = vmatmul.f32.vlgmr.msrb.gmra.mxu2 %v14635_v7  ;;  %v7700_v37 = vsub.f32 %v14762_v19, %v7699_v39 }
 0x68c   :  { %7678 = vmatpush.msra.mxu1 %v7677_v58  ;;  %7770 = vmatpush.msra.mxu2 %v14698_v2  ;;  %v7724_v58 = vsub.f32 %v14813_v62, %v7723_v25  ;;  %v8062_v2 = vld [vmem:[#allocation7 + $0x138] sm:$0xff] }
 0x68d   :  { %7468 = vmatpush.msrb.mxu0 %v14578_v26  ;;  %7620 = vmatpush.msrb.mxu3 %v14588_v6  ;;  %v6896_v26 = vld [vmem:[#allocation7 + $0x40] sm:$0xff]  ;;  %v7717_v6 = vand.u32 4294901760, %v14801_v21  ;;  %v7701_v0 = vand.u32 4294901760, %v7700_v37  ;;  %v7736_v37 = vsub.f32 %v14837_v24, %v7735_v43 }
 0x68e   :  { %7622 = vmatmul.f32.vlgmr.msrb.gmra.mxu3 %v14635_v7  ;;  %7684 = vmatpush.msra.mxu1 %v7683_v44  ;;  %v14839_v18 = vand.u32 4294901760, %v6896_v26  ;;  %v7725_v63 = vand.u32 4294901760, %v7724_v58 }
 0x68f   :  { %7773 = vmatpush.msra.mxu2 %v14708_v34  ;;  %7823 = vmatpush.msra.mxu3 %v14683_v42  ;;  %v7718_v38 = vsub.f32 %v14801_v21, %v7717_v6 }
 0x690   :  { %7471 = vmatpush.msrb.mxu0 %v14591_v61  ;;  %7690 = vmatpush.msra.mxu1 %v7689_v29  ;;  %v7707_v61 = vand.u32 4294901760, %v7706_v23  ;;  %v14861_v31 = vsub.f32 %v6896_v26, %v14839_v18  ;;  %v14873_v29 = vsub.f32 %v6893_v12, %v14851_v10  ;;  %v14883_v23 = vsub.f32 %v6890_v35, %v14863_v33 }
 0x691   :  { %7776 = vmatpush.msra.mxu2 %v14719_v28  ;;  %7825 = vmatpush.msra.mxu3 %v14690_v57  ;;  %v7719_v44 = vand.u32 4294901760, %v7718_v38  ;;  %v7731_v26 = vand.u32 4294901760, %v7730_v56  ;;  %v8059_v28 = vld [vmem:[#allocation7 + $0x120] sm:$0xff] }
 0x692   :  { %7474 = vmatpush.msrb.mxu0 %v14604_v60  ;;  %7696 = vmatpush.msra.mxu1 %v7695_v48  ;;  %v7713_v60 = vand.u32 4294901760, %v7712_v8  ;;  %v7747_v48 = vand.u32 4294901760, %v14861_v31  ;;  %v7742_v8 = vsub.f32 %v14849_v36, %v7741_v16  ;;  %v7753_v12 = vand.u32 4294901760, %v14873_v29 }
 0x693   :  { %7477 = vmatmul.f32.vlgmr.msrb.gmra.mxu0 %v14640_v32  ;;  %7779 = vmatpush.msra.mxu2 %v14730_v15  ;;  %v7759_v35 = vand.u32 4294901760, %v14883_v23 }
 0x694   :  { %7627 = vmatpush.msra.mxu0 %v14683_v42  ;;  %7827 = vmatpush.msra.mxu3 %v14700_v27  ;;  %v7743_v38 = vand.u32 4294901760, %v7742_v8 }
 0x695   :  { %7702 = vmatpush.msra.mxu1 %v7701_v0  ;;  %7782 = vmatpush.msra.mxu2 %v14744_v22  ;;  %v7737_v0 = vand.u32 4294901760, %v7736_v37  ;;  %v15016_v22 = vand.u32 4294901760, %v8059_v28  ;;  %v8044_v37 = vld [vmem:[#allocation7 + $0xa8] sm:$0xff] }
 0x696   :  { %7629 = vmatpush.msra.mxu0 %v14690_v57  ;;  %7829 = vmatpush.msra.mxu3 %v14710_v5  ;;  %v15078_v8 = vand.u32 4294901760, %v8044_v37 }
 0x697   :  { %7708 = vmatpush.msra.mxu1 %v7707_v61  ;;  %7785 = vmatpush.msra.mxu2 %v14762_v19  ;;  %v7748_v61 = vsub.f32 %v14861_v31, %v7747_v48 }
 0x698   :  { %7631 = vmatpush.msra.mxu0 %v14700_v27  ;;  %7831 = vmatpush.msra.mxu3 %v14721_v4 }
 0x699   :  { %7714 = vmatpush.msra.mxu1 %v7713_v60  ;;  %7788 = vmatpush.msra.mxu2 %v14772_v45  ;;  %v7754_v60 = vsub.f32 %v14873_v29, %v7753_v12  ;;  %v7749_v58 = vand.u32 4294901760, %v7748_v61  ;;  %v8041_v61 = vld [vmem:[#allocation7 + $0x90] sm:$0xff] }
 0x69a   :  { %7633 = vmatpush.msra.mxu0 %v14710_v5  ;;  %7833 = vmatpush.msra.mxu3 %v14734_v50 }
 0x69b   :  { %7720 = vmatpush.msra.mxu1 %v7719_v44  ;;  %7791 = vmatpush.msra.mxu2 %v14785_v52  ;;  %v7760_v44 = vsub.f32 %v14883_v23, %v7759_v35  ;;  %v7755_v56 = vand.u32 4294901760, %v7754_v60 }
 0x69c   :  { %7635 = vmatpush.msra.mxu0 %v14721_v4  ;;  %7835 = vmatpush.msra.mxu3 %v14746_v30 }
 0x69d   :  { %7726 = vmatpush.msra.mxu1 %v7725_v63  ;;  %7794 = vmatpush.msra.mxu2 %v14801_v21  ;;  %v7761_v63 = vand.u32 4294901760, %v7760_v44  ;;  %v15089_v44 = vsub.f32 %v8044_v37, %v15078_v8  ;;  %v8023_v37 = vld [vmem:[#allocation7] sm:$0xff] }
 0x69e   :  { %7637 = vmatpush.msra.mxu0 %v14734_v50  ;;  %7837 = vmatpush.msra.mxu3 %v14757_v13 }
 0x69f   :  { %7732 = vmatpush.msra.mxu1 %v7731_v26  ;;  %7797 = vmatpush.msra.mxu2 %v14813_v62 }
 0x6a0   :  { %7639 = vmatpush.msra.mxu0 %v14746_v30  ;;  %7839 = vmatpush.msra.mxu3 %v14776_v41 }
 0x6a1   :  { %7738 = vmatpush.msra.mxu1 %v7737_v0  ;;  %7800 = vmatpush.msra.mxu2 %v14825_v51 }
 0x6a2   :  { %7641 = vmatpush.msra.mxu0 %v14757_v13  ;;  %7841 = vmatpush.msra.mxu3 %v14790_v40 }
 0x6a3   :  { %7744 = vmatpush.msra.mxu1 %v7743_v38  ;;  %7803 = vmatpush.msra.mxu2 %v14837_v24 }
 0x6a4   :  { %7643 = vmatpush.msra.mxu0 %v14776_v41  ;;  %7843 = vmatpush.msra.mxu3 %v14803_v46 }
 0x6a5   :  { %7750 = vmatpush.msra.mxu1 %v7749_v58  ;;  %7806 = vmatpush.msra.mxu2 %v14849_v36 }
 0x6a6   :  { %7645 = vmatpush.msra.mxu0 %v14790_v40  ;;  %7845 = vmatpush.msra.mxu3 %v14815_v14 }
 0x6a7   :  { %7756 = vmatpush.msra.mxu1 %v7755_v56  ;;  %7809 = vmatpush.msra.mxu2 %v14861_v31  ;;  %v15092_v56 = vand.u32 4294901760, %v8041_v61 }
 0x6a8   :  { %7647 = vmatpush.msra.mxu0 %v14803_v46  ;;  %7847 = vmatpush.msra.mxu3 %v14827_v17 }
 0x6a9   :  { %7762 = vmatpush.msra.mxu1 %v7761_v63  ;;  %7812 = vmatpush.msra.mxu2 %v14873_v29  ;;  %v8038_v63 = vld [vmem:[#allocation7 + $0x78] sm:$0xff] }
 0x6aa   :  { %7649 = vmatpush.msra.mxu0 %v14815_v14  ;;  %7849 = vmatpush.msra.mxu3 %v14839_v18 }
 0x6ab   :  { %7764 = vmatmul.f32.vlgmr.msra.gmra.mxu1 %v14635_v7  ;;  %7815 = vmatpush.msra.mxu2 %v14883_v23 }
 0x6ac   :  { %7931 = vmatpush.msrb.mxu1 %v14683_v42  ;;  %7651 = vmatpush.msra.mxu0 %v14827_v17 }
 0x6ad   :  { %7851 = vmatpush.msra.mxu3 %v14851_v10  ;;  %7818 = vmatmul.f32.vlgmr.msra.gmra.mxu2 %v14640_v32  ;;  %v8068_v32 = vld [vmem:[#allocation7 + $0x168] sm:$0xff] }
 0x6ae   :  { %7933 = vmatpush.msrb.mxu1 %v14690_v57  ;;  %7653 = vmatpush.msra.mxu0 %v14839_v18 }
 0x6af   :  { %7853 = vmatpush.msra.mxu3 %v14863_v33 }
 0x6b0   :  { %7857 = vmatmul.f32.vlgmr.msra.gmra.mxu3 %v14645_v47  ;;  %7935 = vmatpush.msrb.mxu1 %v14700_v27  ;;  %v14986_v47 = vand.u32 4294901760, %v8068_v32  ;;  %v14995_v27 = vld [vmem:[#allocation8] sm:$0x7] }
 0x6b1   :  { %7655 = vmatpush.msra.mxu0 %v14851_v10 }
 0x6b2   :  { %7937 = vmatpush.msrb.mxu1 %v14710_v5  ;;  %v14989_v42 = vsub.f32 %v8068_v32, %v14986_v47  ;;  %8080 = vmatpush.msrb.mxu2 %v14986_v47  ;;  %v15002_v5 = vand.u32 4294901760, %v8062_v2 }
 0x6b3   :  { %7657 = vmatpush.msra.mxu0 %v14863_v33 }
 0x6b4   :  { %7663 = vmatmul.f32.vlgmr.msra.gmra.mxu0 %v14657_v49  ;;  %7939 = vmatpush.msrb.mxu1 %v14721_v4  ;;  %v8065_v49 = vld [vmem:[#allocation7 + $0x150] sm:$0xff]  ;;  %v8122_v34 = vand.u32 4294901760, %v14989_v42  ;;  %v15011_v15 = vsub.f32 %v8062_v2, %v15002_v5  ;;  %v15094_v2 = vand.u32 4294901760, %v8038_v63 }
 0x6b5   :  { %7864 = vmatpush.msrb.mxu0 %v7669_v9  ;;  %v14991_v57 = vand.u32 4294901760, %v8065_v49 }
 0x6b6   :  { %7941 = vmatpush.msrb.mxu1 %v14734_v50  ;;  %v8123_v4 = vsub.f32 %v14989_v42, %v8122_v34  ;;  %v6938_v50 = vperm.slane %v14995_v27, 0  ;;  %v8134_v19 = vand.u32 4294901760, %v15011_v15 }
 0x6b7   :  { %7868 = vmatpush.msrb.mxu0 %v7675_v54  ;;  %8082 = vmatpush.msrb.mxu2 %v14991_v57 }
 0x6b8   :  { %7943 = vmatpush.msrb.mxu1 %v14746_v30  ;;  %v8056_v30 = vld [vmem:[#allocation7 + $0x108] sm:$0xff] }
 0x6b9   :  { %7872 = vmatpush.msrb.mxu0 %v7681_v20  ;;  %8084 = vmatpush.msrb.mxu2 %v15002_v5  ;;  %v15027_v45 = vand.u32 4294901760, %v8056_v30 }
 0x6ba   :  { %7945 = vmatpush.msrb.mxu1 %v14757_v13 }
 0x6bb   :  { %7876 = vmatpush.msrb.mxu0 %v7687_v53  ;;  %v8124_v53 = vand.u32 4294901760, %v8123_v4  ;;  %8086 = vmatpush.msrb.mxu2 %v15016_v22  ;;  %v15040_v62 = vsub.f32 %v8056_v30, %v15027_v45  ;;  %v8035_v30 = vld [vmem:[#allocation7 + $0x60] sm:$0xff] }
 0x6bc   :  { %7947 = vmatpush.msrb.mxu1 %v14776_v41  ;;  %v8053_v41 = vld [vmem:[#allocation7 + $0xf0] sm:$0xff] }
 0x6bd   :  { %7880 = vmatpush.msrb.mxu0 %v7693_v3  ;;  %v15025_v3 = vsub.f32 %v8059_v28, %v15016_v22  ;;  %8125 = vmatpush.msrb.mxu3 %v8124_v53  ;;  %v8146_v24 = vand.u32 4294901760, %v15040_v62  ;;  %v15109_v53 = vsub.f32 %v8038_v63, %v15094_v2  ;;  %v15147_v63 = vand.u32 4294901760, %v8023_v37 }
 0x6be   :  { %7949 = vmatpush.msrb.mxu1 %v14790_v40  ;;  %v15034_v40 = vand.u32 4294901760, %v8053_v41  ;;  %8088 = vmatpush.msrb.mxu2 %v15027_v45 }
 0x6bf   :  { %7884 = vmatpush.msrb.mxu0 %v7699_v39  ;;  %v8135_v39 = vsub.f32 %v15011_v15, %v8134_v19  ;;  %v8147_v29 = vsub.f32 %v15040_v62, %v8146_v24 }
 0x6c0   :  { %7951 = vmatpush.msrb.mxu1 %v14803_v46  ;;  %v15045_v51 = vsub.f32 %v8053_v41, %v15034_v40  ;;  %8090 = vmatpush.msrb.mxu2 %v15034_v40 }
 0x6c1   :  { %7888 = vmatpush.msrb.mxu0 %v7705_v1  ;;  %v8148_v0 = vand.u32 4294901760, %v8147_v29  ;;  %v8026_v29 = vld [vmem:[#allocation7 + $0x18] sm:$0xff] }
 0x6c2   :  { %7953 = vmatpush.msrb.mxu1 %v14815_v14  ;;  %v8050_v14 = vld [vmem:[#allocation7 + $0xd8] sm:$0xff] }
 0x6c3   :  { %7892 = vmatpush.msrb.mxu0 %v7711_v55  ;;  %v8140_v55 = vand.u32 4294901760, %v15025_v3 }
 0x6c4   :  { %7955 = vmatpush.msrb.mxu1 %v14827_v17  ;;  %v15047_v17 = vand.u32 4294901760, %v8050_v14 }
 0x6c5   :  { %7896 = vmatpush.msrb.mxu0 %v7717_v6  ;;  %v8136_v6 = vand.u32 4294901760, %v8135_v39 }
 0x6c6   :  { %7957 = vmatpush.msrb.mxu1 %v14839_v18  ;;  %v8047_v18 = vld [vmem:[#allocation7 + $0xc0] sm:$0xff]  ;;  %v15058_v36 = vsub.f32 %v8050_v14, %v15047_v17  ;;  %8092 = vmatpush.msrb.mxu2 %v15047_v17  ;;  %v8032_v14 = vld [vmem:[#allocation7 + $0x48] sm:$0xff] }
 0x6c7   :  { %7900 = vmatpush.msrb.mxu0 %v7723_v25  ;;  %v8141_v25 = vsub.f32 %v15025_v3, %v8140_v55 }
 0x6c8   :  { %7959 = vmatpush.msrb.mxu1 %v14851_v10  ;;  %v15060_v10 = vand.u32 4294901760, %v8047_v18  ;;  %v8158_v23 = vand.u32 4294901760, %v15058_v36 }
 0x6c9   :  { %7904 = vmatpush.msrb.mxu0 %v7729_v11  ;;  %v8152_v11 = vand.u32 4294901760, %v15045_v51 }
 0x6ca   :  { %7961 = vmatpush.msrb.mxu1 %v14863_v33  ;;  %v6939_v33 = vperm.slane %v14995_v27, 1  ;;  %v15076_v26 = vsub.f32 %v8047_v18, %v15060_v10  ;;  %v8159_v38 = vsub.f32 %v15058_v36, %v8158_v23  ;;  %8094 = vmatpush.msrb.mxu2 %v15060_v10 }
 0x6cb   :  { %7908 = vmatpush.msrb.mxu0 %v7735_v43  ;;  %7963 = vmatmul.f32.vlgmr.msrb.gmra.mxu1 %v14635_v7 }
 0x6cc   :  { %8276 = vmatpush.msra.mxu1 %v14986_v47  ;;  %v8164_v58 = vand.u32 4294901760, %v15076_v26  ;;  %8096 = vmatpush.msrb.mxu2 %v15078_v8 }
 0x6cd   :  { %7912 = vmatpush.msrb.mxu0 %v7741_v16  ;;  %v8142_v16 = vand.u32 4294901760, %v8141_v25  ;;  %v8182_v25 = vand.u32 4294901760, %v15109_v53 }
 0x6ce   :  { %8278 = vmatpush.msra.mxu1 %v14991_v57  ;;  %v8165_v4 = vsub.f32 %v15076_v26, %v8164_v58  ;;  %8098 = vmatpush.msrb.mxu2 %v15092_v56 }
 0x6cf   :  { %7916 = vmatpush.msrb.mxu0 %v7747_v48  ;;  %v8153_v48 = vsub.f32 %v15045_v51, %v8152_v11 }
 0x6d0   :  { %8280 = vmatpush.msra.mxu1 %v15002_v5  ;;  %v8166_v39 = vand.u32 4294901760, %v8165_v4  ;;  %8100 = vmatpush.msrb.mxu2 %v15094_v2 }
 0x6d1   :  { %7920 = vmatpush.msrb.mxu0 %v7753_v12 }
 0x6d2   :  { %8282 = vmatpush.msra.mxu1 %v15016_v22 }
 0x6d3   :  { %7924 = vmatpush.msrb.mxu0 %v7759_v35  ;;  %v8154_v35 = vand.u32 4294901760, %v8153_v48 }
 0x6d4   :  { %7926 = vmatmul.f32.vlgmr.msrb.gmra.mxu0 %v14635_v7  ;;  %v14999_v7 = vsub.f32 %v8065_v49, %v14991_v57  ;;  %8284 = vmatpush.msra.mxu1 %v15027_v45  ;;  %v8160_v49 = vand.u32 4294901760, %v8159_v38 }
 0x6d5   :  { %8223 = vmatpush.msra.mxu0 %v14989_v42 }
 0x6d6   :  { %v8128_v54 = vand.u32 4294901760, %v14999_v7  ;;  %8286 = vmatpush.msra.mxu1 %v15034_v40 }
 0x6d7   :  { %8226 = vmatpush.msra.mxu0 %v14999_v7 }
 0x6d8   :  { %v8129_v13 = vsub.f32 %v14999_v7, %v8128_v54  ;;  %8288 = vmatpush.msra.mxu1 %v15047_v17 }
 0x6d9   :  { %8229 = vmatpush.msra.mxu0 %v15011_v15  ;;  %v8057_v15 = vld [vmem:[#allocation7 + $0x110] sm:$0xff] }
 0x6da   :  { %v8130_v52 = vand.u32 4294901760, %v8129_v13  ;;  %8290 = vmatpush.msra.mxu1 %v15060_v10  ;;  %v15111_v13 = vand.u32 4294901760, %v8035_v30 }
 0x6db   :  { %8232 = vmatpush.msra.mxu0 %v15025_v3 }
 0x6dc   :  { %8131 = vmatpush.msrb.mxu3 %v8130_v52  ;;  %8292 = vmatpush.msra.mxu1 %v15078_v8  ;;  %v15123_v18 = vsub.f32 %v8035_v30, %v15111_v13 }
 0x6dd   :  { %8235 = vmatpush.msra.mxu0 %v15040_v62  ;;  %8102 = vmatpush.msrb.mxu2 %v15111_v13 }
 0x6de   :  { %8137 = vmatpush.msrb.mxu3 %v8136_v6  ;;  %8294 = vmatpush.msra.mxu1 %v15092_v56 }
 0x6df   :  { %8238 = vmatpush.msra.mxu0 %v15045_v51  ;;  %v8045_v51 = vld [vmem:[#allocation7 + $0xb0] sm:$0xff] }
 0x6e0   :  { %8143 = vmatpush.msrb.mxu3 %v8142_v16  ;;  %8296 = vmatpush.msra.mxu1 %v15094_v2  ;;  %v8029_v16 = vld [vmem:[#allocation7 + $0x30] sm:$0xff] }
 0x6e1   :  { %8241 = vmatpush.msra.mxu0 %v15058_v36  ;;  %v15143_v38 = vand.u32 4294901760, %v8029_v16 }
 0x6e2   :  { %8149 = vmatpush.msrb.mxu3 %v8148_v0  ;;  %v8188_v0 = vand.u32 4294901760, %v15123_v18  ;;  %8298 = vmatpush.msra.mxu1 %v15111_v13 }
 0x6e3   :  { %v7083_v1 = vpop.f32.mrf.mxu1  ;;  %8244 = vmatpush.msra.mxu0 %v15076_v26 }
 0x6e4   :  { %8155 = vmatpush.msrb.mxu3 %v8154_v35 }
 0x6e5   :  { %8247 = vmatpush.msra.mxu0 %v15089_v44 }
 0x6e6   :  { %8161 = vmatpush.msrb.mxu3 %v8160_v49 }
 0x6e8   :  { %8167 = vmatpush.msrb.mxu3 %v8166_v39 }
 0x6eb   :  { %v6982_v9 = vpop.f32.mrf.mxu0  ;;  %v7137_v20 = vpop.f32.mrf.mxu2 }
 0x6ec   :  { %v6983_v21 = vadd.f32 %v6982_v9, %v6938_v50  ;;  %v15098_v9 = vpop.f32.mrf.mxu1  ;;  %v8170_v50 = vand.u32 4294901760, %v15089_v44 }
 0x6ed   :  { %v15036_v46 = vpop.f32.mrf.mxu3 }
 0x6ee   :  { %v7084_v43 = vadd.f32 %v7083_v1, %v6983_v21  ;;  %v8171_v1 = vsub.f32 %v15089_v44, %v8170_v50 }
 0x6f0   :  { %v7138_v60 = vadd.f32 %v7137_v20, %v7084_v43  ;;  %v15105_v20 = vsub.f32 %v8041_v61, %v15092_v56  ;;  %v15125_v43 = vand.u32 4294901760, %v8032_v14 }
 0x6f2   :  { %v7177_v41 = vadd.f32 %v15036_v46, %v7138_v60  ;;  %v8176_v21 = vand.u32 4294901760, %v15105_v20  ;;  %8250 = vmatpush.msra.mxu0 %v15105_v20  ;;  %v8172_v46 = vand.u32 4294901760, %v8171_v1  ;;  %v15138_v61 = vsub.f32 %v8032_v14, %v15125_v43  ;;  %8300 = vmatpush.msra.mxu1 %v15125_v43 }
 0x6f3   :  { %v15145_v60 = vand.u32 4294901760, %v8026_v29  ;;  %8104 = vmatpush.msrb.mxu2 %v15125_v43 }
 0x6f4   :  { %v7323_v12 = vpop.f32.mrf.mxu2  ;;  %8253 = vmatpush.msra.mxu0 %v15109_v53  ;;  %8173 = vmatpush.msrb.mxu3 %v8172_v46  ;;  %v8194_v4 = vand.u32 4294901760, %v15138_v61 }
 0x6f5   :  { %v15063_v31 = vpop.f32.mrf.mxu0  ;;  %v7324_v32 = vadd.f32 %v7323_v12, %v6939_v33  ;;  %v8177_v33 = vsub.f32 %v15105_v20, %v8176_v21  ;;  %v8183_v12 = vsub.f32 %v15109_v53, %v8182_v25  ;;  %8302 = vmatpush.msra.mxu1 %v15143_v38  ;;  %8106 = vmatpush.msrb.mxu2 %v15143_v38 }
 0x6f6   :  { %8256 = vmatpush.msra.mxu0 %v15123_v18  ;;  %v8195_v14 = vsub.f32 %v15138_v61, %v8194_v4 }
 0x6f7   :  { %v7424_v28 = vpop.f32.mrf.mxu3  ;;  %v8178_v35 = vand.u32 4294901760, %v8177_v33  ;;  %v8184_v49 = vand.u32 4294901760, %v8183_v12  ;;  %8304 = vmatpush.msra.mxu1 %v15145_v60  ;;  %8108 = vmatpush.msrb.mxu2 %v15145_v60 }
 0x6f8   :  { %v7425_v6 = vadd.f32 %v7424_v28, %v7324_v32  ;;  %v7246_v32 = vadd.f32 %v15063_v31, %v7177_v41  ;;  %v8189_v28 = vsub.f32 %v15123_v18, %v8188_v0  ;;  %8259 = vmatpush.msra.mxu0 %v15138_v61  ;;  %v15161_v31 = vsub.f32 %v8026_v29, %v15145_v60 }
 0x6f9   :  { %8179 = vmatpush.msrb.mxu3 %v8178_v35  ;;  %v15164_v41 = vsub.f32 %v8023_v37, %v15147_v63  ;;  %v8196_v29 = vand.u32 4294901760, %v8195_v14  ;;  %8306 = vmatpush.msra.mxu1 %v15147_v63  ;;  %v8066_v14 = vld [vmem:[#allocation7 + $0x158] sm:$0xff] }
 0x6fa   :  { %v8190_v1 = vand.u32 4294901760, %v8189_v28  ;;  %v15874_v46 = vand.u32 4294901760, %v15161_v31  ;;  %8110 = vmatpush.msrb.mxu2 %v15147_v63 }
 0x6fb   :  { %8185 = vmatpush.msrb.mxu3 %v8184_v49  ;;  %v15873_v33 = vand.u32 4294901760, %v15164_v41  ;;  %v8069_v49 = vld [vmem:[#allocation7 + $0x170] sm:$0xff] }
 0x6fc   :  { %v8207_v12 = vsub.f32 %v15161_v31, %v15874_v46  ;;  %8317 = vmatpush.msra.mxu2 %v8122_v34 }
 0x6fd   :  { %8191 = vmatpush.msrb.mxu3 %v8190_v1  ;;  %v8213_v35 = vsub.f32 %v15164_v41, %v15873_v33  ;;  %v15193_v1 = vand.u32 4294901760, %v8069_v49 }
 0x6fe   :  { %8321 = vmatpush.msra.mxu2 %v8128_v54 }
 0x6ff   :  { %8197 = vmatpush.msrb.mxu3 %v8196_v29  ;;  %v15202_v29 = vand.u32 4294901760, %v8066_v14 }
 0x700   :  { %8325 = vmatpush.msra.mxu2 %v8134_v19  ;;  %v15227_v19 = vand.u32 4294901760, %v8057_v15 }
 0x702   :  { %8329 = vmatpush.msra.mxu2 %v8140_v55  ;;  %v15244_v3 = vsub.f32 %v8057_v15, %v15227_v19 }
 0x704   :  { %8333 = vmatpush.msra.mxu2 %v8146_v24 }
 0x706   :  { %v7517_v30 = vpop.f32.mrf.mxu1  ;;  %8337 = vmatpush.msra.mxu2 %v8152_v11 }
 0x708   :  { %8341 = vmatpush.msra.mxu2 %v8158_v23  ;;  %v8042_v23 = vld [vmem:[#allocation7 + $0x98] sm:$0xff] }
 0x70a   :  { %8345 = vmatpush.msra.mxu2 %v8164_v58 }
 0x70c   :  { %8349 = vmatpush.msra.mxu2 %v8170_v50  ;;  %v8036_v50 = vld [vmem:[#allocation7 + $0x68] sm:$0xff] }
 0x70e   :  { %v7586_v37 = vpop.f32.mrf.mxu2  ;;  %8353 = vmatpush.msra.mxu2 %v8176_v21  ;;  %v15327_v21 = vand.u32 4294901760, %v8036_v50 }
 0x710   :  { %v7478_v52 = vpop.f32.mrf.mxu0  ;;  %8357 = vmatpush.msra.mxu2 %v8182_v25  ;;  %v8030_v25 = vld [vmem:[#allocation7 + $0x38] sm:$0xff] }
 0x711   :  { %v7479_v48 = vadd.f32 %v7478_v52, %v7425_v6  ;;  %v15157_v52 = vsub.f32 %v8029_v16, %v15143_v38  ;;  %v7283_v16 = vadd.f32 %v15098_v9, %v7246_v32  ;;  %v15188_v9 = vld [vmem:[#allocation2 + $0x12] sm:$0x7]  ;;  %v7623_v46 = vpop.f32.mrf.mxu3 }
 0x712   :  { %8361 = vmatpush.msra.mxu2 %v8188_v0  ;;  %v8027_v0 = vld [vmem:[#allocation7 + $0x20] sm:$0xff] }
 0x713   :  { %v7518_v39 = vadd.f32 %v7517_v30, %v7479_v48  ;;  %v15875_v6 = vand.u32 4294901760, %v15157_v52  ;;  %8262 = vmatpush.msra.mxu0 %v15157_v52  ;;  %v8208_v30 = vand.u32 4294901760, %v8207_v12  ;;  %v7967_v33 = vadd.f32 %v7283_v16, %v15188_v9 }
 0x714   :  { %v7988_v12 = vrot.slane %v15188_v9, 1  ;;  %v15212_v16 = vsub.f32 %v8066_v14, %v15202_v29  ;;  %v8054_v14 = vld [vmem:[#allocation7 + $0xf8] sm:$0xff]  ;;  %8365 = vmatpush.msra.mxu2 %v8194_v4  ;;  %v15965_v61 = vand.u32 4294901760, %v15157_v52 }
 0x715   :  { %v8201_v48 = vsub.f32 %v15157_v52, %v15875_v6  ;;  %8265 = vmatpush.msra.mxu0 %v15161_v31  ;;  %v7587_v32 = vadd.f32 %v7586_v37, %v7518_v39  ;;  %v8214_v39 = vand.u32 4294901760, %v8213_v35  ;;  %v15200_v37 = vsub.f32 %v8069_v49, %v15193_v1  ;;  %v8063_v6 = vld [vmem:[#allocation7 + $0x140] sm:$0xff]  ;;  %v8060_v35 = vld [vmem:[#allocation7 + $0x128] sm:$0xff] }
 0x716   :  { %v15209_v34 = vand.u32 4294901760, %v8063_v6  ;;  %v8469_v49 = vand.u32 4294901760, %v15212_v16  ;;  %8369 = vmatpush.msra.mxu2 %v15965_v61 }
 0x717   :  { %v8202_v28 = vand.u32 4294901760, %v8201_v48  ;;  %8268 = vmatpush.msra.mxu0 %v15164_v41  ;;  %v7624_v48 = vadd.f32 %v7623_v46, %v7587_v32  ;;  %v8463_v42 = vand.u32 4294901760, %v15200_v37  ;;  %v9189_v46 = vmul.f32 -1.442695, %v7967_v33 }
 0x718   :  { %v15216_v32 = vand.u32 4294901760, %v8060_v35 }
 0x719   :  { %8203 = vmatpush.msrb.mxu3 %v8202_v28  ;;  %8421 = vmatpush.msrb.mxu0 %v15193_v1  ;;  %v7990_v7 = vadd.f32 %v7988_v12, %v7624_v48  ;;  %v8464_v54 = vsub.f32 %v15200_v37, %v8463_v42  ;;  %v15225_v28 = vsub.f32 %v8063_v6, %v15209_v34  ;;  %9264 = vpow2.f32 %v9189_v46 }
 0x71a   :  { %v15230_v33 = vsub.f32 %v8060_v35, %v15216_v32  ;;  %v15241_v48 = vand.u32 4294901760, %v8054_v14  ;;  %v8051_v35 = vld [vmem:[#allocation7 + $0xe0] sm:$0xff] }
 0x71b   :  { %8209 = vmatpush.msrb.mxu3 %v8208_v30  ;;  %8423 = vmatpush.msrb.mxu0 %v15202_v29  ;;  %v8470_v30 = vsub.f32 %v15212_v16, %v8469_v49  ;;  %v8475_v6 = vand.u32 4294901760, %v15225_v28  ;;  %v15257_v62 = vand.u32 4294901760, %v8051_v35 }
 0x71c   :  { %v15260_v24 = vsub.f32 %v8054_v14, %v15241_v48 }
 0x71d   :  { %8215 = vmatpush.msrb.mxu3 %v8214_v39  ;;  %8425 = vmatpush.msrb.mxu0 %v15209_v34  ;;  %v15876_v39 = vand.u32 4294901760, %v15230_v33  ;;  %v8471_v55 = vand.u32 4294901760, %v8470_v30  ;;  %v8476_v12 = vsub.f32 %v15225_v28, %v8475_v6 }
 0x71e   :  { %v8493_v30 = vand.u32 4294901760, %v15260_v24 }
 0x71f   :  { %8384 = vmatpush.msra.mxu3 %v14986_v47  ;;  %v8465_v47 = vand.u32 4294901760, %v8464_v54  ;;  %8427 = vmatpush.msrb.mxu0 %v15216_v32  ;;  %v8482_v46 = vsub.f32 %v15230_v33, %v15876_v39  ;;  %v8487_v54 = vand.u32 4294901760, %v15244_v3  ;;  %v9265_v11 = vpop.eup %9264 }
 0x720   :  { %v15299_v26 = vadd.f32 1.0, %v9265_v11  ;;  %v8033_v11 = vld [vmem:[#allocation7 + $0x50] sm:$0xff] }
 0x721   :  { %8386 = vmatpush.msra.mxu3 %v14991_v57  ;;  %v9190_v57 = vmul.f32 -1.442695, %v7990_v7  ;;  %8466 = vmatpush.msrb.mxu1 %v8465_v47  ;;  %v8048_v7 = vld [vmem:[#allocation7 + $0xc8] sm:$0xff]  ;;  %v8483_v15 = vand.u32 4294901760, %v8482_v46  ;;  %v8488_v47 = vsub.f32 %v15244_v3, %v8487_v54 }
 0x722   :  { %8429 = vmatpush.msrb.mxu0 %v15227_v19  ;;  %v15270_v39 = vand.u32 4294901760, %v8048_v7  ;;  %vm7977_vm1 = vweird.f32 %v15299_v26 }
 0x723   :  { %8388 = vmatpush.msra.mxu3 %v15002_v5  ;;  %8472 = vmatpush.msrb.mxu1 %v8471_v55  ;;  %v8477_v5 = vand.u32 4294901760, %v8476_v12  ;;  %9266 = vpow2.f32 %v9190_v57  ;;  %v8489_v14 = vand.u32 4294901760, %v8488_v47  ;;  %v8494_v55 = vsub.f32 %v15260_v24, %v8493_v30 }
 0x724   :  { %8431 = vmatpush.msrb.mxu0 %v15241_v48  ;;  %v15282_v12 = vand.u32 4294901760, %v8045_v51  ;;  %v15289_v36 = vsub.f32 %v8048_v7, %v15270_v39  ;;  %9268 = vrcp.f32 %v15299_v26 }
 0x725   :  { %8390 = vmatpush.msra.mxu3 %v15016_v22  ;;  %8478 = vmatpush.msrb.mxu1 %v8477_v5  ;;  %v15276_v22 = vsub.f32 %v8051_v35, %v15257_v62  ;;  %v8495_v57 = vand.u32 4294901760, %v8494_v55  ;;  %v15292_v35 = vand.u32 4294901760, %v8042_v23  ;;  %v8039_v5 = vld [vmem:[#allocation7 + $0x80] sm:$0xff] }
 0x726   :  { %8433 = vmatpush.msrb.mxu0 %v15257_v62  ;;  %v15295_v46 = vsub.f32 %v8045_v51, %v15282_v12  ;;  %v8505_v58 = vand.u32 4294901760, %v15289_v36  ;;  %v15318_v51 = vand.u32 4294901760, %v8039_v5 }
 0x727   :  { %8392 = vmatpush.msra.mxu3 %v15027_v45  ;;  %8484 = vmatpush.msrb.mxu1 %v8483_v15  ;;  %v8499_v45 = vand.u32 4294901760, %v15276_v22  ;;  %v15321_v20 = vsub.f32 %v8042_v23, %v15292_v35 }
 0x728   :  { %8435 = vmatpush.msrb.mxu0 %v15270_v39  ;;  %v8511_v7 = vand.u32 4294901760, %v15295_v46  ;;  %v15332_v23 = vsub.f32 %v8039_v5, %v15318_v51 }
 0x729   :  { %8394 = vmatpush.msra.mxu3 %v15034_v40  ;;  %8490 = vmatpush.msrb.mxu1 %v8489_v14  ;;  %v8500_v40 = vsub.f32 %v15276_v22, %v8499_v45  ;;  %v9267_v15 = vpop.eup %9266  ;;  %v8517_v55 = vand.u32 4294901760, %v15321_v20 }
 0x72a   :  { %8437 = vmatpush.msrb.mxu0 %v15282_v12  ;;  %v8512_v47 = vsub.f32 %v15295_v46, %v8511_v7  ;;  %v15338_v53 = vadd.f32 1.0, %v9267_v15  ;;  %v15878_v5 = vand.u32 4294901760, %v15332_v23  ;;  %v15367_v4 = vpop.eup %9268 }
 0x72b   :  { %8396 = vmatpush.msra.mxu3 %v15047_v17  ;;  %8496 = vmatpush.msrb.mxu1 %v8495_v57  ;;  %v8501_v44 = vand.u32 4294901760, %v8500_v40  ;;  %v8506_v17 = vsub.f32 %v15289_v36, %v8505_v58  ;;  %v15334_v57 = vand.u32 4294901760, %v8033_v11  ;;  %v8518_v40 = vsub.f32 %v15321_v20, %v8517_v55 }
 0x72c   :  { %8439 = vmatpush.msrb.mxu0 %v15292_v35  ;;  %v8513_v14 = vand.u32 4294901760, %v8512_v47  ;;  %v15363_v47 = vand.u32 4294901760, %v8027_v0  ;;  %9270 = vrcp.f32 %v15338_v53  ;;  %vm7978_vm0 = vweird.f32 %v15367_v4 }
 0x72d   :  { %8398 = vmatpush.msra.mxu3 %v15060_v10  ;;  %8502 = vmatpush.msrb.mxu1 %v8501_v44  ;;  %v8507_v10 = vand.u32 4294901760, %v8506_v17  ;;  %v15349_v44 = vand.u32 4294901760, %v8030_v25  ;;  %v15352_v18 = vsub.f32 %v8033_v11, %v15334_v57  ;;  %v8519_v17 = vand.u32 4294901760, %v8518_v40  ;;  %vm7979_vm2 = vmor %vm7977_vm1, %vm7978_vm0 }
 0x72e   :  { %8441 = vmatpush.msrb.mxu0 %v15318_v51  ;;  %v6940_v11 = vperm.slane %v14995_v27, 2  ;;  %v15966_v27 = vand.u32 4294901760, %v15161_v31  ;;  %v15967_v31 = vand.u32 4294901760, %v15164_v41  ;;  %vm8000_vm5 = vweird.f32 %v15338_v53 }
 0x72f   :  { %8400 = vmatpush.msra.mxu3 %v15078_v8  ;;  %8508 = vmatpush.msrb.mxu1 %v8507_v10  ;;  %v15342_v8 = vsub.f32 %v8036_v50, %v15327_v21  ;;  %v8524_v50 = vsub.f32 %v15332_v23, %v15878_v5  ;;  %v15880_v15 = vand.u32 4294901760, %v15352_v18  ;;  %v15374_v10 = vsub.f32 %v8030_v25, %v15349_v44 }
 0x730   :  { %8443 = vmatpush.msrb.mxu0 %v15327_v21  ;;  %v15387_v5 = vsub.f32 %v8027_v0, %v15363_v47  ;;  %8373 = vmatpush.msra.mxu2 %v15966_v27 }
 0x731   :  { %8402 = vmatpush.msra.mxu3 %v15092_v56  ;;  %8514 = vmatpush.msrb.mxu1 %v8513_v14  ;;  %v15877_v56 = vand.u32 4294901760, %v15342_v8  ;;  %v8525_v14 = vand.u32 4294901760, %v8524_v50  ;;  %v8536_v52 = vsub.f32 %v15352_v18, %v15880_v15  ;;  %v7664_v40 = vpop.f32.mrf.mxu0  ;;  %v15879_v25 = vand.u32 4294901760, %v15374_v10 }
 0x732   :  { %8445 = vmatpush.msrb.mxu0 %v15334_v57  ;;  %8377 = vmatpush.msra.mxu2 %v15967_v31  ;;  %v7665_v27 = vadd.f32 %v7664_v40, %v6940_v11  ;;  %v7819_v31 = vpop.f32.mrf.mxu2 }
 0x733   :  { %8404 = vmatpush.msra.mxu3 %v15094_v2  ;;  %v8530_v2 = vsub.f32 %v15342_v8, %v15877_v56  ;;  %8520 = vmatpush.msrb.mxu1 %v8519_v17  ;;  %v7973_v17 = vmul.f32 %v15367_v4, %v15299_v26  ;;  %v8537_v50 = vand.u32 4294901760, %v8536_v52 }
 0x734   :  { %8447 = vmatpush.msrb.mxu0 %v15349_v44 }
 0x735   :  { %8406 = vmatpush.msra.mxu3 %v15111_v13  ;;  %v8024_v13 = vld [vmem:[#allocation7 + $0x8] sm:$0xff]  ;;  %v8531_v61 = vand.u32 4294901760, %v8530_v2  ;;  %8526 = vmatpush.msrb.mxu1 %v8525_v14  ;;  %v15881_v2 = vand.u32 4294901760, %v15387_v5  ;;  %v7974_v15 = vsub.f32 1.0, %v7973_v17 }
 0x736   :  { %v15384_v56 = vand.u32 4294901760, %v8024_v13  ;;  %8449 = vmatpush.msrb.mxu0 %v15363_v47 }
 0x737   :  { %8408 = vmatpush.msra.mxu3 %v15125_v43  ;;  %v8542_v43 = vsub.f32 %v15374_v10, %v15879_v25  ;;  %8532 = vmatpush.msrb.mxu1 %v8531_v61  ;;  %v9271_v25 = vpop.eup %9270 }
 0x738   :  { %v15400_v0 = vsub.f32 %v8024_v13, %v15384_v56  ;;  %8451 = vmatpush.msrb.mxu0 %v15384_v56  ;;  %v7765_v13 = vpop.f32.mrf.mxu1  ;;  %vm8001_vm4 = vweird.f32 %v9271_v25 }
 0x739   :  { %8410 = vmatpush.msra.mxu3 %v15143_v38  ;;  %v8543_v14 = vand.u32 4294901760, %v8542_v43  ;;  %v8548_v38 = vsub.f32 %v15387_v5, %v15881_v2  ;;  %8538 = vmatpush.msrb.mxu1 %v8537_v50  ;;  %v7766_v40 = vadd.f32 %v7765_v13, %v7665_v27  ;;  %v7975_v43 = vmul.f32 %v15367_v4, %v7974_v15  ;;  %vm8002_vm6 = vmor %vm8000_vm5, %vm8001_vm4 }
 0x73a   :  { %v15882_v52 = vand.u32 4294901760, %v15400_v0  ;;  %v7981_v27 = vand.u32 2147483647, %v15299_v26 }
 0x73b   :  { %8412 = vmatpush.msra.mxu3 %v15145_v60  ;;  %v8549_v41 = vand.u32 4294901760, %v8548_v38  ;;  %8544 = vmatpush.msrb.mxu1 %v8543_v14  ;;  %v7996_v60 = vmul.f32 %v9271_v25, %v15338_v53  ;;  %v7820_v2 = vadd.f32 %v7819_v31, %v7766_v40  ;;  %v7976_v50 = vadd.f32 %v15367_v4, %v7975_v43 }
 0x73c   :  { %v8554_v11 = vsub.f32 %v15400_v0, %v15882_v52  ;;  %v7983_v38 = vand.u32 2147483648, %v15299_v26  ;;  %vm7982_vm3 = vcmp.eq.f32.partialorder %v7981_v27, 8.507059e+37  ;;  %v8004_v26 = vand.u32 2147483647, %v15338_v53 }
 0x73d   :  { %8414 = vmatpush.msra.mxu3 %v15147_v63  ;;  %8550 = vmatpush.msrb.mxu1 %v8549_v41  ;;  %v7997_v17 = vsub.f32 1.0, %v7996_v60  ;;  %v7858_v63 = vpop.f32.mrf.mxu3  ;;  %v7980_v41 = vsel %vm7979_vm2, %v15367_v4, %v7976_v50 }
 0x73e   :  { %v8555_v61 = vand.u32 4294901760, %v8554_v11  ;;  %v7859_v52 = vadd.f32 %v7858_v63, %v7820_v2  ;;  %v7984_v40 = vor.u32 1.1754944e-38, %v7983_v38  ;;  %v8006_v2 = vand.u32 2147483648, %v15338_v53 }
 0x73f   :  { %v7998_v14 = vmul.f32 %v9271_v25, %v7997_v17  ;;  %vm8005_vm7 = vcmp.eq.f32.partialorder %v8004_v26, 8.507059e+37  ;;  %v15973_v26 = vand.u32 4294901760, %v15387_v5 }
 0x740   :  { %8556 = vmatpush.msrb.mxu1 %v8555_v61  ;;  %v8011_v61 = vrot.slane %v15188_v9, 2  ;;  %v7985_v31 = vsel %vm7982_vm3, %v7984_v40, %v7980_v41  ;;  %v8007_v4 = vor.u32 1.1754944e-38, %v8006_v2 }
 0x741   :  { %v7999_v43 = vadd.f32 %v9271_v25, %v7998_v14 }
 0x743   :  { %v8003_v17 = vsel %vm8002_vm6, %v9271_v25, %v7999_v43 }
 0x744   :  { %v8008_v50 = vsel %vm8005_vm7, %v8007_v4, %v8003_v17  ;;  %v8040_v4 = vld [vmem:[#allocation7 + $0x88] sm:$0xff] }
 0x745   :  { %v8015_v38 = vsub.f32 1.0, %v8008_v50  ;;  %v8017_v14 = vmul.f32 %v8008_v50, %v14631_v59 }
 0x748   :  { %v7964_v11 = vpop.f32.mrf.mxu1 }
 0x751   :  { %v7927_v13 = vpop.f32.mrf.mxu0 }
 0x752   :  { %v7928_v15 = vadd.f32 %v7927_v13, %v7859_v52 }
 0x754   :  { %v7965_v60 = vadd.f32 %v7964_v11, %v7928_v15 }
 0x756   :  { %v8010_v63 = vmul.f32 %v7985_v31, %v7965_v60  ;;  %v8046_v60 = vld [vmem:[#allocation7 + $0xb8] sm:$0xff] }
 0x758   :  { %v8013_v52 = vadd.f32 %v8011_v61, %v8010_v63  ;;  %v15972_v61 = vand.u32 4294901760, %v15374_v10  ;;  %v15572_v63 = vand.u32 4294901760, %v8046_v60 }
 0x75a   :  { %9272 = vtanh.f32 %v8013_v52 }
 0x760   :  { %v9273_v27 = vpop.eup %9272 }
 0x761   :  { %v8016_v9 = vmul.f32 %v9273_v27, %v8015_v38 }
 0x763   :  { %v15427_v13 = vadd.f32 %v8017_v14, %v8016_v9  ;;  %v8037_v14 = vld [vmem:[#allocation7 + $0x70] sm:$0xff] }
 0x765   :  { %8020 = vst [vmem:[#allocation10 + $0x6] sm:$0x1] %v15427_v13  ;;  %v15431_v15 = vand.u32 4294901760, %v15427_v13 }
 0x767   :  { %8217 = vmatmul.f32.vlgmr.msrb.gmra.mxu3 %v15431_v15  ;;  %v15436_v53 = vsub.f32 %v15427_v13, %v15431_v15 }
 0x768   :  { %8617 = vmatpush.msrb.mxu3 %v15193_v1 }
 0x769   :  { %8271 = vmatmul.f32.vlgmr.msra.gmra.mxu0 %v15436_v53  ;;  %v15441_v25 = vand.u32 4294901760, %v15436_v53 }
 0x76a   :  { %8619 = vmatpush.msrb.mxu3 %v15202_v29  ;;  %8658 = vmatpush.msra.mxu0 %v8463_v42  ;;  %v15968_v42 = vand.u32 4294901760, %v15230_v33 }
 0x76b   :  { %8310 = vmatmul.f32.vlgmr.msra.gmra.mxu1 %v15441_v25  ;;  %v8114_v59 = vsub.f32 %v15436_v53, %v15441_v25 }
 0x76c   :  { %8621 = vmatpush.msrb.mxu3 %v15209_v34  ;;  %8662 = vmatpush.msra.mxu0 %v8469_v49 }
 0x76d   :  { %8725 = vmatpush.msra.mxu1 %v15193_v1  ;;  %v15453_v41 = vand.u32 4294901760, %v8114_v59  ;;  %v8070_v1 = vld [vmem:[#allocation7 + $0x178] sm:$0xff]  ;;  %v15599_v59 = vand.u32 4294901760, %v8040_v4 }
 0x76e   :  { %8623 = vmatpush.msrb.mxu3 %v15216_v32  ;;  %8666 = vmatpush.msra.mxu0 %v8475_v6 }
 0x76f   :  { %8727 = vmatpush.msra.mxu1 %v15202_v29  ;;  %8116 = vmatmul.f32.vlgmr.msrb.gmra.mxu2 %v15453_v41  ;;  %v15479_v29 = vand.u32 4294901760, %v8070_v1 }
 0x770   :  { %8416 = vmatmul.f32.vlgmr.msra.gmra.mxu3 %v15431_v15  ;;  %8564 = vmatpush.msrb.mxu2 %v15200_v37  ;;  %v8067_v37 = vld [vmem:[#allocation7 + $0x160] sm:$0xff] }
 0x771   :  { %8625 = vmatpush.msrb.mxu3 %v15227_v19  ;;  %8670 = vmatpush.msra.mxu0 %v15968_v42  ;;  %v15494_v49 = vsub.f32 %v8070_v1, %v15479_v29 }
 0x772   :  { %8729 = vmatpush.msra.mxu1 %v15209_v34  ;;  %8457 = vmatmul.f32.vlgmr.msrb.gmra.mxu0 %v15453_v41  ;;  %v8064_v34 = vld [vmem:[#allocation7 + $0x148] sm:$0xff] }
 0x773   :  { %8567 = vmatpush.msrb.mxu2 %v15212_v16  ;;  %8627 = vmatpush.msrb.mxu3 %v15241_v48  ;;  %v15486_v16 = vand.u32 4294901760, %v8067_v37 }
 0x774   :  { %8674 = vmatpush.msra.mxu0 %v8487_v54  ;;  %8731 = vmatpush.msra.mxu1 %v15216_v32  ;;  %v8061_v32 = vld [vmem:[#allocation7 + $0x130] sm:$0xff]  ;;  %v8055_v54 = vld [vmem:[#allocation7 + $0x100] sm:$0xff] }
 0x775   :  { %8558 = vmatmul.f32.vlgmr.msrb.gmra.mxu1 %v15431_v15  ;;  %8570 = vmatpush.msrb.mxu2 %v15225_v28  ;;  %v15496_v28 = vand.u32 4294901760, %v8064_v34  ;;  %v15506_v6 = vand.u32 4294901760, %v8061_v32 }
 0x776   :  { %8629 = vmatpush.msrb.mxu3 %v15257_v62  ;;  %8678 = vmatpush.msra.mxu0 %v8493_v30 }
 0x777   :  { %8733 = vmatpush.msra.mxu1 %v15227_v19  ;;  %8573 = vmatpush.msrb.mxu2 %v15230_v33  ;;  %v8058_v19 = vld [vmem:[#allocation7 + $0x118] sm:$0xff]  ;;  %v15504_v33 = vsub.f32 %v8067_v37, %v15486_v16 }
 0x778   :  { %8631 = vmatpush.msrb.mxu3 %v15270_v39  ;;  %8682 = vmatpush.msra.mxu0 %v8499_v45  ;;  %v8049_v45 = vld [vmem:[#allocation7 + $0xd0] sm:$0xff]  ;;  %v8034_v37 = vld [vmem:[#allocation7 + $0x58] sm:$0xff] }
 0x779   :  { %8735 = vmatpush.msra.mxu1 %v15241_v48  ;;  %8379 = vmatmul.f32.vlgmr.msra.gmra.mxu2 %v15431_v15  ;;  %v8804_v48 = vand.u32 4294901760, %v15494_v49  ;;  %v8810_v30 = vand.u32 4294901760, %v15504_v33  ;;  %v15553_v40 = vand.u32 4294901760, %v8049_v45 }
 0x77a   :  { %8576 = vmatpush.msrb.mxu2 %v15244_v3  ;;  %8633 = vmatpush.msrb.mxu3 %v15282_v12  ;;  %v15515_v3 = vsub.f32 %v8064_v34, %v15496_v28 }
 0x77b   :  { %8686 = vmatpush.msra.mxu0 %v8505_v58  ;;  %8737 = vmatpush.msra.mxu1 %v15257_v62  ;;  %v8052_v62 = vld [vmem:[#allocation7 + $0xe8] sm:$0xff]  ;;  %v15581_v17 = vsub.f32 %v8049_v45, %v15553_v40 }
 0x77c   :  { %8579 = vmatpush.msrb.mxu2 %v15260_v24  ;;  %8635 = vmatpush.msrb.mxu3 %v15292_v35  ;;  %v15969_v24 = vand.u32 4294901760, %v15332_v23  ;;  %v8816_v58 = vand.u32 4294901760, %v15515_v3 }
 0x77d   :  { %8690 = vmatpush.msra.mxu0 %v8511_v7  ;;  %8739 = vmatpush.msra.mxu1 %v15270_v39  ;;  %v15517_v39 = vand.u32 4294901760, %v8058_v19  ;;  %v8846_v1 = vand.u32 4294901760, %v15581_v17 }
 0x77e   :  { %8582 = vmatpush.msrb.mxu2 %v15276_v22  ;;  %8637 = vmatpush.msrb.mxu3 %v15318_v51  ;;  %v15526_v22 = vsub.f32 %v8061_v32, %v15506_v6  ;;  %v8817_v43 = vsub.f32 %v15515_v3, %v8816_v58  ;;  %v15611_v32 = vand.u32 4294901760, %v8037_v14 }
 0x77f   :  { %8694 = vmatpush.msra.mxu0 %v8517_v55  ;;  %8741 = vmatpush.msra.mxu1 %v15282_v12  ;;  %v15530_v12 = vand.u32 4294901760, %v8055_v54  ;;  %v15540_v7 = vsub.f32 %v8058_v19, %v15517_v39  ;;  %v15971_v55 = vand.u32 4294901760, %v15352_v18  ;;  %v8847_v45 = vsub.f32 %v15581_v17, %v8846_v1 }
 0x780   :  { %8585 = vmatpush.msrb.mxu2 %v15289_v36  ;;  %8639 = vmatpush.msrb.mxu3 %v15327_v21  ;;  %v15970_v36 = vand.u32 4294901760, %v15342_v8  ;;  %v8822_v11 = vand.u32 4294901760, %v15526_v22  ;;  %v8818_v38 = vand.u32 4294901760, %v8817_v43 }
 0x781   :  { %8698 = vmatpush.msra.mxu0 %v15969_v24  ;;  %8743 = vmatpush.msra.mxu1 %v15292_v35  ;;  %v8805_v35 = vsub.f32 %v15494_v49, %v8804_v48  ;;  %v8828_v31 = vand.u32 4294901760, %v15540_v7  ;;  %v15623_v24 = vand.u32 4294901760, %v8034_v37 }
 0x782   :  { %8588 = vmatpush.msrb.mxu2 %v15295_v46  ;;  %8641 = vmatpush.msrb.mxu3 %v15334_v57  ;;  %v15542_v46 = vand.u32 4294901760, %v8052_v62  ;;  %v8823_v52 = vsub.f32 %v15526_v22, %v8822_v11 }
 0x783   :  { %8702 = vmatpush.msra.mxu0 %v15970_v36  ;;  %8745 = vmatpush.msra.mxu1 %v15318_v51  ;;  %v8811_v51 = vsub.f32 %v15504_v33, %v8810_v30  ;;  %v8829_v27 = vsub.f32 %v15540_v7, %v8828_v31  ;;  %v8028_v36 = vld [vmem:[#allocation7 + $0x28] sm:$0xff] }
 0x784   :  { %8591 = vmatpush.msrb.mxu2 %v15321_v20  ;;  %8643 = vmatpush.msrb.mxu3 %v15349_v44  ;;  %v15558_v20 = vsub.f32 %v8055_v54, %v15530_v12  ;;  %v15568_v2 = vsub.f32 %v8052_v62, %v15542_v46  ;;  %v8824_v42 = vand.u32 4294901760, %v8823_v52  ;;  %v15621_v62 = vsub.f32 %v8040_v4, %v15599_v59 }
 0x785   :  { %8706 = vmatpush.msra.mxu0 %v15971_v55  ;;  %8747 = vmatpush.msra.mxu1 %v15327_v21  ;;  %v8806_v21 = vand.u32 4294901760, %v8805_v35  ;;  %v8830_v19 = vand.u32 4294901760, %v8829_v27 }
 0x786   :  { %8594 = vmatpush.msrb.mxu2 %v15332_v23  ;;  %8645 = vmatpush.msrb.mxu3 %v15363_v47  ;;  %v8043_v23 = vld [vmem:[#allocation7 + $0xa0] sm:$0xff]  ;;  %v8840_v9 = vand.u32 4294901760, %v15568_v2  ;;  %v8864_v43 = vand.u32 4294901760, %v15621_v62 }
 0x787   :  { %8710 = vmatpush.msra.mxu0 %v15972_v61  ;;  %8749 = vmatpush.msra.mxu1 %v15334_v57  ;;  %v8812_v57 = vand.u32 4294901760, %v8811_v51  ;;  %v15586_v50 = vand.u32 4294901760, %v8043_v23  ;;  %v15633_v51 = vsub.f32 %v8037_v14, %v15611_v32  ;;  %v8025_v61 = vld [vmem:[#allocation7 + $0x10] sm:$0xff] }
 0x788   :  { %8597 = vmatpush.msrb.mxu2 %v15342_v8  ;;  %8647 = vmatpush.msrb.mxu3 %v15384_v56  ;;  %v8834_v8 = vand.u32 4294901760, %v15558_v20  ;;  %v8841_v54 = vsub.f32 %v15568_v2, %v8840_v9  ;;  %v8865_v27 = vsub.f32 %v15621_v62, %v8864_v43 }
 0x789   :  { %8714 = vmatpush.msra.mxu0 %v15973_v26  ;;  %8751 = vmatpush.msra.mxu1 %v15349_v44  ;;  %v15974_v44 = vand.u32 4294901760, %v15400_v0  ;;  %v15609_v34 = vsub.f32 %v8043_v23, %v15586_v50  ;;  %v15645_v23 = vsub.f32 %v8034_v37, %v15623_v24  ;;  %v15647_v26 = vand.u32 4294901760, %v8028_v36 }
 0x78a   :  { %8651 = vmatmul.f32.vlgmr.msrb.gmra.mxu3 %v15441_v25  ;;  %8600 = vmatpush.msrb.mxu2 %v15352_v18  ;;  %v15597_v18 = vsub.f32 %v8046_v60, %v15572_v63  ;;  %v8870_v52 = vand.u32 4294901760, %v15633_v51 }
 0x78b   :  { %8807 = vmatpush.msra.mxu3 %v8806_v21  ;;  %8718 = vmatpush.msra.mxu0 %v15974_v44  ;;  %v8858_v55 = vand.u32 4294901760, %v15609_v34  ;;  %v15659_v44 = vand.u32 4294901760, %v8025_v61  ;;  %v8876_v14 = vand.u32 4294901760, %v15645_v23 }
 0x78c   :  { %8753 = vmatpush.msra.mxu1 %v15363_v47  ;;  %8720 = vmatmul.f32.vlgmr.msra.gmra.mxu0 %v15431_v15  ;;  %v8835_v47 = vsub.f32 %v15558_v20, %v8834_v8 }
 0x78d   :  { %8813 = vmatpush.msra.mxu3 %v8812_v57  ;;  %8905 = vmatpush.msrb.mxu0 %v15494_v49  ;;  %v8859_v57 = vsub.f32 %v15609_v34, %v8858_v55 }
 0x78e   :  { %8603 = vmatpush.msrb.mxu2 %v15374_v10  ;;  %8755 = vmatpush.msra.mxu1 %v15384_v56  ;;  %v8031_v10 = vld [vmem:[#allocation7 + $0x40] sm:$0xff]  ;;  %v8852_v56 = vand.u32 4294901760, %v15597_v18  ;;  %v8836_v35 = vand.u32 4294901760, %v8835_v47  ;;  %v8871_v47 = vsub.f32 %v15633_v51, %v8870_v52 }
 0x78f   :  { %8757 = vmatmul.f32.vlgmr.msra.gmra.mxu1 %v15431_v15  ;;  %8819 = vmatpush.msra.mxu3 %v8818_v38  ;;  %v15635_v60 = vand.u32 4294901760, %v8031_v10  ;;  %v8860_v37 = vand.u32 4294901760, %v8859_v57 }
 0x790   :  { %8908 = vmatpush.msrb.mxu0 %v15504_v33  ;;  %8958 = vmatpush.msrb.mxu1 %v15479_v29  ;;  %v8853_v21 = vsub.f32 %v15597_v18, %v8852_v56 }
 0x791   :  { %8606 = vmatpush.msrb.mxu2 %v15387_v5  ;;  %8825 = vmatpush.msra.mxu3 %v8824_v42  ;;  %v8842_v5 = vand.u32 4294901760, %v8841_v54  ;;  %v15657_v4 = vsub.f32 %v8031_v10, %v15635_v60  ;;  %v15669_v42 = vsub.f32 %v8028_v36, %v15647_v26  ;;  %v15679_v54 = vsub.f32 %v8025_v61, %v15659_v44 }
 0x792   :  { %8911 = vmatpush.msrb.mxu0 %v15515_v3  ;;  %8960 = vmatpush.msrb.mxu1 %v15486_v16  ;;  %v8854_v38 = vand.u32 4294901760, %v8853_v21  ;;  %v8866_v10 = vand.u32 4294901760, %v8865_v27 }
 0x793   :  { %8609 = vmatpush.msrb.mxu2 %v15400_v0  ;;  %8831 = vmatpush.msra.mxu3 %v8830_v19  ;;  %v8848_v0 = vand.u32 4294901760, %v8847_v45  ;;  %v8882_v19 = vand.u32 4294901760, %v15657_v4  ;;  %v8877_v45 = vsub.f32 %v15645_v23, %v8876_v14  ;;  %v8888_v36 = vand.u32 4294901760, %v15669_v42 }
 0x794   :  { %8612 = vmatmul.f32.vlgmr.msrb.gmra.mxu2 %v15436_v53  ;;  %8914 = vmatpush.msrb.mxu0 %v15526_v22  ;;  %v8894_v61 = vand.u32 4294901760, %v15679_v54 }
 0x795   :  { %8762 = vmatpush.msra.mxu2 %v15479_v29  ;;  %8962 = vmatpush.msrb.mxu1 %v15496_v28  ;;  %v8878_v21 = vand.u32 4294901760, %v8877_v45 }
 0x796   :  { %8837 = vmatpush.msra.mxu3 %v8836_v35  ;;  %8917 = vmatpush.msrb.mxu0 %v15540_v7  ;;  %v8872_v35 = vand.u32 4294901760, %v8871_v47 }
 0x797   :  { %8764 = vmatpush.msra.mxu2 %v15486_v16  ;;  %8964 = vmatpush.msrb.mxu1 %v15506_v6 }
 0x798   :  { %8843 = vmatpush.msra.mxu3 %v8842_v5  ;;  %8920 = vmatpush.msrb.mxu0 %v15558_v20  ;;  %v8883_v5 = vsub.f32 %v15657_v4, %v8882_v19 }
 0x799   :  { %8766 = vmatpush.msra.mxu2 %v15496_v28  ;;  %8966 = vmatpush.msrb.mxu1 %v15517_v39 }
 0x79a   :  { %8849 = vmatpush.msra.mxu3 %v8848_v0  ;;  %8923 = vmatpush.msrb.mxu0 %v15568_v2  ;;  %v8889_v0 = vsub.f32 %v15669_v42, %v8888_v36  ;;  %v8884_v57 = vand.u32 4294901760, %v8883_v5  ;;  %v8022_v2 = vld [vmem:[#allocation2 + $0x15] sm:$0x7] }
 0x79b   :  { %8768 = vmatpush.msra.mxu2 %v15506_v6  ;;  %8968 = vmatpush.msrb.mxu1 %v15530_v12 }
 0x79c   :  { %8855 = vmatpush.msra.mxu3 %v8854_v38  ;;  %8926 = vmatpush.msrb.mxu0 %v15581_v17  ;;  %v8895_v38 = vsub.f32 %v15679_v54, %v8894_v61  ;;  %v8890_v27 = vand.u32 4294901760, %v8889_v0 }
 0x79d   :  { %8770 = vmatpush.msra.mxu2 %v15517_v39  ;;  %8970 = vmatpush.msrb.mxu1 %v15542_v46 }
 0x79e   :  { %8861 = vmatpush.msra.mxu3 %v8860_v37  ;;  %8929 = vmatpush.msrb.mxu0 %v15597_v18  ;;  %v8896_v37 = vand.u32 4294901760, %v8895_v38 }
 0x79f   :  { %8772 = vmatpush.msra.mxu2 %v15530_v12  ;;  %8972 = vmatpush.msrb.mxu1 %v15553_v40 }
 0x7a0   :  { %8867 = vmatpush.msra.mxu3 %v8866_v10  ;;  %8932 = vmatpush.msrb.mxu0 %v15609_v34 }
 0x7a1   :  { %8774 = vmatpush.msra.mxu2 %v15542_v46  ;;  %8974 = vmatpush.msrb.mxu1 %v15572_v63 }
 0x7a2   :  { %8873 = vmatpush.msra.mxu3 %v8872_v35  ;;  %8935 = vmatpush.msrb.mxu0 %v15621_v62 }
 0x7a3   :  { %8776 = vmatpush.msra.mxu2 %v15553_v40  ;;  %8976 = vmatpush.msrb.mxu1 %v15586_v50 }
 0x7a4   :  { %8879 = vmatpush.msra.mxu3 %v8878_v21  ;;  %8938 = vmatpush.msrb.mxu0 %v15633_v51 }
 0x7a5   :  { %8778 = vmatpush.msra.mxu2 %v15572_v63  ;;  %8978 = vmatpush.msrb.mxu1 %v15599_v59 }
 0x7a6   :  { %8885 = vmatpush.msra.mxu3 %v8884_v57  ;;  %8941 = vmatpush.msrb.mxu0 %v15645_v23 }
 0x7a7   :  { %8780 = vmatpush.msra.mxu2 %v15586_v50  ;;  %8980 = vmatpush.msrb.mxu1 %v15611_v32 }
 0x7a8   :  { %8891 = vmatpush.msra.mxu3 %v8890_v27  ;;  %8944 = vmatpush.msrb.mxu0 %v15657_v4 }
 0x7a9   :  { %8782 = vmatpush.msra.mxu2 %v15599_v59  ;;  %8982 = vmatpush.msrb.mxu1 %v15623_v24 }
 0x7aa   :  { %8897 = vmatpush.msra.mxu3 %v8896_v37  ;;  %8947 = vmatpush.msrb.mxu0 %v15669_v42 }
 0x7ab   :  { %8784 = vmatpush.msra.mxu2 %v15611_v32  ;;  %8984 = vmatpush.msrb.mxu1 %v15635_v60 }
 0x7ac   :  { %8899 = vmatmul.f32.vlgmr.msra.gmra.mxu3 %v15431_v15  ;;  %8950 = vmatpush.msrb.mxu0 %v15679_v54 }
 0x7ad   :  { %9066 = vmatpush.msrb.mxu3 %v15479_v29  ;;  %8786 = vmatpush.msra.mxu2 %v15623_v24 }
 0x7ae   :  { %8986 = vmatpush.msrb.mxu1 %v15647_v26  ;;  %8953 = vmatmul.f32.vlgmr.msrb.gmra.mxu0 %v15436_v53 }
 0x7af   :  { %9068 = vmatpush.msrb.mxu3 %v15486_v16  ;;  %8788 = vmatpush.msra.mxu2 %v15635_v60 }
 0x7b0   :  { %8988 = vmatpush.msrb.mxu1 %v15659_v44 }
 0x7b1   :  { %8992 = vmatmul.f32.vlgmr.msrb.gmra.mxu1 %v15441_v25  ;;  %9070 = vmatpush.msrb.mxu3 %v15496_v28  ;;  %v8071_v25 = vld [vmem:[#allocation8] sm:$0x7] }
 0x7b2   :  { %8790 = vmatpush.msra.mxu2 %v15647_v26  ;;  %v8073_v29 = vperm.slane %v8071_v25, 0  ;;  %v8075_v51 = vperm.slane %v8071_v25, 2 }
 0x7b3   :  { %9072 = vmatpush.msrb.mxu3 %v15506_v6 }
 0x7b4   :  { %8792 = vmatpush.msra.mxu2 %v15659_v44 }
 0x7b5   :  { %8798 = vmatmul.f32.vlgmr.msra.gmra.mxu2 %v15453_v41  ;;  %9074 = vmatpush.msrb.mxu3 %v15517_v39 }
 0x7b6   :  { %8999 = vmatpush.msrb.mxu2 %v8804_v48  ;;  %v8074_v48 = vperm.slane %v8071_v25, 1 }
 0x7b7   :  { %9076 = vmatpush.msrb.mxu3 %v15530_v12 }
 0x7b8   :  { %9003 = vmatpush.msrb.mxu2 %v8810_v30 }
 0x7b9   :  { %9078 = vmatpush.msrb.mxu3 %v15542_v46 }
 0x7ba   :  { %9007 = vmatpush.msrb.mxu2 %v8816_v58 }
 0x7bb   :  { %9080 = vmatpush.msrb.mxu3 %v15553_v40 }
 0x7bc   :  { %9011 = vmatpush.msrb.mxu2 %v8822_v11 }
 0x7bd   :  { %9082 = vmatpush.msrb.mxu3 %v15572_v63 }
 0x7be   :  { %9015 = vmatpush.msrb.mxu2 %v8828_v31 }
 0x7bf   :  { %9084 = vmatpush.msrb.mxu3 %v15586_v50 }
 0x7c0   :  { %9019 = vmatpush.msrb.mxu2 %v8834_v8 }
 0x7c1   :  { %9086 = vmatpush.msrb.mxu3 %v15599_v59 }
 0x7c2   :  { %9023 = vmatpush.msrb.mxu2 %v8840_v9  ;;  %v9123_v9 = vrot.slane %v8022_v2, 1 }
 0x7c3   :  { %9088 = vmatpush.msrb.mxu3 %v15611_v32 }
 0x7c4   :  { %9027 = vmatpush.msrb.mxu2 %v8846_v1 }
 0x7c5   :  { %9090 = vmatpush.msrb.mxu3 %v15623_v24 }
 0x7c6   :  { %9031 = vmatpush.msrb.mxu2 %v8852_v56 }
 0x7c7   :  { %9092 = vmatpush.msrb.mxu3 %v15635_v60 }
 0x7c8   :  { %9035 = vmatpush.msrb.mxu2 %v8858_v55 }
 0x7c9   :  { %9094 = vmatpush.msrb.mxu3 %v15647_v26 }
 0x7ca   :  { %9039 = vmatpush.msrb.mxu2 %v8864_v43 }
 0x7cb   :  { %9096 = vmatpush.msrb.mxu3 %v15659_v44 }
 0x7cc   :  { %9043 = vmatpush.msrb.mxu2 %v8870_v52  ;;  %9098 = vmatmul.f32.vlgmr.msrb.gmra.mxu3 %v15431_v15 }
 0x7ce   :  { %9047 = vmatpush.msrb.mxu2 %v8876_v14 }
 0x7d0   :  { %9051 = vmatpush.msrb.mxu2 %v8882_v19 }
 0x7d2   :  { %9055 = vmatpush.msrb.mxu2 %v8888_v36 }
 0x7d4   :  { %9059 = vmatpush.msrb.mxu2 %v8894_v61 }
 0x7d5   :  { %9061 = vmatmul.f32.vlgmr.msrb.gmra.mxu2 %v15431_v15 }
 0x7e6   :  { %v8272_v41 = vpop.f32.mrf.mxu0 }
 0x7e8   :  { %v8311_v16 = vpop.f32.mrf.mxu1 }
 0x7ea   :  { %v8218_v49 = vpop.f32.mrf.mxu3 }
 0x7ef   :  { %v8458_v3 = vpop.f32.mrf.mxu0 }
 0x7f0   :  { %v8459_v30 = vadd.f32 %v8458_v3, %v8074_v48 }
 0x7f2   :  { %v8117_v53 = vpop.f32.mrf.mxu2  ;;  %v8559_v22 = vpop.f32.mrf.mxu1 }
 0x7f3   :  { %v8118_v28 = vadd.f32 %v8117_v53, %v8073_v29  ;;  %v8417_v12 = vpop.f32.mrf.mxu3  ;;  %v8560_v46 = vadd.f32 %v8559_v22, %v8459_v30  ;;  %v9146_v53 = vrot.slane %v8022_v2, 2 }
 0x7f5   :  { %v8219_v33 = vadd.f32 %v8218_v49, %v8118_v28 }
 0x7f7   :  { %v8273_v39 = vadd.f32 %v8272_v41, %v8219_v33 }
 0x7f9   :  { %v8312_v58 = vadd.f32 %v8311_v16, %v8273_v39 }
 0x7fc   :  { %v8380_v6 = vpop.f32.mrf.mxu2 }
 0x7fd   :  { %v8381_v15 = vadd.f32 %v8380_v6, %v8312_v58 }
 0x7ff   :  { %v8418_v31 = vadd.f32 %v8417_v12, %v8381_v15 }
 0x801   :  { %v9102_v8 = vadd.f32 %v8418_v31, %v8022_v2 }
 0x803   :  { %v9191_v59 = vmul.f32 -1.442695, %v9102_v8 }
 0x805   :  { %9274 = vpow2.f32 %v9191_v59 }
 0x809   :  { %v8721_v63 = vpop.f32.mrf.mxu0 }
 0x80b   :  { %v9275_v32 = vpop.eup %9274 }
 0x80c   :  { %v8758_v50 = vpop.f32.mrf.mxu1  ;;  %v9106_v56 = vadd.f32 1.0, %v9275_v32 }
 0x80d   :  { %v8652_v40 = vpop.f32.mrf.mxu3 }
 0x80e   :  { %v9118_v36 = vand.u32 2147483648, %v9106_v56  ;;  %vm9112_vm9 = vweird.f32 %v9106_v56  ;;  %v9116_v5 = vand.u32 2147483647, %v9106_v56 }
 0x810   :  { %v9119_v27 = vor.u32 1.1754944e-38, %v9118_v36  ;;  %vm9117_vm11 = vcmp.eq.f32.partialorder %v9116_v5, 8.507059e+37 }
 0x817   :  { %v8613_v7 = vpop.f32.mrf.mxu2 }
 0x818   :  { %v8614_v11 = vadd.f32 %v8613_v7, %v8560_v46 }
 0x81a   :  { %v8653_v20 = vadd.f32 %v8652_v40, %v8614_v11 }
 0x81c   :  { %v8722_v17 = vadd.f32 %v8721_v63, %v8653_v20 }
 0x81e   :  { %v8759_v18 = vadd.f32 %v8758_v50, %v8722_v17 }
 0x820   :  { %v9125_v1 = vadd.f32 %v9123_v9, %v8759_v18 }
 0x822   :  { %v9192_v34 = vmul.f32 -1.442695, %v9125_v1 }
 0x824   :  { %9276 = vpow2.f32 %v9192_v34 }
 0x825   :  { %9278 = vrcp.f32 %v9106_v56 }
 0x82a   :  { %v9277_v62 = vpop.eup %9276 }
 0x82b   :  { %v9129_v24 = vadd.f32 1.0, %v9277_v62  ;;  %v9279_v55 = vpop.eup %9278  ;;  %v8954_v47 = vpop.f32.mrf.mxu0 }
 0x82c   :  { %v9108_v43 = vmul.f32 %v9279_v55, %v9106_v56  ;;  %vm9113_vm8 = vweird.f32 %v9279_v55 }
 0x82d   :  { %9280 = vrcp.f32 %v9129_v24  ;;  %vm9114_vm10 = vmor %vm9112_vm9, %vm9113_vm8  ;;  %v9141_v29 = vand.u32 2147483648, %v9129_v24  ;;  %vm9135_vm13 = vweird.f32 %v9129_v24  ;;  %v9139_v49 = vand.u32 2147483647, %v9129_v24 }
 0x82e   :  { %v9109_v52 = vsub.f32 1.0, %v9108_v43  ;;  %v8993_v45 = vpop.f32.mrf.mxu1 }
 0x82f   :  { %v8900_v4 = vpop.f32.mrf.mxu3  ;;  %v9142_v6 = vor.u32 1.1754944e-38, %v9141_v29  ;;  %vm9140_vm15 = vcmp.eq.f32.partialorder %v9139_v49, 8.507059e+37 }
 0x830   :  { %v9110_v42 = vmul.f32 %v9279_v55, %v9109_v52 }
 0x832   :  { %v9111_v10 = vadd.f32 %v9279_v55, %v9110_v42 }
 0x833   :  { %v9281_v26 = vpop.eup %9280 }
 0x834   :  { %v9131_v14 = vmul.f32 %v9281_v26, %v9129_v24  ;;  %v9115_v57 = vsel %vm9114_vm10, %v9279_v55, %v9111_v10  ;;  %vm9136_vm12 = vweird.f32 %v9281_v26 }
 0x835   :  { %v9120_v25 = vsel %vm9117_vm11, %v9119_v27, %v9115_v57  ;;  %vm9137_vm14 = vmor %vm9135_vm13, %vm9136_vm12 }
 0x836   :  { %v9132_v54 = vsub.f32 1.0, %v9131_v14 }
 0x838   :  { %v8799_v60 = vpop.f32.mrf.mxu2  ;;  %v9133_v21 = vmul.f32 %v9281_v26, %v9132_v54 }
 0x839   :  { %v8800_v23 = vadd.f32 %v8799_v60, %v8075_v51 }
 0x83a   :  { %v9134_v41 = vadd.f32 %v9281_v26, %v9133_v21 }
 0x83b   :  { %v8901_v44 = vadd.f32 %v8900_v4, %v8800_v23 }
 0x83c   :  { %v9138_v33 = vsel %vm9137_vm14, %v9281_v26, %v9134_v41 }
 0x83d   :  { %v8955_v19 = vadd.f32 %v8954_v47, %v8901_v44  ;;  %v9143_v48 = vsel %vm9140_vm15, %v9142_v6, %v9138_v33 }
 0x83e   :  { %v9150_v3 = vsub.f32 1.0, %v9143_v48  ;;  %v9152_v22 = vmul.f32 %v9143_v48, %v15427_v13 }
 0x83f   :  { %v8994_v35 = vadd.f32 %v8993_v45, %v8955_v19 }
 0x84f   :  { %v9099_v38 = vpop.f32.mrf.mxu3 }
 0x858   :  { %v9062_v61 = vpop.f32.mrf.mxu2 }
 0x859   :  { %v9063_v0 = vadd.f32 %v9062_v61, %v8994_v35 }
 0x85b   :  { %v9100_v37 = vadd.f32 %v9099_v38, %v9063_v0 }
 0x85d   :  { %v9145_v16 = vmul.f32 %v9120_v25, %v9100_v37 }
 0x85f   :  { %v9148_v28 = vadd.f32 %v9146_v53, %v9145_v16 }
 0x861   :  { %9282 = vtanh.f32 %v9148_v28 }
 0x867   :  { %v9283_v39 = vpop.eup %9282 }
 0x868   :  { %v9151_v30 = vmul.f32 %v9283_v39, %v9150_v3 }
 0x86a   :  { %v9153_v12 = vadd.f32 %v9152_v22, %v9151_v30 }
 0x86c   :  { %9155 = vst [vmem:[#allocation10 + $0x7] sm:$0x1] %v9153_v12 }
 0x86d   :  { %9168 = dma.vmem_to_hbm [thread:$0]  %s9161_s3, 128, %s9163_s13, [#allocation4], %s9422_s14, %s9422_s14, %s9423_s15  }
 0x86e   :  { %9411 = dma.done.wait [#allocation4], 128  }
 0x86f   :  { %9412 = vsyncadd [#allocation4], 4294967168 }
 0x870   :  { %9173 = vsyncpa [#allocation3], 1 }
 0x871   :  { %9174 = vsyncpa [#allocation6], 1 }
 0x872   :  { %9175 = vsyncpa [#allocation9], 1 }
 0x873   :  { %9176 = vsyncpa [#allocation4], 1 }

</bundles_post_ra>
